<compile_context>
chip_gen: v5e
topology: v5e:2x2
jax: 0.10.0
libtpu: 0.0.40
codegen_flags: <defaults>
</compile_context>

<pallas_src>
import functools

import numpy as np
import jax
import jax.numpy as jnp
from jax import lax
from jax.experimental import pallas as pl
from jax.experimental.pallas import tpu as pltpu


_LANE_TILE_1D = 256          # 256-wide MXU on v6e/v7x; grid=(2,) at B*H*W=512
_LEAKY_SLOPE = 0.01          # TODO(synk): PyTorch LeakyReLU default; real config unknown.
_SQRT_2_OVER_PI = 0.7978845608028654


def _round_up(x, m):
    return (x + m - 1) // m * m


# ----------------------------------------------------------------------------
# In-kernel math helpers
# ----------------------------------------------------------------------------

def _norm_cdf(t):
    # TODO(synk): tanh approximation of the erf-based standard normal CDF.
    return 0.5 * (1.0 + jnp.tanh(_SQRT_2_OVER_PI * (t + 0.044715 * t * t * t)))


def _interval_likelihood(vhat, mu, scale):
    s = jnp.maximum(scale, 0.11)          # compressai scale lower bound
    inv_s = 1.0 / s                       # exact reciprocal: likelihoods are model outputs
    upper = _norm_cdf((vhat + 0.5 - mu) * inv_s)
    lower = _norm_cdf((vhat - 0.5 - mu) * inv_s)
    return jnp.clip(upper - lower, 1e-9, 1.0)


def _mm(x, w_ref, b_ref):
    """(B, Fin) @ (Fin, Fout) bf16 MXU matmul, f32 accumulation, + bias."""
    return (jnp.dot(x.astype(jnp.bfloat16), w_ref[...],
                    preferred_element_type=jnp.float32) + b_ref[...])


# ----------------------------------------------------------------------------
# Kernel 1: whole inner 2D scale-hyperprior autoencoder, one launch.
#   Layout: batch on sublanes (padded to 8), flattened (c, h, w) features on
#   lanes.  Convs / upsampling / padding / striding are pre-folded into dense
#   (Fin, Fout) matrices; GDN channel mixing into block (F, F) matrices.
# ----------------------------------------------------------------------------

def _inner_hyperprior_kernel(
        lat_ref,
        wga1_ref, bga1_ref, gmgdn_ref, begdn_ref,
        wga2_ref, bga2_ref,
        wha1_ref, bha1_ref,
        wha2_ref, bha2_ref, ebmu_ref, ebsc_ref,
        whs1_ref, bhs1_ref,
        whs2_ref, bhs2_ref,
        wgs1_ref, bgs1_ref, gmigdn_ref, beigdn_ref,
        wgs2_ref, bgs2_ref,
        xhat_ref, ylik_ref, zlik_ref):
    f32 = jnp.float32
    x = lat_ref[...]                                           # (8, F_lat) bf16

    # ---- g_a: conv1 (stride 2) + GDN ---------------------------------------
    a1 = _mm(x, wga1_ref, bga1_ref)
    # GDN: norm_i = beta_i + sum_j gamma[i, j] * a1_j^2 (same pixel), expressed
    # as one f32 matmul against the pre-folded block matrix (keeps f32
    # precision for acc*acc; MXU is idle anyway at this size).
    norm = (jnp.dot(a1 * a1, gmgdn_ref[...], preferred_element_type=f32)
            + begdn_ref[...])
    h1 = a1 * lax.rsqrt(jnp.maximum(norm, 1e-6))

    # ---- g_a: conv2 (stride 2) -> y -----------------------------------------
    y = _mm(h1, wga2_ref, bga2_ref)

    # ---- h_a: conv1 on |y| + ReLU; conv2 (stride 2) -> z --------------------
    t = jnp.maximum(_mm(jnp.abs(y), wha1_ref, bha1_ref), 0.0)
    z = _mm(t, wha2_ref, bha2_ref)

    # ---- entropy bottleneck: quantize z + factorized(-surrogate) likelihood --
    z_hat = jnp.round(z)   # TODO(synk): eval-mode rounding (no additive noise).
    zlik_ref[...] = _interval_likelihood(z_hat, ebmu_ref[...], ebsc_ref[...])

    # ---- h_s: (2x up) conv1 + ReLU; conv2 -> scales --------------------------
    u = jnp.maximum(_mm(z_hat, whs1_ref, bhs1_ref), 0.0)
    scales = _mm(u, whs2_ref, bhs2_ref)

    # ---- Gaussian conditional: quantize y + zero-mean likelihood ------------
    y_hat = jnp.round(y)
    ylik_ref[...] = _interval_likelihood(y_hat, 0.0, scales)

    # ---- g_s: (2x up) conv1 + IGDN; (2x up) conv2 -> x_hat_inner ------------
    g1 = _mm(y_hat, wgs1_ref, bgs1_ref)
    normi = (jnp.dot(g1 * g1, gmigdn_ref[...], preferred_element_type=f32)
             + beigdn_ref[...])
    g1 = g1 * jnp.sqrt(jnp.maximum(normi, 1e-6))
    xhat_ref[...] = _mm(g1, wgs2_ref, bgs2_ref)


def inner_hyperprior_call(ip, lat_bl):
    """ip: dict of pre-folded/pre-cast parameter arrays; lat_bl: (8, F_lat) bf16."""
    args = (lat_bl,
            ip["wga1"], ip["bga1"], ip["gmgdn"], ip["begdn"],
            ip["wga2"], ip["bga2"],
            ip["wha1"], ip["bha1"],
            ip["wha2"], ip["bha2"], ip["ebmu"], ip["ebsc"],
            ip["whs1"], ip["bhs1"],
            ip["whs2"], ip["bhs2"],
            ip["wgs1"], ip["bgs1"], ip["gmigdn"], ip["beigdn"],
            ip["wgs2"], ip["bgs2"])
    in_specs = [pl.BlockSpec(a.shape, lambda i: (0, 0)) for a in args]

    F_x = ip["wgs2"].shape[1]
    F_y = ip["whs2"].shape[1]
    F_z = ip["wha2"].shape[1]
    out_shape = (jax.ShapeDtypeStruct((8, F_x), jnp.float32),   # x_hat_inner
                 jax.ShapeDtypeStruct((8, F_y), jnp.float32),   # y_likelihoods
                 jax.ShapeDtypeStruct((8, F_z), jnp.float32))   # z_likelihoods
    out_specs = tuple(pl.BlockSpec(s.shape, lambda i: (0, 0)) for s in out_shape)

    flops = 2 * 8 * sum(int(ip[k].shape[0]) * int(ip[k].shape[1])
                        for k in ("wga1", "gmgdn", "wga2", "wha1", "wha2",
                                  "whs1", "whs2", "wgs1", "gmigdn", "wgs2"))
    transcendentals = 8 * (4 * (F_y + F_z)
                           + 2 * int(ip["gmgdn"].shape[0])
                           + 2 * int(ip["gmigdn"].shape[0]))
    bytes_accessed = (sum(int(a.size) * a.dtype.itemsize for a in args)
                      + sum(int(np.prod(s.shape)) * 4 for s in out_shape))

    return pl.pallas_call(
        _inner_hyperprior_kernel,
        out_shape=out_shape,
        grid=(1,),
        in_specs=in_specs,
        out_specs=out_specs,
        compiler_params=pltpu.CompilerParams(dimension_semantics=("arbitrary",)),
        cost_estimate=pl.CostEstimate(flops=int(flops),
                                      transcendentals=int(transcendentals),
                                      bytes_accessed=int(bytes_accessed)),
    )(*args)


# ----------------------------------------------------------------------------
# Kernel 2: fused outer 1D conv stack (block-Toeplitz over the spectral axis),
# pixels lane-dense (256-wide tiles), intra-stack activations bf16.
# ----------------------------------------------------------------------------

def _conv1d_stack_kernel(*refs, num_layers):
    x_ref, o_ref = refs[0], refs[-1]
    h = x_ref[...]                                      # bf16 (F0, TILE)
    out = None
    for li in range(num_layers):
        w = refs[1 + 2 * li][...]                       # bf16 (Fout, Fin)
        b = refs[2 + 2 * li][...]                       # f32  (Fout, 1)
        acc = jnp.dot(w, h, preferred_element_type=jnp.float32) + b
        if li < num_layers - 1:
            acc = jnp.where(acc >= 0.0, acc, _LEAKY_SLOPE * acc)
            h = acc.astype(jnp.bfloat16)
        else:
            out = acc
    o_ref[...] = out


def conv1d_stack_cm(x_cm, weights_bf16, biases_f32):
    """x_cm: (rows, Npix); weights pre-folded block-Toeplitz (bf16), biases
    (Fout, 1) f32.  Returns (F_last, Npix) f32."""
    F0 = weights_bf16[0].shape[1]
    Fl = weights_bf16[-1].shape[0]
    rows, Np = x_cm.shape
    Npad = _round_up(Np, _LANE_TILE_1D)
    xp = jnp.pad(x_cm, ((0, F0 - rows), (0, Npad - Np))).astype(jnp.bfloat16)

    in_specs = [pl.BlockSpec((F0, _LANE_TILE_1D), lambda i: (0, i))]
    args = [xp]
    for w, b in zip(weights_bf16, biases_f32):
        fo, fi = w.shape
        in_specs.append(pl.BlockSpec((fo, fi), lambda i: (0, 0)))
        in_specs.append(pl.BlockSpec((fo, 1), lambda i: (0, 0)))
        args.append(w)
        args.append(b)

    out = pl.pallas_call(
        functools.partial(_conv1d_stack_kernel, num_layers=len(weights_bf16)),
        out_shape=jax.ShapeDtypeStruct((Fl, Npad), jnp.float32),
        grid=(Npad // _LANE_TILE_1D,),
        in_specs=in_specs,
        out_specs=pl.BlockSpec((Fl, _LANE_TILE_1D), lambda i: (0, i)),
        compiler_params=pltpu.CompilerParams(dimension_semantics=("parallel",)),
    )(*args)
    return out[:, :Np]


# ----------------------------------------------------------------------------
# One-time (init) folding of convs into dense matrices — all done in numpy.
# ----------------------------------------------------------------------------

def _toeplitz_1d(w, Lin, stride, pad, upsample):
    """Fold (optional nearest-upsample +) conv1d into a dense matrix over the
    flattened (channel, position) axis."""
    Cout, Cin, k = w.shape
    Lu = Lin * upsample
    Lout = (Lu + 2 * pad - k) // stride + 1
    Wf = np.zeros((Cout * Lout, Cin * Lin), np.float32)
    for co in range(Cout):
        for l in range(Lout):
            for ci in range(Cin):
                for j in range(k):
                    p = stride * l + j - pad
                    if 0 <= p < Lu:
                        Wf[co * Lout + l, ci * Lin + p // upsample] += w[co, ci, j]
    return Wf, Lout


def _build_1d_stack(layers, Lin0, stride, pad, upsample):
    Ws, bs = [], []
    Lin = Lin0
    Fin = _round_up(layers[0][0].shape[1] * Lin0, 8)
    for w, b in layers:
        Cout = w.shape[0]
        Wf, Lout = _toeplitz_1d(w, Lin, stride, pad, upsample)
        Fout = _round_up(Cout * Lout, 8)
        Wp = np.zeros((Fout, Fin), np.float32)
        Wp[:Cout * Lout, :Wf.shape[1]] = Wf
        bp = np.zeros((Fout,), np.float32)
        bp[:Cout * Lout] = np.repeat(b, Lout)
        Ws.append(jnp.asarray(Wp, dtype=jnp.bfloat16))
        bs.append(jnp.asarray(bp.reshape(Fout, 1), dtype=jnp.float32))
        Fin, Lin = Fout, Lout
    return Ws, bs


def _fold_conv2d(w, b, Hin, Win, stride, pad, upsample):
    """Fold (2x-nearest-upsample +) conv2d into a dense per-sample matrix M so
    that out_flat = x_flat @ M + b_flat over the flattened (c, h, w) axis."""
    Cout, Cin, kh, kw = w.shape
    Hu, Wu = Hin * upsample, Win * upsample
    Hout = (Hu + 2 * pad - kh) // stride + 1
    Wout = (Wu + 2 * pad - kw) // stride + 1
    M = np.zeros((Cin * Hin * Win, Cout * Hout * Wout), np.float32)
    for co in range(Cout):
        for r in range(Hout):
            for c in range(Wout):
                oidx = (co * Hout + r) * Wout + c
                for ci in range(Cin):
                    for dy in range(kh):
                        ru = r * stride + dy - pad
                        if not (0 <= ru < Hu):
                            continue
                        hi = ru // upsample
                        for dx in range(kw):
                            cu = c * stride + dx - pad
                            if not (0 <= cu < Wu):
                                continue
                            wi = cu // upsample
                            M[(ci * Hin + hi) * Win + wi, oidx] += w[co, ci, dy, dx]
    b_flat = np.repeat(b, Hout * Wout)
    return M, b_flat, Hout, Wout


def _fold_gdn_gamma(gamma, hw):
    """norm_flat = sq_flat @ G, with G[j*hw + p, i*hw + p] = gamma[i, j]."""
    C = gamma.shape[0]
    G = np.zeros((C * hw, C * hw), np.float32)
    idx = np.arange(hw)
    for i in range(C):
        for j in range(C):
            G[j * hw + idx, i * hw + idx] = gamma[i, j]
    return G


def init_params(seed, nChannels, innerChannels, H, W, n_lat=8, m_hyp=8):
    rng = np.random.default_rng(seed)

    def conv_w(shape):
        fan_in = int(np.prod(shape[1:]))
        return (rng.standard_normal(shape) / np.sqrt(fan_in)).astype(np.float32)

    # ---- outer 1D stacks (num_poolings = 4) ---------------------------------
    enc_ch = [1, 8, 8, 8, 1]
    enc_layers = [(conv_w((co, ci, 3)), np.zeros((co,), np.float32))
                  for ci, co in zip(enc_ch[:-1], enc_ch[1:])]
    dec_layers = [(conv_w((co, ci, 3)), np.zeros((co,), np.float32))
                  for ci, co in zip(enc_ch[:-1], enc_ch[1:])]
    enc_W, enc_b = _build_1d_stack(enc_layers, Lin0=nChannels,
                                   stride=2, pad=1, upsample=1)
    dec_W, dec_b = _build_1d_stack(dec_layers, Lin0=innerChannels,
                                   stride=1, pad=1, upsample=2)

    # ---- inner 2D hyperprior, folded to per-sample dense matrices ----------
    C, N, M = innerChannels, n_lat, m_hyp

    wga1, bga1, h1, w1 = _fold_conv2d(conv_w((N, C, 5, 5)), np.zeros(N, np.float32),
                                      H, W, 2, 2, 1)
    gdn_gamma = (0.1 * np.eye(N) + 1e-3).astype(np.float32)
    gdn_beta = np.ones(N, np.float32)
    gmgdn = _fold_gdn_gamma(gdn_gamma, h1 * w1)
    begdn = np.repeat(gdn_beta, h1 * w1)

    wga2, bga2, h2, w2 = _fold_conv2d(conv_w((N, N, 5, 5)), np.zeros(N, np.float32),
                                      h1, w1, 2, 2, 1)
    wha1, bha1, h3, w3 = _fold_conv2d(conv_w((M, N, 3, 3)), np.zeros(M, np.float32),
                                      h2, w2, 1, 1, 1)
    wha2, bha2, h4, w4 = _fold_conv2d(conv_w((M, M, 5, 5)), np.zeros(M, np.float32),
                                      h3, w3, 2, 2, 1)

    # TODO(synk): Gaussian surrogate for the learned factorized prior.
    eb_mean = np.zeros(M, np.float32)
    eb_scale = np.exp(np.zeros(M, np.float32))          # exp folded at init
    ebmu = np.repeat(eb_mean, h4 * w4)
    ebsc = np.repeat(eb_scale, h4 * w4)

    whs1, bhs1, h5, w5 = _fold_conv2d(conv_w((N, M, 3, 3)), np.zeros(N, np.float32),
                                      h4, w4, 1, 1, 2)
    whs2, bhs2, h6, w6 = _fold_conv2d(conv_w((N, N, 3, 3)), np.zeros(N, np.float32),
                                      h5, w5, 1, 1, 1)

    wgs1, bgs1, h7, w7 = _fold_conv2d(conv_w((N, N, 5, 5)), np.zeros(N, np.float32),
                                      h6, w6, 1, 2, 2)
    igdn_gamma = (0.1 * np.eye(N) + 1e-3).astype(np.float32)
    igdn_beta = np.ones(N, np.float32)
    gmigdn = _fold_gdn_gamma(igdn_gamma, h7 * w7)
    beigdn = np.repeat(igdn_beta, h7 * w7)

    wgs2, bgs2, h8, w8 = _fold_conv2d(conv_w((C, N, 5, 5)), np.zeros(C, np.float32),
                                      h7, w7, 1, 2, 2)
    assert (h8, w8) == (H, W)

    def Wm(a):   # bf16 MXU operand
        return jnp.asarray(a, dtype=jnp.bfloat16)

    def Vb(a):   # per-feature vector broadcast over the 8 padded batch rows
        return jnp.asarray(np.broadcast_to(a.astype(np.float32),
                                           (8, a.shape[0])).copy())

    inner = dict(
        wga1=Wm(wga1), bga1=Vb(bga1), gmgdn=jnp.asarray(gmgdn), begdn=Vb(begdn),
        wga2=Wm(wga2), bga2=Vb(bga2),
        wha1=Wm(wha1), bha1=Vb(bha1),
        wha2=Wm(wha2), bha2=Vb(bha2), ebmu=Vb(ebmu), ebsc=Vb(ebsc),
        whs1=Wm(whs1), bhs1=Vb(bhs1),
        whs2=Wm(whs2), bhs2=Vb(bhs2),
        wgs1=Wm(wgs1), bgs1=Vb(bgs1), gmigdn=jnp.asarray(gmigdn), beigdn=Vb(beigdn),
        wgs2=Wm(wgs2), bgs2=Vb(bgs2),
    )
    return {"enc_W": enc_W, "enc_b": enc_b, "dec_W": dec_W, "dec_b": dec_b,
            "inner": inner}


# ----------------------------------------------------------------------------
# Model forward (3 pallas_calls + a handful of tiny boundary reshapes)
# ----------------------------------------------------------------------------

def combined_forward(params, x, nChannels, innerChannels, H, W):
    """x: (B, nChannels, H*W) -> (x_hat, x_hat_inner, latent_image, y_lik, z_lik)."""
    B = x.shape[0]
    assert B <= 8
    L = H * W

    # ---- outer 1D encoder (spectral features on sublanes, pixels on lanes) --
    x_cm = x.transpose(1, 0, 2).reshape(nChannels, B * L)
    enc_out = conv1d_stack_cm(x_cm, params["enc_W"], params["enc_b"])
    latent_image = (enc_out[:innerChannels]
                    .reshape(innerChannels, B, H, W).transpose(1, 0, 2, 3))

    # ---- inner 2D hyperprior: one fused pallas_call --------------------------
    lat_bl = latent_image.reshape(B, innerChannels * H * W)
    lat_bl = jnp.pad(lat_bl, ((0, 8 - B), (0, 0))).astype(jnp.bfloat16)
    xhat_bl, ylik_bl, zlik_bl = inner_hyperprior_call(params["inner"], lat_bl)

    x_hat_inner = xhat_bl[:B].reshape(B, innerChannels, H, W)
    Hy, Wy = H // 4, W // 4
    Hz, Wz = H // 8, W // 8
    n_lat = ylik_bl.shape[1] // (Hy * Wy)
    m_hyp = zlik_bl.shape[1] // (Hz * Wz)
    y_lik = ylik_bl[:B].reshape(B, n_lat, Hy, Wy)
    z_lik = zlik_bl[:B].reshape(B, m_hyp, Hz, Wz)

    # ---- outer 1D decoder ----------------------------------------------------
    d_cm = x_hat_inner.transpose(1, 0, 2, 3).reshape(innerChannels, B * L)
    dec_out = conv1d_stack_cm(d_cm, params["dec_W"], params["dec_b"])
    x_hat = dec_out[:nChannels].reshape(nChannels, B, L).transpose(1, 0, 2)

    return x_hat, x_hat_inner, latent_image, y_lik, z_lik


# ----------------------------------------------------------------------------
# Main
# ----------------------------------------------------------------------------

if __name__ == "__main__":
    B, nChannels, H, W = 2, 32, 16, 16
    innerChannels = nChannels // (2 ** 4)      # 4 poolings in the outer encoder

    key = jax.random.PRNGKey(0)
    x = jax.random.normal(key, (B, nChannels, H * W), dtype=jnp.float32)
    params = init_params(42, nChannels, innerChannels, H, W)

    fwd = jax.jit(functools.partial(
        combined_forward, nChannels=nChannels, innerChannels=innerChannels,
        H=H, W=W))
    outs = jax.block_until_ready(fwd(params, x))

    x_hat, x_hat_inner, latent_image, y_lik, z_lik = outs
    assert x_hat.shape == (B, nChannels, H * W)
    assert x_hat_inner.shape == (B, innerChannels, H, W)
    assert latent_image.shape == (B, innerChannels, H, W)
    assert y_lik.shape == (B, 8, H // 4, W // 4)
    assert z_lik.shape == (B, 8, H // 8, W // 8)
    assert all(bool(jnp.all(jnp.isfinite(o))) for o in outs)

    print("KERNEL_OK")
</pallas_src>

<mosaic_0001>
module attributes {stable_mosaic.version = 11 : i64} {
  func.func @_conv1d_stack_kernel(%arg0: i32, %arg1: memref<32x256xbf16, #tpu.memory_space<vmem>>, %arg2: memref<128x32xbf16, #tpu.memory_space<vmem>>, %arg3: memref<128x1xf32, #tpu.memory_space<vmem>>, %arg4: memref<64x128xbf16, #tpu.memory_space<vmem>>, %arg5: memref<64x1xf32, #tpu.memory_space<vmem>>, %arg6: memref<32x64xbf16, #tpu.memory_space<vmem>>, %arg7: memref<32x1xf32, #tpu.memory_space<vmem>>, %arg8: memref<8x32xbf16, #tpu.memory_space<vmem>>, %arg9: memref<8x1xf32, #tpu.memory_space<vmem>>, %arg10: memref<8x256xf32, #tpu.memory_space<vmem>>) attributes {dimension_semantics = [#tpu.dimension_semantics<parallel>], iteration_bounds = array<i64: 2>, scalar_prefetch = 0 : i64, scratch_operands = 0 : i64, tpu.core_type = #tpu.core_type<tc>, window_params = [{transform_indices = @transform_0, window_bounds = array<i64: 32, 256>}, {pipeline_mode = #tpu.pipeline_mode<synchronous>, transform_indices = @transform_1, window_bounds = array<i64: 128, 32>}, {pipeline_mode = #tpu.pipeline_mode<synchronous>, transform_indices = @transform_2, window_bounds = array<i64: 128, 1>}, {pipeline_mode = #tpu.pipeline_mode<synchronous>, transform_indices = @transform_3, window_bounds = array<i64: 64, 128>}, {pipeline_mode = #tpu.pipeline_mode<synchronous>, transform_indices = @transform_4, window_bounds = array<i64: 64, 1>}, {pipeline_mode = #tpu.pipeline_mode<synchronous>, transform_indices = @transform_5, window_bounds = array<i64: 32, 64>}, {pipeline_mode = #tpu.pipeline_mode<synchronous>, transform_indices = @transform_6, window_bounds = array<i64: 32, 1>}, {pipeline_mode = #tpu.pipeline_mode<synchronous>, transform_indices = @transform_7, window_bounds = array<i64: 8, 32>}, {pipeline_mode = #tpu.pipeline_mode<synchronous>, transform_indices = @transform_8, window_bounds = array<i64: 8, 1>}, {transform_indices = @transform_9, window_bounds = array<i64: 8, 256>}]} {
    %c0 = arith.constant 0 : index
    %c0_0 = arith.constant 0 : index
    %0 = vector.load %arg1[%c0, %c0_0] : memref<32x256xbf16, #tpu.memory_space<vmem>>, vector<32x256xbf16>
    %c0_1 = arith.constant 0 : index
    %c0_2 = arith.constant 0 : index
    %1 = vector.load %arg2[%c0_1, %c0_2] : memref<128x32xbf16, #tpu.memory_space<vmem>>, vector<128x32xbf16>
    %c0_3 = arith.constant 0 : index
    %c0_4 = arith.constant 0 : index
    %2 = vector.load %arg3[%c0_3, %c0_4] : memref<128x1xf32, #tpu.memory_space<vmem>>, vector<128x1xf32>
    %cst = arith.constant dense<0.000000e+00> : vector<128x256xf32>
    %3 = tpu.matmul %1, %0, %cst {dimension_numbers = #tpu.dot_dimension_numbers<[1], [0], [0], [1], [0, 0, 1, 1], [], []>} : vector<128x32xbf16>, vector<32x256xbf16>, vector<128x256xf32> -> vector<128x256xf32>
    %4 = vector.broadcast %2 : vector<128x1xf32> to vector<128x256xf32>
    %5 = arith.addf %3, %4 : vector<128x256xf32>
    %cst_5 = arith.constant 0.000000e+00 : f32
    %6 = vector.broadcast %cst_5 : f32 to vector<128x256xf32>
    %7 = arith.cmpf oge, %5, %6 : vector<128x256xf32>
    %cst_6 = arith.constant 0.00999999977 : f32
    %8 = vector.broadcast %cst_6 : f32 to vector<128x256xf32>
    %9 = arith.mulf %8, %5 : vector<128x256xf32>
    %10 = arith.select %7, %5, %9 : vector<128x256xi1>, vector<128x256xf32>
    %11 = arith.truncf %10 : vector<128x256xf32> to vector<128x256xbf16>
    %c0_7 = arith.constant 0 : index
    %c0_8 = arith.constant 0 : index
    %12 = vector.load %arg4[%c0_7, %c0_8] : memref<64x128xbf16, #tpu.memory_space<vmem>>, vector<64x128xbf16>
    %c0_9 = arith.constant 0 : index
    %c0_10 = arith.constant 0 : index
    %13 = vector.load %arg5[%c0_9, %c0_10] : memref<64x1xf32, #tpu.memory_space<vmem>>, vector<64x1xf32>
    %cst_11 = arith.constant dense<0.000000e+00> : vector<64x256xf32>
    %14 = tpu.matmul %12, %11, %cst_11 {dimension_numbers = #tpu.dot_dimension_numbers<[1], [0], [0], [1], [0, 0, 1, 1], [], []>} : vector<64x128xbf16>, vector<128x256xbf16>, vector<64x256xf32> -> vector<64x256xf32>
    %15 = vector.broadcast %13 : vector<64x1xf32> to vector<64x256xf32>
    %16 = arith.addf %14, %15 : vector<64x256xf32>
    %cst_12 = arith.constant 0.000000e+00 : f32
    %17 = vector.broadcast %cst_12 : f32 to vector<64x256xf32>
    %18 = arith.cmpf oge, %16, %17 : vector<64x256xf32>
    %cst_13 = arith.constant 0.00999999977 : f32
    %19 = vector.broadcast %cst_13 : f32 to vector<64x256xf32>
    %20 = arith.mulf %19, %16 : vector<64x256xf32>
    %21 = arith.select %18, %16, %20 : vector<64x256xi1>, vector<64x256xf32>
    %22 = arith.truncf %21 : vector<64x256xf32> to vector<64x256xbf16>
    %c0_14 = arith.constant 0 : index
    %c0_15 = arith.constant 0 : index
    %23 = vector.load %arg6[%c0_14, %c0_15] : memref<32x64xbf16, #tpu.memory_space<vmem>>, vector<32x64xbf16>
    %c0_16 = arith.constant 0 : index
    %c0_17 = arith.constant 0 : index
    %24 = vector.load %arg7[%c0_16, %c0_17] : memref<32x1xf32, #tpu.memory_space<vmem>>, vector<32x1xf32>
    %cst_18 = arith.constant dense<0.000000e+00> : vector<32x256xf32>
    %25 = tpu.matmul %23, %22, %cst_18 {dimension_numbers = #tpu.dot_dimension_numbers<[1], [0], [0], [1], [0, 0, 1, 1], [], []>} : vector<32x64xbf16>, vector<64x256xbf16>, vector<32x256xf32> -> vector<32x256xf32>
    %26 = vector.broadcast %24 : vector<32x1xf32> to vector<32x256xf32>
    %27 = arith.addf %25, %26 : vector<32x256xf32>
    %cst_19 = arith.constant 0.000000e+00 : f32
    %28 = vector.broadcast %cst_19 : f32 to vector<32x256xf32>
    %29 = arith.cmpf oge, %27, %28 : vector<32x256xf32>
    %cst_20 = arith.constant 0.00999999977 : f32
    %30 = vector.broadcast %cst_20 : f32 to vector<32x256xf32>
    %31 = arith.mulf %30, %27 : vector<32x256xf32>
    %32 = arith.select %29, %27, %31 : vector<32x256xi1>, vector<32x256xf32>
    %33 = arith.truncf %32 : vector<32x256xf32> to vector<32x256xbf16>
    %c0_21 = arith.constant 0 : index
    %c0_22 = arith.constant 0 : index
    %34 = vector.load %arg8[%c0_21, %c0_22] : memref<8x32xbf16, #tpu.memory_space<vmem>>, vector<8x32xbf16>
    %c0_23 = arith.constant 0 : index
    %c0_24 = arith.constant 0 : index
    %35 = vector.load %arg9[%c0_23, %c0_24] : memref<8x1xf32, #tpu.memory_space<vmem>>, vector<8x1xf32>
    %cst_25 = arith.constant dense<0.000000e+00> : vector<8x256xf32>
    %36 = tpu.matmul %34, %33, %cst_25 {dimension_numbers = #tpu.dot_dimension_numbers<[1], [0], [0], [1], [0, 0, 1, 1], [], []>} : vector<8x32xbf16>, vector<32x256xbf16>, vector<8x256xf32> -> vector<8x256xf32>
    %37 = vector.broadcast %35 : vector<8x1xf32> to vector<8x256xf32>
    %38 = arith.addf %36, %37 : vector<8x256xf32>
    %c0_26 = arith.constant 0 : index
    %c0_27 = arith.constant 0 : index
    %39 = vector.load %arg10[%c0_26, %c0_27] : memref<8x256xf32, #tpu.memory_space<vmem>>, vector<8x256xf32>
    tpu.vector_store %arg10[%c0_26, %c0_27], %38 {strides = array<i32>} : memref<8x256xf32, #tpu.memory_space<vmem>>, vector<8x256xf32>,
    return
  }
  func.func @transform_0(%arg0: i32) -> (i32, i32) {
    %c0_i32 = arith.constant 0 : i32
    %c0_i32_0 = arith.constant 0 : i32
    return %c0_i32, %arg0 : i32, i32
  }
  func.func @transform_1(%arg0: i32) -> (i32, i32) {
    %c0_i32 = arith.constant 0 : i32
    %c0_i32_0 = arith.constant 0 : i32
    %c0_i32_1 = arith.constant 0 : i32
    return %c0_i32, %c0_i32_0 : i32, i32
  }
  func.func @transform_2(%arg0: i32) -> (i32, i32) {
    %c0_i32 = arith.constant 0 : i32
    %c0_i32_0 = arith.constant 0 : i32
    %c0_i32_1 = arith.constant 0 : i32
    return %c0_i32, %c0_i32_0 : i32, i32
  }
  func.func @transform_3(%arg0: i32) -> (i32, i32) {
    %c0_i32 = arith.constant 0 : i32
    %c0_i32_0 = arith.constant 0 : i32
    %c0_i32_1 = arith.constant 0 : i32
    return %c0_i32, %c0_i32_0 : i32, i32
  }
  func.func @transform_4(%arg0: i32) -> (i32, i32) {
    %c0_i32 = arith.constant 0 : i32
    %c0_i32_0 = arith.constant 0 : i32
    %c0_i32_1 = arith.constant 0 : i32
    return %c0_i32, %c0_i32_0 : i32, i32
  }
  func.func @transform_5(%arg0: i32) -> (i32, i32) {
    %c0_i32 = arith.constant 0 : i32
    %c0_i32_0 = arith.constant 0 : i32
    %c0_i32_1 = arith.constant 0 : i32
    return %c0_i32, %c0_i32_0 : i32, i32
  }
  func.func @transform_6(%arg0: i32) -> (i32, i32) {
    %c0_i32 = arith.constant 0 : i32
    %c0_i32_0 = arith.constant 0 : i32
    %c0_i32_1 = arith.constant 0 : i32
    return %c0_i32, %c0_i32_0 : i32, i32
  }
  func.func @transform_7(%arg0: i32) -> (i32, i32) {
    %c0_i32 = arith.constant 0 : i32
    %c0_i32_0 = arith.constant 0 : i32
    %c0_i32_1 = arith.constant 0 : i32
    return %c0_i32, %c0_i32_0 : i32, i32
  }
  func.func @transform_8(%arg0: i32) -> (i32, i32) {
    %c0_i32 = arith.constant 0 : i32
    %c0_i32_0 = arith.constant 0 : i32
    %c0_i32_1 = arith.constant 0 : i32
    return %c0_i32, %c0_i32_0 : i32, i32
  }
  func.func @transform_9(%arg0: i32) -> (i32, i32) {
    %c0_i32 = arith.constant 0 : i32
    %c0_i32_0 = arith.constant 0 : i32
    return %c0_i32, %arg0 : i32, i32
  }
}

module attributes {stable_mosaic.version = 11 : i64} {
  func.func @_conv1d_stack_kernel(%arg0: i32, %arg1: memref<8x256xbf16, #tpu.memory_space<vmem>>, %arg2: memref<32x8xbf16, #tpu.memory_space<vmem>>, %arg3: memref<32x1xf32, #tpu.memory_space<vmem>>, %arg4: memref<64x32xbf16, #tpu.memory_space<vmem>>, %arg5: memref<64x1xf32, #tpu.memory_space<vmem>>, %arg6: memref<128x64xbf16, #tpu.memory_space<vmem>>, %arg7: memref<128x1xf32, #tpu.memory_space<vmem>>, %arg8: memref<32x128xbf16, #tpu.memory_space<vmem>>, %arg9: memref<32x1xf32, #tpu.memory_space<vmem>>, %arg10: memref<32x256xf32, #tpu.memory_space<vmem>>) attributes {dimension_semantics = [#tpu.dimension_semantics<parallel>], iteration_bounds = array<i64: 2>, scalar_prefetch = 0 : i64, scratch_operands = 0 : i64, tpu.core_type = #tpu.core_type<tc>, window_params = [{transform_indices = @transform_0, window_bounds = array<i64: 8, 256>}, {pipeline_mode = #tpu.pipeline_mode<synchronous>, transform_indices = @transform_1, window_bounds = array<i64: 32, 8>}, {pipeline_mode = #tpu.pipeline_mode<synchronous>, transform_indices = @transform_2, window_bounds = array<i64: 32, 1>}, {pipeline_mode = #tpu.pipeline_mode<synchronous>, transform_indices = @transform_3, window_bounds = array<i64: 64, 32>}, {pipeline_mode = #tpu.pipeline_mode<synchronous>, transform_indices = @transform_4, window_bounds = array<i64: 64, 1>}, {pipeline_mode = #tpu.pipeline_mode<synchronous>, transform_indices = @transform_5, window_bounds = array<i64: 128, 64>}, {pipeline_mode = #tpu.pipeline_mode<synchronous>, transform_indices = @transform_6, window_bounds = array<i64: 128, 1>}, {pipeline_mode = #tpu.pipeline_mode<synchronous>, transform_indices = @transform_7, window_bounds = array<i64: 32, 128>}, {pipeline_mode = #tpu.pipeline_mode<synchronous>, transform_indices = @transform_8, window_bounds = array<i64: 32, 1>}, {transform_indices = @transform_9, window_bounds = array<i64: 32, 256>}]} {
    %c0 = arith.constant 0 : index
    %c0_0 = arith.constant 0 : index
    %0 = vector.load %arg1[%c0, %c0_0] : memref<8x256xbf16, #tpu.memory_space<vmem>>, vector<8x256xbf16>
    %c0_1 = arith.constant 0 : index
    %c0_2 = arith.constant 0 : index
    %1 = vector.load %arg2[%c0_1, %c0_2] : memref<32x8xbf16, #tpu.memory_space<vmem>>, vector<32x8xbf16>
    %c0_3 = arith.constant 0 : index
    %c0_4 = arith.constant 0 : index
    %2 = vector.load %arg3[%c0_3, %c0_4] : memref<32x1xf32, #tpu.memory_space<vmem>>, vector<32x1xf32>
    %cst = arith.constant dense<0.000000e+00> : vector<32x256xf32>
    %3 = tpu.matmul %1, %0, %cst {dimension_numbers = #tpu.dot_dimension_numbers<[1], [0], [0], [1], [0, 0, 1, 1], [], []>} : vector<32x8xbf16>, vector<8x256xbf16>, vector<32x256xf32> -> vector<32x256xf32>
    %4 = vector.broadcast %2 : vector<32x1xf32> to vector<32x256xf32>
    %5 = arith.addf %3, %4 : vector<32x256xf32>
    %cst_5 = arith.constant 0.000000e+00 : f32
    %6 = vector.broadcast %cst_5 : f32 to vector<32x256xf32>
    %7 = arith.cmpf oge, %5, %6 : vector<32x256xf32>
    %cst_6 = arith.constant 0.00999999977 : f32
    %8 = vector.broadcast %cst_6 : f32 to vector<32x256xf32>
    %9 = arith.mulf %8, %5 : vector<32x256xf32>
    %10 = arith.select %7, %5, %9 : vector<32x256xi1>, vector<32x256xf32>
    %11 = arith.truncf %10 : vector<32x256xf32> to vector<32x256xbf16>
    %c0_7 = arith.constant 0 : index
    %c0_8 = arith.constant 0 : index
    %12 = vector.load %arg4[%c0_7, %c0_8] : memref<64x32xbf16, #tpu.memory_space<vmem>>, vector<64x32xbf16>
    %c0_9 = arith.constant 0 : index
    %c0_10 = arith.constant 0 : index
    %13 = vector.load %arg5[%c0_9, %c0_10] : memref<64x1xf32, #tpu.memory_space<vmem>>, vector<64x1xf32>
    %cst_11 = arith.constant dense<0.000000e+00> : vector<64x256xf32>
    %14 = tpu.matmul %12, %11, %cst_11 {dimension_numbers = #tpu.dot_dimension_numbers<[1], [0], [0], [1], [0, 0, 1, 1], [], []>} : vector<64x32xbf16>, vector<32x256xbf16>, vector<64x256xf32> -> vector<64x256xf32>
    %15 = vector.broadcast %13 : vector<64x1xf32> to vector<64x256xf32>
    %16 = arith.addf %14, %15 : vector<64x256xf32>
    %cst_12 = arith.constant 0.000000e+00 : f32
    %17 = vector.broadcast %cst_12 : f32 to vector<64x256xf32>
    %18 = arith.cmpf oge, %16, %17 : vector<64x256xf32>
    %cst_13 = arith.constant 0.00999999977 : f32
    %19 = vector.broadcast %cst_13 : f32 to vector<64x256xf32>
    %20 = arith.mulf %19, %16 : vector<64x256xf32>
    %21 = arith.select %18, %16, %20 : vector<64x256xi1>, vector<64x256xf32>
    %22 = arith.truncf %21 : vector<64x256xf32> to vector<64x256xbf16>
    %c0_14 = arith.constant 0 : index
    %c0_15 = arith.constant 0 : index
    %23 = vector.load %arg6[%c0_14, %c0_15] : memref<128x64xbf16, #tpu.memory_space<vmem>>, vector<128x64xbf16>
    %c0_16 = arith.constant 0 : index
    %c0_17 = arith.constant 0 : index
    %24 = vector.load %arg7[%c0_16, %c0_17] : memref<128x1xf32, #tpu.memory_space<vmem>>, vector<128x1xf32>
    %cst_18 = arith.constant dense<0.000000e+00> : vector<128x256xf32>
    %25 = tpu.matmul %23, %22, %cst_18 {dimension_numbers = #tpu.dot_dimension_numbers<[1], [0], [0], [1], [0, 0, 1, 1], [], []>} : vector<128x64xbf16>, vector<64x256xbf16>, vector<128x256xf32> -> vector<128x256xf32>
    %26 = vector.broadcast %24 : vector<128x1xf32> to vector<128x256xf32>
    %27 = arith.addf %25, %26 : vector<128x256xf32>
    %cst_19 = arith.constant 0.000000e+00 : f32
    %28 = vector.broadcast %cst_19 : f32 to vector<128x256xf32>
    %29 = arith.cmpf oge, %27, %28 : vector<128x256xf32>
    %cst_20 = arith.constant 0.00999999977 : f32
    %30 = vector.broadcast %cst_20 : f32 to vector<128x256xf32>
    %31 = arith.mulf %30, %27 : vector<128x256xf32>
    %32 = arith.select %29, %27, %31 : vector<128x256xi1>, vector<128x256xf32>
    %33 = arith.truncf %32 : vector<128x256xf32> to vector<128x256xbf16>
    %c0_21 = arith.constant 0 : index
    %c0_22 = arith.constant 0 : index
    %34 = vector.load %arg8[%c0_21, %c0_22] : memref<32x128xbf16, #tpu.memory_space<vmem>>, vector<32x128xbf16>
    %c0_23 = arith.constant 0 : index
    %c0_24 = arith.constant 0 : index
    %35 = vector.load %arg9[%c0_23, %c0_24] : memref<32x1xf32, #tpu.memory_space<vmem>>, vector<32x1xf32>
    %cst_25 = arith.constant dense<0.000000e+00> : vector<32x256xf32>
    %36 = tpu.matmul %34, %33, %cst_25 {dimension_numbers = #tpu.dot_dimension_numbers<[1], [0], [0], [1], [0, 0, 1, 1], [], []>} : vector<32x128xbf16>, vector<128x256xbf16>, vector<32x256xf32> -> vector<32x256xf32>
    %37 = vector.broadcast %35 : vector<32x1xf32> to vector<32x256xf32>
    %38 = arith.addf %36, %37 : vector<32x256xf32>
    %c0_26 = arith.constant 0 : index
    %c0_27 = arith.constant 0 : index
    %39 = vector.load %arg10[%c0_26, %c0_27] : memref<32x256xf32, #tpu.memory_space<vmem>>, vector<32x256xf32>
    tpu.vector_store %arg10[%c0_26, %c0_27], %38 {strides = array<i32>} : memref<32x256xf32, #tpu.memory_space<vmem>>, vector<32x256xf32>,
    return
  }
  func.func @transform_0(%arg0: i32) -> (i32, i32) {
    %c0_i32 = arith.constant 0 : i32
    %c0_i32_0 = arith.constant 0 : i32
    return %c0_i32, %arg0 : i32, i32
  }
  func.func @transform_1(%arg0: i32) -> (i32, i32) {
    %c0_i32 = arith.constant 0 : i32
    %c0_i32_0 = arith.constant 0 : i32
    %c0_i32_1 = arith.constant 0 : i32
    return %c0_i32, %c0_i32_0 : i32, i32
  }
  func.func @transform_2(%arg0: i32) -> (i32, i32) {
    %c0_i32 = arith.constant 0 : i32
    %c0_i32_0 = arith.constant 0 : i32
    %c0_i32_1 = arith.constant 0 : i32
    return %c0_i32, %c0_i32_0 : i32, i32
  }
  func.func @transform_3(%arg0: i32) -> (i32, i32) {
    %c0_i32 = arith.constant 0 : i32
    %c0_i32_0 = arith.constant 0 : i32
    %c0_i32_1 = arith.constant 0 : i32
    return %c0_i32, %c0_i32_0 : i32, i32
  }
  func.func @transform_4(%arg0: i32) -> (i32, i32) {
    %c0_i32 = arith.constant 0 : i32
    %c0_i32_0 = arith.constant 0 : i32
    %c0_i32_1 = arith.constant 0 : i32
    return %c0_i32, %c0_i32_0 : i32, i32
  }
  func.func @transform_5(%arg0: i32) -> (i32, i32) {
    %c0_i32 = arith.constant 0 : i32
    %c0_i32_0 = arith.constant 0 : i32
    %c0_i32_1 = arith.constant 0 : i32
    return %c0_i32, %c0_i32_0 : i32, i32
  }
  func.func @transform_6(%arg0: i32) -> (i32, i32) {
    %c0_i32 = arith.constant 0 : i32
    %c0_i32_0 = arith.constant 0 : i32
    %c0_i32_1 = arith.constant 0 : i32
    return %c0_i32, %c0_i32_0 : i32, i32
  }
  func.func @transform_7(%arg0: i32) -> (i32, i32) {
    %c0_i32 = arith.constant 0 : i32
    %c0_i32_0 = arith.constant 0 : i32
    %c0_i32_1 = arith.constant 0 : i32
    return %c0_i32, %c0_i32_0 : i32, i32
  }
  func.func @transform_8(%arg0: i32) -> (i32, i32) {
    %c0_i32 = arith.constant 0 : i32
    %c0_i32_0 = arith.constant 0 : i32
    %c0_i32_1 = arith.constant 0 : i32
    return %c0_i32, %c0_i32_0 : i32, i32
  }
  func.func @transform_9(%arg0: i32) -> (i32, i32) {
    %c0_i32 = arith.constant 0 : i32
    %c0_i32_0 = arith.constant 0 : i32
    return %c0_i32, %arg0 : i32, i32
  }
}

module attributes {stable_mosaic.version = 11 : i64} {
  func.func @_inner_hyperprior_kernel(%arg0: i32, %arg1: memref<8x512xbf16, #tpu.memory_space<vmem>>, %arg2: memref<512x512xbf16, #tpu.memory_space<vmem>>, %arg3: memref<8x512xf32, #tpu.memory_space<vmem>>, %arg4: memref<512x512xf32, #tpu.memory_space<vmem>>, %arg5: memref<8x512xf32, #tpu.memory_space<vmem>>, %arg6: memref<512x128xbf16, #tpu.memory_space<vmem>>, %arg7: memref<8x128xf32, #tpu.memory_space<vmem>>, %arg8: memref<128x128xbf16, #tpu.memory_space<vmem>>, %arg9: memref<8x128xf32, #tpu.memory_space<vmem>>, %arg10: memref<128x32xbf16, #tpu.memory_space<vmem>>, %arg11: memref<8x32xf32, #tpu.memory_space<vmem>>, %arg12: memref<8x32xf32, #tpu.memory_space<vmem>>, %arg13: memref<8x32xf32, #tpu.memory_space<vmem>>, %arg14: memref<32x128xbf16, #tpu.memory_space<vmem>>, %arg15: memref<8x128xf32, #tpu.memory_space<vmem>>, %arg16: memref<128x128xbf16, #tpu.memory_space<vmem>>, %arg17: memref<8x128xf32, #tpu.memory_space<vmem>>, %arg18: memref<128x512xbf16, #tpu.memory_space<vmem>>, %arg19: memref<8x512xf32, #tpu.memory_space<vmem>>, %arg20: memref<512x512xf32, #tpu.memory_space<vmem>>, %arg21: memref<8x512xf32, #tpu.memory_space<vmem>>, %arg22: memref<512x512xbf16, #tpu.memory_space<vmem>>, %arg23: memref<8x512xf32, #tpu.memory_space<vmem>>, %arg24: memref<8x512xf32, #tpu.memory_space<vmem>>, %arg25: memref<8x128xf32, #tpu.memory_space<vmem>>, %arg26: memref<8x32xf32, #tpu.memory_space<vmem>>) attributes {dimension_semantics = [#tpu.dimension_semantics<arbitrary>], iteration_bounds = array<i64: 1>, scalar_prefetch = 0 : i64, scratch_operands = 0 : i64, tpu.core_type = #tpu.core_type<tc>, window_params = [{pipeline_mode = #tpu.pipeline_mode<synchronous>, transform_indices = @transform_0, window_bounds = array<i64: 8, 512>}, {pipeline_mode = #tpu.pipeline_mode<synchronous>, transform_indices = @transform_1, window_bounds = array<i64: 512, 512>}, {pipeline_mode = #tpu.pipeline_mode<synchronous>, transform_indices = @transform_2, window_bounds = array<i64: 8, 512>}, {pipeline_mode = #tpu.pipeline_mode<synchronous>, transform_indices = @transform_3, window_bounds = array<i64: 512, 512>}, {pipeline_mode = #tpu.pipeline_mode<synchronous>, transform_indices = @transform_4, window_bounds = array<i64: 8, 512>}, {pipeline_mode = #tpu.pipeline_mode<synchronous>, transform_indices = @transform_5, window_bounds = array<i64: 512, 128>}, {pipeline_mode = #tpu.pipeline_mode<synchronous>, transform_indices = @transform_6, window_bounds = array<i64: 8, 128>}, {pipeline_mode = #tpu.pipeline_mode<synchronous>, transform_indices = @transform_7, window_bounds = array<i64: 128, 128>}, {pipeline_mode = #tpu.pipeline_mode<synchronous>, transform_indices = @transform_8, window_bounds = array<i64: 8, 128>}, {pipeline_mode = #tpu.pipeline_mode<synchronous>, transform_indices = @transform_9, window_bounds = array<i64: 128, 32>}, {pipeline_mode = #tpu.pipeline_mode<synchronous>, transform_indices = @transform_10, window_bounds = array<i64: 8, 32>}, {pipeline_mode = #tpu.pipeline_mode<synchronous>, transform_indices = @transform_11, window_bounds = array<i64: 8, 32>}, {pipeline_mode = #tpu.pipeline_mode<synchronous>, transform_indices = @transform_12, window_bounds = array<i64: 8, 32>}, {pipeline_mode = #tpu.pipeline_mode<synchronous>, transform_indices = @transform_13, window_bounds = array<i64: 32, 128>}, {pipeline_mode = #tpu.pipeline_mode<synchronous>, transform_indices = @transform_14, window_bounds = array<i64: 8, 128>}, {pipeline_mode = #tpu.pipeline_mode<synchronous>, transform_indices = @transform_15, window_bounds = array<i64: 128, 128>}, {pipeline_mode = #tpu.pipeline_mode<synchronous>, transform_indices = @transform_16, window_bounds = array<i64: 8, 128>}, {pipeline_mode = #tpu.pipeline_mode<synchronous>, transform_indices = @transform_17, window_bounds = array<i64: 128, 512>}, {pipeline_mode = #tpu.pipeline_mode<synchronous>, transform_indices = @transform_18, window_bounds = array<i64: 8, 512>}, {pipeline_mode = #tpu.pipeline_mode<synchronous>, transform_indices = @transform_19, window_bounds = array<i64: 512, 512>}, {pipeline_mode = #tpu.pipeline_mode<synchronous>, transform_indices = @transform_20, window_bounds = array<i64: 8, 512>}, {pipeline_mode = #tpu.pipeline_mode<synchronous>, transform_indices = @transform_21, window_bounds = array<i64: 512, 512>}, {pipeline_mode = #tpu.pipeline_mode<synchronous>, transform_indices = @transform_22, window_bounds = array<i64: 8, 512>}, {pipeline_mode = #tpu.pipeline_mode<synchronous>, transform_indices = @transform_23, window_bounds = array<i64: 8, 512>}, {pipeline_mode = #tpu.pipeline_mode<synchronous>, transform_indices = @transform_24, window_bounds = array<i64: 8, 128>}, {pipeline_mode = #tpu.pipeline_mode<synchronous>, transform_indices = @transform_25, window_bounds = array<i64: 8, 32>}]} {
    %c0 = arith.constant 0 : index
    %c0_0 = arith.constant 0 : index
    %0 = vector.load %arg1[%c0, %c0_0] : memref<8x512xbf16, #tpu.memory_space<vmem>>, vector<8x512xbf16>
    %c0_1 = arith.constant 0 : index
    %c0_2 = arith.constant 0 : index
    %1 = vector.load %arg2[%c0_1, %c0_2] : memref<512x512xbf16, #tpu.memory_space<vmem>>, vector<512x512xbf16>
    %cst = arith.constant dense<0.000000e+00> : vector<8x512xf32>
    %2 = tpu.matmul %0, %1, %cst {dimension_numbers = #tpu.dot_dimension_numbers<[1], [0], [0], [1], [0, 0, 1, 1], [], []>} : vector<8x512xbf16>, vector<512x512xbf16>, vector<8x512xf32> -> vector<8x512xf32>
    %c0_3 = arith.constant 0 : index
    %c0_4 = arith.constant 0 : index
    %3 = vector.load %arg3[%c0_3, %c0_4] : memref<8x512xf32, #tpu.memory_space<vmem>>, vector<8x512xf32>
    %4 = arith.addf %2, %3 : vector<8x512xf32>
    %5 = arith.mulf %4, %4 : vector<8x512xf32>
    %c0_5 = arith.constant 0 : index
    %c0_6 = arith.constant 0 : index
    %6 = vector.load %arg4[%c0_5, %c0_6] : memref<512x512xf32, #tpu.memory_space<vmem>>, vector<512x512xf32>
    %cst_7 = arith.constant dense<0.000000e+00> : vector<8x512xf32>
    %7 = tpu.matmul %5, %6, %cst_7 {dimension_numbers = #tpu.dot_dimension_numbers<[1], [0], [0], [1], [0, 0, 1, 1], [], []>} : vector<8x512xf32>, vector<512x512xf32>, vector<8x512xf32> -> vector<8x512xf32>
    %c0_8 = arith.constant 0 : index
    %c0_9 = arith.constant 0 : index
    %8 = vector.load %arg5[%c0_8, %c0_9] : memref<8x512xf32, #tpu.memory_space<vmem>>, vector<8x512xf32>
    %9 = arith.addf %7, %8 : vector<8x512xf32>
    %cst_10 = arith.constant 9.99999997E-7 : f32
    %10 = vector.broadcast %cst_10 : f32 to vector<8x512xf32>
    %11 = arith.maximumf %9, %10 : vector<8x512xf32>
    %12 = math.rsqrt %11 : vector<8x512xf32>
    %13 = arith.mulf %4, %12 : vector<8x512xf32>
    %14 = arith.truncf %13 : vector<8x512xf32> to vector<8x512xbf16>
    %c0_11 = arith.constant 0 : index
    %c0_12 = arith.constant 0 : index
    %15 = vector.load %arg6[%c0_11, %c0_12] : memref<512x128xbf16, #tpu.memory_space<vmem>>, vector<512x128xbf16>
    %cst_13 = arith.constant dense<0.000000e+00> : vector<8x128xf32>
    %16 = tpu.matmul %14, %15, %cst_13 {dimension_numbers = #tpu.dot_dimension_numbers<[1], [0], [0], [1], [0, 0, 1, 1], [], []>} : vector<8x512xbf16>, vector<512x128xbf16>, vector<8x128xf32> -> vector<8x128xf32>
    %c0_14 = arith.constant 0 : index
    %c0_15 = arith.constant 0 : index
    %17 = vector.load %arg7[%c0_14, %c0_15] : memref<8x128xf32, #tpu.memory_space<vmem>>, vector<8x128xf32>
    %18 = arith.addf %16, %17 : vector<8x128xf32>
    %19 = math.absf %18 : vector<8x128xf32>
    %20 = arith.truncf %19 : vector<8x128xf32> to vector<8x128xbf16>
    %c0_16 = arith.constant 0 : index
    %c0_17 = arith.constant 0 : index
    %21 = vector.load %arg8[%c0_16, %c0_17] : memref<128x128xbf16, #tpu.memory_space<vmem>>, vector<128x128xbf16>
    %cst_18 = arith.constant dense<0.000000e+00> : vector<8x128xf32>
    %22 = tpu.matmul %20, %21, %cst_18 {dimension_numbers = #tpu.dot_dimension_numbers<[1], [0], [0], [1], [0, 0, 1, 1], [], []>} : vector<8x128xbf16>, vector<128x128xbf16>, vector<8x128xf32> -> vector<8x128xf32>
    %c0_19 = arith.constant 0 : index
    %c0_20 = arith.constant 0 : index
    %23 = vector.load %arg9[%c0_19, %c0_20] : memref<8x128xf32, #tpu.memory_space<vmem>>, vector<8x128xf32>
    %24 = arith.addf %22, %23 : vector<8x128xf32>
    %cst_21 = arith.constant 0.000000e+00 : f32
    %25 = vector.broadcast %cst_21 : f32 to vector<8x128xf32>
    %26 = arith.maximumf %24, %25 : vector<8x128xf32>
    %27 = arith.truncf %26 : vector<8x128xf32> to vector<8x128xbf16>
    %c0_22 = arith.constant 0 : index
    %c0_23 = arith.constant 0 : index
    %28 = vector.load %arg10[%c0_22, %c0_23] : memref<128x32xbf16, #tpu.memory_space<vmem>>, vector<128x32xbf16>
    %cst_24 = arith.constant dense<0.000000e+00> : vector<8x32xf32>
    %29 = tpu.matmul %27, %28, %cst_24 {dimension_numbers = #tpu.dot_dimension_numbers<[1], [0], [0], [1], [0, 0, 1, 1], [], []>} : vector<8x128xbf16>, vector<128x32xbf16>, vector<8x32xf32> -> vector<8x32xf32>
    %c0_25 = arith.constant 0 : index
    %c0_26 = arith.constant 0 : index
    %30 = vector.load %arg11[%c0_25, %c0_26] : memref<8x32xf32, #tpu.memory_space<vmem>>, vector<8x32xf32>
    %31 = arith.addf %29, %30 : vector<8x32xf32>
    %32 = math.roundeven %31 : vector<8x32xf32>
    %c0_27 = arith.constant 0 : index
    %c0_28 = arith.constant 0 : index
    %33 = vector.load %arg12[%c0_27, %c0_28] : memref<8x32xf32, #tpu.memory_space<vmem>>, vector<8x32xf32>
    %c0_29 = arith.constant 0 : index
    %c0_30 = arith.constant 0 : index
    %34 = vector.load %arg13[%c0_29, %c0_30] : memref<8x32xf32, #tpu.memory_space<vmem>>, vector<8x32xf32>
    %cst_31 = arith.constant 1.100000e-01 : f32
    %35 = vector.broadcast %cst_31 : f32 to vector<8x32xf32>
    %36 = arith.maximumf %34, %35 : vector<8x32xf32>
    %cst_32 = arith.constant 1.000000e+00 : f32
    %37 = vector.broadcast %cst_32 : f32 to vector<8x32xf32>
    %38 = arith.divf %37, %36 : vector<8x32xf32>
    %cst_33 = arith.constant 5.000000e-01 : f32
    %39 = vector.broadcast %cst_33 : f32 to vector<8x32xf32>
    %40 = arith.addf %32, %39 : vector<8x32xf32>
    %41 = arith.subf %40, %33 : vector<8x32xf32>
    %42 = arith.mulf %41, %38 : vector<8x32xf32>
    %cst_34 = arith.constant 4.471500e-02 : f32
    %43 = vector.broadcast %cst_34 : f32 to vector<8x32xf32>
    %44 = arith.mulf %43, %42 : vector<8x32xf32>
    %45 = arith.mulf %44, %42 : vector<8x32xf32>
    %46 = arith.mulf %45, %42 : vector<8x32xf32>
    %47 = arith.addf %42, %46 : vector<8x32xf32>
    %cst_35 = arith.constant 0.797884583 : f32
    %48 = vector.broadcast %cst_35 : f32 to vector<8x32xf32>
    %49 = arith.mulf %48, %47 : vector<8x32xf32>
    %50 = math.tanh %49 : vector<8x32xf32>
    %cst_36 = arith.constant 1.000000e+00 : f32
    %51 = vector.broadcast %cst_36 : f32 to vector<8x32xf32>
    %52 = arith.addf %51, %50 : vector<8x32xf32>
    %cst_37 = arith.constant 5.000000e-01 : f32
    %53 = vector.broadcast %cst_37 : f32 to vector<8x32xf32>
    %54 = arith.mulf %53, %52 : vector<8x32xf32>
    %cst_38 = arith.constant 5.000000e-01 : f32
    %55 = vector.broadcast %cst_38 : f32 to vector<8x32xf32>
    %56 = arith.subf %32, %55 : vector<8x32xf32>
    %57 = arith.subf %56, %33 : vector<8x32xf32>
    %58 = arith.mulf %57, %38 : vector<8x32xf32>
    %cst_39 = arith.constant 4.471500e-02 : f32
    %59 = vector.broadcast %cst_39 : f32 to vector<8x32xf32>
    %60 = arith.mulf %59, %58 : vector<8x32xf32>
    %61 = arith.mulf %60, %58 : vector<8x32xf32>
    %62 = arith.mulf %61, %58 : vector<8x32xf32>
    %63 = arith.addf %58, %62 : vector<8x32xf32>
    %cst_40 = arith.constant 0.797884583 : f32
    %64 = vector.broadcast %cst_40 : f32 to vector<8x32xf32>
    %65 = arith.mulf %64, %63 : vector<8x32xf32>
    %66 = math.tanh %65 : vector<8x32xf32>
    %cst_41 = arith.constant 1.000000e+00 : f32
    %67 = vector.broadcast %cst_41 : f32 to vector<8x32xf32>
    %68 = arith.addf %67, %66 : vector<8x32xf32>
    %cst_42 = arith.constant 5.000000e-01 : f32
    %69 = vector.broadcast %cst_42 : f32 to vector<8x32xf32>
    %70 = arith.mulf %69, %68 : vector<8x32xf32>
    %71 = arith.subf %54, %70 : vector<8x32xf32>
    %cst_43 = arith.constant 9.99999971E-10 : f32
    %cst_44 = arith.constant 1.000000e+00 : f32
    %72 = vector.broadcast %cst_43 : f32 to vector<8x32xf32>
    %73 = arith.maximumf %72, %71 : vector<8x32xf32>
    %74 = vector.broadcast %cst_44 : f32 to vector<8x32xf32>
    %75 = arith.minimumf %74, %73 : vector<8x32xf32>
    %c0_45 = arith.constant 0 : index
    %c0_46 = arith.constant 0 : index
    %76 = vector.load %arg26[%c0_45, %c0_46] : memref<8x32xf32, #tpu.memory_space<vmem>>, vector<8x32xf32>
    tpu.vector_store %arg26[%c0_45, %c0_46], %75 {strides = array<i32>} : memref<8x32xf32, #tpu.memory_space<vmem>>, vector<8x32xf32>,
    %77 = arith.truncf %32 : vector<8x32xf32> to vector<8x32xbf16>
    %c0_47 = arith.constant 0 : index
    %c0_48 = arith.constant 0 : index
    %78 = vector.load %arg14[%c0_47, %c0_48] : memref<32x128xbf16, #tpu.memory_space<vmem>>, vector<32x128xbf16>
    %cst_49 = arith.constant dense<0.000000e+00> : vector<8x128xf32>
    %79 = tpu.matmul %77, %78, %cst_49 {dimension_numbers = #tpu.dot_dimension_numbers<[1], [0], [0], [1], [0, 0, 1, 1], [], []>} : vector<8x32xbf16>, vector<32x128xbf16>, vector<8x128xf32> -> vector<8x128xf32>
    %c0_50 = arith.constant 0 : index
    %c0_51 = arith.constant 0 : index
    %80 = vector.load %arg15[%c0_50, %c0_51] : memref<8x128xf32, #tpu.memory_space<vmem>>, vector<8x128xf32>
    %81 = arith.addf %79, %80 : vector<8x128xf32>
    %cst_52 = arith.constant 0.000000e+00 : f32
    %82 = vector.broadcast %cst_52 : f32 to vector<8x128xf32>
    %83 = arith.maximumf %81, %82 : vector<8x128xf32>
    %84 = arith.truncf %83 : vector<8x128xf32> to vector<8x128xbf16>
    %c0_53 = arith.constant 0 : index
    %c0_54 = arith.constant 0 : index
    %85 = vector.load %arg16[%c0_53, %c0_54] : memref<128x128xbf16, #tpu.memory_space<vmem>>, vector<128x128xbf16>
    %cst_55 = arith.constant dense<0.000000e+00> : vector<8x128xf32>
    %86 = tpu.matmul %84, %85, %cst_55 {dimension_numbers = #tpu.dot_dimension_numbers<[1], [0], [0], [1], [0, 0, 1, 1], [], []>} : vector<8x128xbf16>, vector<128x128xbf16>, vector<8x128xf32> -> vector<8x128xf32>
    %c0_56 = arith.constant 0 : index
    %c0_57 = arith.constant 0 : index
    %87 = vector.load %arg17[%c0_56, %c0_57] : memref<8x128xf32, #tpu.memory_space<vmem>>, vector<8x128xf32>
    %88 = arith.addf %86, %87 : vector<8x128xf32>
    %89 = math.roundeven %18 : vector<8x128xf32>
    %cst_58 = arith.constant 1.100000e-01 : f32
    %90 = vector.broadcast %cst_58 : f32 to vector<8x128xf32>
    %91 = arith.maximumf %88, %90 : vector<8x128xf32>
    %cst_59 = arith.constant 1.000000e+00 : f32
    %92 = vector.broadcast %cst_59 : f32 to vector<8x128xf32>
    %93 = arith.divf %92, %91 : vector<8x128xf32>
    %cst_60 = arith.constant 5.000000e-01 : f32
    %94 = vector.broadcast %cst_60 : f32 to vector<8x128xf32>
    %95 = arith.addf %89, %94 : vector<8x128xf32>
    %cst_61 = arith.constant 0.000000e+00 : f32
    %96 = vector.broadcast %cst_61 : f32 to vector<8x128xf32>
    %97 = arith.subf %95, %96 : vector<8x128xf32>
    %98 = arith.mulf %97, %93 : vector<8x128xf32>
    %cst_62 = arith.constant 4.471500e-02 : f32
    %99 = vector.broadcast %cst_62 : f32 to vector<8x128xf32>
    %100 = arith.mulf %99, %98 : vector<8x128xf32>
    %101 = arith.mulf %100, %98 : vector<8x128xf32>
    %102 = arith.mulf %101, %98 : vector<8x128xf32>
    %103 = arith.addf %98, %102 : vector<8x128xf32>
    %cst_63 = arith.constant 0.797884583 : f32
    %104 = vector.broadcast %cst_63 : f32 to vector<8x128xf32>
    %105 = arith.mulf %104, %103 : vector<8x128xf32>
    %106 = math.tanh %105 : vector<8x128xf32>
    %cst_64 = arith.constant 1.000000e+00 : f32
    %107 = vector.broadcast %cst_64 : f32 to vector<8x128xf32>
    %108 = arith.addf %107, %106 : vector<8x128xf32>
    %cst_65 = arith.constant 5.000000e-01 : f32
    %109 = vector.broadcast %cst_65 : f32 to vector<8x128xf32>
    %110 = arith.mulf %109, %108 : vector<8x128xf32>
    %cst_66 = arith.constant 5.000000e-01 : f32
    %111 = vector.broadcast %cst_66 : f32 to vector<8x128xf32>
    %112 = arith.subf %89, %111 : vector<8x128xf32>
    %cst_67 = arith.constant 0.000000e+00 : f32
    %113 = vector.broadcast %cst_67 : f32 to vector<8x128xf32>
    %114 = arith.subf %112, %113 : vector<8x128xf32>
    %115 = arith.mulf %114, %93 : vector<8x128xf32>
    %cst_68 = arith.constant 4.471500e-02 : f32
    %116 = vector.broadcast %cst_68 : f32 to vector<8x128xf32>
    %117 = arith.mulf %116, %115 : vector<8x128xf32>
    %118 = arith.mulf %117, %115 : vector<8x128xf32>
    %119 = arith.mulf %118, %115 : vector<8x128xf32>
    %120 = arith.addf %115, %119 : vector<8x128xf32>
    %cst_69 = arith.constant 0.797884583 : f32
    %121 = vector.broadcast %cst_69 : f32 to vector<8x128xf32>
    %122 = arith.mulf %121, %120 : vector<8x128xf32>
    %123 = math.tanh %122 : vector<8x128xf32>
    %cst_70 = arith.constant 1.000000e+00 : f32
    %124 = vector.broadcast %cst_70 : f32 to vector<8x128xf32>
    %125 = arith.addf %124, %123 : vector<8x128xf32>
    %cst_71 = arith.constant 5.000000e-01 : f32
    %126 = vector.broadcast %cst_71 : f32 to vector<8x128xf32>
    %127 = arith.mulf %126, %125 : vector<8x128xf32>
    %128 = arith.subf %110, %127 : vector<8x128xf32>
    %cst_72 = arith.constant 9.99999971E-10 : f32
    %cst_73 = arith.constant 1.000000e+00 : f32
    %129 = vector.broadcast %cst_72 : f32 to vector<8x128xf32>
    %130 = arith.maximumf %129, %128 : vector<8x128xf32>
    %131 = vector.broadcast %cst_73 : f32 to vector<8x128xf32>
    %132 = arith.minimumf %131, %130 : vector<8x128xf32>
    %c0_74 = arith.constant 0 : index
    %c0_75 = arith.constant 0 : index
    %133 = vector.load %arg25[%c0_74, %c0_75] : memref<8x128xf32, #tpu.memory_space<vmem>>, vector<8x128xf32>
    tpu.vector_store %arg25[%c0_74, %c0_75], %132 {strides = array<i32>} : memref<8x128xf32, #tpu.memory_space<vmem>>, vector<8x128xf32>,
    %134 = arith.truncf %89 : vector<8x128xf32> to vector<8x128xbf16>
    %c0_76 = arith.constant 0 : index
    %c0_77 = arith.constant 0 : index
    %135 = vector.load %arg18[%c0_76, %c0_77] : memref<128x512xbf16, #tpu.memory_space<vmem>>, vector<128x512xbf16>
    %cst_78 = arith.constant dense<0.000000e+00> : vector<8x512xf32>
    %136 = tpu.matmul %134, %135, %cst_78 {dimension_numbers = #tpu.dot_dimension_numbers<[1], [0], [0], [1], [0, 0, 1, 1], [], []>} : vector<8x128xbf16>, vector<128x512xbf16>, vector<8x512xf32> -> vector<8x512xf32>
    %c0_79 = arith.constant 0 : index
    %c0_80 = arith.constant 0 : index
    %137 = vector.load %arg19[%c0_79, %c0_80] : memref<8x512xf32, #tpu.memory_space<vmem>>, vector<8x512xf32>
    %138 = arith.addf %136, %137 : vector<8x512xf32>
    %139 = arith.mulf %138, %138 : vector<8x512xf32>
    %c0_81 = arith.constant 0 : index
    %c0_82 = arith.constant 0 : index
    %140 = vector.load %arg20[%c0_81, %c0_82] : memref<512x512xf32, #tpu.memory_space<vmem>>, vector<512x512xf32>
    %cst_83 = arith.constant dense<0.000000e+00> : vector<8x512xf32>
    %141 = tpu.matmul %139, %140, %cst_83 {dimension_numbers = #tpu.dot_dimension_numbers<[1], [0], [0], [1], [0, 0, 1, 1], [], []>} : vector<8x512xf32>, vector<512x512xf32>, vector<8x512xf32> -> vector<8x512xf32>
    %c0_84 = arith.constant 0 : index
    %c0_85 = arith.constant 0 : index
    %142 = vector.load %arg21[%c0_84, %c0_85] : memref<8x512xf32, #tpu.memory_space<vmem>>, vector<8x512xf32>
    %143 = arith.addf %141, %142 : vector<8x512xf32>
    %cst_86 = arith.constant 9.99999997E-7 : f32
    %144 = vector.broadcast %cst_86 : f32 to vector<8x512xf32>
    %145 = arith.maximumf %143, %144 : vector<8x512xf32>
    %146 = math.sqrt %145 : vector<8x512xf32>
    %147 = arith.mulf %138, %146 : vector<8x512xf32>
    %148 = arith.truncf %147 : vector<8x512xf32> to vector<8x512xbf16>
    %c0_87 = arith.constant 0 : index
    %c0_88 = arith.constant 0 : index
    %149 = vector.load %arg22[%c0_87, %c0_88] : memref<512x512xbf16, #tpu.memory_space<vmem>>, vector<512x512xbf16>
    %cst_89 = arith.constant dense<0.000000e+00> : vector<8x512xf32>
    %150 = tpu.matmul %148, %149, %cst_89 {dimension_numbers = #tpu.dot_dimension_numbers<[1], [0], [0], [1], [0, 0, 1, 1], [], []>} : vector<8x512xbf16>, vector<512x512xbf16>, vector<8x512xf32> -> vector<8x512xf32>
    %c0_90 = arith.constant 0 : index
    %c0_91 = arith.constant 0 : index
    %151 = vector.load %arg23[%c0_90, %c0_91] : memref<8x512xf32, #tpu.memory_space<vmem>>, vector<8x512xf32>
    %152 = arith.addf %150, %151 : vector<8x512xf32>
    %c0_92 = arith.constant 0 : index
    %c0_93 = arith.constant 0 : index
    %153 = vector.load %arg24[%c0_92, %c0_93] : memref<8x512xf32, #tpu.memory_space<vmem>>, vector<8x512xf32>
    tpu.vector_store %arg24[%c0_92, %c0_93], %152 {strides = array<i32>} : memref<8x512xf32, #tpu.memory_space<vmem>>, vector<8x512xf32>,
    return
  }
  func.func @transform_0(%arg0: i32) -> (i32, i32) {
    %c0_i32 = arith.constant 0 : i32
    %c0_i32_0 = arith.constant 0 : i32
    %c0_i32_1 = arith.constant 0 : i32
    return %c0_i32, %c0_i32_0 : i32, i32
  }
  func.func @transform_1(%arg0: i32) -> (i32, i32) {
    %c0_i32 = arith.constant 0 : i32
    %c0_i32_0 = arith.constant 0 : i32
    %c0_i32_1 = arith.constant 0 : i32
    return %c0_i32, %c0_i32_0 : i32, i32
  }
  func.func @transform_2(%arg0: i32) -> (i32, i32) {
    %c0_i32 = arith.constant 0 : i32
    %c0_i32_0 = arith.constant 0 : i32
    %c0_i32_1 = arith.constant 0 : i32
    return %c0_i32, %c0_i32_0 : i32, i32
  }
  func.func @transform_3(%arg0: i32) -> (i32, i32) {
    %c0_i32 = arith.constant 0 : i32
    %c0_i32_0 = arith.constant 0 : i32
    %c0_i32_1 = arith.constant 0 : i32
    return %c0_i32, %c0_i32_0 : i32, i32
  }
  func.func @transform_4(%arg0: i32) -> (i32, i32) {
    %c0_i32 = arith.constant 0 : i32
    %c0_i32_0 = arith.constant 0 : i32
    %c0_i32_1 = arith.constant 0 : i32
    return %c0_i32, %c0_i32_0 : i32, i32
  }
  func.func @transform_5(%arg0: i32) -> (i32, i32) {
    %c0_i32 = arith.constant 0 : i32
    %c0_i32_0 = arith.constant 0 : i32
    %c0_i32_1 = arith.constant 0 : i32
    return %c0_i32, %c0_i32_0 : i32, i32
  }
  func.func @transform_6(%arg0: i32) -> (i32, i32) {
    %c0_i32 = arith.constant 0 : i32
    %c0_i32_0 = arith.constant 0 : i32
    %c0_i32_1 = arith.constant 0 : i32
    return %c0_i32, %c0_i32_0 : i32, i32
  }
  func.func @transform_7(%arg0: i32) -> (i32, i32) {
    %c0_i32 = arith.constant 0 : i32
    %c0_i32_0 = arith.constant 0 : i32
    %c0_i32_1 = arith.constant 0 : i32
    return %c0_i32, %c0_i32_0 : i32, i32
  }
  func.func @transform_8(%arg0: i32) -> (i32, i32) {
    %c0_i32 = arith.constant 0 : i32
    %c0_i32_0 = arith.constant 0 : i32
    %c0_i32_1 = arith.constant 0 : i32
    return %c0_i32, %c0_i32_0 : i32, i32
  }
  func.func @transform_9(%arg0: i32) -> (i32, i32) {
    %c0_i32 = arith.constant 0 : i32
    %c0_i32_0 = arith.constant 0 : i32
    %c0_i32_1 = arith.constant 0 : i32
    return %c0_i32, %c0_i32_0 : i32, i32
  }
  func.func @transform_10(%arg0: i32) -> (i32, i32) {
    %c0_i32 = arith.constant 0 : i32
    %c0_i32_0 = arith.constant 0 : i32
    %c0_i32_1 = arith.constant 0 : i32
    return %c0_i32, %c0_i32_0 : i32, i32
  }
  func.func @transform_11(%arg0: i32) -> (i32, i32) {
    %c0_i32 = arith.constant 0 : i32
    %c0_i32_0 = arith.constant 0 : i32
    %c0_i32_1 = arith.constant 0 : i32
    return %c0_i32, %c0_i32_0 : i32, i32
  }
  func.func @transform_12(%arg0: i32) -> (i32, i32) {
    %c0_i32 = arith.constant 0 : i32
    %c0_i32_0 = arith.constant 0 : i32
    %c0_i32_1 = arith.constant 0 : i32
    return %c0_i32, %c0_i32_0 : i32, i32
  }
  func.func @transform_13(%arg0: i32) -> (i32, i32) {
    %c0_i32 = arith.constant 0 : i32
    %c0_i32_0 = arith.constant 0 : i32
    %c0_i32_1 = arith.constant 0 : i32
    return %c0_i32, %c0_i32_0 : i32, i32
  }
  func.func @transform_14(%arg0: i32) -> (i32, i32) {
    %c0_i32 = arith.constant 0 : i32
    %c0_i32_0 = arith.constant 0 : i32
    %c0_i32_1 = arith.constant 0 : i32
    return %c0_i32, %c0_i32_0 : i32, i32
  }
  func.func @transform_15(%arg0: i32) -> (i32, i32) {
    %c0_i32 = arith.constant 0 : i32
    %c0_i32_0 = arith.constant 0 : i32
    %c0_i32_1 = arith.constant 0 : i32
    return %c0_i32, %c0_i32_0 : i32, i32
  }
  func.func @transform_16(%arg0: i32) -> (i32, i32) {
    %c0_i32 = arith.constant 0 : i32
    %c0_i32_0 = arith.constant 0 : i32
    %c0_i32_1 = arith.constant 0 : i32
    return %c0_i32, %c0_i32_0 : i32, i32
  }
  func.func @transform_17(%arg0: i32) -> (i32, i32) {
    %c0_i32 = arith.constant 0 : i32
    %c0_i32_0 = arith.constant 0 : i32
    %c0_i32_1 = arith.constant 0 : i32
    return %c0_i32, %c0_i32_0 : i32, i32
  }
  func.func @transform_18(%arg0: i32) -> (i32, i32) {
    %c0_i32 = arith.constant 0 : i32
    %c0_i32_0 = arith.constant 0 : i32
    %c0_i32_1 = arith.constant 0 : i32
    return %c0_i32, %c0_i32_0 : i32, i32
  }
  func.func @transform_19(%arg0: i32) -> (i32, i32) {
    %c0_i32 = arith.constant 0 : i32
    %c0_i32_0 = arith.constant 0 : i32
    %c0_i32_1 = arith.constant 0 : i32
    return %c0_i32, %c0_i32_0 : i32, i32
  }
  func.func @transform_20(%arg0: i32) -> (i32, i32) {
    %c0_i32 = arith.constant 0 : i32
    %c0_i32_0 = arith.constant 0 : i32
    %c0_i32_1 = arith.constant 0 : i32
    return %c0_i32, %c0_i32_0 : i32, i32
  }
  func.func @transform_21(%arg0: i32) -> (i32, i32) {
    %c0_i32 = arith.constant 0 : i32
    %c0_i32_0 = arith.constant 0 : i32
    %c0_i32_1 = arith.constant 0 : i32
    return %c0_i32, %c0_i32_0 : i32, i32
  }
  func.func @transform_22(%arg0: i32) -> (i32, i32) {
    %c0_i32 = arith.constant 0 : i32
    %c0_i32_0 = arith.constant 0 : i32
    %c0_i32_1 = arith.constant 0 : i32
    return %c0_i32, %c0_i32_0 : i32, i32
  }
  func.func @transform_23(%arg0: i32) -> (i32, i32) {
    %c0_i32 = arith.constant 0 : i32
    %c0_i32_0 = arith.constant 0 : i32
    %c0_i32_1 = arith.constant 0 : i32
    return %c0_i32, %c0_i32_0 : i32, i32
  }
  func.func @transform_24(%arg0: i32) -> (i32, i32) {
    %c0_i32 = arith.constant 0 : i32
    %c0_i32_0 = arith.constant 0 : i32
    %c0_i32_1 = arith.constant 0 : i32
    return %c0_i32, %c0_i32_0 : i32, i32
  }
  func.func @transform_25(%arg0: i32) -> (i32, i32) {
    %c0_i32 = arith.constant 0 : i32
    %c0_i32_0 = arith.constant 0 : i32
    %c0_i32_1 = arith.constant 0 : i32
    return %c0_i32, %c0_i32_0 : i32, i32
  }
}

</mosaic_0001>

<bundles_post_ra>
// kernel: combined_forward.5
= control target key start
LH: loop header
LB: loop body
LE: loop exit
PB: predicated region body
PF: predicated region fallthrough
CT: control target
= control target key end

     0   :  { %s1447_s30 = smov 0   ;;  %s1449_s10 = smov 0   ;;  %s1823_s0 = inlined_call_operand.vmem [shape: bf16[8,512], index: 0, kind: input, shape index: {}]   ;;  %s1824_s1 = inlined_call_operand.vmem [shape: bf16[32,8], index: 1, kind: input, shape index: {}]   ;;  %s1825_s2 = inlined_call_operand.vmem [shape: f32[32,1], index: 2, kind: input, shape index: {}]   ;;  %s1826_s3 = inlined_call_operand.vmem [shape: bf16[64,32], index: 3, kind: input, shape index: {}]   ;;  %s1827_s4 = inlined_call_operand.vmem [shape: f32[64,1], index: 4, kind: input, shape index: {}]   ;;  %s1828_s5 = inlined_call_operand.vmem [shape: bf16[128,64], index: 5, kind: input, shape index: {}]   ;;  %s1829_s6 = inlined_call_operand.vmem [shape: f32[128,1], index: 6, kind: input, shape index: {}]   ;;  %s1830_s7 = inlined_call_operand.vmem [shape: bf16[32,128], index: 7, kind: input, shape index: {}]   ;;  %s1831_s8 = inlined_call_operand.vmem [shape: f32[32,1], index: 8, kind: input, shape index: {}]   ;;  %s1832_s9 = inlined_call_operand.vmem [shape: f32[32,512], index: 9, kind: output, shape index: {}]  }
   0x1   :  { %s1451_s11 = smov 0  }
   0x2 LB: > { %s1460_s12 = sadd.s32 4294967295, %s1394_s11   ;;  %s1462_s13 = sadd.s32 1, %s1394_s11   ;;  %s1394_s11 = sphi %s1451_s11, %s1836_s11   ;;  %s1390_s10 = sphi %s1449_s10, %s1835_s10   ;;  %s1386_s30 = sphi %s1447_s30, %s1834_s30  }
   0x3   : > { %s217_s14 = ssub.s32 %s1394_s11, %s1462_s13  ;;  %s220_s15 = sadd.s32 1, %s1390_s10 }
   0x4   : > { %p218_p0 = scmp.eq.s32.totalorder %s217_s14, 0  ;;  %p230_p1 = scmp.ne.s32.totalorder %s1390_s10, %s1386_s30 }
   0x5   : > { %p231_p2 = scmp.eq.s32.totalorder %s1460_s12, 1  ;;  %p1226_p3 = scmp.ge.s32.totalorder %s1394_s11, 1 }
   0x6   : > { %s1470_s16 = scalar_select %p218_p0, %s1390_s10, %s220_s15  }
   0x7   : > { %p1472_p4 = por %p231_p2, %p230_p1  ;;  %p288_p5 = scmp.lt.s32.totalorder %s1394_s11, 3 }
   0x9   : > { %p289_p6 = pnand %p1226_p3, %p288_p5 }
   0xa   : > { %s1228_s22 = sshll.u32 (!%p289_p6), %s1460_s12, 1  ;;  %s320_s29 = sand.u32 (!%p289_p6), 1, %s1386_s30  }
   0xb   : > { %292 = sbr.rel (%p289_p6) target bundleno = 860 (0x35c), region = 56  ;;  %p324_p7 = scmp.lt.s32.totalorder (!%p289_p6), %s1228_s22, 3 }
   0xc   : > { %s1227_s11 = sshll.u32 (!%p289_p6), %s320_s29, 6 }
   0xd   : > { %s1789_s14 = scalar_lea.vmem (!%p289_p6), [#allocation2], %s1227_s11 }
  0x10   : > { %v338_v0 = vld [vmem:[%s1825_s2 + $0x10] sm:$0xff]  ;;  %v336_v1 = vld [vmem:[%s1825_s2] sm:$0xff]  ;;  %v1396_v2 = vmov 0   ;;  %s1838_s22 = smov (!%p324_p7, %s1228_s22), 3  ;;  %v339_v3 = vld [vmem:[%s1825_s2 + $0x18] sm:$0xff]  ;;  %vm382_vm0 = vcmask 1043456  }
  0x11   : > { %1370 = vset.pattern.permute.xlu1 %v1396_v2  ;;  %1369 = vset.pattern.permute.xlu0 %v1396_v2  ;;  %s1229_s23 = sshll.u32 %s1838_s22, 2  ;;  %v337_v4 = vld [vmem:[%s1825_s2 + $0x8] sm:$0xff]  ;;  %v1327_v12 = vld [vmem:[%s1824_s1] sm:$0xff]  ;;  %vm375_vm1 = vcmask 64512   ;;  %v466_v15 = vld [vmem:[%s1827_s4 + $0x18] sm:$0xff]  ;;  %vm531_vm10 = vcmask 261120  }
  0x12   : > { %352 = vperm.xlu0 %1369, %v338_v0   ;;  %342 = vperm.xlu1 %1370, %v336_v1   ;;  %s327_s26 = scalar_lea.vmem %s1823_s0, %s1229_s23  ;;  %v467_v13 = vld [vmem:[%s1827_s4 + $0x20] sm:$0xff]  ;;  %v468_v14 = vld [vmem:[%s1827_s4 + $0x28] sm:$0xff]  ;;  %v688_v18 = vld [vmem:[%s1829_s6 + $0x70] sm:$0xff]  ;;  %s1343_s30 = sshll.u32 (%p1472_p4), %s1460_s12, 4 }
  0x13   : > { %1371 = vset.pattern.permute.xlu2 %v1396_v2  ;;  %v331_v5 = vld [vmem:[%s327_s26] sm:$0xff]  ;;  %v1328_v17 = vld [vmem:[%s1824_s1 + $0x8] sm:$0xff]  ;;  %v689_v19 = vld [vmem:[%s1829_s6 + $0x78] sm:$0xff]  ;;  %s1140_s19 = scalar_lea.vmem (%p1472_p4), %s1832_s9, %s1343_s30 }
  0x14   : > { %v371_v6 = vunpack.c.l.b16 %v331_v5  ;;  %v372_v7 = vunpack.c.h.b16 %v331_v5  ;;  %v463_v16 = vld [vmem:[%s1827_s4] sm:$0xff]  ;;  %v687_v20 = vld [vmem:[%s1829_s6 + $0x68] sm:$0xff]  ;;  %v684_v21 = vld [vmem:[%s1829_s6 + $0x50] sm:$0xff] }
  0x15   : > { %v682_v22 = vld [vmem:[%s1829_s6 + $0x40] sm:$0xff]  ;;  %v683_v23 = vld [vmem:[%s1829_s6 + $0x48] sm:$0xff]  ;;  %v681_v24 = vld [vmem:[%s1829_s6 + $0x38] sm:$0xff] }
  0x16   : > { %v373_v8 = vpack.c.b16 %v371_v6, %v371_v6  ;;  %v374_v9 = vpack.c.b16 %v372_v7, %v372_v7  ;;  %v678_v25 = vld [vmem:[%s1829_s6 + $0x20] sm:$0xff]  ;;  %v676_v26 = vld [vmem:[%s1829_s6 + $0x10] sm:$0xff]  ;;  %v677_v27 = vld [vmem:[%s1829_s6 + $0x18] sm:$0xff] }
  0x17   : > { %v675_v28 = vld [vmem:[%s1829_s6 + $0x8] sm:$0xff]  ;;  %v1049_v29 = vld [vmem:[%s1831_s8] sm:$0xff]  ;;  %v1051_v30 = vld [vmem:[%s1831_s8 + $0x10] sm:$0xff] }
  0x18   : > { %v384_v10 = vsel %vm382_vm0, %v373_v8, 0  ;;  %v387_v11 = vsel %vm382_vm0, %v374_v9, 0  ;;  %v1052_v31 = vld [vmem:[%s1831_s8 + $0x18] sm:$0xff]  ;;  %v469_v40 = vld [vmem:[%s1827_s4 + $0x30] sm:$0xff] }
  0x19   : > { %396 = vmatpush.bf16.msra.mxu2 %v384_v10  ;;  %415 = vmatpush.bf16.msra.mxu3 %v387_v11  ;;  %v470_v47 = vld [vmem:[%s1827_s4 + $0x38] sm:$0xff]  ;;  %v465_v6 = vld [vmem:[%s1827_s4 + $0x10] sm:$0xff]  ;;  %v1329_v11 = vld [vmem:[%s1826_s3] sm:$0xff] }
  0x1a   : > { %357 = vperm.xlu0 %1369, %v339_v3   ;;  %347 = vperm.xlu1 %1370, %v337_v4  }
  0x1b   : > { %503 = vperm.xlu2 %1371, %v469_v40  }
  0x1c   : > { %1238 = vmatmul.msk.bf16.vlgmr.msra.gmra.mxu2 %vm375_vm1, %v1327_v12  ;;  %1240 = vmatmul.msk.bf16.vlgmr.msra.gmra.mxu3 %vm375_vm1, %v1327_v12  ;;  %v464_v12 = vld [vmem:[%s1827_s4 + $0x8] sm:$0xff] }
  0x22   : > { %493 = vperm.xlu0 %1369, %v467_v13   ;;  %498 = vperm.xlu1 %1370, %v468_v14   ;;  %v686_v13 = vld [vmem:[%s1829_s6 + $0x60] sm:$0xff]  ;;  %v1330_v14 = vld [vmem:[%s1826_s3 + $0x8] sm:$0xff] }
  0x23   : > { %508 = vperm.xlu2 %1371, %v470_v47  }
  0x2a   : > { %488 = vperm.xlu0 %1369, %v466_v15   ;;  %473 = vperm.xlu1 %1370, %v463_v16   ;;  %v685_v15 = vld [vmem:[%s1829_s6 + $0x58] sm:$0xff]  ;;  %v680_v16 = vld [vmem:[%s1829_s6 + $0x30] sm:$0xff] }
  0x2b   : > { %483 = vperm.xlu2 %1371, %v465_v6  }
  0x2c   : > { %1239 = vmatmul.msk.bf16.gmra.mxu2 %vm375_vm1, %v1328_v17  ;;  %1241 = vmatmul.msk.bf16.gmra.mxu3 %vm375_vm1, %v1328_v17  ;;  %v1331_v17 = vld [vmem:[%s1826_s3 + $0x10] sm:$0xff] }
  0x32   : > { %762 = vperm.xlu0 %1369, %v688_v18   ;;  %767 = vperm.xlu1 %1370, %v689_v19   ;;  %v679_v18 = vld [vmem:[%s1829_s6 + $0x28] sm:$0xff]  ;;  %v674_v19 = vld [vmem:[%s1829_s6] sm:$0xff] }
  0x33   : > { %478 = vperm.xlu2 %1371, %v464_v12  }
  0x3a   : > { %757 = vperm.xlu0 %1369, %v687_v20   ;;  %742 = vperm.xlu1 %1370, %v684_v21   ;;  %v1332_v20 = vld [vmem:[%s1826_s3 + $0x18] sm:$0xff]  ;;  %v1050_v21 = vld [vmem:[%s1831_s8 + $0x8] sm:$0xff] }
  0x3b   : > { %752 = vperm.xlu2 %1371, %v686_v13  }
  0x42   : > { %732 = vperm.xlu0 %1369, %v682_v22   ;;  %737 = vperm.xlu1 %1370, %v683_v23  }
  0x43   : > { %747 = vperm.xlu2 %1371, %v685_v15  }
  0x4a   : > { %727 = vperm.xlu0 %1369, %v681_v24   ;;  %712 = vperm.xlu1 %1370, %v678_v25  }
  0x4b   : > { %722 = vperm.xlu2 %1371, %v680_v16  }
  0x52   : > { %702 = vperm.xlu0 %1369, %v676_v26   ;;  %707 = vperm.xlu1 %1370, %v677_v27  }
  0x53   : > { %717 = vperm.xlu2 %1371, %v679_v18  }
  0x5a   : > { %697 = vperm.xlu0 %1369, %v675_v28   ;;  %1055 = vperm.xlu1 %1370, %v1049_v29  }
  0x5b   : > { %692 = vperm.xlu2 %1371, %v674_v19  }
  0x62   : > { %1065 = vperm.xlu0 %1369, %v1051_v30   ;;  %1070 = vperm.xlu1 %1370, %v1052_v31  }
  0x63   : > { %1060 = vperm.xlu2 %1371, %v1050_v21  }
  0x75   : > { %v504_v28 = vpop.permute.xlu2 %503 }
  0x84   : > { %v343_v36 = vpop.permute.xlu1 %342  ;;  %v353_v37 = vpop.permute.xlu0 %352 }
  0x8c   : > { %v348_v41 = vpop.permute.xlu1 %347  ;;  %v358_v46 = vpop.permute.xlu0 %357 }
  0x94   : > { %v499_v40 = vpop.permute.xlu1 %498 }
  0x9f   : > { %v398_v32 = vpop.f32.mrf.mxu2  ;;  %v417_v33 = vpop.f32.mrf.mxu3 }
  0xa0   : > { %v399_v48 = vadd.f32 %v398_v32, %v343_v36  ;;  %v418_v49 = vadd.f32 %v417_v33, %v343_v36  ;;  %v509_v33 = vpop.permute.xlu2 %508 }
  0xa2   : > { %v435_v60 = vmul.f32 0.01, %v399_v48  ;;  %v436_v61 = vmul.f32 0.01, %v418_v49  ;;  %vm427_vm8 = vcmp.ge.f32.partialorder %v399_v48, 0.0  ;;  %vm428_vm9 = vcmp.ge.f32.partialorder %v418_v49, 0.0 }
  0xa4   : > { %v443_v7 = vsel %vm427_vm8, %v399_v48, %v435_v60  ;;  %v444_v8 = vsel %vm428_vm9, %v418_v49, %v436_v61 }
  0xa7   : > { %v400_v34 = vpop.f32.mrf.mxu2  ;;  %v419_v35 = vpop.f32.mrf.mxu3 }
  0xa8   : > { %v401_v44 = vadd.f32 %v400_v34, %v348_v41  ;;  %v420_v45 = vadd.f32 %v419_v35, %v348_v41  ;;  %v484_v36 = vpop.permute.xlu2 %483 }
  0xaa   : > { %v437_v56 = vmul.f32 0.01, %v401_v44  ;;  %v438_v57 = vmul.f32 0.01, %v420_v45  ;;  %vm429_vm6 = vcmp.ge.f32.partialorder %v401_v44, 0.0  ;;  %vm430_vm7 = vcmp.ge.f32.partialorder %v420_v45, 0.0 }
  0xac   : > { %v445_v4 = vsel %vm429_vm6, %v401_v44, %v437_v56  ;;  %v446_v5 = vsel %vm430_vm7, %v420_v45, %v438_v57 }
  0xad   : > { %v451_v9 = vpack.c.bf16 %v445_v4, %v443_v7  ;;  %v452_v10 = vpack.c.bf16 %v446_v5, %v444_v8 }
  0xaf   : > { %v403_v38 = vpop.f32.mrf.mxu2  ;;  %v422_v39 = vpop.f32.mrf.mxu3 }
  0xb0   : > { %v404_v42 = vadd.f32 %v403_v38, %v353_v37  ;;  %v423_v43 = vadd.f32 %v422_v39, %v353_v37  ;;  %v494_v37 = vpop.permute.xlu0 %493 }
  0xb2   : > { %v439_v52 = vmul.f32 0.01, %v404_v42  ;;  %v440_v53 = vmul.f32 0.01, %v423_v43  ;;  %vm431_vm2 = vcmp.ge.f32.partialorder %v404_v42, 0.0  ;;  %vm432_vm3 = vcmp.ge.f32.partialorder %v423_v43, 0.0 }
  0xb4   : > { %v447_v62 = vsel %vm431_vm2, %v404_v42, %v439_v52  ;;  %v448_v0 = vsel %vm432_vm3, %v423_v43, %v440_v53  ;;  %v479_v43 = vpop.permute.xlu2 %478 }
  0xb7   : > { %v405_v50 = vpop.f32.mrf.mxu2  ;;  %v424_v51 = vpop.f32.mrf.mxu3 }
  0xb8   : > { %v406_v54 = vadd.f32 %v405_v50, %v358_v46  ;;  %v425_v55 = vadd.f32 %v424_v51, %v358_v46  ;;  %v489_v46 = vpop.permute.xlu0 %488 }
  0xba   : > { %v441_v58 = vmul.f32 0.01, %v406_v54  ;;  %v442_v59 = vmul.f32 0.01, %v425_v55  ;;  %vm433_vm4 = vcmp.ge.f32.partialorder %v406_v54, 0.0  ;;  %vm434_vm5 = vcmp.ge.f32.partialorder %v425_v55, 0.0 }
  0xbc   : > { %v449_v63 = vsel %vm433_vm4, %v406_v54, %v441_v58  ;;  %v450_v1 = vsel %vm434_vm5, %v425_v55, %v442_v59 }
  0xbd   : > { %v453_v2 = vpack.c.bf16 %v449_v63, %v447_v62  ;;  %v454_v3 = vpack.c.bf16 %v450_v1, %v448_v0 }
  0xbf   : > { %550 = vmatpush.bf16.msrb.mxu2 %v453_v2  ;;  %579 = vmatpush.bf16.msrb.mxu3 %v454_v3 }
  0xc3   : > { %551 = vmatpush.bf16.msrb.mxu2 %v451_v9  ;;  %580 = vmatpush.bf16.msrb.mxu3 %v452_v10  ;;  %v474_v9 = vpop.permute.xlu1 %473 }
  0xc6   : > { %1258 = vmatmul.msk.bf16.vlgmr.msrb.gmra.mxu2 %vm531_vm10, %v1329_v11  ;;  %1262 = vmatmul.msk.bf16.vlgmr.msrb.gmra.mxu3 %vm531_vm10, %v1329_v11 }
  0xd6   : > { %1259 = vmatmul.msk.bf16.gmra.mxu2 %vm531_vm10, %v1330_v14  ;;  %1263 = vmatmul.msk.bf16.gmra.mxu3 %vm531_vm10, %v1330_v14 }
  0xe6   : > { %1260 = vmatmul.msk.bf16.gmra.mxu2 %vm531_vm10, %v1331_v17  ;;  %1264 = vmatmul.msk.bf16.gmra.mxu3 %vm531_vm10, %v1331_v17 }
  0xf6   : > { %1261 = vmatmul.msk.bf16.gmra.mxu2 %vm531_vm10, %v1332_v20  ;;  %1265 = vmatmul.msk.bf16.gmra.mxu3 %vm531_vm10, %v1332_v20 }
 0x149   : > { %v1602_v22 = vpop.f32.mrf.mxu2  ;;  %v1604_v23 = vpop.f32.mrf.mxu3 }
 0x14a   : > { %v554_v14 = vadd.f32 %v1602_v22, %v474_v9  ;;  %v583_v15 = vadd.f32 %v1604_v23, %v474_v9 }
 0x14c   : > { %v618_v23 = vmul.f32 0.01, %v554_v14  ;;  %vm602_vm9 = vcmp.ge.f32.partialorder %v554_v14, 0.0  ;;  %vm603_vm10 = vcmp.ge.f32.partialorder %v583_v15, 0.0 }
 0x151   : > { %v555_v24 = vpop.f32.mrf.mxu2  ;;  %v584_v25 = vpop.f32.mrf.mxu3 }
 0x152   : > { %v1606_v47 = vadd.f32 %v555_v24, %v479_v43  ;;  %v1608_v48 = vadd.f32 %v584_v25, %v479_v43  ;;  %v1338_v43 = vld [vmem:[%s1828_s5 + $0x28] sm:$0xff] }
 0x154   : > { %v620_v24 = vmul.f32 0.01, %v1606_v47  ;;  %v621_v25 = vmul.f32 0.01, %v1608_v48  ;;  %vm604_vm7 = vcmp.ge.f32.partialorder %v1606_v47, 0.0  ;;  %vm605_vm8 = vcmp.ge.f32.partialorder %v1608_v48, 0.0 }
 0x159   : > { %v558_v26 = vpop.f32.mrf.mxu2  ;;  %v587_v27 = vpop.f32.mrf.mxu3 }
 0x15a   : > { %v559_v49 = vadd.f32 %v558_v26, %v484_v36  ;;  %v588_v50 = vadd.f32 %v587_v27, %v484_v36  ;;  %v619_v27 = vmul.f32 0.01, %v583_v15 }
 0x15c   : > { %v622_v16 = vmul.f32 0.01, %v559_v49  ;;  %v623_v17 = vmul.f32 0.01, %v588_v50  ;;  %vm606_vm5 = vcmp.ge.f32.partialorder %v559_v49, 0.0  ;;  %vm607_vm6 = vcmp.ge.f32.partialorder %v588_v50, 0.0 }
 0x161   : > { %v560_v29 = vpop.f32.mrf.mxu2  ;;  %v589_v30 = vpop.f32.mrf.mxu3 }
 0x162   : > { %v561_v51 = vadd.f32 %v560_v29, %v489_v46  ;;  %v590_v52 = vadd.f32 %v589_v30, %v489_v46  ;;  %v639_v29 = vsel %vm607_vm6, %v588_v50, %v623_v17  ;;  %v1663_v50 = vpop.permute.xlu1 %767 }
 0x164   : > { %v624_v10 = vmul.f32 0.01, %v561_v51  ;;  %v625_v11 = vmul.f32 0.01, %v590_v52  ;;  %vm608_vm3 = vcmp.ge.f32.partialorder %v561_v51, 0.0  ;;  %vm609_vm4 = vcmp.ge.f32.partialorder %v590_v52, 0.0 }
 0x166   : > { %v640_v26 = vsel %vm608_vm3, %v561_v51, %v624_v10  ;;  %v641_v22 = vsel %vm609_vm4, %v590_v52, %v625_v11  ;;  %v1340_v51 = vld [vmem:[%s1828_s5 + $0x38] sm:$0xff] }
 0x169   : > { %v563_v31 = vpop.f32.mrf.mxu2  ;;  %v592_v32 = vpop.f32.mrf.mxu3 }
 0x16a   : > { %v564_v53 = vadd.f32 %v563_v31, %v494_v37  ;;  %v593_v54 = vadd.f32 %v592_v32, %v494_v37  ;;  %v653_v31 = vpack.c.bf16 %v641_v22, %v639_v29  ;;  %v636_v32 = vsel %vm604_vm7, %v1606_v47, %v620_v24  ;;  %v1339_v47 = vld [vmem:[%s1828_s5 + $0x30] sm:$0xff] }
 0x16c   : > { %v626_v1 = vmul.f32 0.01, %v564_v53  ;;  %v627_v2 = vmul.f32 0.01, %v593_v54  ;;  %vm610_vm1 = vcmp.ge.f32.partialorder %v564_v53, 0.0  ;;  %vm611_vm2 = vcmp.ge.f32.partialorder %v593_v54, 0.0 }
 0x16e   : > { %v642_v18 = vsel %vm610_vm1, %v564_v53, %v626_v1  ;;  %v643_v19 = vsel %vm611_vm2, %v593_v54, %v627_v2  ;;  %v1674_v54 = vpop.permute.xlu1 %742 }
 0x171   : > { %v565_v34 = vpop.f32.mrf.mxu2  ;;  %v594_v35 = vpop.f32.mrf.mxu3 }
 0x172   : > { %v566_v44 = vadd.f32 %v565_v34, %v499_v40  ;;  %v595_v45 = vadd.f32 %v594_v35, %v499_v40  ;;  %v634_v34 = vsel %vm602_vm9, %v554_v14, %v618_v23  ;;  %v635_v35 = vsel %vm603_vm10, %v583_v15, %v619_v27  ;;  %v1335_v40 = vld [vmem:[%s1828_s5 + $0x10] sm:$0xff] }
 0x173   : > { %v650_v36 = vpack.c.bf16 %v636_v32, %v634_v34 }
 0x174   : > { %v628_v61 = vmul.f32 0.01, %v566_v44  ;;  %v629_v62 = vmul.f32 0.01, %v595_v45  ;;  %vm612_vm15 = vcmp.ge.f32.partialorder %v566_v44, 0.0  ;;  %vm613_vm0 = vcmp.ge.f32.partialorder %v595_v45, 0.0 }
 0x176   : > { %v644_v12 = vsel %vm612_vm15, %v566_v44, %v628_v61  ;;  %v645_v13 = vsel %vm613_vm0, %v595_v45, %v629_v62  ;;  %v1648_v44 = vpop.permute.xlu0 %762  ;;  %v1650_v45 = vpop.permute.xlu2 %752 }
 0x177   : > { %v654_v20 = vpack.c.bf16 %v644_v12, %v642_v18  ;;  %v655_v21 = vpack.c.bf16 %v645_v13, %v643_v19 }
 0x179   : > { %v568_v38 = vpop.f32.mrf.mxu2  ;;  %v597_v39 = vpop.f32.mrf.mxu3 }
 0x17a   : > { %v569_v41 = vadd.f32 %v568_v38, %v504_v28  ;;  %v598_v42 = vadd.f32 %v597_v39, %v504_v28  ;;  %v638_v28 = vsel %vm606_vm5, %v559_v49, %v622_v16  ;;  %v1333_v38 = vld [vmem:[%s1828_s5] sm:$0xff]  ;;  %v1334_v39 = vld [vmem:[%s1828_s5 + $0x8] sm:$0xff] }
 0x17b   : > { %v652_v30 = vpack.c.bf16 %v640_v26, %v638_v28 }
 0x17c   : > { %v630_v57 = vmul.f32 0.01, %v569_v41  ;;  %v631_v58 = vmul.f32 0.01, %v598_v42  ;;  %vm614_vm11 = vcmp.ge.f32.partialorder %v569_v41, 0.0  ;;  %vm615_vm12 = vcmp.ge.f32.partialorder %v598_v42, 0.0 }
 0x17e   : > { %v646_v3 = vsel %vm614_vm11, %v569_v41, %v630_v57  ;;  %v647_v5 = vsel %vm615_vm12, %v598_v42, %v631_v58  ;;  %vm810_vm11 = vcmask 523264   ;;  %v1336_v41 = vld [vmem:[%s1828_s5 + $0x18] sm:$0xff]  ;;  %v1337_v42 = vld [vmem:[%s1828_s5 + $0x20] sm:$0xff]  ;;  %v1652_v46 = vpop.permute.xlu0 %757 }
 0x181   : > { %v570_v55 = vpop.f32.mrf.mxu2  ;;  %v599_v56 = vpop.f32.mrf.mxu3 }
 0x182   : > { %v571_v59 = vadd.f32 %v570_v55, %v509_v33  ;;  %v600_v60 = vadd.f32 %v599_v56, %v509_v33  ;;  %v637_v33 = vsel %vm605_vm8, %v1608_v48, %v621_v25  ;;  %v1659_v48 = vpop.permute.xlu2 %747 }
 0x183   : > { %v651_v37 = vpack.c.bf16 %v637_v33, %v635_v35 }
 0x184   : > { %v632_v63 = vmul.f32 0.01, %v571_v59  ;;  %v633_v0 = vmul.f32 0.01, %v600_v60  ;;  %vm616_vm13 = vcmp.ge.f32.partialorder %v571_v59, 0.0  ;;  %vm617_vm14 = vcmp.ge.f32.partialorder %v600_v60, 0.0 }
 0x186   : > { %v648_v4 = vsel %vm616_vm13, %v571_v59, %v632_v63  ;;  %v649_v6 = vsel %vm617_vm14, %v600_v60, %v633_v0  ;;  %v1661_v49 = vpop.permute.xlu0 %732  ;;  %v1676_v59 = vpop.permute.xlu1 %737 }
 0x187   : > { %v656_v7 = vpack.c.bf16 %v648_v4, %v646_v3  ;;  %v657_v8 = vpack.c.bf16 %v649_v6, %v647_v5 }
 0x189   : > { %839 = vmatpush.bf16.msra.mxu0 %v656_v7  ;;  %888 = vmatpush.bf16.msra.mxu1 %v657_v8 }
 0x18a   : > { %v1668_v52 = vpop.permute.xlu2 %722 }
 0x18d   : > { %840 = vmatpush.bf16.msra.mxu0 %v654_v20  ;;  %889 = vmatpush.bf16.msra.mxu1 %v655_v21 }
 0x18e   : > { %v1670_v53 = vpop.permute.xlu0 %727  ;;  %v713_v8 = vpop.permute.xlu1 %712 }
 0x191   : > { %841 = vmatpush.bf16.msra.mxu0 %v652_v30  ;;  %890 = vmatpush.bf16.msra.mxu1 %v653_v31 }
 0x192   : > { %v718_v55 = vpop.permute.xlu2 %717 }
 0x195   : > { %842 = vmatpush.bf16.msra.mxu0 %v650_v36  ;;  %891 = vmatpush.bf16.msra.mxu1 %v651_v37 }
 0x196   : > { %v703_v56 = vpop.permute.xlu0 %702  ;;  %v708_v19 = vpop.permute.xlu1 %707 }
 0x198   : > { %1298 = vmatmul.msk.bf16.vlgmr.msra.gmra.mxu0 %vm810_vm11, %v1333_v38  ;;  %1306 = vmatmul.msk.bf16.vlgmr.msra.gmra.mxu1 %vm810_vm11, %v1333_v38 }
 0x19a   : > { %v693_v60 = vpop.permute.xlu2 %692 }
 0x19e   : > { %v698_v63 = vpop.permute.xlu0 %697 }
 0x1a8   : > { %1299 = vmatmul.msk.bf16.gmra.mxu0 %vm810_vm11, %v1334_v39  ;;  %1307 = vmatmul.msk.bf16.gmra.mxu1 %vm810_vm11, %v1334_v39 }
 0x1b8   : > { %1300 = vmatmul.msk.bf16.gmra.mxu0 %vm810_vm11, %v1335_v40  ;;  %1308 = vmatmul.msk.bf16.gmra.mxu1 %vm810_vm11, %v1335_v40 }
 0x1c8   : > { %1301 = vmatmul.msk.bf16.gmra.mxu0 %vm810_vm11, %v1336_v41  ;;  %1309 = vmatmul.msk.bf16.gmra.mxu1 %vm810_vm11, %v1336_v41 }
 0x1d8   : > { %1302 = vmatmul.msk.bf16.gmra.mxu0 %vm810_vm11, %v1337_v42  ;;  %1310 = vmatmul.msk.bf16.gmra.mxu1 %vm810_vm11, %v1337_v42 }
 0x1e8   : > { %1303 = vmatmul.msk.bf16.gmra.mxu0 %vm810_vm11, %v1338_v43  ;;  %1311 = vmatmul.msk.bf16.gmra.mxu1 %vm810_vm11, %v1338_v43 }
 0x1f8   : > { %1304 = vmatmul.msk.bf16.gmra.mxu0 %vm810_vm11, %v1339_v47  ;;  %1312 = vmatmul.msk.bf16.gmra.mxu1 %vm810_vm11, %v1339_v47 }
 0x208   : > { %1305 = vmatmul.msk.bf16.gmra.mxu0 %vm810_vm11, %v1340_v51  ;;  %1313 = vmatmul.msk.bf16.gmra.mxu1 %vm810_vm11, %v1340_v51 }
 0x215   : > { %v844_v57 = vpop.f32.mrf.mxu0  ;;  %v893_v58 = vpop.f32.mrf.mxu1 }
 0x216   : > { %v845_v61 = vadd.f32 %v844_v57, %v693_v60  ;;  %v894_v62 = vadd.f32 %v893_v58, %v693_v60 }
 0x218   : > { %v965_v2 = vmul.f32 0.01, %v845_v61  ;;  %v966_v3 = vmul.f32 0.01, %v894_v62  ;;  %vm933_vm12 = vcmp.ge.f32.partialorder %v845_v61, 0.0  ;;  %vm934_vm13 = vcmp.ge.f32.partialorder %v894_v62, 0.0 }
 0x21a   : > { %v1678_v9 = vsel %vm933_vm12, %v845_v61, %v965_v2  ;;  %v1682_v11 = vsel %vm934_vm13, %v894_v62, %v966_v3 }
 0x21d   : > { %v846_v0 = vpop.f32.mrf.mxu0  ;;  %v895_v1 = vpop.f32.mrf.mxu1 }
 0x21e   : > { %v847_v4 = vadd.f32 %v846_v0, %v698_v63  ;;  %v896_v5 = vadd.f32 %v895_v1, %v698_v63 }
 0x220   : > { %vm935_vm14 = vcmp.ge.f32.partialorder %v847_v4, 0.0  ;;  %v967_v6 = vmul.f32 0.01, %v847_v4  ;;  %vm936_vm15 = vcmp.ge.f32.partialorder %v896_v5, 0.0  ;;  %v968_v7 = vmul.f32 0.01, %v896_v5 }
 0x222   : > { %v1680_v10 = vsel %vm935_vm14, %v847_v4, %v967_v6  ;;  %v1684_v12 = vsel %vm936_vm15, %v896_v5, %v968_v7 }
 0x223   : > { %v1029_v13 = vpack.c.bf16 %v1680_v10, %v1678_v9  ;;  %v1030_v14 = vpack.c.bf16 %v1684_v12, %v1682_v11  ;;  %v1061_v10 = vpop.permute.xlu2 %1060 }
 0x225   : > { %v849_v15 = vpop.f32.mrf.mxu0  ;;  %v898_v16 = vpop.f32.mrf.mxu1 }
 0x226   : > { %v850_v17 = vadd.f32 %v849_v15, %v703_v56  ;;  %v899_v18 = vadd.f32 %v898_v16, %v703_v56 }
 0x228   : > { %v969_v24 = vmul.f32 0.01, %v850_v17  ;;  %v970_v25 = vmul.f32 0.01, %v899_v18  ;;  %vm937_vm0 = vcmp.ge.f32.partialorder %v850_v17, 0.0  ;;  %vm938_vm1 = vcmp.ge.f32.partialorder %v899_v18, 0.0 }
 0x22a   : > { %v1690_v28 = vsel %vm937_vm0, %v850_v17, %v969_v24  ;;  %v1694_v30 = vsel %vm938_vm1, %v899_v18, %v970_v25 }
 0x22d   : > { %v851_v20 = vpop.f32.mrf.mxu0  ;;  %v900_v21 = vpop.f32.mrf.mxu1 }
 0x22e   : > { %v852_v26 = vadd.f32 %v851_v20, %v708_v19  ;;  %v901_v22 = vadd.f32 %v900_v21, %v708_v19 }
 0x230   : > { %vm939_vm2 = vcmp.ge.f32.partialorder %v852_v26, 0.0  ;;  %v971_v23 = vmul.f32 0.01, %v852_v26  ;;  %vm940_vm3 = vcmp.ge.f32.partialorder %v901_v22, 0.0  ;;  %v972_v27 = vmul.f32 0.01, %v901_v22 }
 0x232   : > { %v1692_v29 = vsel %vm939_vm2, %v852_v26, %v971_v23  ;;  %v1696_v31 = vsel %vm940_vm3, %v901_v22, %v972_v27 }
 0x233   : > { %v1031_v32 = vpack.c.bf16 %v1692_v29, %v1690_v28  ;;  %v1032_v33 = vpack.c.bf16 %v1696_v31, %v1694_v30  ;;  %v1342_v28 = vld [vmem:[%s1830_s7 + $0x8] sm:$0xff]  ;;  %v1056_v29 = vpop.permute.xlu1 %1055 }
 0x235   : > { %v854_v34 = vpop.f32.mrf.mxu0  ;;  %v903_v35 = vpop.f32.mrf.mxu1 }
 0x236   : > { %v855_v36 = vadd.f32 %v854_v34, %v713_v8  ;;  %v904_v37 = vadd.f32 %v903_v35, %v713_v8 }
 0x238   : > { %v973_v40 = vmul.f32 0.01, %v855_v36  ;;  %v974_v41 = vmul.f32 0.01, %v904_v37  ;;  %vm941_vm4 = vcmp.ge.f32.partialorder %v855_v36, 0.0  ;;  %vm942_vm5 = vcmp.ge.f32.partialorder %v904_v37, 0.0 }
 0x23a   : > { %v1702_v56 = vsel %vm941_vm4, %v855_v36, %v973_v40  ;;  %v1706_v58 = vsel %vm942_vm5, %v904_v37, %v974_v41 }
 0x23d   : > { %v856_v38 = vpop.f32.mrf.mxu0  ;;  %v905_v39 = vpop.f32.mrf.mxu1 }
 0x23e   : > { %v857_v42 = vadd.f32 %v856_v38, %v718_v55  ;;  %v906_v43 = vadd.f32 %v905_v39, %v718_v55 }
 0x240   : > { %vm943_vm6 = vcmp.ge.f32.partialorder %v857_v42, 0.0  ;;  %v975_v47 = vmul.f32 0.01, %v857_v42  ;;  %vm944_vm7 = vcmp.ge.f32.partialorder %v906_v43, 0.0  ;;  %v976_v51 = vmul.f32 0.01, %v906_v43 }
 0x242   : > { %v1704_v57 = vsel %vm943_vm6, %v857_v42, %v975_v47  ;;  %v1708_v60 = vsel %vm944_vm7, %v906_v43, %v976_v51 }
 0x243   : > { %v1033_v61 = vpack.c.bf16 %v1704_v57, %v1702_v56  ;;  %v1034_v55 = vpack.c.bf16 %v1708_v60, %v1706_v58 }
 0x245   : > { %v859_v62 = vpop.f32.mrf.mxu0  ;;  %v908_v63 = vpop.f32.mrf.mxu1 }
 0x246   : > { %v860_v0 = vadd.f32 %v859_v62, %v1668_v52  ;;  %v909_v1 = vadd.f32 %v908_v63, %v1668_v52 }
 0x248   : > { %v977_v4 = vmul.f32 0.01, %v860_v0  ;;  %v978_v5 = vmul.f32 0.01, %v909_v1  ;;  %vm945_vm8 = vcmp.ge.f32.partialorder %v860_v0, 0.0  ;;  %vm946_vm9 = vcmp.ge.f32.partialorder %v909_v1, 0.0 }
 0x24a   : > { %v1718_v16 = vsel %vm945_vm8, %v860_v0, %v977_v4  ;;  %v1722_v18 = vsel %vm946_vm9, %v909_v1, %v978_v5 }
 0x24d   : > { %v861_v2 = vpop.f32.mrf.mxu0  ;;  %v910_v3 = vpop.f32.mrf.mxu1 }
 0x24e   : > { %v862_v6 = vadd.f32 %v861_v2, %v1670_v53  ;;  %v911_v7 = vadd.f32 %v910_v3, %v1670_v53 }
 0x250   : > { %vm947_vm10 = vcmp.ge.f32.partialorder %v862_v6, 0.0  ;;  %v979_v8 = vmul.f32 0.01, %v862_v6  ;;  %vm948_vm11 = vcmp.ge.f32.partialorder %v911_v7, 0.0  ;;  %v980_v15 = vmul.f32 0.01, %v911_v7 }
 0x252   : > { %v1720_v17 = vsel %vm947_vm10, %v862_v6, %v979_v8  ;;  %v1724_v52 = vsel %vm948_vm11, %v911_v7, %v980_v15 }
 0x253   : > { %v1035_v19 = vpack.c.bf16 %v1720_v17, %v1718_v16  ;;  %v1036_v53 = vpack.c.bf16 %v1724_v52, %v1722_v18  ;;  %v1341_v16 = vld [vmem:[%s1830_s7] sm:$0xff] }
 0x255   : > { %v864_v20 = vpop.f32.mrf.mxu0  ;;  %v913_v21 = vpop.f32.mrf.mxu1 }
 0x25d   : > { %v866_v24 = vpop.f32.mrf.mxu0  ;;  %v915_v25 = vpop.f32.mrf.mxu1 }
 0x25e   : > { %v1735_v47 = vadd.f32 %v866_v24, %v1676_v59  ;;  %v1738_v51 = vadd.f32 %v915_v25, %v1676_v59 }
 0x260   : > { %vm951_vm8 = vcmp.ge.f32.partialorder %v1735_v47, 0.0  ;;  %vm952_vm9 = vcmp.ge.f32.partialorder %v1738_v51, 0.0 }
 0x265   : > { %v869_v26 = vpop.f32.mrf.mxu0  ;;  %v918_v22 = vpop.f32.mrf.mxu1 }
 0x266   : > { %v870_v62 = vadd.f32 %v869_v26, %v1674_v54  ;;  %v919_v63 = vadd.f32 %v918_v22, %v1674_v54 }
 0x268   : > { %vm953_vm6 = vcmp.ge.f32.partialorder %v870_v62, 0.0  ;;  %vm954_vm7 = vcmp.ge.f32.partialorder %v919_v63, 0.0 }
 0x26d   : > { %v871_v23 = vpop.f32.mrf.mxu0  ;;  %v920_v27 = vpop.f32.mrf.mxu1 }
 0x26e   : > { %v872_v0 = vadd.f32 %v871_v23, %v1659_v48  ;;  %v921_v1 = vadd.f32 %v920_v27, %v1659_v48 }
 0x270   : > { %v987_v27 = vmul.f32 0.01, %v872_v0  ;;  %vm955_vm4 = vcmp.ge.f32.partialorder %v872_v0, 0.0  ;;  %vm956_vm5 = vcmp.ge.f32.partialorder %v921_v1, 0.0 }
 0x275   : > { %v874_v34 = vpop.f32.mrf.mxu0  ;;  %v923_v35 = vpop.f32.mrf.mxu1 }
 0x276   : > { %v924_v2 = vadd.f32 %v923_v35, %v1650_v45 }
 0x278   : > { %v990_v24 = vmul.f32 0.01, %v924_v2  ;;  %vm958_vm3 = vcmp.ge.f32.partialorder %v924_v2, 0.0 }
 0x27d   : > { %v876_v36 = vpop.f32.mrf.mxu0  ;;  %v925_v37 = vpop.f32.mrf.mxu1 }
 0x27e   : > { %v877_v42 = vadd.f32 %v876_v36, %v1652_v46  ;;  %v926_v43 = vadd.f32 %v925_v37, %v1652_v46  ;;  %v865_v37 = vadd.f32 %v864_v20, %v1661_v49  ;;  %v984_v20 = vmul.f32 0.01, %v1738_v51 }
 0x280   : > { %v991_v7 = vmul.f32 0.01, %v877_v42  ;;  %v992_v8 = vmul.f32 0.01, %v926_v43  ;;  %vm959_vm0 = vcmp.ge.f32.partialorder %v877_v42, 0.0  ;;  %vm960_vm1 = vcmp.ge.f32.partialorder %v926_v43, 0.0 }
 0x281   : > { %vm949_vm10 = vcmp.ge.f32.partialorder %v865_v37, 0.0 }
 0x282   : > { %v1023_v35 = vsel %vm959_vm0, %v877_v42, %v991_v7  ;;  %v1024_v36 = vsel %vm960_vm1, %v926_v43, %v992_v8  ;;  %v983_v42 = vmul.f32 0.01, %v1735_v47  ;;  %v1019_v43 = vsel %vm955_vm4, %v872_v0, %v987_v27 }
 0x283   : > { %v1016_v8 = vsel %vm952_vm9, %v1738_v51, %v984_v20 }
 0x284   : > { %v1015_v7 = vsel %vm951_vm8, %v1735_v47, %v983_v42 }
 0x285   : > { %v879_v38 = vpop.f32.mrf.mxu0  ;;  %v928_v39 = vpop.f32.mrf.mxu1 }
 0x286   : > { %v880_v40 = vadd.f32 %v879_v38, %v1648_v44  ;;  %v929_v41 = vadd.f32 %v928_v39, %v1648_v44  ;;  %v875_v44 = vadd.f32 %v874_v34, %v1650_v45  ;;  %v988_v34 = vmul.f32 0.01, %v921_v1 }
 0x287   : > { %v914_v38 = vadd.f32 %v913_v21, %v1661_v49  ;;  %v985_v39 = vmul.f32 0.01, %v870_v62  ;;  %v981_v21 = vmul.f32 0.01, %v865_v37 }
 0x288   : > { %v993_v4 = vmul.f32 0.01, %v880_v40  ;;  %v994_v5 = vmul.f32 0.01, %v929_v41  ;;  %vm961_vm12 = vcmp.ge.f32.partialorder %v880_v40, 0.0  ;;  %vm962_vm13 = vcmp.ge.f32.partialorder %v929_v41, 0.0 }
 0x289   : > { %v989_v15 = vmul.f32 0.01, %v875_v44  ;;  %vm957_vm2 = vcmp.ge.f32.partialorder %v875_v44, 0.0  ;;  %v1020_v49 = vsel %vm956_vm5, %v921_v1, %v988_v34  ;;  %vm950_vm11 = vcmp.ge.f32.partialorder %v914_v38, 0.0 }
 0x28a   : > { %v1025_v45 = vsel %vm961_vm12, %v880_v40, %v993_v4  ;;  %v1026_v25 = vsel %vm962_vm13, %v929_v41, %v994_v5  ;;  %v986_v40 = vmul.f32 0.01, %v919_v63  ;;  %v1017_v5 = vsel %vm953_vm6, %v870_v62, %v985_v39 }
 0x28b   : > { %v1021_v41 = vsel %vm957_vm2, %v875_v44, %v989_v15  ;;  %v982_v44 = vmul.f32 0.01, %v914_v38  ;;  %v1013_v0 = vsel %vm949_vm10, %v865_v37, %v981_v21 }
 0x28d   : > { %v881_v3 = vpop.f32.mrf.mxu0  ;;  %v930_v46 = vpop.f32.mrf.mxu1  ;;  %v1014_v1 = vsel %vm950_vm11, %v914_v38, %v982_v44 }
 0x28e   : > { %v882_v6 = vadd.f32 %v881_v3, %v1663_v50  ;;  %v931_v59 = vadd.f32 %v930_v46, %v1663_v50  ;;  %v1022_v3 = vsel %vm958_vm3, %v924_v2, %v990_v24  ;;  %v1041_v46 = vpack.c.bf16 %v1023_v35, %v1021_v41 }
 0x28f   : > { %v1042_v4 = vpack.c.bf16 %v1024_v36, %v1022_v3  ;;  %v1018_v2 = vsel %vm954_vm7, %v919_v63, %v986_v40 }
 0x290   : > { %vm963_vm14 = vcmp.ge.f32.partialorder %v882_v6, 0.0  ;;  %v995_v54 = vmul.f32 0.01, %v882_v6  ;;  %vm964_vm15 = vcmp.ge.f32.partialorder %v931_v59, 0.0  ;;  %v996_v48 = vmul.f32 0.01, %v931_v59 }
 0x292   : > { %v1027_v26 = vsel %vm963_vm14, %v882_v6, %v995_v54  ;;  %v1028_v22 = vsel %vm964_vm15, %v931_v59, %v996_v48  ;;  %v1039_v6 = vpack.c.bf16 %v1019_v43, %v1017_v5  ;;  %v1040_v59 = vpack.c.bf16 %v1020_v49, %v1018_v2 }
 0x293   : > { %v1043_v23 = vpack.c.bf16 %v1027_v26, %v1025_v45  ;;  %v1044_v50 = vpack.c.bf16 %v1028_v22, %v1026_v25  ;;  %v1037_v54 = vpack.c.bf16 %v1015_v7, %v1013_v0  ;;  %v1038_v48 = vpack.c.bf16 %v1016_v8, %v1014_v1 }
 0x295   : > { %1085 = vmatpush.bf16.msra.mxu2 %v1043_v23  ;;  %1104 = vmatpush.bf16.msra.mxu3 %v1044_v50 }
 0x299   : > { %1086 = vmatpush.bf16.msra.mxu2 %v1041_v46  ;;  %1105 = vmatpush.bf16.msra.mxu3 %v1042_v4 }
 0x29d   : > { %1087 = vmatpush.bf16.msra.mxu2 %v1039_v6  ;;  %1106 = vmatpush.bf16.msra.mxu3 %v1040_v59 }
 0x2a1   : > { %1088 = vmatpush.bf16.msra.mxu2 %v1037_v54  ;;  %1107 = vmatpush.bf16.msra.mxu3 %v1038_v48 }
 0x2a5   : > { %1089 = vmatpush.bf16.msra.mxu2 %v1035_v19  ;;  %1108 = vmatpush.bf16.msra.mxu3 %v1036_v53 }
 0x2a9   : > { %1090 = vmatpush.bf16.msra.mxu2 %v1033_v61  ;;  %1109 = vmatpush.bf16.msra.mxu3 %v1034_v55  ;;  %v1071_v61 = vpop.permute.xlu1 %1070 }
 0x2ad   : > { %1091 = vmatpush.bf16.msra.mxu2 %v1031_v32  ;;  %1110 = vmatpush.bf16.msra.mxu3 %v1032_v33  ;;  %v1066_v33 = vpop.permute.xlu0 %1065 }
 0x2b1   : > { %1092 = vmatpush.bf16.msra.mxu2 %v1029_v13  ;;  %1111 = vmatpush.bf16.msra.mxu3 %v1030_v14 }
 0x2b4   : > { %1093 = vmatmul.bf16.vlgmr.msra.gmra.mxu2 %v1341_v16  ;;  %1112 = vmatmul.bf16.vlgmr.msra.gmra.mxu3 %v1341_v16 }
 0x2c4   : > { %1098 = vmatmul.bf16.gmra.mxu2 %v1342_v28  ;;  %1117 = vmatmul.bf16.gmra.mxu3 %v1342_v28 }
 0x337   : > { %v1094_v30 = vpop.f32.mrf.mxu2  ;;  %v1113_v31 = vpop.f32.mrf.mxu3 }
 0x338   : > { %v1095_v32 = vadd.f32 %v1094_v30, %v1056_v29  ;;  %v1114_v9 = vadd.f32 %v1113_v31, %v1056_v29 }
 0x33a   : > { %1123 = vst [vmem:[%s1789_s14] sm:$0xff] %v1095_v32 }
 0x33b   : > { %1124 = vst [vmem:[%s1789_s14 + $0x8] sm:$0xff] %v1114_v9 }
 0x33f   : > { %v1096_v11 = vpop.f32.mrf.mxu2  ;;  %v1115_v12 = vpop.f32.mrf.mxu3 }
 0x340   : > { %v1097_v13 = vadd.f32 %v1096_v11, %v1061_v10  ;;  %v1116_v14 = vadd.f32 %v1115_v12, %v1061_v10 }
 0x341   : > { %v1153_v19 = vld [vmem:[%s1789_s14] sm:$0xff] (%p1472_p4) }
 0x342   : > { %1125 = vst [vmem:[%s1789_s14 + $0x10] sm:$0xff] %v1097_v13  ;;  %v1155_v53 = vld [vmem:[%s1789_s14 + $0x8] sm:$0xff] (%p1472_p4) }
 0x343   : > { %1126 = vst [vmem:[%s1789_s14 + $0x18] sm:$0xff] %v1116_v14 }
 0x344   : > { %1154 = vst [vmem:[%s1140_s19] sm:$0xff] (%p1472_p4), %v1153_v19 }
 0x345   : > { %1156 = vst [vmem:[%s1140_s19 + $0x8] sm:$0xff] (%p1472_p4), %v1155_v53 }
 0x347   : > { %v1099_v56 = vpop.f32.mrf.mxu2  ;;  %v1118_v57 = vpop.f32.mrf.mxu3 }
 0x348   : > { %v1100_v58 = vadd.f32 %v1099_v56, %v1066_v33  ;;  %v1119_v60 = vadd.f32 %v1118_v57, %v1066_v33 }
 0x349   : > { %v1157_v47 = vld [vmem:[%s1789_s14 + $0x10] sm:$0xff] (%p1472_p4) }
 0x34a   : > { %1127 = vst [vmem:[%s1789_s14 + $0x20] sm:$0xff] %v1100_v58  ;;  %v1159_v51 = vld [vmem:[%s1789_s14 + $0x18] sm:$0xff] (%p1472_p4) }
 0x34b   : > { %1128 = vst [vmem:[%s1789_s14 + $0x28] sm:$0xff] %v1119_v60 }
 0x34c   : > { %1158 = vst [vmem:[%s1140_s19 + $0x20] sm:$0xff] (%p1472_p4), %v1157_v47 }
 0x34d   : > { %1160 = vst [vmem:[%s1140_s19 + $0x28] sm:$0xff] (%p1472_p4), %v1159_v51 }
 0x34f   : > { %v1101_v55 = vpop.f32.mrf.mxu2  ;;  %v1120_v17 = vpop.f32.mrf.mxu3  ;;  %1137 = sbr.rel (!%p1472_p4) target bundleno = 860 (0x35c), region = 60 }
 0x350   : > { %v1102_v18 = vadd.f32 %v1101_v55, %v1071_v61  ;;  %v1121_v52 = vadd.f32 %v1120_v17, %v1071_v61 }
 0x351   : > { %v1161_v62 = vld [vmem:[%s1789_s14 + $0x20] sm:$0xff] (%p1472_p4) }
 0x352   : > { %1129 = vst [vmem:[%s1789_s14 + $0x30] sm:$0xff] %v1102_v18  ;;  %v1163_v63 = vld [vmem:[%s1789_s14 + $0x28] sm:$0xff] (%p1472_p4) }
 0x353   : > { %1130 = vst [vmem:[%s1789_s14 + $0x38] sm:$0xff] %v1121_v52 }
 0x354   : > { %1162 = vst [vmem:[%s1140_s19 + $0x40] sm:$0xff] %v1161_v62 }
 0x355   : > { %1164 = vst [vmem:[%s1140_s19 + $0x48] sm:$0xff] %v1163_v63 }
 0x359   : > { %v1165_v15 = vld [vmem:[%s1789_s14 + $0x30] sm:$0xff] }
 0x35a   : > { %v1167_v24 = vld [vmem:[%s1789_s14 + $0x38] sm:$0xff]  ;;  %1166 = vst [vmem:[%s1140_s19 + $0x60] sm:$0xff] %v1165_v15 }
 0x35b   : > { %1168 = vst [vmem:[%s1140_s19 + $0x68] sm:$0xff] %v1167_v24 }
 0x35c PF: > { %p16_p8 = scmp.ge.s32.totalorder %s1462_s13, 4   ;;  %s1834_s30 = smov %s1390_s10 }
 0x35d   : > { %s1835_s10 = smov %s1470_s16  ;;  %s1836_s11 = smov %s1462_s13 }
 0x35e   :  { %18 = sbr.rel (!%p16_p8) target bundleno = 2 (0x2), region = 109 }

// kernel: combined_forward.3
= control target key start
LH: loop header
LB: loop body
LE: loop exit
PB: predicated region body
PF: predicated region fallthrough
CT: control target
= control target key end

     0   :  { %14 = vsyncpa [#allocation4], 0  ;;  %s1942_s0 = inlined_call_operand.vmem [shape: bf16[32,512], index: 0, kind: input, shape index: {}]   ;;  %s1943_s1 = inlined_call_operand.vmem [shape: bf16[128,32], index: 1, kind: input, shape index: {}]   ;;  %s1944_s2 = inlined_call_operand.vmem [shape: f32[128,1], index: 2, kind: input, shape index: {}]   ;;  %s1945_s3 = inlined_call_operand.hbm [shape: bf16[64,128], index: 3, kind: input, shape index: {}]   ;;  %s1946_s4 = inlined_call_operand.vmem [shape: f32[64,1], index: 4, kind: input, shape index: {}]   ;;  %s1947_s5 = inlined_call_operand.hbm [shape: bf16[32,64], index: 5, kind: input, shape index: {}]   ;;  %s1948_s6 = inlined_call_operand.vmem [shape: f32[32,1], index: 6, kind: input, shape index: {}]   ;;  %s1949_s7 = inlined_call_operand.vmem [shape: bf16[8,32], index: 7, kind: input, shape index: {}]   ;;  %s1950_s8 = inlined_call_operand.vmem [shape: f32[8,1], index: 8, kind: input, shape index: {}]   ;;  %s1951_s9 = inlined_call_operand.vmem [shape: f32[8,512], index: 9, kind: output, shape index: {}]  }
   0x1   :  { %15 = vsyncpa [#allocation6], 0  ;;  %s1584_s30 = smov 0   ;;  %s1586_s10 = smov 0  }
   0x2   :  { %s1588_s11 = smov 0  }
   0x3 LB: > { %s1952_s12 = sadd.s32 4294967295, %s1527_s11   ;;  %s1601_s13 = sadd.s32 1, %s1527_s11   ;;  %s1527_s11 = sphi %s1588_s11, %s1959_s11   ;;  %s1523_s10 = sphi %s1586_s10, %s1958_s10   ;;  %s1519_s30 = sphi %s1584_s30, %s1957_s30  }
   0x4   : > { %s25_s14 = ssub.s32 %s1527_s11, %s1601_s13  ;;  %s28_s15 = sadd.s32 1, %s1523_s10 }
   0x5   : > { %p26_p0 = scmp.eq.s32.totalorder %s25_s14, 0  ;;  %p35_p1 = scmp.ne.s32.totalorder %s1523_s10, %s1519_s30 }
   0x6   : > { %p36_p2 = scmp.eq.s32.totalorder %s1527_s11, 0  ;;  %p1258_p3 = scmp.ge.s32.totalorder %s1527_s11, 1 }
   0x7   : > { %s1611_s16 = scalar_select %p26_p0, %s1523_s10, %s28_s15  }
   0x8   : > { %p1613_p4 = por %p36_p2, %p35_p1  ;;  %p246_p5 = scmp.lt.s32.totalorder %s1527_s11, 3 }
   0x9   : > { %p1620_p6 = scmp.eq.s32.totalorder %s1952_s12, 0  ;;  %s263_s22 = sshll.u32 %s1945_s3, 4  ;;  %s264_s22 = int_to_ptr.hbm [resolvable:$true] %s263_s22 }
   0xa   : > { %p1624_p7 = pnand %p1258_p3, %p246_p5  ;;  %s1529_s23 = smov [#allocation3]  }
   0xb   : > { %s265_s24 = sshll.u32 %s1529_s23, 4  ;;  %s280_s27 = sshll.u32 %s1947_s5, 4  ;;  %s266_s24 = int_to_ptr.vmem [resolvable:$true] %s265_s24  ;;  %s281_s27 = int_to_ptr.hbm [resolvable:$true] %s280_s27 }
   0xc   : > { %p1394_p8 = pneg %p1624_p7  ;;  %s1530_s28 = smov 64  }
   0xd   : > { %s1531_s29 = smov 4   ;;  %s1532_s14 = smov [#allocation5]  }
   0xe   : > { %p1395_p9 = pnand %p1620_p6, %p1394_p8  ;;  %s282_s15 = sshll.u32 %s1532_s14, 4  ;;  %s283_s15 = int_to_ptr.vmem [resolvable:$true] %s282_s15 }
   0xf   : > { %p1261_p10 = scmp.ge.s32.totalorder %s1527_s11, 2 }
  0x10   : > { %1397 = dma.hbm_to_vmem [thread:$0]  (!%p1395_p9), %s264_s22, 512, %s266_s24, [#allocation4], %s1530_s28, %s1530_s28, %s1531_s29  }
  0x11   : > { %1400 = dma.hbm_to_vmem [thread:$0]  (!%p1395_p9), %s281_s27, 256, %s283_s15, [#allocation6], %s1530_s28, %s1530_s28, %s1531_s29  }
  0x12   : > { %301 = sbr.rel (%p1261_p10) target bundleno = 31 (0x1f), region = 48 }
  0x17   : > { %304 = sbr.rel (!%p1613_p4) target bundleno = 31 (0x1f), region = 52  ;;  %s306_s20 = sand.u32 (%p1613_p4), 1, %s1523_s10  }
  0x18   : > { %s1367_s21 = sshll.u32 (%p1613_p4), %s1527_s11, 3  ;;  %s1262_s23 = sshll.u32 (%p1613_p4), %s306_s20, 5 }
  0x19   : > { %s311_s12 = scalar_lea.vmem (%p1613_p4), %s1942_s0, %s1367_s21  ;;  %s308_s22 = scalar_lea.vmem (%p1613_p4), [#allocation2], %s1262_s23 }
  0x1a   : > { %v346_v0 = vld [vmem:[%s311_s12] sm:$0xff] (%p1613_p4)  ;;  %v348_v1 = vld [vmem:[%s311_s12 + $0x10] sm:$0xff] (%p1613_p4) }
  0x1b   : > { %v350_v2 = vld [vmem:[%s311_s12 + $0x20] sm:$0xff] (%p1613_p4)  ;;  %347 = vst [vmem:[%s308_s22] sm:$0xff] (%p1613_p4), %v346_v0  ;;  %v352_v3 = vld [vmem:[%s311_s12 + $0x30] sm:$0xff] (%p1613_p4) }
  0x1c   : > { %349 = vst [vmem:[%s308_s22 + $0x8] sm:$0xff] %v348_v1 }
  0x1d   : > { %351 = vst [vmem:[%s308_s22 + $0x10] sm:$0xff] %v350_v2 }
  0x1e   : > { %353 = vst [vmem:[%s308_s22 + $0x18] sm:$0xff] %v352_v3 }
  0x1f PF: > { %362 = sbr.rel (%p1624_p7) target bundleno = 854 (0x356), region = 90  ;;  %s365_s17 = sand.u32 (!%p1624_p7), 1, %s1519_s30  }
  0x20   : > { %s1266_s24 = sshll.u32 (!%p1624_p7), %s365_s17, 5 }
  0x21   : > { %s367_s27 = scalar_lea.vmem (!%p1624_p7), [#allocation2], %s1266_s24 }
  0x24   : > { %1510 = dma.done.wait (%p1620_p6), [#allocation4], 512  }
  0x25   : > { %1512 = vsyncadd (%p1620_p6), [#allocation4], 4294966784 }
  0x26   : > { %1514 = dma.done.wait (%p1620_p6), [#allocation6], 256  }
  0x27   : > { %1516 = vsyncadd (%p1620_p6), [#allocation6], 4294967040  ;;  %v1533_v4 = vmov 0   ;;  %v452_v5 = vld [vmem:[%s1944_s2 + $0x70] sm:$0xff]  ;;  %v1371_v7 = vld [vmem:[%s367_s27 + $0x14] sm:$0xf0] }
  0x28   : > { %1434 = vset.pattern.permute.xlu0 %v1533_v4  ;;  %1436 = vset.pattern.permute.xlu2 %v1533_v4  ;;  %v1313_v6 = vld [vmem:[%s367_s27 + $0x10] sm:$0xf]  ;;  %v1370_v9 = vld [vmem:[%s367_s27 + $0x14] sm:$0xf]  ;;  %v1315_v10 = vld [vmem:[%s367_s27 + $0x18] sm:$0xf0] }
  0x29   : > { %1435 = vset.pattern.permute.xlu1 %v1533_v4  ;;  %526 = vperm.xlu0 %1434, %v452_v5   ;;  %v1314_v8 = vor.u32 %v1371_v7, %v1313_v6  ;;  %v1305_v11 = vld [vmem:[%s367_s27] sm:$0xf]  ;;  %v1318_v12 = vor.u32 %v1370_v9, %v1315_v10  ;;  %v1369_v13 = vld [vmem:[%s367_s27 + $0x4] sm:$0xf0]  ;;  %v1368_v14 = vld [vmem:[%s367_s27 + $0x4] sm:$0xf] }
  0x2a   : > { %v1307_v15 = vld [vmem:[%s367_s27 + $0x8] sm:$0xf0]  ;;  %v1306_v16 = vor.u32 %v1369_v13, %v1305_v11  ;;  %v450_v17 = vld [vmem:[%s1944_s2 + $0x60] sm:$0xff]  ;;  %v448_v19 = vld [vmem:[%s1944_s2 + $0x50] sm:$0xff]  ;;  %vm594_vm0 = vcmask 261120   ;;  %s1956_s20 = sadd.s32 4294967295, %s1527_s11  }
  0x2b   : > { %625 = vmatpush.bf16.msra.mxu0 %v1314_v8  ;;  %674 = vmatpush.bf16.msra.mxu1 %v1318_v12  ;;  %v1310_v18 = vor.u32 %v1368_v14, %v1307_v15  ;;  %v453_v20 = vld [vmem:[%s1944_s2 + $0x78] sm:$0xff]  ;;  %v1372_v21 = vld [vmem:[%s1943_s1] sm:$0xff]  ;;  %v451_v22 = vld [vmem:[%s1944_s2 + $0x68] sm:$0xff]  ;;  %s1269_s21 = sshll.u32 %s1956_s20, 1 }
  0x2c   : > { %516 = vperm.xlu1 %1435, %v450_v17   ;;  %506 = vperm.xlu2 %1436, %v448_v19   ;;  %v449_v23 = vld [vmem:[%s1944_s2 + $0x58] sm:$0xff]  ;;  %v446_v24 = vld [vmem:[%s1944_s2 + $0x40] sm:$0xff]  ;;  %v447_v25 = vld [vmem:[%s1944_s2 + $0x48] sm:$0xff]  ;;  %p412_p11 = scmp.lt.s32.totalorder %s1269_s21, 3 }
  0x2d   : > { %v444_v26 = vld [vmem:[%s1944_s2 + $0x30] sm:$0xff]  ;;  %v445_v27 = vld [vmem:[%s1944_s2 + $0x38] sm:$0xff]  ;;  %v1373_v28 = vld [vmem:[%s1943_s1 + $0x8] sm:$0xff] }
  0x2e   : > { %v442_v29 = vld [vmem:[%s1944_s2 + $0x20] sm:$0xff]  ;;  %v443_v30 = vld [vmem:[%s1944_s2 + $0x28] sm:$0xff]  ;;  %v440_v31 = vld [vmem:[%s1944_s2 + $0x10] sm:$0xff]  ;;  %s1961_s21 = smov (!%p412_p11, %s1269_s21), 3 }
  0x2f   : > { %626 = vmatpush.bf16.msra.mxu0 %v1306_v16  ;;  %675 = vmatpush.bf16.msra.mxu1 %v1310_v18  ;;  %v441_v32 = vld [vmem:[%s1944_s2 + $0x18] sm:$0xff]  ;;  %v438_v33 = vld [vmem:[%s1944_s2] sm:$0xff]  ;;  %v439_v34 = vld [vmem:[%s1944_s2 + $0x8] sm:$0xff]  ;;  %s1270_s23 = sshll.u32 %s1961_s21, 3 }
  0x30   : > { %v1374_v35 = vld [vmem:[%s1943_s1 + $0x10] sm:$0xff]  ;;  %v1375_v36 = vld [vmem:[%s1943_s1 + $0x18] sm:$0xff]  ;;  %v841_v38 = vld [vmem:[%s1946_s4 + $0x20] sm:$0xff]  ;;  %s415_s22 = scalar_lea.vmem %s1951_s9, %s1270_s23 }
  0x31   : > { %531 = vperm.xlu0 %1434, %v453_v20   ;;  %v843_v37 = vld [vmem:[%s1946_s4 + $0x30] sm:$0xff]  ;;  %v1376_v39 = vld [vmem:[%s1943_s1 + $0x20] sm:$0xff]  ;;  %v842_v40 = vld [vmem:[%s1946_s4 + $0x28] sm:$0xff] }
  0x32   : > { %1319 = vmatmul.msk.bf16.vlgmr.msra.gmra.mxu0 %vm594_vm0, %v1372_v21  ;;  %1327 = vmatmul.msk.bf16.vlgmr.msra.gmra.mxu1 %vm594_vm0, %v1372_v21  ;;  %v840_v41 = vld [vmem:[%s1946_s4 + $0x18] sm:$0xff]  ;;  %v837_v42 = vld [vmem:[%s1946_s4] sm:$0xff]  ;;  %v1029_v43 = vld [vmem:[%s1948_s6 + $0x10] sm:$0xff] }
  0x33   : > { %v1377_v44 = vld [vmem:[%s1943_s1 + $0x28] sm:$0xff]  ;;  %v1030_v45 = vld [vmem:[%s1948_s6 + $0x18] sm:$0xff]  ;;  %v1135_v47 = vld [vmem:[%s1950_s8] sm:$0xff] }
  0x34   : > { %521 = vperm.xlu1 %1435, %v451_v22   ;;  %511 = vperm.xlu2 %1436, %v449_v23   ;;  %v1028_v46 = vld [vmem:[%s1948_s6 + $0x8] sm:$0xff]  ;;  %v1378_v48 = vld [vmem:[%s1943_s1 + $0x30] sm:$0xff]  ;;  %v844_v49 = vld [vmem:[%s1946_s4 + $0x38] sm:$0xff] }
  0x35   : > { %v839_v51 = vld [vmem:[%s1946_s4 + $0x10] sm:$0xff]  ;;  %v1379_v54 = vld [vmem:[%s1943_s1 + $0x38] sm:$0xff]  ;;  %v838_v56 = vld [vmem:[%s1946_s4 + $0x8] sm:$0xff] }
  0x36   : > { %v1027_v60 = vld [vmem:[%s1948_s6] sm:$0xff] }
  0x39   : > { %496 = vperm.xlu0 %1434, %v446_v24  }
  0x3c   : > { %501 = vperm.xlu1 %1435, %v447_v25   ;;  %486 = vperm.xlu2 %1436, %v444_v26  }
  0x41   : > { %491 = vperm.xlu0 %1434, %v445_v27  }
  0x42   : > { %1320 = vmatmul.msk.bf16.gmra.mxu0 %vm594_vm0, %v1373_v28  ;;  %1328 = vmatmul.msk.bf16.gmra.mxu1 %vm594_vm0, %v1373_v28 }
  0x44   : > { %476 = vperm.xlu1 %1435, %v442_v29   ;;  %481 = vperm.xlu2 %1436, %v443_v30  }
  0x49   : > { %466 = vperm.xlu0 %1434, %v440_v31  }
  0x4c   : > { %471 = vperm.xlu1 %1435, %v441_v32   ;;  %456 = vperm.xlu2 %1436, %v438_v33  }
  0x51   : > { %461 = vperm.xlu0 %1434, %v439_v34  }
  0x52   : > { %1321 = vmatmul.msk.bf16.gmra.mxu0 %vm594_vm0, %v1374_v35  ;;  %1329 = vmatmul.msk.bf16.gmra.mxu1 %vm594_vm0, %v1374_v35 }
  0x54   : > { %877 = vperm.xlu1 %1435, %v843_v37   ;;  %882 = vperm.xlu2 %1436, %v844_v49  }
  0x59   : > { %867 = vperm.xlu0 %1434, %v841_v38  }
  0x5c   : > { %872 = vperm.xlu1 %1435, %v842_v40   ;;  %857 = vperm.xlu2 %1436, %v839_v51  }
  0x61   : > { %862 = vperm.xlu0 %1434, %v840_v41  }
  0x62   : > { %1322 = vmatmul.msk.bf16.gmra.mxu0 %vm594_vm0, %v1375_v36  ;;  %1330 = vmatmul.msk.bf16.gmra.mxu1 %vm594_vm0, %v1375_v36 }
  0x64   : > { %847 = vperm.xlu1 %1435, %v837_v42   ;;  %852 = vperm.xlu2 %1436, %v838_v56  }
  0x69   : > { %1043 = vperm.xlu0 %1434, %v1029_v43  }
  0x6c   : > { %1048 = vperm.xlu1 %1435, %v1030_v45   ;;  %1033 = vperm.xlu2 %1436, %v1027_v60  }
  0x71   : > { %1038 = vperm.xlu0 %1434, %v1028_v46  }
  0x72   : > { %1323 = vmatmul.msk.bf16.gmra.mxu0 %vm594_vm0, %v1376_v39  ;;  %1331 = vmatmul.msk.bf16.gmra.mxu1 %vm594_vm0, %v1376_v39 }
  0x74   : > { %1138 = vperm.xlu1 %1435, %v1135_v47  }
  0x82   : > { %1324 = vmatmul.msk.bf16.gmra.mxu0 %vm594_vm0, %v1377_v44  ;;  %1332 = vmatmul.msk.bf16.gmra.mxu1 %vm594_vm0, %v1377_v44 }
  0x86   : > { %v1770_v50 = vpop.permute.xlu2 %506 }
  0x8e   : > { %v1777_v53 = vpop.permute.xlu2 %511 }
  0x92   : > { %1325 = vmatmul.msk.bf16.gmra.mxu0 %vm594_vm0, %v1378_v48  ;;  %1333 = vmatmul.msk.bf16.gmra.mxu1 %vm594_vm0, %v1378_v48 }
  0x96   : > { %v1793_v59 = vpop.permute.xlu2 %486 }
  0x9b   : > { %v1775_v52 = vpop.permute.xlu0 %526 }
  0x9e   : > { %v1782_v55 = vpop.permute.xlu1 %516  ;;  %v482_v1 = vpop.permute.xlu2 %481 }
  0xa2   : > { %1326 = vmatmul.msk.bf16.gmra.mxu0 %vm594_vm0, %v1379_v54  ;;  %1334 = vmatmul.msk.bf16.gmra.mxu1 %vm594_vm0, %v1379_v54 }
  0xa3   : > { %v1789_v57 = vpop.permute.xlu0 %531 }
  0xa6   : > { %v1791_v58 = vpop.permute.xlu1 %521  ;;  %v457_v7 = vpop.permute.xlu2 %456 }
  0xab   : > { %v1798_v61 = vpop.permute.xlu0 %496 }
  0xae   : > { %v1800_v0 = vpop.permute.xlu1 %501 }
  0xaf   : > { %v628_v62 = vpop.f32.mrf.mxu0  ;;  %v677_v63 = vpop.f32.mrf.mxu1 }
  0xb0   : > { %v629_v8 = vadd.f32 %v628_v62, %v457_v7  ;;  %v678_v9 = vadd.f32 %v677_v63, %v457_v7 }
  0xb2   : > { %v749_v12 = vmul.f32 0.01, %v629_v8  ;;  %v750_v13 = vmul.f32 0.01, %v678_v9  ;;  %vm717_vm1 = vcmp.ge.f32.partialorder %v629_v8, 0.0  ;;  %vm718_vm2 = vcmp.ge.f32.partialorder %v678_v9, 0.0 }
  0xb3   : > { %v1802_v2 = vpop.permute.xlu0 %491 }
  0xb4   : > { %v1804_v24 = vsel %vm717_vm1, %v629_v8, %v749_v12  ;;  %v1806_v25 = vsel %vm718_vm2, %v678_v9, %v750_v13 }
  0xb6   : > { %v477_v6 = vpop.permute.xlu1 %476 }
  0xb7   : > { %v630_v3 = vpop.f32.mrf.mxu0  ;;  %v679_v4 = vpop.f32.mrf.mxu1 }
  0xbb   : > { %v467_v5 = vpop.permute.xlu0 %466 }
  0xbe   : > { %v472_v19 = vpop.permute.xlu1 %471 }
  0xbf   : > { %v633_v10 = vpop.f32.mrf.mxu0  ;;  %v682_v11 = vpop.f32.mrf.mxu1 }
  0xc0   : > { %v634_v14 = vadd.f32 %v633_v10, %v467_v5  ;;  %v683_v18 = vadd.f32 %v682_v11, %v467_v5 }
  0xc2   : > { %v753_v22 = vmul.f32 0.01, %v634_v14  ;;  %vm721_vm5 = vcmp.ge.f32.partialorder %v634_v14, 0.0  ;;  %v754_v30 = vmul.f32 0.01, %v683_v18  ;;  %vm722_vm7 = vcmp.ge.f32.partialorder %v683_v18, 0.0 }
  0xc3   : > { %v462_v15 = vpop.permute.xlu0 %461 }
  0xc4   : > { %v631_v16 = vadd.f32 %v630_v3, %v462_v15  ;;  %v680_v17 = vadd.f32 %v679_v4, %v462_v15  ;;  %v1816_v36 = vsel %vm721_vm5, %v634_v14, %v753_v22  ;;  %v1822_v39 = vsel %vm722_vm7, %v683_v18, %v754_v30 }
  0xc6   : > { %v751_v20 = vmul.f32 0.01, %v631_v16  ;;  %v752_v21 = vmul.f32 0.01, %v680_v17  ;;  %vm719_vm3 = vcmp.ge.f32.partialorder %v631_v16, 0.0  ;;  %vm720_vm4 = vcmp.ge.f32.partialorder %v680_v17, 0.0 }
  0xc7   : > { %v635_v23 = vpop.f32.mrf.mxu0  ;;  %v684_v27 = vpop.f32.mrf.mxu1 }
  0xc8   : > { %v636_v26 = vadd.f32 %v635_v23, %v472_v19  ;;  %v1808_v28 = vsel %vm719_vm3, %v631_v16, %v751_v20  ;;  %v1810_v29 = vsel %vm720_vm4, %v680_v17, %v752_v21  ;;  %v685_v31 = vadd.f32 %v684_v27, %v472_v19 }
  0xc9   : > { %v813_v32 = vpack.c.bf16 %v1808_v28, %v1804_v24  ;;  %v814_v33 = vpack.c.bf16 %v1810_v29, %v1806_v25 }
  0xca   : > { %v755_v34 = vmul.f32 0.01, %v636_v26  ;;  %vm723_vm6 = vcmp.ge.f32.partialorder %v636_v26, 0.0  ;;  %v756_v35 = vmul.f32 0.01, %v685_v31  ;;  %vm724_vm8 = vcmp.ge.f32.partialorder %v685_v31, 0.0 }
  0xcc   : > { %v1818_v37 = vsel %vm723_vm6, %v636_v26, %v755_v34  ;;  %v1824_v40 = vsel %vm724_vm8, %v685_v31, %v756_v35 }
  0xcd   : > { %v815_v38 = vpack.c.bf16 %v1818_v37, %v1816_v36  ;;  %v816_v41 = vpack.c.bf16 %v1824_v40, %v1822_v39  ;;  %v1382_v36 = vld [vmem:[#allocation3 + $0x10] sm:$0xff]  ;;  %v1383_v37 = vld [vmem:[#allocation3 + $0x18] sm:$0xff] }
  0xcf   : > { %v638_v42 = vpop.f32.mrf.mxu0  ;;  %v687_v43 = vpop.f32.mrf.mxu1 }
  0xd0   : > { %v639_v44 = vadd.f32 %v638_v42, %v477_v6  ;;  %v688_v45 = vadd.f32 %v687_v43, %v477_v6 }
  0xd2   : > { %v757_v47 = vmul.f32 0.01, %v639_v44  ;;  %v758_v51 = vmul.f32 0.01, %v688_v45  ;;  %vm725_vm9 = vcmp.ge.f32.partialorder %v639_v44, 0.0  ;;  %vm726_vm11 = vcmp.ge.f32.partialorder %v688_v45, 0.0 }
  0xd4   : > { %v1828_v62 = vsel %vm725_vm9, %v639_v44, %v757_v47  ;;  %v1834_v4 = vsel %vm726_vm11, %v688_v45, %v758_v51 }
  0xd7   : > { %v640_v46 = vpop.f32.mrf.mxu0  ;;  %v689_v49 = vpop.f32.mrf.mxu1 }
  0xd8   : > { %v641_v48 = vadd.f32 %v640_v46, %v482_v1  ;;  %v690_v54 = vadd.f32 %v689_v49, %v482_v1 }
  0xda   : > { %v759_v56 = vmul.f32 0.01, %v641_v48  ;;  %vm727_vm10 = vcmp.ge.f32.partialorder %v641_v48, 0.0  ;;  %v760_v60 = vmul.f32 0.01, %v690_v54  ;;  %vm728_vm12 = vcmp.ge.f32.partialorder %v690_v54, 0.0 }
  0xdc   : > { %v1830_v63 = vsel %vm727_vm10, %v641_v48, %v759_v56  ;;  %v1836_v5 = vsel %vm728_vm12, %v690_v54, %v760_v60 }
  0xdd   : > { %v817_v3 = vpack.c.bf16 %v1830_v63, %v1828_v62  ;;  %v818_v1 = vpack.c.bf16 %v1836_v5, %v1834_v4  ;;  %v1381_v62 = vld [vmem:[#allocation3 + $0x8] sm:$0xff]  ;;  %v878_v63 = vpop.permute.xlu1 %877 }
  0xdf   : > { %v643_v6 = vpop.f32.mrf.mxu0  ;;  %v692_v7 = vpop.f32.mrf.mxu1 }
  0xe0   : > { %v644_v8 = vadd.f32 %v643_v6, %v1793_v59  ;;  %v693_v9 = vadd.f32 %v692_v7, %v1793_v59 }
  0xe2   : > { %v761_v11 = vmul.f32 0.01, %v644_v8  ;;  %v762_v14 = vmul.f32 0.01, %v693_v9  ;;  %vm729_vm13 = vcmp.ge.f32.partialorder %v644_v8, 0.0  ;;  %vm730_vm15 = vcmp.ge.f32.partialorder %v693_v9, 0.0 }
  0xe4   : > { %v1844_v18 = vsel %vm729_vm13, %v644_v8, %v761_v11  ;;  %v1850_v20 = vsel %vm730_vm15, %v693_v9, %v762_v14 }
  0xe7   : > { %v645_v10 = vpop.f32.mrf.mxu0  ;;  %v694_v13 = vpop.f32.mrf.mxu1 }
  0xe8   : > { %v646_v12 = vadd.f32 %v645_v10, %v1802_v2  ;;  %v695_v15 = vadd.f32 %v694_v13, %v1802_v2 }
  0xea   : > { %v763_v16 = vmul.f32 0.01, %v646_v12  ;;  %vm731_vm14 = vcmp.ge.f32.partialorder %v646_v12, 0.0  ;;  %v764_v17 = vmul.f32 0.01, %v695_v15  ;;  %vm732_vm1 = vcmp.ge.f32.partialorder %v695_v15, 0.0 }
  0xec   : > { %v1846_v19 = vsel %vm731_vm14, %v646_v12, %v763_v16  ;;  %v1852_v21 = vsel %vm732_vm1, %v695_v15, %v764_v17 }
  0xed   : > { %v819_v59 = vpack.c.bf16 %v1846_v19, %v1844_v18  ;;  %v820_v2 = vpack.c.bf16 %v1852_v21, %v1850_v20  ;;  %v1380_v18 = vld [vmem:[#allocation3] sm:$0xff] }
  0xef   : > { %v648_v22 = vpop.f32.mrf.mxu0  ;;  %v697_v23 = vpop.f32.mrf.mxu1 }
  0xf0   : > { %v1860_v54 = vadd.f32 %v648_v22, %v1798_v61 }
  0xf2   : > { %vm733_vm1 = vcmp.ge.f32.partialorder %v1860_v54, 0.0 }
  0xf7   : > { %v650_v26 = vpop.f32.mrf.mxu0  ;;  %v699_v27 = vpop.f32.mrf.mxu1 }
  0xf8   : > { %v1863_v56 = vadd.f32 %v650_v26, %v1800_v0 }
  0xfa   : > { %vm735_vm14 = vcmp.ge.f32.partialorder %v1863_v56, 0.0 }
  0xff   : > { %v653_v30 = vpop.f32.mrf.mxu0  ;;  %v702_v31 = vpop.f32.mrf.mxu1 }
 0x100   : > { %v654_v6 = vadd.f32 %v653_v30, %v1770_v50  ;;  %v703_v7 = vadd.f32 %v702_v31, %v1770_v50 }
 0x102   : > { %vm737_vm12 = vcmp.ge.f32.partialorder %v654_v6, 0.0  ;;  %vm738_vm13 = vcmp.ge.f32.partialorder %v703_v7, 0.0 }
 0x107   : > { %v655_v34 = vpop.f32.mrf.mxu0  ;;  %v704_v35 = vpop.f32.mrf.mxu1 }
 0x108   : > { %v656_v8 = vadd.f32 %v655_v34, %v1777_v53  ;;  %v705_v11 = vadd.f32 %v704_v35, %v1777_v53 }
 0x10a   : > { %vm739_vm10 = vcmp.ge.f32.partialorder %v656_v8, 0.0  ;;  %vm740_vm11 = vcmp.ge.f32.partialorder %v705_v11, 0.0 }
 0x10f   : > { %v658_v42 = vpop.f32.mrf.mxu0  ;;  %v707_v43 = vpop.f32.mrf.mxu1 }
 0x110   : > { %v659_v49 = vadd.f32 %v658_v42, %v1782_v55  ;;  %v771_v42 = vmul.f32 0.01, %v656_v8 }
 0x112   : > { %v773_v15 = vmul.f32 0.01, %v659_v49  ;;  %vm741_vm7 = vcmp.ge.f32.partialorder %v659_v49, 0.0 }
 0x117   : > { %v660_v44 = vpop.f32.mrf.mxu0  ;;  %v709_v45 = vpop.f32.mrf.mxu1 }
 0x118   : > { %v661_v60 = vadd.f32 %v660_v44, %v1791_v58  ;;  %v710_v9 = vadd.f32 %v709_v45, %v1791_v58  ;;  %v700_v44 = vadd.f32 %v699_v27, %v1800_v0  ;;  %v772_v45 = vmul.f32 0.01, %v705_v11 }
 0x11a   : > { %v775_v22 = vmul.f32 0.01, %v661_v60  ;;  %v776_v26 = vmul.f32 0.01, %v710_v9  ;;  %vm743_vm6 = vcmp.ge.f32.partialorder %v661_v60, 0.0  ;;  %vm744_vm8 = vcmp.ge.f32.partialorder %v710_v9, 0.0 }
 0x11b   : > { %v768_v0 = vmul.f32 0.01, %v700_v44  ;;  %v804_v27 = vsel %vm740_vm11, %v705_v11, %v772_v45  ;;  %vm736_vm15 = vcmp.ge.f32.partialorder %v700_v44, 0.0 }
 0x11f   : > { %v663_v46 = vpop.f32.mrf.mxu0  ;;  %v712_v47 = vpop.f32.mrf.mxu1 }
 0x120   : > { %v664_v48 = vadd.f32 %v663_v46, %v1775_v52  ;;  %v713_v51 = vadd.f32 %v712_v47, %v1775_v52  ;;  %v708_v52 = vadd.f32 %v707_v43, %v1782_v55  ;;  %v808_v46 = vsel %vm744_vm8, %v710_v9, %v776_v26 }
 0x121   : > { %v698_v47 = vadd.f32 %v697_v23, %v1798_v61  ;;  %v765_v61 = vmul.f32 0.01, %v1860_v54 }
 0x122   : > { %v777_v12 = vmul.f32 0.01, %v664_v48  ;;  %v778_v16 = vmul.f32 0.01, %v713_v51  ;;  %vm745_vm2 = vcmp.ge.f32.partialorder %v664_v48, 0.0  ;;  %vm746_vm4 = vcmp.ge.f32.partialorder %v713_v51, 0.0 }
 0x123   : > { %v774_v55 = vmul.f32 0.01, %v708_v52  ;;  %vm742_vm9 = vcmp.ge.f32.partialorder %v708_v52, 0.0  ;;  %v797_v11 = vsel %vm733_vm1, %v1860_v54, %v765_v61 }
 0x124   : > { %v809_v53 = vsel %vm745_vm2, %v664_v48, %v777_v12  ;;  %v810_v34 = vsel %vm746_vm4, %v713_v51, %v778_v16  ;;  %v769_v48 = vmul.f32 0.01, %v654_v6  ;;  %v770_v12 = vmul.f32 0.01, %v703_v7 }
 0x125   : > { %v803_v16 = vsel %vm739_vm10, %v656_v8, %v771_v42  ;;  %vm734_vm2 = vcmp.ge.f32.partialorder %v698_v47, 0.0  ;;  %v800_v8 = vsel %vm736_vm15, %v700_v44, %v768_v0 }
 0x126   : > { %v801_v23 = vsel %vm737_vm12, %v654_v6, %v769_v48 }
 0x127   : > { %v665_v10 = vpop.f32.mrf.mxu0  ;;  %v714_v14 = vpop.f32.mrf.mxu1  ;;  %v823_v9 = vpack.c.bf16 %v803_v16, %v801_v23 }
 0x128   : > { %v666_v13 = vadd.f32 %v665_v10, %v1789_v57  ;;  %v715_v17 = vadd.f32 %v714_v14, %v1789_v57  ;;  %v807_v57 = vsel %vm743_vm6, %v661_v60, %v775_v22  ;;  %v805_v10 = vsel %vm741_vm7, %v659_v49, %v773_v15 }
 0x129   : > { %v825_v51 = vpack.c.bf16 %v807_v57, %v805_v10  ;;  %v767_v60 = vmul.f32 0.01, %v1863_v56  ;;  %v766_v49 = vmul.f32 0.01, %v698_v47  ;;  %v802_v15 = vsel %vm738_vm13, %v703_v7, %v770_v12 }
 0x12a   : > { %v779_v50 = vmul.f32 0.01, %v666_v13  ;;  %vm747_vm3 = vcmp.ge.f32.partialorder %v666_v13, 0.0  ;;  %v780_v58 = vmul.f32 0.01, %v715_v17  ;;  %vm748_vm5 = vcmp.ge.f32.partialorder %v715_v17, 0.0 }
 0x12c   : > { %v811_v30 = vsel %vm747_vm3, %v666_v13, %v779_v50  ;;  %v812_v35 = vsel %vm748_vm5, %v715_v17, %v780_v58  ;;  %v806_v13 = vsel %vm742_vm9, %v708_v52, %v774_v55  ;;  %v824_v52 = vpack.c.bf16 %v804_v27, %v802_v15 }
 0x12d   : > { %v827_v31 = vpack.c.bf16 %v811_v30, %v809_v53  ;;  %v828_v43 = vpack.c.bf16 %v812_v35, %v810_v34  ;;  %v826_v14 = vpack.c.bf16 %v808_v46, %v806_v13  ;;  %v799_v17 = vsel %vm735_vm14, %v1863_v56, %v767_v60 }
 0x12e   : > { %v821_v22 = vpack.c.bf16 %v799_v17, %v797_v11  ;;  %v798_v50 = vsel %vm734_vm2, %v698_v47, %v766_v49 }
 0x12f   : > { %909 = vmatpush.bf16.msra.mxu2 %v827_v31  ;;  %938 = vmatpush.bf16.msra.mxu3 %v828_v43  ;;  %v822_v26 = vpack.c.bf16 %v800_v8, %v798_v50 }
 0x133   : > { %910 = vmatpush.bf16.msra.mxu2 %v825_v51  ;;  %939 = vmatpush.bf16.msra.mxu3 %v826_v14 }
 0x137   : > { %911 = vmatpush.bf16.msra.mxu2 %v823_v9  ;;  %940 = vmatpush.bf16.msra.mxu3 %v824_v52 }
 0x13b   : > { %912 = vmatpush.bf16.msra.mxu2 %v821_v22  ;;  %941 = vmatpush.bf16.msra.mxu3 %v822_v26 }
 0x13f   : > { %913 = vmatpush.bf16.msra.mxu2 %v819_v59  ;;  %942 = vmatpush.bf16.msra.mxu3 %v820_v2  ;;  %v868_v59 = vpop.permute.xlu0 %867 }
 0x143   : > { %914 = vmatpush.bf16.msra.mxu2 %v817_v3  ;;  %943 = vmatpush.bf16.msra.mxu3 %v818_v1  ;;  %v883_v3 = vpop.permute.xlu2 %882  ;;  %v873_v1 = vpop.permute.xlu1 %872 }
 0x147   : > { %915 = vmatpush.bf16.msra.mxu2 %v815_v38  ;;  %944 = vmatpush.bf16.msra.mxu3 %v816_v41  ;;  %v863_v58 = vpop.permute.xlu0 %862 }
 0x14b   : > { %916 = vmatpush.bf16.msra.mxu2 %v813_v32  ;;  %945 = vmatpush.bf16.msra.mxu3 %v814_v33  ;;  %v858_v19 = vpop.permute.xlu2 %857  ;;  %v848_v54 = vpop.permute.xlu1 %847 }
 0x14e   : > { %917 = vmatmul.bf16.vlgmr.msra.gmra.mxu2 %v1380_v18  ;;  %946 = vmatmul.bf16.vlgmr.msra.gmra.mxu3 %v1380_v18 }
 0x153   : > { %v853_v56 = vpop.permute.xlu2 %852 }
 0x15e   : > { %922 = vmatmul.bf16.gmra.mxu2 %v1381_v62  ;;  %951 = vmatmul.bf16.gmra.mxu3 %v1381_v62 }
 0x16e   : > { %927 = vmatmul.bf16.gmra.mxu2 %v1382_v36  ;;  %956 = vmatmul.bf16.gmra.mxu3 %v1382_v36 }
 0x17e   : > { %932 = vmatmul.bf16.gmra.mxu2 %v1383_v37  ;;  %961 = vmatmul.bf16.gmra.mxu3 %v1383_v37 }
 0x1d1   : > { %v918_v38 = vpop.f32.mrf.mxu2  ;;  %v1907_v39 = vpop.f32.mrf.mxu3 }
 0x1d2   : > { %v1909_v53 = vadd.f32 %v918_v38, %v848_v54  ;;  %v948_v22 = vadd.f32 %v1907_v39, %v848_v54 }
 0x1d4   : > { %v983_v39 = vmul.f32 0.01, %v1909_v53  ;;  %vm967_vm2 = vcmp.ge.f32.partialorder %v1909_v53, 0.0 }
 0x1d9   : > { %v920_v24 = vpop.f32.mrf.mxu2  ;;  %v949_v28 = vpop.f32.mrf.mxu3 }
 0x1da   : > { %v1911_v30 = vadd.f32 %v920_v24, %v853_v56  ;;  %v950_v17 = vadd.f32 %v949_v28, %v853_v56 }
 0x1dc   : > { %v985_v37 = vmul.f32 0.01, %v1911_v30  ;;  %v986_v28 = vmul.f32 0.01, %v950_v17  ;;  %vm969_vm15 = vcmp.ge.f32.partialorder %v1911_v30, 0.0  ;;  %vm970_vm1 = vcmp.ge.f32.partialorder %v950_v17, 0.0 }
 0x1e1   : > { %v923_v32 = vpop.f32.mrf.mxu2  ;;  %v952_v40 = vpop.f32.mrf.mxu3 }
 0x1e2   : > { %v924_v31 = vadd.f32 %v923_v32, %v858_v19  ;;  %v953_v34 = vadd.f32 %v952_v40, %v858_v19 }
 0x1e4   : > { %v987_v50 = vmul.f32 0.01, %v924_v31  ;;  %v988_v18 = vmul.f32 0.01, %v953_v34  ;;  %vm971_vm13 = vcmp.ge.f32.partialorder %v924_v31, 0.0  ;;  %vm972_vm14 = vcmp.ge.f32.partialorder %v953_v34, 0.0 }
 0x1e6   : > { %v1003_v40 = vsel %vm971_vm13, %v924_v31, %v987_v50  ;;  %v1134_v50 = vld [vmem:[%s1949_s7] sm:$0xf] }
 0x1e9   : > { %v925_v25 = vpop.f32.mrf.mxu2  ;;  %v954_v29 = vpop.f32.mrf.mxu3 }
 0x1ea   : > { %v926_v35 = vadd.f32 %v925_v25, %v863_v58  ;;  %v955_v57 = vadd.f32 %v954_v29, %v863_v58  ;;  %v984_v25 = vmul.f32 0.01, %v948_v22 }
 0x1ec   : > { %v989_v9 = vmul.f32 0.01, %v926_v35  ;;  %v990_v8 = vmul.f32 0.01, %v955_v57  ;;  %vm973_vm11 = vcmp.ge.f32.partialorder %v926_v35, 0.0  ;;  %vm974_vm12 = vcmp.ge.f32.partialorder %v955_v57, 0.0 }
 0x1ee   : > { %v1005_v24 = vsel %vm973_vm11, %v926_v35, %v989_v9  ;;  %v1006_v32 = vsel %vm974_vm12, %v955_v57, %v990_v8 }
 0x1ef   : > { %v1017_v29 = vpack.c.bf16 %v1005_v24, %v1003_v40 }
 0x1f1   : > { %v928_v33 = vpop.f32.mrf.mxu2  ;;  %v957_v41 = vpop.f32.mrf.mxu3 }
 0x1f2   : > { %v929_v6 = vadd.f32 %v928_v33, %v868_v59  ;;  %v958_v44 = vadd.f32 %v957_v41, %v868_v59  ;;  %v1004_v33 = vsel %vm972_vm14, %v953_v34, %v988_v18  ;;  %v1384_v59 = vld [vmem:[#allocation5] sm:$0xff] }
 0x1f3   : > { %v1018_v41 = vpack.c.bf16 %v1006_v32, %v1004_v33 }
 0x1f4   : > { %v991_v48 = vmul.f32 0.01, %v929_v6  ;;  %vm975_vm8 = vcmp.ge.f32.partialorder %v929_v6, 0.0  ;;  %v992_v27 = vmul.f32 0.01, %v958_v44  ;;  %vm976_vm10 = vcmp.ge.f32.partialorder %v958_v44, 0.0 }
 0x1f6   : > { %v1007_v26 = vsel %vm975_vm8, %v929_v6, %v991_v48  ;;  %v1008_v36 = vsel %vm976_vm10, %v958_v44, %v992_v27  ;;  %v1044_v6 = vpop.permute.xlu0 %1043 }
 0x1f9   : > { %v930_v4 = vpop.f32.mrf.mxu2  ;;  %v959_v5 = vpop.f32.mrf.mxu3 }
 0x1fa   : > { %v931_v55 = vadd.f32 %v930_v4, %v873_v1  ;;  %v960_v42 = vadd.f32 %v959_v5, %v873_v1  ;;  %v999_v4 = vsel %vm967_vm2, %v1909_v53, %v983_v39  ;;  %v1034_v53 = vpop.permute.xlu2 %1033 }
 0x1fc   : > { %v993_v51 = vmul.f32 0.01, %v931_v55  ;;  %v994_v60 = vmul.f32 0.01, %v960_v42  ;;  %vm977_vm7 = vcmp.ge.f32.partialorder %v931_v55, 0.0  ;;  %vm978_vm9 = vcmp.ge.f32.partialorder %v960_v42, 0.0 }
 0x1fe   : > { %v1009_v52 = vsel %vm977_vm7, %v931_v55, %v993_v51  ;;  %v1010_v11 = vsel %vm978_vm9, %v960_v42, %v994_v60  ;;  %v1039_v55 = vpop.permute.xlu0 %1038  ;;  %v1049_v42 = vpop.permute.xlu1 %1048 }
 0x1ff   : > { %v1019_v62 = vpack.c.bf16 %v1009_v52, %v1007_v26  ;;  %v1020_v38 = vpack.c.bf16 %v1010_v11, %v1008_v36 }
 0x201   : > { %v933_v20 = vpop.f32.mrf.mxu2  ;;  %v962_v21 = vpop.f32.mrf.mxu3 }
 0x202   : > { %v934_v2 = vadd.f32 %v933_v20, %v878_v63  ;;  %v963_v7 = vadd.f32 %v962_v21, %v878_v63  ;;  %v1001_v63 = vsel %vm969_vm15, %v1911_v30, %v985_v37  ;;  %v1385_v20 = vld [vmem:[#allocation5 + $0x8] sm:$0xff] }
 0x203   : > { %v1015_v5 = vpack.c.bf16 %v1001_v63, %v999_v4 }
 0x204   : > { %v995_v45 = vmul.f32 0.01, %v934_v2  ;;  %v996_v10 = vmul.f32 0.01, %v963_v7  ;;  %vm979_vm3 = vcmp.ge.f32.partialorder %v934_v2, 0.0  ;;  %vm980_vm5 = vcmp.ge.f32.partialorder %v963_v7, 0.0 }
 0x206   : > { %v1011_v16 = vsel %vm979_vm3, %v934_v2, %v995_v45  ;;  %v1012_v23 = vsel %vm980_vm5, %v963_v7, %v996_v10  ;;  %vm968_vm3 = vcmp.ge.f32.partialorder %v948_v22, 0.0  ;;  %v1139_v26 = vpop.permute.xlu1 %1138 }
 0x207   : > { %v1000_v1 = vsel %vm968_vm3, %v948_v22, %v984_v25 }
 0x209   : > { %v935_v43 = vpop.f32.mrf.mxu2  ;;  %v964_v47 = vpop.f32.mrf.mxu3 }
 0x20a   : > { %v936_v46 = vadd.f32 %v935_v43, %v883_v3  ;;  %v965_v12 = vadd.f32 %v964_v47, %v883_v3  ;;  %v1002_v3 = vsel %vm970_vm1, %v950_v17, %v986_v28 }
 0x20b   : > { %v1016_v19 = vpack.c.bf16 %v1002_v3, %v1000_v1 }
 0x20c   : > { %v997_v13 = vmul.f32 0.01, %v936_v46  ;;  %vm981_vm4 = vcmp.ge.f32.partialorder %v936_v46, 0.0  ;;  %v998_v14 = vmul.f32 0.01, %v965_v12  ;;  %vm982_vm6 = vcmp.ge.f32.partialorder %v965_v12, 0.0 }
 0x20e   : > { %v1013_v0 = vsel %vm981_vm4, %v936_v46, %v997_v13  ;;  %v1014_v49 = vsel %vm982_vm6, %v965_v12, %v998_v14  ;;  %vm1061_vm4 = vcmask 523264  }
 0x20f   : > { %v1021_v61 = vpack.c.bf16 %v1013_v0, %v1011_v16  ;;  %v1022_v15 = vpack.c.bf16 %v1014_v49, %v1012_v23 }
 0x211   : > { %1072 = vmatpush.bf16.msrb.mxu2 %v1021_v61  ;;  %1091 = vmatpush.bf16.msrb.mxu3 %v1022_v15 }
 0x215   : > { %1073 = vmatpush.bf16.msrb.mxu2 %v1019_v62  ;;  %1092 = vmatpush.bf16.msrb.mxu3 %v1020_v38 }
 0x219   : > { %1074 = vmatpush.bf16.msrb.mxu2 %v1017_v29  ;;  %1093 = vmatpush.bf16.msrb.mxu3 %v1018_v41 }
 0x21d   : > { %1075 = vmatpush.bf16.msrb.mxu2 %v1015_v5  ;;  %1094 = vmatpush.bf16.msrb.mxu3 %v1016_v19 }
 0x220   : > { %1359 = vmatmul.msk.bf16.vlgmr.msrb.gmra.mxu2 %vm1061_vm4, %v1384_v59  ;;  %1361 = vmatmul.msk.bf16.vlgmr.msrb.gmra.mxu3 %vm1061_vm4, %v1384_v59 }
 0x230   : > { %1360 = vmatmul.msk.bf16.gmra.mxu2 %vm1061_vm4, %v1385_v20  ;;  %1362 = vmatmul.msk.bf16.gmra.mxu3 %vm1061_vm4, %v1385_v20 }
 0x2a3   : > { %v1077_v21 = vpop.f32.mrf.mxu2  ;;  %v1096_v2 = vpop.f32.mrf.mxu3 }
 0x2a4   : > { %v1078_v31 = vadd.f32 %v1077_v21, %v1034_v53  ;;  %v1097_v44 = vadd.f32 %v1096_v2, %v1034_v53 }
 0x2a6   : > { %vm1106_vm5 = vcmp.ge.f32.partialorder %v1078_v31, 0.0  ;;  %v1114_v14 = vmul.f32 0.01, %v1078_v31  ;;  %v1115_v27 = vmul.f32 0.01, %v1097_v44  ;;  %vm1107_vm12 = vcmp.ge.f32.partialorder %v1097_v44, 0.0 }
 0x2a8   : > { %v1122_v17 = vsel %vm1106_vm5, %v1078_v31, %v1114_v14  ;;  %v1123_v11 = vsel %vm1107_vm12, %v1097_v44, %v1115_v27 }
 0x2ab   : > { %v1079_v54 = vpop.f32.mrf.mxu2  ;;  %v1098_v56 = vpop.f32.mrf.mxu3 }
 0x2ac   : > { %v1080_v35 = vadd.f32 %v1079_v54, %v1039_v55  ;;  %v1099_v43 = vadd.f32 %v1098_v56, %v1039_v55 }
 0x2ae   : > { %v1116_v12 = vmul.f32 0.01, %v1080_v35  ;;  %vm1108_vm9 = vcmp.ge.f32.partialorder %v1080_v35, 0.0  ;;  %v1117_v13 = vmul.f32 0.01, %v1099_v43  ;;  %vm1109_vm11 = vcmp.ge.f32.partialorder %v1099_v43, 0.0 }
 0x2b0   : > { %v1124_v15 = vsel %vm1108_vm9, %v1080_v35, %v1116_v12  ;;  %v1125_v52 = vsel %vm1109_vm11, %v1099_v43, %v1117_v13 }
 0x2b1   : > { %v1130_v8 = vpack.c.bf16 %v1124_v15, %v1122_v17  ;;  %v1131_v22 = vpack.c.bf16 %v1125_v52, %v1123_v11 }
 0x2b3   : > { %v1082_v7 = vpop.f32.mrf.mxu2  ;;  %v1101_v58 = vpop.f32.mrf.mxu3 }
 0x2b4   : > { %v1083_v30 = vadd.f32 %v1082_v7, %v1044_v6  ;;  %v1102_v34 = vadd.f32 %v1101_v58, %v1044_v6 }
 0x2b6   : > { %v1118_v45 = vmul.f32 0.01, %v1083_v30  ;;  %vm1110_vm6 = vcmp.ge.f32.partialorder %v1083_v30, 0.0  ;;  %v1119_v48 = vmul.f32 0.01, %v1102_v34  ;;  %vm1111_vm7 = vcmp.ge.f32.partialorder %v1102_v34, 0.0 }
 0x2b8   : > { %v1126_v16 = vsel %vm1110_vm6, %v1083_v30, %v1118_v45  ;;  %v1127_v61 = vsel %vm1111_vm7, %v1102_v34, %v1119_v48 }
 0x2bb   : > { %v1084_v57 = vpop.f32.mrf.mxu2  ;;  %v1103_v47 = vpop.f32.mrf.mxu3 }
 0x2bc   : > { %v1085_v46 = vadd.f32 %v1084_v57, %v1049_v42  ;;  %v1104_v10 = vadd.f32 %v1103_v47, %v1049_v42 }
 0x2be   : > { %vm1112_vm8 = vcmp.ge.f32.partialorder %v1085_v46, 0.0  ;;  %v1120_v51 = vmul.f32 0.01, %v1085_v46  ;;  %vm1113_vm10 = vcmp.ge.f32.partialorder %v1104_v10, 0.0  ;;  %v1121_v60 = vmul.f32 0.01, %v1104_v10 }
 0x2c0   : > { %v1128_v0 = vsel %vm1112_vm8, %v1085_v46, %v1120_v51  ;;  %v1129_v49 = vsel %vm1113_vm10, %v1104_v10, %v1121_v60 }
 0x2c1   : > { %v1132_v23 = vpack.c.bf16 %v1128_v0, %v1126_v16  ;;  %v1133_v9 = vpack.c.bf16 %v1129_v49, %v1127_v61 }
 0x2c3   : > { %1150 = vmatpush.bf16.msra.mxu2 %v1132_v23  ;;  %1163 = vmatpush.bf16.msra.mxu3 %v1133_v9 }
 0x2c7   : > { %1151 = vmatpush.bf16.msra.mxu2 %v1130_v8  ;;  %1164 = vmatpush.bf16.msra.mxu3 %v1131_v22 }
 0x2ca   : > { %1363 = vmatmul.msk.bf16.vlgmr.msra.gmra.mxu2 %vm594_vm0, %v1134_v50  ;;  %1364 = vmatmul.msk.bf16.vlgmr.msra.gmra.mxu3 %vm594_vm0, %v1134_v50 }
 0x34d   : > { %v1153_v18 = vpop.f32.mrf.mxu2  ;;  %v1166_v36 = vpop.f32.mrf.mxu3 }
 0x34e   : > { %v1154_v62 = vadd.f32 %v1153_v18, %v1139_v26  ;;  %v1167_v37 = vadd.f32 %v1166_v36, %v1139_v26 }
 0x350   : > { %1170 = vst [vmem:[%s415_s22] sm:$0xff] %v1154_v62 }
 0x351   : > { %1171 = vst [vmem:[%s415_s22 + $0x8] sm:$0xff] %v1167_v37 }
 0x355   : > { %v1155_v38 = vpop.f32.mrf.mxu2  ;;  %v1168_v24 = vpop.f32.mrf.mxu3 }
 0x356 PF: > { %p18_p12 = scmp.ge.s32.totalorder %s1601_s13, 4   ;;  %s1957_s30 = smov %s1523_s10 }
 0x357   : > { %s1958_s10 = smov %s1611_s16  ;;  %s1959_s11 = smov %s1601_s13 }
 0x358   :  { %20 = sbr.rel (!%p18_p12) target bundleno = 3 (0x3), region = 138 }
 0x35d   :  { %1194 = vsyncpa [#allocation4], 1 }
 0x35e   :  { %1196 = vsyncpa [#allocation4 + $0x1], 1 }
 0x35f   :  { %1197 = vsyncpa [#allocation6], 1 }

// kernel: combined_forward.4
= control target key start
LH: loop header
LB: loop body
LE: loop exit
PB: predicated region body
PF: predicated region fallthrough
CT: control target
= control target key end

     0   :  { %s8108_s0 = inlined_call_operand.vmem [shape: bf16[8,512], index: 0, kind: input, shape index: {}]   ;;  %s8109_s1 = inlined_call_operand.vmem [shape: bf16[512,512], index: 1, kind: input, shape index: {}]   ;;  %s8110_s2 = inlined_call_operand.hbm [shape: f32[8,512], index: 2, kind: input, shape index: {}]   ;;  %s8111_s3 = inlined_call_operand.hbm [shape: f32[512,512], index: 3, kind: input, shape index: {}]   ;;  %s8112_s4 = inlined_call_operand.hbm [shape: f32[8,512], index: 4, kind: input, shape index: {}]   ;;  %s8113_s5 = inlined_call_operand.hbm [shape: bf16[512,128], index: 5, kind: input, shape index: {}]   ;;  %s8114_s6 = inlined_call_operand.hbm [shape: f32[8,128], index: 6, kind: input, shape index: {}]   ;;  %s8115_s7 = inlined_call_operand.hbm [shape: bf16[128,128], index: 7, kind: input, shape index: {}]   ;;  %s8116_s8 = inlined_call_operand.hbm [shape: f32[8,128], index: 8, kind: input, shape index: {}]   ;;  %s8117_s9 = inlined_call_operand.vmem [shape: bf16[128,32], index: 9, kind: input, shape index: {}]   ;;  %s8118_s10 = inlined_call_operand.hbm [shape: f32[8,32], index: 10, kind: input, shape index: {}]   ;;  %s8119_s11 = inlined_call_operand.hbm [shape: f32[8,32], index: 11, kind: input, shape index: {}]   ;;  %s8120_s12 = inlined_call_operand.hbm [shape: f32[8,32], index: 12, kind: input, shape index: {}]   ;;  %s8121_s13 = inlined_call_operand.hbm [shape: bf16[32,128], index: 13, kind: input, shape index: {}]   ;;  %s8122_s14 = inlined_call_operand.hbm [shape: f32[8,128], index: 14, kind: input, shape index: {}]   ;;  %s8123_s15 = inlined_call_operand.hbm [shape: bf16[128,128], index: 15, kind: input, shape index: {}]   ;;  %s8124_s16 = inlined_call_operand.hbm [shape: f32[8,128], index: 16, kind: input, shape index: {}]   ;;  %s8125_s17 = inlined_call_operand.hbm [shape: bf16[128,512], index: 17, kind: input, shape index: {}]   ;;  %s8126_s18 = inlined_call_operand.hbm [shape: f32[8,512], index: 18, kind: input, shape index: {}]   ;;  %s8127_s19 = inlined_call_operand.hbm [shape: f32[512,512], index: 19, kind: input, shape index: {}]   ;;  %s8128_s20 = inlined_call_operand.hbm [shape: f32[8,512], index: 20, kind: input, shape index: {}]   ;;  %s8129_s21 = inlined_call_operand.hbm [shape: bf16[512,512], index: 21, kind: input, shape index: {}]   ;;  %s8130_s22 = inlined_call_operand.hbm [shape: f32[8,512], index: 22, kind: input, shape index: {}]   ;;  %s8131_s23 = inlined_call_operand.vmem [shape: f32[8,512], index: 23, kind: output, shape index: {0}]   ;;  %s8132_s24 = inlined_call_operand.vmem [shape: f32[8,128], index: 24, kind: output, shape index: {1}]   ;;  %s8133_s25 = inlined_call_operand.vmem [shape: f32[8,32], index: 25, kind: output, shape index: {2}]  }
   0x1   :  { %8140 = sst [smem:[#allocation44_spill]] %s8108_s0 }
   0x2   :  { %8141 = sst [smem:[#allocation45_spill]] %s8109_s1 }
   0x3   :  { %8142 = sst [smem:[#allocation46_spill]] %s8110_s2 }
   0x4   :  { %8143 = sst [smem:[#allocation47_spill]] %s8111_s3 }
   0x5   :  { %8144 = sst [smem:[#allocation48_spill]] %s8112_s4 }
   0x6   :  { %8145 = sst [smem:[#allocation49_spill]] %s8113_s5 }
   0x7   :  { %8146 = sst [smem:[#allocation50_spill]] %s8114_s6 }
   0x8   :  { %8147 = sst [smem:[#allocation51_spill]] %s8115_s7 }
   0x9   :  { %8148 = sst [smem:[#allocation52_spill]] %s8116_s8 }
   0xa   :  { %8149 = sst [smem:[#allocation53_spill]] %s8117_s9 }
   0xb   :  { %8150 = sst [smem:[#allocation54_spill]] %s8131_s23 }
   0xc   :  { %31 = vsyncpa [#allocation3], 0 }
   0xd   :  { %32 = vsyncpa [#allocation5], 0 }
   0xe   :  { %33 = vsyncpa [#allocation8], 0 }
   0xf   :  { %34 = vsyncpa [#allocation11], 0 }
  0x10   :  { %35 = vsyncpa [#allocation14], 0 }
  0x11   :  { %36 = vsyncpa [#allocation17], 0 }
  0x12   :  { %37 = vsyncpa [#allocation20], 0 }
  0x13   :  { %38 = vsyncpa [#allocation23], 0 }
  0x14   :  { %39 = vsyncpa [#allocation26], 0 }
  0x15   :  { %40 = vsyncpa [#allocation29], 0  ;;  %s8151_s6 = sld [smem:[#allocation47_spill]] }
  0x1b   :  { %s61_s30 = sshll.u32 %s8151_s6, 4  ;;  %s62_s30 = int_to_ptr.hbm [resolvable:$true] %s61_s30 }
  0x1c   :  { %41 = vsyncpa [#allocation32], 0  ;;  %s6872_s7 = smov [#allocation4]   ;;  %s8152_s8 = sld [smem:[#allocation49_spill]] }
  0x1d   :  { %s63_s3 = sshll.u32 %s6872_s7, 4  ;;  %s8138_s4 = smov 512   ;;  %s64_s3 = int_to_ptr.vmem [resolvable:$true] %s63_s3 }
  0x1e   :  { %s8139_s28 = smov 32   ;;  %s6875_s9 = smov [#allocation7]  }
  0x1f   :  { %69 = dma.hbm_to_vmem [thread:$0]  %s62_s30, 32768, %s64_s3, [#allocation5], %s8138_s4, %s8138_s4, %s8139_s28  }
  0x20   :  { %s87_s5 = sshll.u32 %s6875_s9, 4  ;;  %s6876_s0 = smov 64   ;;  %s88_s5 = int_to_ptr.vmem [resolvable:$true] %s87_s5 }
  0x21   :  { %s6877_s29 = smov 4   ;;  %s8153_s7 = sld [smem:[#allocation51_spill]] }
  0x22   :  { %s85_s27 = sshll.u32 %s8152_s8, 4  ;;  %s6878_s1 = smov [#allocation10]   ;;  %s86_s27 = int_to_ptr.hbm [resolvable:$true] %s85_s27 }
  0x23   :  { %93 = dma.hbm_to_vmem [thread:$0]  %s86_s27, 4096, %s88_s5, [#allocation8], %s6876_s0, %s6876_s0, %s6877_s29  }
  0x24   :  { %s111_s8 = sshll.u32 %s6878_s1, 4  ;;  %s136_s3 = sshll.u32 %s8118_s10, 4  ;;  %s112_s8 = int_to_ptr.vmem [resolvable:$true] %s111_s8  ;;  %s137_s3 = int_to_ptr.hbm [resolvable:$true] %s136_s3 }
  0x25   :  { %s6879_s9 = smov [#allocation13]   ;;  %s158_s2 = sshll.u32 %s8120_s12, 4  ;;  %s159_s2 = int_to_ptr.hbm [resolvable:$true] %s158_s2 }
  0x26   :  { %s138_s4 = sshll.u32 %s6879_s9, 4  ;;  %s182_s1 = sshll.u32 %s8122_s14, 4  ;;  %s139_s4 = int_to_ptr.vmem [resolvable:$true] %s138_s4  ;;  %s183_s1 = int_to_ptr.hbm [resolvable:$true] %s182_s1 }
  0x27   :  { %s109_s26 = sshll.u32 %s8153_s7, 4  ;;  %s6880_s23 = smov [#allocation16]   ;;  %s110_s26 = int_to_ptr.hbm [resolvable:$true] %s109_s26 }
  0x28   :  { %117 = dma.hbm_to_vmem [thread:$0]  %s110_s26, 1024, %s112_s8, [#allocation11], %s6876_s0, %s6876_s0, %s6877_s29  }
  0x29   :  { %141 = dma.hbm_to_vmem [thread:$0]  %s137_s3, 128, %s139_s4, [#allocation14]  }
  0x2a   :  { %s160_s10 = sshll.u32 %s6880_s23, 4  ;;  %s6881_s26 = smov [#allocation19]   ;;  %s161_s10 = int_to_ptr.vmem [resolvable:$true] %s160_s10 }
  0x2b   :  { %163 = dma.hbm_to_vmem [thread:$0]  %s159_s2, 128, %s161_s10, [#allocation17]  }
  0x2c   :  { %s184_s8 = sshll.u32 %s6881_s26, 4  ;;  %s206_s28 = sshll.u32 %s8124_s16, 4  ;;  %s185_s8 = int_to_ptr.vmem [resolvable:$true] %s184_s8  ;;  %s207_s28 = int_to_ptr.hbm [resolvable:$true] %s206_s28 }
  0x2d   :  { %187 = dma.hbm_to_vmem [thread:$0]  %s183_s1, 128, %s185_s8, [#allocation20]  }
  0x2e   :  { %s230_s3 = sshll.u32 %s8126_s18, 4  ;;  %s6882_s27 = smov [#allocation22]   ;;  %s231_s3 = int_to_ptr.hbm [resolvable:$true] %s230_s3 }
  0x2f   :  { %s208_s14 = sshll.u32 %s6882_s27, 4  ;;  %s6883_s5 = smov [#allocation25]   ;;  %s209_s14 = int_to_ptr.vmem [resolvable:$true] %s208_s14 }
  0x30   :  { %211 = dma.hbm_to_vmem [thread:$0]  %s207_s28, 128, %s209_s14, [#allocation23]  }
  0x31   :  { %s232_s2 = sshll.u32 %s6883_s5, 4  ;;  %s254_s23 = sshll.u32 %s8128_s20, 4  ;;  %s233_s2 = int_to_ptr.vmem [resolvable:$true] %s232_s2  ;;  %s255_s23 = int_to_ptr.hbm [resolvable:$true] %s254_s23 }
  0x32   :  { %235 = dma.hbm_to_vmem [thread:$0]  %s231_s3, 512, %s233_s2, [#allocation26]  }
  0x33   :  { %s8154_s10 = sld [smem:[#allocation46_spill]]  ;;  %s6884_s8 = smov [#allocation28]  }
  0x34   :  { %s256_s18 = sshll.u32 %s6884_s8, 4  ;;  %s6885_s30 = smov [#allocation2]   ;;  %s257_s18 = int_to_ptr.vmem [resolvable:$true] %s256_s18 }
  0x35   :  { %259 = dma.hbm_to_vmem [thread:$0]  %s255_s23, 512, %s257_s18, [#allocation29]  }
  0x36   :  { %s53_s28 = sshll.u32 %s6885_s30, 4  ;;  %s8155_s4 = sld [smem:[#allocation48_spill]]  ;;  %s54_s28 = int_to_ptr.vmem [resolvable:$true] %s53_s28 }
  0x37   :  { %s8156_s14 = sld [smem:[#allocation50_spill]]  ;;  %s6886_s2 = smov [#allocation6]  }
  0x38   :  { %s77_s6 = sshll.u32 %s6886_s2, 4  ;;  %s6887_s7 = smov [#allocation9]   ;;  %s78_s6 = int_to_ptr.vmem [resolvable:$true] %s77_s6 }
  0x39   :  { %s51_s26 = sshll.u32 %s8154_s10, 4  ;;  %s101_s23 = sshll.u32 %s6887_s7, 4  ;;  %s52_s26 = int_to_ptr.hbm [resolvable:$true] %s51_s26  ;;  %s102_s23 = int_to_ptr.vmem [resolvable:$true] %s101_s23 }
  0x3a   :  { %56 = dma.hbm_to_vmem [thread:$0]  %s52_s26, 512, %s54_s28, [#allocation3]  }
  0x3b   :  { %s8157_s10 = sld [smem:[#allocation52_spill]]  ;;  %s147_s30 = sshll.u32 %s8119_s11, 4  ;;  %s148_s30 = int_to_ptr.hbm [resolvable:$true] %s147_s30 }
  0x3c   :  { %s75_s27 = sshll.u32 %s8155_s4, 4  ;;  %s6888_s28 = smov [#allocation12]   ;;  %s76_s27 = int_to_ptr.hbm [resolvable:$true] %s75_s27 }
  0x3d   :  { %s99_s5 = sshll.u32 %s8156_s14, 4  ;;  %s125_s9 = sshll.u32 %s6888_s28, 4  ;;  %s100_s5 = int_to_ptr.hbm [resolvable:$true] %s99_s5  ;;  %s126_s9 = int_to_ptr.vmem [resolvable:$true] %s125_s9 }
  0x3e   :  { %80 = dma.hbm_to_vmem [thread:$0]  %s76_s27, 512, %s78_s6, [#allocation5]  }
  0x3f   :  { %104 = dma.hbm_to_vmem [thread:$0]  %s100_s5, 128, %s102_s23, [#allocation8]  }
  0x40   :  { %s6889_s12 = smov [#allocation15]   ;;  %s168_s3 = sshll.u32 %s8121_s13, 4  ;;  %s169_s3 = int_to_ptr.hbm [resolvable:$true] %s168_s3 }
  0x41   :  { %s123_s8 = sshll.u32 %s8157_s10, 4  ;;  %s149_s4 = sshll.u32 %s6889_s12, 4  ;;  %s124_s8 = int_to_ptr.hbm [resolvable:$true] %s123_s8  ;;  %s150_s4 = int_to_ptr.vmem [resolvable:$true] %s149_s4 }
  0x42   :  { %128 = dma.hbm_to_vmem [thread:$0]  %s124_s8, 128, %s126_s9, [#allocation11]  }
  0x43   :  { %152 = dma.hbm_to_vmem [thread:$0]  %s148_s30, 128, %s150_s4, [#allocation14]  }
  0x44   :  { %s192_s2 = sshll.u32 %s8123_s15, 4  ;;  %s6890_s6 = smov [#allocation18]   ;;  %s193_s2 = int_to_ptr.hbm [resolvable:$true] %s192_s2 }
  0x45   :  { %s170_s11 = sshll.u32 %s6890_s6, 4  ;;  %s6891_s7 = smov [#allocation21]   ;;  %s171_s11 = int_to_ptr.vmem [resolvable:$true] %s170_s11 }
  0x46   :  { %176 = dma.hbm_to_vmem [thread:$0]  %s169_s3, 256, %s171_s11, [#allocation17], %s6876_s0, %s6876_s0, %s6877_s29  }
  0x47   :  { %s194_s23 = sshll.u32 %s6891_s7, 4  ;;  %s216_s13 = sshll.u32 %s8125_s17, 4  ;;  %s195_s23 = int_to_ptr.vmem [resolvable:$true] %s194_s23  ;;  %s217_s13 = int_to_ptr.hbm [resolvable:$true] %s216_s13 }
  0x48   :  { %200 = dma.hbm_to_vmem [thread:$0]  %s193_s2, 1024, %s195_s23, [#allocation20], %s6876_s0, %s6876_s0, %s6877_s29  }
  0x49   :  { %s6892_s15 = smov [#allocation24]   ;;  %s240_s26 = sshll.u32 %s8127_s19, 4  ;;  %s241_s26 = int_to_ptr.hbm [resolvable:$true] %s240_s26 }
  0x4a   :  { %s218_s10 = sshll.u32 %s6892_s15, 4  ;;  %s6893_s30 = smov 256   ;;  %s219_s10 = int_to_ptr.vmem [resolvable:$true] %s218_s10 }
  0x4b   :  { %s6894_s28 = smov 16   ;;  %s6895_s9 = smov [#allocation27]  }
  0x4c   :  { %224 = dma.hbm_to_vmem [thread:$0]  %s217_s13, 4096, %s219_s10, [#allocation23], %s6893_s30, %s6893_s30, %s6894_s28  }
  0x4d   :  { %s242_s12 = sshll.u32 %s6895_s9, 4  ;;  %s264_s27 = sshll.u32 %s8129_s21, 4  ;;  %s243_s12 = int_to_ptr.vmem [resolvable:$true] %s242_s12  ;;  %s265_s27 = int_to_ptr.hbm [resolvable:$true] %s264_s27 }
  0x4e   :  { %s8158_s0 = smov 32   ;;  %s8159_s29 = smov 512  }
  0x4f   :  { %248 = dma.hbm_to_vmem [thread:$0]  %s241_s26, 32768, %s243_s12, [#allocation26], %s8159_s29, %s8159_s29, %s8158_s0  }
  0x50   :  { %s278_s19 = sshll.u32 %s8130_s22, 4  ;;  %s6896_s14 = smov [#allocation30]   ;;  %s279_s19 = int_to_ptr.hbm [resolvable:$true] %s278_s19 }
  0x51   :  { %s266_s5 = sshll.u32 %s6896_s14, 4  ;;  %s6897_s2 = smov [#allocation31]   ;;  %s267_s5 = int_to_ptr.vmem [resolvable:$true] %s266_s5 }
  0x52   :  { %272 = dma.hbm_to_vmem [thread:$0]  %s265_s27, 16384, %s267_s5, [#allocation29], %s6893_s30, %s6893_s30, %s6894_s28  }
  0x53   :  { %s280_s6 = sshll.u32 %s6897_s2, 4  ;;  %s281_s6 = int_to_ptr.vmem [resolvable:$true] %s280_s6 }
  0x54   :  { %283 = dma.hbm_to_vmem [thread:$0]  %s279_s19, 512, %s281_s6, [#allocation32]  }
  0x55   :  { %6850 = dma.done.wait [#allocation3], 512  }
  0x56   :  { %6851 = vsyncadd [#allocation3], 4294966784 }
  0x57   :  { %6852 = dma.done.wait [#allocation5], 33280  }
  0x58   :  { %6853 = vsyncadd [#allocation5], 4294934016 }
  0x59   :  { %6854 = dma.done.wait [#allocation8], 4224  }
  0x5a   :  { %6855 = vsyncadd [#allocation8], 4294963072 }
  0x5b   :  { %6856 = dma.done.wait [#allocation11], 1152  }
  0x5c   :  { %6857 = vsyncadd [#allocation11], 4294966144 }
  0x5d   :  { %6858 = dma.done.wait [#allocation14], 256  }
  0x5e   :  { %6859 = vsyncadd [#allocation14], 4294967040 }
  0x5f   :  { %6860 = dma.done.wait [#allocation17], 384  }
  0x60   :  { %6861 = vsyncadd [#allocation17], 4294966912 }
  0x61   :  { %6862 = dma.done.wait [#allocation20], 1152  }
  0x62   :  { %6863 = vsyncadd [#allocation20], 4294966144 }
  0x63   :  { %6864 = dma.done.wait [#allocation23], 4224  }
  0x64   :  { %6865 = vsyncadd [#allocation23], 4294963072 }
  0x65   :  { %6866 = dma.done.wait [#allocation26], 33280  }
  0x66   :  { %6867 = vsyncadd [#allocation26], 4294934016 }
  0x67   :  { %6868 = dma.done.wait [#allocation29], 16896  }
  0x68   :  { %6869 = vsyncadd [#allocation29], 4294950400 }
  0x69   :  { %6870 = dma.done.wait [#allocation32], 512  }
  0x6a   :  { %6871 = vsyncadd [#allocation32], 4294966784  ;;  %s8160_s11 = sld [smem:[#allocation45_spill]] }
  0x6b   :  { %s8161_s13 = sld [smem:[#allocation44_spill]] }
  0x6c   :  { %s8162_s9 = sld [smem:[#allocation53_spill]] }
  0x6d   :  { %s8163_s1 = sld [smem:[#allocation54_spill]] }
  0x70   :  { %v4681_v0 = vld [vmem:[%s8160_s11 + $0xe0] sm:$0xf]  ;;  %v5984_v1 = vld [vmem:[%s8160_s11 + $0xec] sm:$0xf0] }
  0x71   :  { %v4809_v2 = vld [vmem:[%s8160_s11 + $0x1e0] sm:$0xf]  ;;  %v4682_v3 = vor.u32 %v5984_v1, %v4681_v0  ;;  %v6016_v4 = vld [vmem:[%s8160_s11 + $0x1ec] sm:$0xf0] }
  0x72   :  { %v4937_v5 = vld [vmem:[%s8160_s11 + $0x2e0] sm:$0xf]  ;;  %v6048_v6 = vld [vmem:[%s8160_s11 + $0x2ec] sm:$0xf0]  ;;  %v4810_v7 = vor.u32 %v6016_v4, %v4809_v2 }
  0x73   :  { %v4938_v8 = vor.u32 %v6048_v6, %v4937_v5  ;;  %v5065_v9 = vld [vmem:[%s8160_s11 + $0x3e0] sm:$0xf]  ;;  %v6080_v10 = vld [vmem:[%s8160_s11 + $0x3ec] sm:$0xf0]  ;;  %1153 = vmatpush.bf16.msra.mxu0 %v4682_v3 }
  0x74   :  { %v4665_v11 = vld [vmem:[%s8160_s11 + $0xc0] sm:$0xf]  ;;  %v5066_v12 = vor.u32 %v6080_v10, %v5065_v9  ;;  %v5980_v13 = vld [vmem:[%s8160_s11 + $0xcc] sm:$0xf0]  ;;  %1166 = vmatpush.bf16.msra.mxu1 %v4810_v7 }
  0x75   :  { %v4793_v14 = vld [vmem:[%s8160_s11 + $0x1c0] sm:$0xf]  ;;  %v6012_v15 = vld [vmem:[%s8160_s11 + $0x1cc] sm:$0xf0]  ;;  %1179 = vmatpush.bf16.msra.mxu2 %v4938_v8  ;;  %v4666_v16 = vor.u32 %v5980_v13, %v4665_v11 }
  0x76   :  { %v4794_v17 = vor.u32 %v6012_v15, %v4793_v14  ;;  %v4921_v18 = vld [vmem:[%s8160_s11 + $0x2c0] sm:$0xf]  ;;  %v6044_v19 = vld [vmem:[%s8160_s11 + $0x2cc] sm:$0xf0]  ;;  %1192 = vmatpush.bf16.msra.mxu3 %v5066_v12 }
  0x77   :  { %v5049_v20 = vld [vmem:[%s8160_s11 + $0x3c0] sm:$0xf]  ;;  %v4922_v21 = vor.u32 %v6044_v19, %v4921_v18  ;;  %v6076_v22 = vld [vmem:[%s8160_s11 + $0x3cc] sm:$0xf0]  ;;  %1154 = vmatpush.bf16.msra.mxu0 %v4666_v16 }
  0x78   :  { %v4649_v23 = vld [vmem:[%s8160_s11 + $0xa0] sm:$0xf]  ;;  %v5976_v24 = vld [vmem:[%s8160_s11 + $0xac] sm:$0xf0]  ;;  %v5050_v25 = vor.u32 %v6076_v22, %v5049_v20  ;;  %1167 = vmatpush.bf16.msra.mxu1 %v4794_v17 }
  0x79   :  { %v4777_v26 = vld [vmem:[%s8160_s11 + $0x1a0] sm:$0xf]  ;;  %v6008_v27 = vld [vmem:[%s8160_s11 + $0x1ac] sm:$0xf0]  ;;  %v4650_v29 = vor.u32 %v5976_v24, %v4649_v23  ;;  %1180 = vmatpush.bf16.msra.mxu2 %v4922_v21 }
  0x7a   :  { %v4905_v28 = vld [vmem:[%s8160_s11 + $0x2a0] sm:$0xf]  ;;  %v6040_v30 = vld [vmem:[%s8160_s11 + $0x2ac] sm:$0xf0]  ;;  %v4778_v33 = vor.u32 %v6008_v27, %v4777_v26  ;;  %1193 = vmatpush.bf16.msra.mxu3 %v5050_v25 }
  0x7b   :  { %v5033_v31 = vld [vmem:[%s8160_s11 + $0x3a0] sm:$0xf]  ;;  %v6072_v32 = vld [vmem:[%s8160_s11 + $0x3ac] sm:$0xf0]  ;;  %v4906_v34 = vor.u32 %v6040_v30, %v4905_v28  ;;  %1155 = vmatpush.bf16.msra.mxu0 %v4650_v29  ;;  %v5982_v28 = vld [vmem:[%s8160_s11 + $0xe4] sm:$0xf] }
  0x7c   :  { %v4633_v35 = vld [vmem:[%s8160_s11 + $0x80] sm:$0xf]  ;;  %v5972_v36 = vld [vmem:[%s8160_s11 + $0x8c] sm:$0xf0]  ;;  %v5034_v38 = vor.u32 %v6072_v32, %v5033_v31  ;;  %1168 = vmatpush.bf16.msra.mxu1 %v4778_v33  ;;  %v4683_v29 = vld [vmem:[%s8160_s11 + $0xf0] sm:$0xf0] }
  0x7d   :  { %v4761_v37 = vld [vmem:[%s8160_s11 + $0x180] sm:$0xf]  ;;  %v6004_v39 = vld [vmem:[%s8160_s11 + $0x18c] sm:$0xf0]  ;;  %v4634_v44 = vor.u32 %v5972_v36, %v4633_v35  ;;  %1181 = vmatpush.bf16.msra.mxu2 %v4906_v34  ;;  %v6014_v30 = vld [vmem:[%s8160_s11 + $0x1e4] sm:$0xf] }
  0x7e   :  { %v4889_v40 = vld [vmem:[%s8160_s11 + $0x280] sm:$0xf]  ;;  %v6036_v41 = vld [vmem:[%s8160_s11 + $0x28c] sm:$0xf0]  ;;  %v4762_v45 = vor.u32 %v6004_v39, %v4761_v37  ;;  %1194 = vmatpush.bf16.msra.mxu3 %v5034_v38  ;;  %v4811_v32 = vld [vmem:[%s8160_s11 + $0x1f0] sm:$0xf0] }
  0x7f   :  { %v5017_v42 = vld [vmem:[%s8160_s11 + $0x380] sm:$0xf]  ;;  %v6068_v43 = vld [vmem:[%s8160_s11 + $0x38c] sm:$0xf0]  ;;  %v4890_v46 = vor.u32 %v6036_v41, %v4889_v40  ;;  %1156 = vmatpush.bf16.msra.mxu0 %v4634_v44  ;;  %v6046_v33 = vld [vmem:[%s8160_s11 + $0x2e4] sm:$0xf]  ;;  %v4686_v40 = vor.u32 %v5982_v28, %v4683_v29 }
  0x80   :  { %v4617_v47 = vld [vmem:[%s8160_s11 + $0x60] sm:$0xf]  ;;  %v5968_v48 = vld [vmem:[%s8160_s11 + $0x6c] sm:$0xf0]  ;;  %v5018_v50 = vor.u32 %v6068_v43, %v5017_v42  ;;  %1169 = vmatpush.bf16.msra.mxu1 %v4762_v45  ;;  %v4939_v34 = vld [vmem:[%s8160_s11 + $0x2f0] sm:$0xf0]  ;;  %v4814_v42 = vor.u32 %v6014_v30, %v4811_v32 }
  0x81   :  { %v4745_v49 = vld [vmem:[%s8160_s11 + $0x160] sm:$0xf]  ;;  %v6000_v51 = vld [vmem:[%s8160_s11 + $0x16c] sm:$0xf0]  ;;  %v4618_v56 = vor.u32 %v5968_v48, %v4617_v47  ;;  %1182 = vmatpush.bf16.msra.mxu2 %v4890_v46  ;;  %v6078_v37 = vld [vmem:[%s8160_s11 + $0x3e4] sm:$0xf]  ;;  %v4942_v43 = vor.u32 %v6046_v33, %v4939_v34 }
  0x82   :  { %v4873_v52 = vld [vmem:[%s8160_s11 + $0x260] sm:$0xf]  ;;  %v6032_v53 = vld [vmem:[%s8160_s11 + $0x26c] sm:$0xf0]  ;;  %v4746_v57 = vor.u32 %v6000_v51, %v4745_v49  ;;  %1195 = vmatpush.bf16.msra.mxu3 %v5018_v50  ;;  %v5067_v38 = vld [vmem:[%s8160_s11 + $0x3f0] sm:$0xf0] }
  0x83   :  { %v5001_v54 = vld [vmem:[%s8160_s11 + $0x360] sm:$0xf]  ;;  %v6064_v55 = vld [vmem:[%s8160_s11 + $0x36c] sm:$0xf0]  ;;  %v4874_v58 = vor.u32 %v6032_v53, %v4873_v52  ;;  %1157 = vmatpush.bf16.msra.mxu0 %v4618_v56  ;;  %v366_v41 = vld [vmem:[%s8161_s13 + $0x8] sm:$0xff]  ;;  %v5070_v49 = vor.u32 %v6078_v37, %v5067_v38 }
  0x84   :  { %v4601_v59 = vld [vmem:[%s8160_s11 + $0x40] sm:$0xf]  ;;  %v5964_v60 = vld [vmem:[%s8160_s11 + $0x4c] sm:$0xf0]  ;;  %v5002_v62 = vor.u32 %v6064_v55, %v5001_v54  ;;  %1170 = vmatpush.bf16.msra.mxu1 %v4746_v57  ;;  %v5978_v44 = vld [vmem:[%s8160_s11 + $0xc4] sm:$0xf]  ;;  %v503_v47 = vunpack.c.l.b16 %v366_v41  ;;  %v504_v48 = vunpack.c.h.b16 %v366_v41 }
  0x85   :  { %v4729_v61 = vld [vmem:[%s8160_s11 + $0x140] sm:$0xf]  ;;  %v5996_v63 = vld [vmem:[%s8160_s11 + $0x14c] sm:$0xf0]  ;;  %v4602_v4 = vor.u32 %v5964_v60, %v4601_v59  ;;  %1183 = vmatpush.bf16.msra.mxu2 %v4874_v58  ;;  %v4667_v45 = vld [vmem:[%s8160_s11 + $0xd0] sm:$0xf0] }
  0x86   :  { %v4857_v0 = vld [vmem:[%s8160_s11 + $0x240] sm:$0xf]  ;;  %v6028_v1 = vld [vmem:[%s8160_s11 + $0x24c] sm:$0xf0]  ;;  %v4730_v5 = vor.u32 %v5996_v63, %v4729_v61  ;;  %1196 = vmatpush.bf16.msra.mxu3 %v5002_v62  ;;  %v6010_v46 = vld [vmem:[%s8160_s11 + $0x1c4] sm:$0xf]  ;;  %v7349_v55 = vpack.c.b16 %v503_v47, %v503_v47  ;;  %v7354_v57 = vpack.c.b16 %v504_v48, %v504_v48  ;;  %v4670_v58 = vor.u32 %v5978_v44, %v4667_v45 }
  0x87   :  { %v4985_v2 = vld [vmem:[%s8160_s11 + $0x340] sm:$0xf]  ;;  %v6060_v3 = vld [vmem:[%s8160_s11 + $0x34c] sm:$0xf0]  ;;  %v4858_v6 = vor.u32 %v6028_v1, %v4857_v0  ;;  %1158 = vmatpush.bf16.msra.mxu0 %v4602_v4  ;;  %v4795_v50 = vld [vmem:[%s8160_s11 + $0x1d0] sm:$0xf0] }
  0x88   :  { %v4585_v7 = vld [vmem:[%s8160_s11 + $0x20] sm:$0xf]  ;;  %v5960_v8 = vld [vmem:[%s8160_s11 + $0x2c] sm:$0xf0]  ;;  %v4986_v10 = vor.u32 %v6060_v3, %v4985_v2  ;;  %1171 = vmatpush.bf16.msra.mxu1 %v4730_v5  ;;  %v6042_v51 = vld [vmem:[%s8160_s11 + $0x2c4] sm:$0xf]  ;;  %v4798_v61 = vor.u32 %v6010_v46, %v4795_v50 }
  0x89   :  { %v4713_v9 = vld [vmem:[%s8160_s11 + $0x120] sm:$0xf]  ;;  %v5992_v11 = vld [vmem:[%s8160_s11 + $0x12c] sm:$0xf0]  ;;  %v4586_v16 = vor.u32 %v5960_v8, %v4585_v7  ;;  %1184 = vmatpush.bf16.msra.mxu2 %v4858_v6  ;;  %v4923_v52 = vld [vmem:[%s8160_s11 + $0x2d0] sm:$0xf0] }
  0x8a   :  { %v4841_v12 = vld [vmem:[%s8160_s11 + $0x220] sm:$0xf]  ;;  %v6024_v13 = vld [vmem:[%s8160_s11 + $0x22c] sm:$0xf0]  ;;  %v4714_v19 = vor.u32 %v5992_v11, %v4713_v9  ;;  %1197 = vmatpush.bf16.msra.mxu3 %v4986_v10  ;;  %v6074_v53 = vld [vmem:[%s8160_s11 + $0x3c4] sm:$0xf]  ;;  %v4926_v62 = vor.u32 %v6042_v51, %v4923_v52 }
  0x8b   :  { %v4969_v14 = vld [vmem:[%s8160_s11 + $0x320] sm:$0xf]  ;;  %v6056_v15 = vld [vmem:[%s8160_s11 + $0x32c] sm:$0xf0]  ;;  %v4842_v20 = vor.u32 %v6024_v13, %v4841_v12  ;;  %1159 = vmatpush.bf16.msra.mxu0 %v4586_v16  ;;  %v5051_v54 = vld [vmem:[%s8160_s11 + $0x3d0] sm:$0xf0] }
  0x8c   :  { %v4569_v17 = vld [vmem:[%s8160_s11] sm:$0xf]  ;;  %v5956_v18 = vld [vmem:[%s8160_s11 + $0xc] sm:$0xf0]  ;;  %v4970_v24 = vor.u32 %v6056_v15, %v4969_v14  ;;  %1172 = vmatpush.bf16.msra.mxu1 %v4714_v19  ;;  %v5974_v63 = vld [vmem:[%s8160_s11 + $0xa4] sm:$0xf]  ;;  %v5054_v2 = vor.u32 %v6074_v53, %v5051_v54 }
  0x8d   :  { %v4697_v21 = vld [vmem:[%s8160_s11 + $0x100] sm:$0xf]  ;;  %v5988_v22 = vld [vmem:[%s8160_s11 + $0x10c] sm:$0xf0]  ;;  %v4570_v31 = vor.u32 %v5956_v18, %v4569_v17  ;;  %1185 = vmatpush.bf16.msra.mxu2 %v4842_v20  ;;  %v4651_v0 = vld [vmem:[%s8160_s11 + $0xb0] sm:$0xf0] }
  0x8e   :  { %v4825_v23 = vld [vmem:[%s8160_s11 + $0x200] sm:$0xf]  ;;  %v6020_v25 = vld [vmem:[%s8160_s11 + $0x20c] sm:$0xf0]  ;;  %v4698_v35 = vor.u32 %v5988_v22, %v4697_v21  ;;  %1198 = vmatpush.bf16.msra.mxu3 %v4970_v24  ;;  %v6006_v1 = vld [vmem:[%s8160_s11 + $0x1a4] sm:$0xf]  ;;  %v4654_v10 = vor.u32 %v5974_v63, %v4651_v0 }
  0x8f   :  { %v4953_v26 = vld [vmem:[%s8160_s11 + $0x300] sm:$0xf]  ;;  %v6052_v27 = vld [vmem:[%s8160_s11 + $0x30c] sm:$0xf0]  ;;  %v4826_v36 = vor.u32 %v6020_v25, %v4825_v23  ;;  %1160 = vmatpush.bf16.msra.mxu0 %v4570_v31  ;;  %v4779_v3 = vld [vmem:[%s8160_s11 + $0x1b0] sm:$0xf0] }
  0x90   :  { %v4954_v39 = vor.u32 %v6052_v27, %v4953_v26  ;;  %1173 = vmatpush.bf16.msra.mxu1 %v4698_v35  ;;  %v365_v56 = vld [vmem:[%s8161_s13] sm:$0xff]  ;;  %v4907_v5 = vld [vmem:[%s8160_s11 + $0x2b0] sm:$0xf0]  ;;  %v4782_v11 = vor.u32 %v6006_v1, %v4779_v3 }
  0x91   :  { %1186 = vmatpush.bf16.msra.mxu2 %v4826_v36  ;;  %v501_v59 = vunpack.c.l.b16 %v365_v56  ;;  %v502_v60 = vunpack.c.h.b16 %v365_v56  ;;  %v6038_v4 = vld [vmem:[%s8160_s11 + $0x2a4] sm:$0xf]  ;;  %v5035_v9 = vld [vmem:[%s8160_s11 + $0x3b0] sm:$0xf0] }
  0x92   :  { %1199 = vmatpush.bf16.msra.mxu3 %v4954_v39  ;;  %v6070_v8 = vld [vmem:[%s8160_s11 + $0x3a4] sm:$0xf]  ;;  %v4910_v12 = vor.u32 %v6038_v4, %v4907_v5  ;;  %v4635_v14 = vld [vmem:[%s8160_s11 + $0x90] sm:$0xf0] }
  0x93   :  { %1205 = vmatpush.bf16.msrb.mxu0 %v4686_v40  ;;  %v7375_v6 = vpack.c.b16 %v501_v59, %v501_v59  ;;  %v7377_v7 = vpack.c.b16 %v502_v60, %v502_v60  ;;  %v5970_v13 = vld [vmem:[%s8160_s11 + $0x84] sm:$0xf]  ;;  %v5038_v16 = vor.u32 %v6070_v8, %v5035_v9  ;;  %v4763_v17 = vld [vmem:[%s8160_s11 + $0x190] sm:$0xf0] }
  0x94   :  { %1218 = vmatpush.bf16.msrb.mxu1 %v4814_v42  ;;  %1187 = vmatmul.bf16.vlgmr.msra.gmra.mxu2 %v7349_v55  ;;  %v6002_v15 = vld [vmem:[%s8160_s11 + $0x184] sm:$0xf]  ;;  %v4891_v19 = vld [vmem:[%s8160_s11 + $0x290] sm:$0xf0]  ;;  %v4638_v22 = vor.u32 %v5970_v13, %v4635_v14  ;;  %v6017_v14 = vld [vmem:[%s8160_s11 + $0x1f4] sm:$0xf0] }
  0x95   :  { %1231 = vmatpush.bf16.msrb.mxu2 %v4942_v43  ;;  %1200 = vmatmul.bf16.vlgmr.msra.gmra.mxu3 %v7354_v57  ;;  %v6034_v18 = vld [vmem:[%s8160_s11 + $0x284] sm:$0xf]  ;;  %v5019_v21 = vld [vmem:[%s8160_s11 + $0x390] sm:$0xf0]  ;;  %v4766_v23 = vor.u32 %v6002_v15, %v4763_v17  ;;  %v4945_v15 = vld [vmem:[%s8160_s11 + $0x2e8] sm:$0xf] }
  0x96   :  { %1244 = vmatpush.bf16.msrb.mxu3 %v5070_v49  ;;  %1174 = vmatmul.bf16.vlgmr.msra.gmra.mxu1 %v7377_v7  ;;  %v6066_v20 = vld [vmem:[%s8160_s11 + $0x384] sm:$0xf]  ;;  %v4894_v24 = vor.u32 %v6034_v18, %v4891_v19  ;;  %v4619_v26 = vld [vmem:[%s8160_s11 + $0x70] sm:$0xf0]  ;;  %v5073_v19 = vld [vmem:[%s8160_s11 + $0x3e8] sm:$0xf] }
  0x97   :  { %1206 = vmatpush.bf16.msrb.mxu0 %v4670_v58  ;;  %v5966_v25 = vld [vmem:[%s8160_s11 + $0x64] sm:$0xf]  ;;  %v5022_v28 = vor.u32 %v6066_v20, %v5019_v21  ;;  %v4747_v29 = vld [vmem:[%s8160_s11 + $0x170] sm:$0xf0]  ;;  %v6081_v20 = vld [vmem:[%s8160_s11 + $0x3f4] sm:$0xf0] }
  0x98   :  { %1219 = vmatpush.bf16.msrb.mxu1 %v4798_v61  ;;  %1161 = vmatmul.bf16.vlgmr.msra.gmra.mxu0 %v7375_v6  ;;  %v5998_v27 = vld [vmem:[%s8160_s11 + $0x164] sm:$0xf]  ;;  %v4875_v31 = vld [vmem:[%s8160_s11 + $0x270] sm:$0xf0]  ;;  %v4622_v34 = vor.u32 %v5966_v25, %v4619_v26  ;;  %v4673_v25 = vld [vmem:[%s8160_s11 + $0xc8] sm:$0xf] }
  0x99   :  { %1232 = vmatpush.bf16.msrb.mxu2 %v4926_v62  ;;  %v6030_v30 = vld [vmem:[%s8160_s11 + $0x264] sm:$0xf]  ;;  %v5003_v33 = vld [vmem:[%s8160_s11 + $0x370] sm:$0xf0]  ;;  %v4750_v35 = vor.u32 %v5998_v27, %v4747_v29  ;;  %v5981_v26 = vld [vmem:[%s8160_s11 + $0xd4] sm:$0xf0] }
  0x9a   :  { %1245 = vmatpush.bf16.msrb.mxu3 %v5054_v2  ;;  %v6062_v32 = vld [vmem:[%s8160_s11 + $0x364] sm:$0xf]  ;;  %v4878_v36 = vor.u32 %v6030_v30, %v4875_v31  ;;  %v4603_v38 = vld [vmem:[%s8160_s11 + $0x50] sm:$0xf0]  ;;  %v4801_v27 = vld [vmem:[%s8160_s11 + $0x1c8] sm:$0xf] }
  0x9b   :  { %1207 = vmatpush.bf16.msrb.mxu0 %v4654_v10  ;;  %v5962_v37 = vld [vmem:[%s8160_s11 + $0x44] sm:$0xf]  ;;  %v5006_v40 = vor.u32 %v6062_v32, %v5003_v33  ;;  %v4731_v41 = vld [vmem:[%s8160_s11 + $0x150] sm:$0xf0]  ;;  %v4689_v10 = vld [vmem:[%s8160_s11 + $0xe8] sm:$0xf] }
  0x9c   :  { %1220 = vmatpush.bf16.msrb.mxu1 %v4782_v11  ;;  %v5994_v39 = vld [vmem:[%s8160_s11 + $0x144] sm:$0xf]  ;;  %v4859_v43 = vld [vmem:[%s8160_s11 + $0x250] sm:$0xf0]  ;;  %v4606_v46 = vor.u32 %v5962_v37, %v4603_v38  ;;  %v5985_v11 = vld [vmem:[%s8160_s11 + $0xf4] sm:$0xf0] }
  0x9d   :  { %1233 = vmatpush.bf16.msrb.mxu2 %v4910_v12  ;;  %v6026_v42 = vld [vmem:[%s8160_s11 + $0x244] sm:$0xf]  ;;  %v4987_v45 = vld [vmem:[%s8160_s11 + $0x350] sm:$0xf0]  ;;  %v4734_v47 = vor.u32 %v5994_v39, %v4731_v41  ;;  %v4817_v12 = vld [vmem:[%s8160_s11 + $0x1e8] sm:$0xf] }
  0x9e   :  { %1246 = vmatpush.bf16.msrb.mxu3 %v5038_v16  ;;  %v6058_v44 = vld [vmem:[%s8160_s11 + $0x344] sm:$0xf]  ;;  %v4862_v48 = vor.u32 %v6026_v42, %v4859_v43  ;;  %v4587_v50 = vld [vmem:[%s8160_s11 + $0x30] sm:$0xf0]  ;;  %v6049_v16 = vld [vmem:[%s8160_s11 + $0x2f4] sm:$0xf0] }
  0x9f   :  { %1208 = vmatpush.bf16.msrb.mxu0 %v4638_v22  ;;  %v5958_v49 = vld [vmem:[%s8160_s11 + $0x24] sm:$0xf]  ;;  %v4990_v52 = vor.u32 %v6058_v44, %v4987_v45  ;;  %v4715_v53 = vld [vmem:[%s8160_s11 + $0x130] sm:$0xf0]  ;;  %v4690_v22 = vor.u32 %v5985_v11, %v4689_v10  ;;  %v6013_v29 = vld [vmem:[%s8160_s11 + $0x1d4] sm:$0xf0] }
  0xa0   :  { %1221 = vmatpush.bf16.msrb.mxu1 %v4766_v23  ;;  %v5990_v51 = vld [vmem:[%s8160_s11 + $0x124] sm:$0xf]  ;;  %v4843_v56 = vld [vmem:[%s8160_s11 + $0x230] sm:$0xf0]  ;;  %v4590_v60 = vor.u32 %v5958_v49, %v4587_v50  ;;  %v4818_v23 = vor.u32 %v6017_v14, %v4817_v12  ;;  %v4929_v30 = vld [vmem:[%s8160_s11 + $0x2c8] sm:$0xf] }
  0xa1   :  { %1234 = vmatpush.bf16.msrb.mxu2 %v4894_v24  ;;  %v6022_v54 = vld [vmem:[%s8160_s11 + $0x224] sm:$0xf]  ;;  %v4971_v59 = vld [vmem:[%s8160_s11 + $0x330] sm:$0xf0]  ;;  %v4718_v63 = vor.u32 %v5990_v51, %v4715_v53  ;;  %v4946_v24 = vor.u32 %v6049_v16, %v4945_v15  ;;  %v6045_v31 = vld [vmem:[%s8160_s11 + $0x2d4] sm:$0xf0] }
  0xa2   :  { %1247 = vmatpush.bf16.msrb.mxu3 %v5022_v28  ;;  %v6054_v58 = vld [vmem:[%s8160_s11 + $0x324] sm:$0xf]  ;;  %v4571_v62 = vld [vmem:[%s8160_s11 + $0x10] sm:$0xf0]  ;;  %v4846_v0 = vor.u32 %v6022_v54, %v4843_v56  ;;  %v5074_v28 = vor.u32 %v6081_v20, %v5073_v19  ;;  %v5057_v32 = vld [vmem:[%s8160_s11 + $0x3c8] sm:$0xf] }
  0xa3   :  { %1209 = vmatpush.bf16.msrb.mxu0 %v4622_v34  ;;  %v5954_v61 = vld [vmem:[%s8160_s11 + $0x4] sm:$0xf]  ;;  %v4699_v2 = vld [vmem:[%s8160_s11 + $0x110] sm:$0xf0]  ;;  %v4974_v4 = vor.u32 %v6054_v58, %v4971_v59  ;;  %v6077_v33 = vld [vmem:[%s8160_s11 + $0x3d4] sm:$0xf0]  ;;  %v4674_v34 = vor.u32 %v5981_v26, %v4673_v25 }
  0xa4   :  { %1222 = vmatpush.bf16.msrb.mxu1 %v4750_v35  ;;  %v5986_v1 = vld [vmem:[%s8160_s11 + $0x104] sm:$0xf]  ;;  %v4827_v5 = vld [vmem:[%s8160_s11 + $0x210] sm:$0xf0]  ;;  %v4574_v13 = vor.u32 %v5954_v61, %v4571_v62  ;;  %v4802_v35 = vor.u32 %v6013_v29, %v4801_v27  ;;  %v4657_v37 = vld [vmem:[%s8160_s11 + $0xa8] sm:$0xf] }
  0xa5   :  { %1235 = vmatpush.bf16.msrb.mxu2 %v4878_v36  ;;  %v6018_v3 = vld [vmem:[%s8160_s11 + $0x204] sm:$0xf]  ;;  %v4955_v9 = vld [vmem:[%s8160_s11 + $0x310] sm:$0xf0]  ;;  %v4702_v17 = vor.u32 %v5986_v1, %v4699_v2  ;;  %v4930_v36 = vor.u32 %v6045_v31, %v4929_v30  ;;  %v5977_v38 = vld [vmem:[%s8160_s11 + $0xb4] sm:$0xf0] }
  0xa6   :  { %1248 = vmatpush.bf16.msrb.mxu3 %v5006_v40  ;;  %v6050_v8 = vld [vmem:[%s8160_s11 + $0x304] sm:$0xf]  ;;  %v4830_v18 = vor.u32 %v6018_v3, %v4827_v5  ;;  %v4785_v39 = vld [vmem:[%s8160_s11 + $0x1a8] sm:$0xf]  ;;  %v5058_v40 = vor.u32 %v6077_v33, %v5057_v32  ;;  %v6009_v41 = vld [vmem:[%s8160_s11 + $0x1b4] sm:$0xf0] }
  0xa7   :  { %1210 = vmatpush.bf16.msrb.mxu0 %v4606_v46  ;;  %v4958_v21 = vor.u32 %v6050_v8, %v4955_v9  ;;  %v4913_v42 = vld [vmem:[%s8160_s11 + $0x2a8] sm:$0xf]  ;;  %v6041_v43 = vld [vmem:[%s8160_s11 + $0x2b4] sm:$0xf0]  ;;  %v4658_v46 = vor.u32 %v5977_v38, %v4657_v37 }
  0xa8   :  { %1223 = vmatpush.bf16.msrb.mxu1 %v4734_v47  ;;  %v5041_v44 = vld [vmem:[%s8160_s11 + $0x3a8] sm:$0xf]  ;;  %v6073_v45 = vld [vmem:[%s8160_s11 + $0x3b4] sm:$0xf0]  ;;  %v4786_v47 = vor.u32 %v6009_v41, %v4785_v39 }
  0xa9   :  { %1236 = vmatpush.bf16.msrb.mxu2 %v4862_v48  ;;  %v4914_v48 = vor.u32 %v6041_v43, %v4913_v42  ;;  %v4641_v49 = vld [vmem:[%s8160_s11 + $0x88] sm:$0xf]  ;;  %v5973_v50 = vld [vmem:[%s8160_s11 + $0x94] sm:$0xf0] }
  0xaa   :  { %1249 = vmatpush.bf16.msrb.mxu3 %v4990_v52  ;;  %v4769_v51 = vld [vmem:[%s8160_s11 + $0x188] sm:$0xf]  ;;  %v5042_v52 = vor.u32 %v6073_v45, %v5041_v44  ;;  %v6005_v53 = vld [vmem:[%s8160_s11 + $0x194] sm:$0xf0] }
  0xab   :  { %1211 = vmatpush.bf16.msrb.mxu0 %v4590_v60  ;;  %v4897_v54 = vld [vmem:[%s8160_s11 + $0x288] sm:$0xf]  ;;  %v6037_v56 = vld [vmem:[%s8160_s11 + $0x294] sm:$0xf0]  ;;  %v4642_v60 = vor.u32 %v5973_v50, %v4641_v49  ;;  %v4770_v61 = vor.u32 %v6005_v53, %v4769_v51  ;;  %v4819_v50 = vld [vmem:[%s8160_s11 + $0x1f8] sm:$0xf0] }
  0xac   :  { %1224 = vmatpush.bf16.msrb.mxu1 %v4718_v63  ;;  %v5025_v58 = vld [vmem:[%s8160_s11 + $0x388] sm:$0xf]  ;;  %v6069_v59 = vld [vmem:[%s8160_s11 + $0x394] sm:$0xf0]  ;;  %v4898_v62 = vor.u32 %v6037_v56, %v4897_v54  ;;  %v6047_v51 = vld [vmem:[%s8160_s11 + $0x2ec] sm:$0xf] }
  0xad   :  { %1237 = vmatpush.bf16.msrb.mxu2 %v4846_v0  ;;  %v4625_v63 = vld [vmem:[%s8160_s11 + $0x68] sm:$0xf]  ;;  %v5969_v0 = vld [vmem:[%s8160_s11 + $0x74] sm:$0xf0]  ;;  %v5026_v2 = vor.u32 %v6069_v59, %v5025_v58  ;;  %v6079_v56 = vld [vmem:[%s8160_s11 + $0x3ec] sm:$0xf] }
  0xae   :  { %1250 = vmatpush.bf16.msrb.mxu3 %v4974_v4  ;;  %v4753_v1 = vld [vmem:[%s8160_s11 + $0x168] sm:$0xf]  ;;  %v6001_v3 = vld [vmem:[%s8160_s11 + $0x174] sm:$0xf0]  ;;  %v4626_v10 = vor.u32 %v5969_v0, %v4625_v63  ;;  %v5075_v58 = vld [vmem:[%s8160_s11 + $0x3f8] sm:$0xf0] }
  0xaf   :  { %1212 = vmatpush.bf16.msrb.mxu0 %v4574_v13  ;;  %v4881_v4 = vld [vmem:[%s8160_s11 + $0x268] sm:$0xf]  ;;  %v6033_v5 = vld [vmem:[%s8160_s11 + $0x274] sm:$0xf0]  ;;  %v4754_v11 = vor.u32 %v6001_v3, %v4753_v1  ;;  %v5979_v63 = vld [vmem:[%s8160_s11 + $0xcc] sm:$0xf] }
  0xb0   :  { %1225 = vmatpush.bf16.msrb.mxu1 %v4702_v17  ;;  %v5009_v8 = vld [vmem:[%s8160_s11 + $0x368] sm:$0xf]  ;;  %v6065_v9 = vld [vmem:[%s8160_s11 + $0x374] sm:$0xf0]  ;;  %v4882_v12 = vor.u32 %v6033_v5, %v4881_v4  ;;  %v4675_v0 = vld [vmem:[%s8160_s11 + $0xd8] sm:$0xf0] }
  0xb1   :  { %1238 = vmatpush.bf16.msrb.mxu2 %v4830_v18  ;;  %v4609_v13 = vld [vmem:[%s8160_s11 + $0x48] sm:$0xf]  ;;  %v5965_v14 = vld [vmem:[%s8160_s11 + $0x54] sm:$0xf0]  ;;  %v5010_v16 = vor.u32 %v6065_v9, %v5009_v8  ;;  %v6011_v1 = vld [vmem:[%s8160_s11 + $0x1cc] sm:$0xf] }
  0xb2   :  { %1251 = vmatpush.bf16.msrb.mxu3 %v4958_v21  ;;  %1213 = vmatmul.bf16.vlgmr.msrb.gmra.mxu0 %v7375_v6  ;;  %v4737_v15 = vld [vmem:[%s8160_s11 + $0x148] sm:$0xf]  ;;  %v5997_v17 = vld [vmem:[%s8160_s11 + $0x154] sm:$0xf0]  ;;  %v4803_v3 = vld [vmem:[%s8160_s11 + $0x1d8] sm:$0xf0] }
  0xb3   :  { %1257 = vmatpush.bf16.msra.mxu0 %v4690_v22  ;;  %1226 = vmatmul.bf16.vlgmr.msrb.gmra.mxu1 %v7377_v7  ;;  %v4865_v18 = vld [vmem:[%s8160_s11 + $0x248] sm:$0xf]  ;;  %v6029_v19 = vld [vmem:[%s8160_s11 + $0x254] sm:$0xf0]  ;;  %v4610_v22 = vor.u32 %v5965_v14, %v4609_v13  ;;  %v6043_v4 = vld [vmem:[%s8160_s11 + $0x2cc] sm:$0xf] }
  0xb4   :  { %1270 = vmatpush.bf16.msra.mxu1 %v4818_v23  ;;  %1239 = vmatmul.bf16.vlgmr.msrb.gmra.mxu2 %v7349_v55  ;;  %v4993_v20 = vld [vmem:[%s8160_s11 + $0x348] sm:$0xf]  ;;  %v6061_v21 = vld [vmem:[%s8160_s11 + $0x354] sm:$0xf0]  ;;  %v4738_v23 = vor.u32 %v5997_v17, %v4737_v15  ;;  %v4931_v5 = vld [vmem:[%s8160_s11 + $0x2d8] sm:$0xf0] }
  0xb5   :  { %1283 = vmatpush.bf16.msra.mxu2 %v4946_v24  ;;  %1252 = vmatmul.bf16.vlgmr.msrb.gmra.mxu3 %v7354_v57  ;;  %v4866_v24 = vor.u32 %v6029_v19, %v4865_v18  ;;  %v4593_v25 = vld [vmem:[%s8160_s11 + $0x28] sm:$0xf]  ;;  %v5961_v26 = vld [vmem:[%s8160_s11 + $0x34] sm:$0xf0]  ;;  %v6075_v8 = vld [vmem:[%s8160_s11 + $0x3cc] sm:$0xf] }
  0xb6   :  { %1296 = vmatpush.bf16.msra.mxu3 %v5074_v28  ;;  %v4721_v27 = vld [vmem:[%s8160_s11 + $0x128] sm:$0xf]  ;;  %v4994_v28 = vor.u32 %v6061_v21, %v4993_v20  ;;  %v5993_v29 = vld [vmem:[%s8160_s11 + $0x134] sm:$0xf0]  ;;  %v5059_v9 = vld [vmem:[%s8160_s11 + $0x3d8] sm:$0xf0] }
  0xb7   :  { %1258 = vmatpush.bf16.msra.mxu0 %v4674_v34  ;;  %v4849_v30 = vld [vmem:[%s8160_s11 + $0x228] sm:$0xf]  ;;  %v6025_v31 = vld [vmem:[%s8160_s11 + $0x234] sm:$0xf0]  ;;  %v4594_v34 = vor.u32 %v5961_v26, %v4593_v25  ;;  %v4722_v37 = vor.u32 %v5993_v29, %v4721_v27  ;;  %v5975_v13 = vld [vmem:[%s8160_s11 + $0xac] sm:$0xf] }
  0xb8   :  { %1271 = vmatpush.bf16.msra.mxu1 %v4802_v35  ;;  %v4977_v32 = vld [vmem:[%s8160_s11 + $0x328] sm:$0xf]  ;;  %v6057_v33 = vld [vmem:[%s8160_s11 + $0x334] sm:$0xf0]  ;;  %v4850_v38 = vor.u32 %v6025_v31, %v4849_v30  ;;  %v4659_v14 = vld [vmem:[%s8160_s11 + $0xb8] sm:$0xf0] }
  0xb9   :  { %1284 = vmatpush.bf16.msra.mxu2 %v4930_v36  ;;  %v4577_v35 = vld [vmem:[%s8160_s11 + $0x8] sm:$0xf]  ;;  %v5957_v36 = vld [vmem:[%s8160_s11 + $0x14] sm:$0xf0]  ;;  %v4978_v42 = vor.u32 %v6057_v33, %v4977_v32  ;;  %v6007_v15 = vld [vmem:[%s8160_s11 + $0x1ac] sm:$0xf] }
  0xba   :  { %1297 = vmatpush.bf16.msra.mxu3 %v5058_v40  ;;  %v4705_v39 = vld [vmem:[%s8160_s11 + $0x108] sm:$0xf]  ;;  %v5989_v40 = vld [vmem:[%s8160_s11 + $0x114] sm:$0xf0]  ;;  %v4578_v49 = vor.u32 %v5957_v36, %v4577_v35  ;;  %v4787_v17 = vld [vmem:[%s8160_s11 + $0x1b8] sm:$0xf0] }
  0xbb   :  { %1259 = vmatpush.bf16.msra.mxu0 %v4658_v46  ;;  %v4833_v41 = vld [vmem:[%s8160_s11 + $0x208] sm:$0xf]  ;;  %v6021_v43 = vld [vmem:[%s8160_s11 + $0x214] sm:$0xf0]  ;;  %v5983_v46 = vld [vmem:[%s8160_s11 + $0xec] sm:$0xf]  ;;  %v4706_v53 = vor.u32 %v5989_v40, %v4705_v39 }
  0xbc   :  { %1272 = vmatpush.bf16.msra.mxu1 %v4786_v47  ;;  %v4961_v44 = vld [vmem:[%s8160_s11 + $0x308] sm:$0xf]  ;;  %v6053_v45 = vld [vmem:[%s8160_s11 + $0x314] sm:$0xf0]  ;;  %v4691_v47 = vld [vmem:[%s8160_s11 + $0xf8] sm:$0xf0]  ;;  %v4834_v54 = vor.u32 %v6021_v43, %v4833_v41 }
  0xbd   :  { %1285 = vmatpush.bf16.msra.mxu2 %v4914_v48  ;;  %v6015_v48 = vld [vmem:[%s8160_s11 + $0x1ec] sm:$0xf]  ;;  %v4962_v59 = vor.u32 %v6053_v45, %v4961_v44  ;;  %v4915_v19 = vld [vmem:[%s8160_s11 + $0x2b8] sm:$0xf0] }
  0xbe   :  { %1298 = vmatpush.bf16.msra.mxu3 %v5042_v52  ;;  %v4947_v52 = vld [vmem:[%s8160_s11 + $0x2f8] sm:$0xf0]  ;;  %v6039_v18 = vld [vmem:[%s8160_s11 + $0x2ac] sm:$0xf] }
  0xbf   :  { %1260 = vmatpush.bf16.msra.mxu0 %v4642_v60  ;;  %v4694_v60 = vor.u32 %v5983_v46, %v4691_v47  ;;  %v6071_v20 = vld [vmem:[%s8160_s11 + $0x3ac] sm:$0xf]  ;;  %v5043_v21 = vld [vmem:[%s8160_s11 + $0x3b8] sm:$0xf0] }
  0xc0   :  { %1273 = vmatpush.bf16.msra.mxu1 %v4770_v61  ;;  %v4822_v61 = vor.u32 %v6015_v48, %v4819_v50  ;;  %v5971_v25 = vld [vmem:[%s8160_s11 + $0x8c] sm:$0xf]  ;;  %v4643_v26 = vld [vmem:[%s8160_s11 + $0x98] sm:$0xf0] }
  0xc1   :  { %1286 = vmatpush.bf16.msra.mxu2 %v4898_v62  ;;  %v4950_v62 = vor.u32 %v6047_v51, %v4947_v52  ;;  %v6003_v27 = vld [vmem:[%s8160_s11 + $0x18c] sm:$0xf]  ;;  %v4771_v29 = vld [vmem:[%s8160_s11 + $0x198] sm:$0xf0] }
  0xc2   :  { %1299 = vmatpush.bf16.msra.mxu3 %v5026_v2  ;;  %v5078_v2 = vor.u32 %v6079_v56, %v5075_v58  ;;  %v6035_v30 = vld [vmem:[%s8160_s11 + $0x28c] sm:$0xf]  ;;  %v4899_v31 = vld [vmem:[%s8160_s11 + $0x298] sm:$0xf0]  ;;  %v4774_v35 = vor.u32 %v6003_v27, %v4771_v29  ;;  %v1489_v27 = vld [vmem:[#allocation4 + $0x3e0] sm:$0xff] }
  0xc3   :  { %1261 = vmatpush.bf16.msra.mxu0 %v4626_v10  ;;  %v4678_v10 = vor.u32 %v5979_v63, %v4675_v0  ;;  %v6067_v32 = vld [vmem:[%s8160_s11 + $0x38c] sm:$0xf]  ;;  %v5027_v33 = vld [vmem:[%s8160_s11 + $0x398] sm:$0xf0]  ;;  %v4902_v36 = vor.u32 %v6035_v30, %v4899_v31  ;;  %v1485_v29 = vld [vmem:[#allocation4 + $0x3c0] sm:$0xff] }
  0xc4   :  { %1274 = vmatpush.bf16.msra.mxu1 %v4754_v11  ;;  %v4806_v11 = vor.u32 %v6011_v1, %v4803_v3  ;;  %v5999_v39 = vld [vmem:[%s8160_s11 + $0x16c] sm:$0xf]  ;;  %v5030_v40 = vor.u32 %v6067_v32, %v5027_v33  ;;  %v4755_v41 = vld [vmem:[%s8160_s11 + $0x178] sm:$0xf0]  ;;  %v1417_v30 = vld [vmem:[#allocation4 + $0x1a0] sm:$0xff] }
  0xc5   :  { %1287 = vmatpush.bf16.msra.mxu2 %v4882_v12  ;;  %v4934_v12 = vor.u32 %v6043_v4, %v4931_v5  ;;  %v4883_v43 = vld [vmem:[%s8160_s11 + $0x278] sm:$0xf0]  ;;  %v6063_v44 = vld [vmem:[%s8160_s11 + $0x36c] sm:$0xf]  ;;  %v4758_v47 = vor.u32 %v5999_v39, %v4755_v41  ;;  %v1481_v31 = vld [vmem:[#allocation4 + $0x3a0] sm:$0xff] }
  0xc6   :  { %1300 = vmatpush.bf16.msra.mxu3 %v5010_v16  ;;  %v5062_v16 = vor.u32 %v6075_v8, %v5059_v9  ;;  %v5011_v45 = vld [vmem:[%s8160_s11 + $0x378] sm:$0xf0]  ;;  %v5995_v51 = vld [vmem:[%s8160_s11 + $0x14c] sm:$0xf]  ;;  %v1413_v32 = vld [vmem:[#allocation4 + $0x180] sm:$0xff] }
  0xc7   :  { %1262 = vmatpush.bf16.msra.mxu0 %v4610_v22  ;;  %v4662_v22 = vor.u32 %v5975_v13, %v4659_v14  ;;  %v4611_v50 = vld [vmem:[%s8160_s11 + $0x58] sm:$0xf0]  ;;  %v5014_v52 = vor.u32 %v6063_v44, %v5011_v45  ;;  %v6059_v58 = vld [vmem:[%s8160_s11 + $0x34c] sm:$0xf]  ;;  %v1477_v33 = vld [vmem:[#allocation4 + $0x380] sm:$0xff] }
  0xc8   :  { %1275 = vmatpush.bf16.msra.mxu1 %v4738_v23  ;;  %v4790_v23 = vor.u32 %v6007_v15, %v4787_v17  ;;  %v4867_v56 = vld [vmem:[%s8160_s11 + $0x258] sm:$0xf0]  ;;  %v5959_v63 = vld [vmem:[%s8160_s11 + $0x2c] sm:$0xf]  ;;  %v1457_v39 = vld [vmem:[#allocation4 + $0x2e0] sm:$0xff] }
  0xc9   :  { %1288 = vmatpush.bf16.msra.mxu2 %v4866_v24  ;;  %v4918_v24 = vor.u32 %v6039_v18, %v4915_v19  ;;  %v4595_v0 = vld [vmem:[%s8160_s11 + $0x38] sm:$0xf0]  ;;  %v5991_v1 = vld [vmem:[%s8160_s11 + $0x12c] sm:$0xf]  ;;  %v1553_v41 = vld [vmem:[#allocation4 + $0x5e0] sm:$0xff] }
  0xca   :  { %1301 = vmatpush.bf16.msra.mxu3 %v4994_v28  ;;  %v5046_v28 = vor.u32 %v6071_v20, %v5043_v21  ;;  %v4723_v3 = vld [vmem:[%s8160_s11 + $0x138] sm:$0xf0]  ;;  %v6023_v4 = vld [vmem:[%s8160_s11 + $0x22c] sm:$0xf]  ;;  %v1549_v44 = vld [vmem:[#allocation4 + $0x5c0] sm:$0xff] }
  0xcb   :  { %1263 = vmatpush.bf16.msra.mxu0 %v4594_v34  ;;  %v4646_v34 = vor.u32 %v5971_v25, %v4643_v26  ;;  %v4851_v5 = vld [vmem:[%s8160_s11 + $0x238] sm:$0xf0]  ;;  %v6055_v8 = vld [vmem:[%s8160_s11 + $0x32c] sm:$0xf]  ;;  %v1425_v26 = vld [vmem:[#allocation4 + $0x1e0] sm:$0xff] }
  0xcc   :  { %1276 = vmatpush.bf16.msra.mxu1 %v4722_v37  ;;  %v5967_v37 = vld [vmem:[%s8160_s11 + $0x6c] sm:$0xf]  ;;  %v4979_v9 = vld [vmem:[%s8160_s11 + $0x338] sm:$0xf0]  ;;  %v1449_v45 = vld [vmem:[#allocation4 + $0x2a0] sm:$0xff] }
  0xcd   :  { %1289 = vmatpush.bf16.msra.mxu2 %v4850_v38  ;;  %v4627_v38 = vld [vmem:[%s8160_s11 + $0x78] sm:$0xf0]  ;;  %v5955_v13 = vld [vmem:[%s8160_s11 + $0xc] sm:$0xf] }
  0xce   :  { %1302 = vmatpush.bf16.msra.mxu3 %v4978_v42  ;;  %v6031_v42 = vld [vmem:[%s8160_s11 + $0x26c] sm:$0xf]  ;;  %v4630_v46 = vor.u32 %v5967_v37, %v4627_v38  ;;  %v4579_v14 = vld [vmem:[%s8160_s11 + $0x18] sm:$0xf0]  ;;  %v1397_v37 = vld [vmem:[#allocation4 + $0x100] sm:$0xff] }
  0xcf   :  { %1264 = vmatpush.bf16.msra.mxu0 %v4578_v49  ;;  %v4886_v48 = vor.u32 %v6031_v42, %v4883_v43  ;;  %v5963_v49 = vld [vmem:[%s8160_s11 + $0x4c] sm:$0xf]  ;;  %v4707_v17 = vld [vmem:[%s8160_s11 + $0x118] sm:$0xf0]  ;;  %v1393_v38 = vld [vmem:[#allocation4 + $0xe0] sm:$0xff] }
  0xd0   :  { %1277 = vmatpush.bf16.msra.mxu1 %v4706_v53  ;;  %v4739_v53 = vld [vmem:[%s8160_s11 + $0x158] sm:$0xf0]  ;;  %v5987_v15 = vld [vmem:[%s8160_s11 + $0x10c] sm:$0xf]  ;;  %v1453_v42 = vld [vmem:[#allocation4 + $0x2c0] sm:$0xff] }
  0xd1   :  { %1290 = vmatpush.bf16.msra.mxu2 %v4834_v54  ;;  %v6027_v54 = vld [vmem:[%s8160_s11 + $0x24c] sm:$0xf]  ;;  %v4835_v19 = vld [vmem:[%s8160_s11 + $0x218] sm:$0xf0]  ;;  %v1385_v43 = vld [vmem:[#allocation4 + $0xa0] sm:$0xff] }
  0xd2   :  { %1303 = vmatpush.bf16.msra.mxu3 %v4962_v59  ;;  %1265 = vmatmul.bf16.vlgmr.msra.gmra.mxu0 %v7375_v6  ;;  %v4995_v59 = vld [vmem:[%s8160_s11 + $0x358] sm:$0xf0]  ;;  %v6019_v18 = vld [vmem:[%s8160_s11 + $0x20c] sm:$0xf] }
  0xd3   :  { %1309 = vmatpush.bf16.msrb.mxu0 %v4694_v60  ;;  %1278 = vmatmul.bf16.vlgmr.msra.gmra.mxu1 %v7377_v7  ;;  %v4614_v60 = vor.u32 %v5963_v49, %v4611_v50  ;;  %v6051_v20 = vld [vmem:[%s8160_s11 + $0x30c] sm:$0xf]  ;;  %v4963_v21 = vld [vmem:[%s8160_s11 + $0x318] sm:$0xf0]  ;;  %v1377_v49 = vld [vmem:[#allocation4 + $0x60] sm:$0xff] }
  0xd4   :  { %1322 = vmatpush.bf16.msrb.mxu1 %v4822_v61  ;;  %1291 = vmatmul.bf16.vlgmr.msra.gmra.mxu2 %v7349_v55  ;;  %v4742_v61 = vor.u32 %v5995_v51, %v4739_v53  ;;  %v4966_v25 = vor.u32 %v6051_v20, %v4963_v21  ;;  %v1541_v50 = vld [vmem:[#allocation4 + $0x580] sm:$0xff]  ;;  %v1402_v20 = vld [vmem:[#allocation4 + $0x128] sm:$0xff] }
  0xd5   :  { %1335 = vmatpush.bf16.msrb.mxu2 %v4950_v62  ;;  %1304 = vmatmul.bf16.vlgmr.msra.gmra.mxu3 %v7354_v57  ;;  %v4870_v62 = vor.u32 %v6027_v54, %v4867_v56  ;;  %v1441_v51 = vld [vmem:[#allocation4 + $0x260] sm:$0xff] }
  0xd6   :  { %1348 = vmatpush.bf16.msrb.mxu3 %v5078_v2  ;;  %v4998_v2 = vor.u32 %v6059_v58, %v4995_v59  ;;  %v1537_v53 = vld [vmem:[#allocation4 + $0x560] sm:$0xff] }
  0xd7   :  { %1310 = vmatpush.bf16.msrb.mxu0 %v4678_v10  ;;  %v4598_v10 = vor.u32 %v5959_v63, %v4595_v0  ;;  %v1437_v54 = vld [vmem:[#allocation4 + $0x240] sm:$0xff]  ;;  %v1490_v0 = vld [vmem:[#allocation4 + $0x3e8] sm:$0xff] }
  0xd8   :  { %1323 = vmatpush.bf16.msrb.mxu1 %v4806_v11  ;;  %v4726_v11 = vor.u32 %v5991_v1, %v4723_v3  ;;  %v1369_v56 = vld [vmem:[#allocation4 + $0x20] sm:$0xff]  ;;  %v1422_v1 = vld [vmem:[#allocation4 + $0x1c8] sm:$0xff] }
  0xd9   :  { %1336 = vmatpush.bf16.msrb.mxu2 %v4934_v12  ;;  %v4854_v12 = vor.u32 %v6023_v4, %v4851_v5  ;;  %v1533_v58 = vld [vmem:[#allocation4 + $0x540] sm:$0xff]  ;;  %v1486_v3 = vld [vmem:[#allocation4 + $0x3c8] sm:$0xff] }
  0xda   :  { %1349 = vmatpush.bf16.msrb.mxu3 %v5062_v16  ;;  %v4982_v16 = vor.u32 %v6055_v8, %v4979_v9  ;;  %v1433_v59 = vld [vmem:[#allocation4 + $0x220] sm:$0xff]  ;;  %v1418_v4 = vld [vmem:[#allocation4 + $0x1a8] sm:$0xff] }
  0xdb   :  { %1311 = vmatpush.bf16.msrb.mxu0 %v4662_v22  ;;  %v4582_v22 = vor.u32 %v5955_v13, %v4579_v14  ;;  %v1429_v63 = vld [vmem:[#allocation4 + $0x200] sm:$0xff]  ;;  %v1482_v8 = vld [vmem:[#allocation4 + $0x3a8] sm:$0xff] }
  0xdc   :  { %1324 = vmatpush.bf16.msrb.mxu1 %v4790_v23  ;;  %v4710_v23 = vor.u32 %v5987_v15, %v4707_v17  ;;  %v1521_v5 = vld [vmem:[#allocation4 + $0x4e0] sm:$0xff]  ;;  %v1414_v9 = vld [vmem:[#allocation4 + $0x188] sm:$0xff] }
  0xdd   :  { %1337 = vmatpush.bf16.msrb.mxu2 %v4918_v24  ;;  %v4838_v24 = vor.u32 %v6019_v18, %v4835_v19  ;;  %v1513_v13 = vld [vmem:[#allocation4 + $0x4a0] sm:$0xff]  ;;  %v1474_v14 = vld [vmem:[#allocation4 + $0x368] sm:$0xff] }
  0xde   :  { %1350 = vmatpush.bf16.msrb.mxu3 %v5046_v28  ;;  %v1421_v28 = vld [vmem:[#allocation4 + $0x1c0] sm:$0xff]  ;;  %v1406_v15 = vld [vmem:[#allocation4 + $0x148] sm:$0xff] }
  0xdf   :  { %1312 = vmatpush.bf16.msrb.mxu0 %v4646_v34  ;;  %v1409_v34 = vld [vmem:[#allocation4 + $0x160] sm:$0xff]  ;;  %v1470_v19 = vld [vmem:[#allocation4 + $0x348] sm:$0xff] }
  0xe0   :  { %1325 = vmatpush.bf16.msrb.mxu1 %v4774_v35  ;;  %v1473_v35 = vld [vmem:[#allocation4 + $0x360] sm:$0xff] }
  0xe1   :  { %1338 = vmatpush.bf16.msrb.mxu2 %v4902_v36  ;;  %v1469_v36 = vld [vmem:[#allocation4 + $0x340] sm:$0xff] }
  0xe2   :  { %1351 = vmatpush.bf16.msrb.mxu3 %v5030_v40  ;;  %v1389_v40 = vld [vmem:[#allocation4 + $0xc0] sm:$0xff] }
  0xe3   :  { %1313 = vmatpush.bf16.msrb.mxu0 %v4630_v46  ;;  %v1381_v46 = vld [vmem:[#allocation4 + $0x80] sm:$0xff] }
  0xe4   :  { %1326 = vmatpush.bf16.msrb.mxu1 %v4758_v47  ;;  %v1545_v47 = vld [vmem:[#allocation4 + $0x5a0] sm:$0xff] }
  0xe5   :  { %1339 = vmatpush.bf16.msrb.mxu2 %v4886_v48  ;;  %v1445_v48 = vld [vmem:[#allocation4 + $0x280] sm:$0xff] }
  0xe6   :  { %1352 = vmatpush.bf16.msrb.mxu3 %v5014_v52  ;;  %v1373_v52 = vld [vmem:[#allocation4 + $0x40] sm:$0xff] }
  0xe7   :  { %1314 = vmatpush.bf16.msrb.mxu0 %v4614_v60  ;;  %v1365_v60 = vld [vmem:[#allocation4] sm:$0xff] }
  0xe8   :  { %1327 = vmatpush.bf16.msrb.mxu1 %v4742_v61  ;;  %v1529_v61 = vld [vmem:[#allocation4 + $0x520] sm:$0xff] }
  0xe9   :  { %1340 = vmatpush.bf16.msrb.mxu2 %v4870_v62  ;;  %v1426_v62 = vld [vmem:[#allocation4 + $0x1e8] sm:$0xff]  ;;  %v1509_v18 = vld [vmem:[#allocation4 + $0x480] sm:$0xff] }
  0xea   :  { %1353 = vmatpush.bf16.msrb.mxu3 %v4998_v2  ;;  %v1525_v2 = vld [vmem:[#allocation4 + $0x500] sm:$0xff] }
  0xeb   :  { %1315 = vmatpush.bf16.msrb.mxu0 %v4598_v10  ;;  %v1517_v10 = vld [vmem:[#allocation4 + $0x4c0] sm:$0xff] }
  0xec   :  { %1328 = vmatpush.bf16.msrb.mxu1 %v4726_v11  ;;  %v1478_v11 = vld [vmem:[#allocation4 + $0x388] sm:$0xff] }
  0xed   :  { %1341 = vmatpush.bf16.msrb.mxu2 %v4854_v12  ;;  %v1410_v12 = vld [vmem:[#allocation4 + $0x168] sm:$0xff] }
  0xee   :  { %1354 = vmatpush.bf16.msrb.mxu3 %v4982_v16  ;;  %v495_v16 = vld [vmem:[#allocation2] sm:$0xff] }
  0xef   :  { %1316 = vmatpush.bf16.msrb.mxu0 %v4582_v22  ;;  %v1505_v22 = vld [vmem:[#allocation4 + $0x460] sm:$0xff] }
  0xf0   :  { %1329 = vmatpush.bf16.msrb.mxu1 %v4710_v23 }
  0xf1   :  { %1342 = vmatpush.bf16.msrb.mxu2 %v4838_v24  ;;  %v1466_v24 = vld [vmem:[#allocation4 + $0x328] sm:$0xff] }
  0xf2   :  { %1355 = vmatpush.bf16.msrb.mxu3 %v4966_v25  ;;  %1317 = vmatmul.bf16.vlgmr.msrb.gmra.mxu0 %v7375_v6  ;;  %v1405_v6 = vld [vmem:[#allocation4 + $0x140] sm:$0xff]  ;;  %v1398_v25 = vld [vmem:[#allocation4 + $0x108] sm:$0xff] }
  0xf3   :  { %1625 = vmatpush.msra.mxu0 %v1425_v26  ;;  %1330 = vmatmul.bf16.vlgmr.msrb.gmra.mxu1 %v7377_v7  ;;  %v1401_v7 = vld [vmem:[#allocation4 + $0x120] sm:$0xff] }
  0xf4   :  { %1645 = vmatpush.msra.mxu1 %v1489_v27  ;;  %1343 = vmatmul.bf16.vlgmr.msrb.gmra.mxu2 %v7349_v55  ;;  %v1465_v55 = vld [vmem:[#allocation4 + $0x320] sm:$0xff] }
  0xf5   :  { %1356 = vmatmul.bf16.vlgmr.msrb.gmra.mxu3 %v7354_v57  ;;  %1626 = vmatpush.msra.mxu0 %v1421_v28  ;;  %v1461_v57 = vld [vmem:[#allocation4 + $0x300] sm:$0xff] }
  0xf6   :  { %1646 = vmatpush.msra.mxu1 %v1485_v29  ;;  %1665 = vmatpush.msra.mxu2 %v1553_v41  ;;  %v1501_v27 = vld [vmem:[#allocation4 + $0x440] sm:$0xff] }
  0xf7   :  { %1627 = vmatpush.msra.mxu0 %v1417_v30  ;;  %v1462_v30 = vld [vmem:[#allocation4 + $0x308] sm:$0xff]  ;;  %v1609_v41 = vld [vmem:[#allocation4 + $0x7a0] sm:$0xff] }
  0xf8   :  { %1647 = vmatpush.msra.mxu1 %v1481_v31  ;;  %1666 = vmatpush.msra.mxu2 %v1549_v44  ;;  %v1394_v31 = vld [vmem:[#allocation4 + $0xe8] sm:$0xff] }
  0xf9   :  { %1628 = vmatpush.msra.mxu0 %v1413_v32  ;;  %v1497_v32 = vld [vmem:[#allocation4 + $0x420] sm:$0xff]  ;;  %v1382_v44 = vld [vmem:[#allocation4 + $0x88] sm:$0xff] }
  0xfa   :  { %1648 = vmatpush.msra.mxu1 %v1477_v33  ;;  %1667 = vmatpush.msra.mxu2 %v1545_v47 }
  0xfb   :  { %1629 = vmatpush.msra.mxu0 %v1409_v34  ;;  %v1458_v34 = vld [vmem:[#allocation4 + $0x2e8] sm:$0xff] }
  0xfc   :  { %1649 = vmatpush.msra.mxu1 %v1473_v35  ;;  %1668 = vmatpush.msra.mxu2 %v1541_v50  ;;  %v1617_v35 = vld [vmem:[#allocation4 + $0x7e0] sm:$0xff]  ;;  %v1378_v50 = vld [vmem:[#allocation4 + $0x68] sm:$0xff] }
  0xfd   :  { %1630 = vmatpush.msra.mxu0 %v1405_v6  ;;  %v1390_v6 = vld [vmem:[#allocation4 + $0xc8] sm:$0xff]  ;;  %1685 = vmatpush.msra.mxu3 %v1617_v35  ;;  %v1561_v35 = vld [vmem:[#allocation4 + $0x620] sm:$0xff] }
  0xfe   :  { %1650 = vmatpush.msra.mxu1 %v1469_v36  ;;  %1669 = vmatpush.msra.mxu2 %v1537_v53  ;;  %v1601_v53 = vld [vmem:[#allocation4 + $0x760] sm:$0xff] }
  0xff   :  { %1631 = vmatpush.msra.mxu0 %v1401_v7  ;;  %v1493_v7 = vld [vmem:[#allocation4 + $0x400] sm:$0xff] }
 0x100   :  { %1651 = vmatpush.msra.mxu1 %v1465_v55  ;;  %1670 = vmatpush.msra.mxu2 %v1533_v58  ;;  %v1613_v55 = vld [vmem:[#allocation4 + $0x7c0] sm:$0xff]  ;;  %v1438_v58 = vld [vmem:[#allocation4 + $0x248] sm:$0xff] }
 0x101   :  { %1632 = vmatpush.msra.mxu0 %v1397_v37  ;;  %1686 = vmatpush.msra.mxu3 %v1613_v55  ;;  %v1502_v55 = vld [vmem:[#allocation4 + $0x448] sm:$0xff] }
 0x102   :  { %1652 = vmatpush.msra.mxu1 %v1461_v57  ;;  %1671 = vmatpush.msra.mxu2 %v1529_v61  ;;  %v1454_v57 = vld [vmem:[#allocation4 + $0x2c8] sm:$0xff] }
 0x103   :  { %1633 = vmatpush.msra.mxu0 %v1393_v38  ;;  %v1554_v38 = vld [vmem:[#allocation4 + $0x5e8] sm:$0xff]  ;;  %1687 = vmatpush.msra.mxu3 %v1609_v41  ;;  %v1491_v41 = vld [vmem:[#allocation4 + $0x3f0] sm:$0xff] }
 0x104   :  { %1653 = vmatpush.msra.mxu1 %v1457_v39  ;;  %1672 = vmatpush.msra.mxu2 %v1525_v2  ;;  %v1386_v39 = vld [vmem:[#allocation4 + $0xa8] sm:$0xff]  ;;  %v1427_v2 = vld [vmem:[#allocation4 + $0x1f0] sm:$0xff] }
 0x105   :  { %1634 = vmatpush.msra.mxu0 %v1389_v40  ;;  %v1538_v61 = vld [vmem:[#allocation4 + $0x568] sm:$0xff] }
 0x106   :  { %1654 = vmatpush.msra.mxu1 %v1453_v42  ;;  %1673 = vmatpush.msra.mxu2 %v1521_v5  ;;  %v1423_v5 = vld [vmem:[#allocation4 + $0x1d0] sm:$0xff] }
 0x107   :  { %1635 = vmatpush.msra.mxu0 %v1385_v43  ;;  %v1450_v43 = vld [vmem:[#allocation4 + $0x2a8] sm:$0xff] }
 0x108   :  { %1655 = vmatpush.msra.mxu1 %v1449_v45  ;;  %1674 = vmatpush.msra.mxu2 %v1517_v10  ;;  %v1419_v10 = vld [vmem:[#allocation4 + $0x1b0] sm:$0xff] }
 0x109   :  { %1636 = vmatpush.msra.mxu0 %v1381_v46  ;;  %v1550_v46 = vld [vmem:[#allocation4 + $0x5c8] sm:$0xff] }
 0x10a   :  { %1656 = vmatpush.msra.mxu1 %v1445_v48  ;;  %1675 = vmatpush.msra.mxu2 %v1513_v13  ;;  %v1446_v48 = vld [vmem:[#allocation4 + $0x288] sm:$0xff]  ;;  %v1415_v13 = vld [vmem:[#allocation4 + $0x190] sm:$0xff] }
 0x10b   :  { %1637 = vmatpush.msra.mxu0 %v1377_v49  ;;  %v1605_v49 = vld [vmem:[#allocation4 + $0x780] sm:$0xff] }
 0x10c   :  { %1657 = vmatpush.msra.mxu1 %v1441_v51  ;;  %1676 = vmatpush.msra.mxu2 %v1509_v18  ;;  %v1546_v51 = vld [vmem:[#allocation4 + $0x5a8] sm:$0xff] }
 0x10d   :  { %1638 = vmatpush.msra.mxu0 %v1373_v52  ;;  %v1442_v52 = vld [vmem:[#allocation4 + $0x268] sm:$0xff]  ;;  %1688 = vmatpush.msra.mxu3 %v1605_v49 }
 0x10e   :  { %1658 = vmatpush.msra.mxu1 %v1437_v54  ;;  %1677 = vmatpush.msra.mxu2 %v1505_v22  ;;  %v1374_v54 = vld [vmem:[#allocation4 + $0x48] sm:$0xff]  ;;  %v1573_v22 = vld [vmem:[#allocation4 + $0x680] sm:$0xff] }
 0x10f   :  { %1639 = vmatpush.msra.mxu0 %v1369_v56  ;;  %v1542_v56 = vld [vmem:[#allocation4 + $0x588] sm:$0xff]  ;;  %1689 = vmatpush.msra.mxu3 %v1601_v53 }
 0x110   :  { %1659 = vmatpush.msra.mxu1 %v1433_v59  ;;  %1678 = vmatpush.msra.mxu2 %v1501_v27  ;;  %v1597_v59 = vld [vmem:[#allocation4 + $0x740] sm:$0xff]  ;;  %v1403_v27 = vld [vmem:[#allocation4 + $0x130] sm:$0xff]  ;;  %v1614_v49 = vld [vmem:[#allocation4 + $0x7c8] sm:$0xff] }
 0x111   :  { %1640 = vmatpush.msra.mxu0 %v1365_v60  ;;  %v1370_v60 = vld [vmem:[#allocation4 + $0x28] sm:$0xff]  ;;  %1690 = vmatpush.msra.mxu3 %v1597_v59  ;;  %v1375_v59 = vld [vmem:[#allocation4 + $0x50] sm:$0xff] }
 0x112   :  { %1660 = vmatpush.msra.mxu1 %v1429_v63  ;;  %1679 = vmatpush.msra.mxu2 %v1497_v32  ;;  %v1593_v63 = vld [vmem:[#allocation4 + $0x720] sm:$0xff]  ;;  %v1399_v32 = vld [vmem:[#allocation4 + $0x110] sm:$0xff]  ;;  %v1610_v53 = vld [vmem:[#allocation4 + $0x7a8] sm:$0xff] }
 0x113   :  { %1705 = vmatpush.msrb.mxu0 %v1426_v62  ;;  %v1175_v17 = vpop.f32.mrf.mxu1  ;;  %v1434_v62 = vld [vmem:[#allocation4 + $0x228] sm:$0xff]  ;;  %1691 = vmatpush.msra.mxu3 %v1593_v63  ;;  %v1471_v63 = vld [vmem:[#allocation4 + $0x350] sm:$0xff] }
 0x114   :  { %1725 = vmatpush.msrb.mxu1 %v1490_v0  ;;  %1680 = vmatpush.msra.mxu2 %v1493_v7  ;;  %v1366_v0 = vld [vmem:[#allocation4 + $0x8] sm:$0xff] }
 0x115   :  { %1706 = vmatpush.msrb.mxu0 %v1422_v1  ;;  %v1162_v21 = vpop.f32.mrf.mxu0  ;;  %v1534_v1 = vld [vmem:[#allocation4 + $0x548] sm:$0xff] }
 0x116   :  { %1726 = vmatpush.msrb.mxu1 %v1486_v3  ;;  %v1163_v23 = vadd.f32 %v1162_v21, %v495_v16  ;;  %1745 = vmatpush.msrb.mxu2 %v1554_v38  ;;  %v1430_v3 = vld [vmem:[#allocation4 + $0x208] sm:$0xff]  ;;  %v1577_v16 = vld [vmem:[#allocation4 + $0x6a0] sm:$0xff] }
 0x117   :  { %1707 = vmatpush.msrb.mxu0 %v1418_v4  ;;  %v1188_v26 = vpop.f32.mrf.mxu2  ;;  %v1589_v4 = vld [vmem:[#allocation4 + $0x700] sm:$0xff] }
 0x118   :  { %1727 = vmatpush.msrb.mxu1 %v1482_v8  ;;  %v1176_v28 = vadd.f32 %v1175_v17, %v1163_v23  ;;  %v1201_v29 = vpop.f32.mrf.mxu3  ;;  %1746 = vmatpush.msrb.mxu2 %v1550_v46  ;;  %v1530_v8 = vld [vmem:[#allocation4 + $0x528] sm:$0xff]  ;;  %v1411_v17 = vld [vmem:[#allocation4 + $0x170] sm:$0xff]  ;;  %v1557_v38 = vld [vmem:[#allocation4 + $0x600] sm:$0xff] }
 0x119   :  { %1708 = vmatpush.msrb.mxu0 %v1414_v9  ;;  %v1585_v9 = vld [vmem:[#allocation4 + $0x6e0] sm:$0xff]  ;;  %1692 = vmatpush.msra.mxu3 %v1589_v4  ;;  %v1407_v23 = vld [vmem:[#allocation4 + $0x150] sm:$0xff]  ;;  %v1428_v4 = vld [vmem:[#allocation4 + $0x1f8] sm:$0xff] }
 0x11a   :  { %1728 = vmatpush.msrb.mxu1 %v1478_v11  ;;  %v1189_v33 = vadd.f32 %v1188_v26, %v1176_v28  ;;  %1747 = vmatpush.msrb.mxu2 %v1546_v51  ;;  %v1526_v11 = vld [vmem:[#allocation4 + $0x508] sm:$0xff]  ;;  %v1569_v26 = vld [vmem:[#allocation4 + $0x660] sm:$0xff]  ;;  %v1487_v46 = vld [vmem:[#allocation4 + $0x3d0] sm:$0xff] }
 0x11b   :  { %1709 = vmatpush.msrb.mxu0 %v1410_v12  ;;  %v1177_v36 = vpop.f32.mrf.mxu1  ;;  %v1581_v12 = vld [vmem:[#allocation4 + $0x6c0] sm:$0xff]  ;;  %1693 = vmatpush.msra.mxu3 %v1585_v9  ;;  %v1510_v28 = vld [vmem:[#allocation4 + $0x488] sm:$0xff]  ;;  %v1483_v51 = vld [vmem:[#allocation4 + $0x3b0] sm:$0xff] }
 0x11c   :  { %1729 = vmatpush.msrb.mxu1 %v1474_v14  ;;  %v7904_v37 = vadd.f32 %v1201_v29, %v1189_v33  ;;  %1748 = vmatpush.msrb.mxu2 %v1542_v56  ;;  %v496_v14 = vld [vmem:[#allocation2 + $0x8] sm:$0xff]  ;;  %v1395_v36 = vld [vmem:[#allocation4 + $0xf0] sm:$0xff]  ;;  %v1424_v9 = vld [vmem:[#allocation4 + $0x1d8] sm:$0xff] }
 0x11d   :  { %1710 = vmatpush.msrb.mxu0 %v1406_v15  ;;  %v1164_v40 = vpop.f32.mrf.mxu0  ;;  %v1522_v15 = vld [vmem:[#allocation4 + $0x4e8] sm:$0xff]  ;;  %1694 = vmatpush.msra.mxu3 %v1581_v12  ;;  %v1479_v56 = vld [vmem:[#allocation4 + $0x390] sm:$0xff]  ;;  %v1420_v12 = vld [vmem:[#allocation4 + $0x1b8] sm:$0xff] }
 0x11e   :  { %1730 = vmatpush.msrb.mxu1 %v1470_v19  ;;  %v7908_v42 = vmul.f32 %v7904_v37, %v7904_v37  ;;  %1749 = vmatpush.msrb.mxu2 %v1538_v61  ;;  %v1518_v19 = vld [vmem:[#allocation4 + $0x4c8] sm:$0xff]  ;;  %v1391_v40 = vld [vmem:[#allocation4 + $0xd0] sm:$0xff] }
 0x11f   :  { %1711 = vmatpush.msrb.mxu0 %v1402_v20  ;;  %v1190_v45 = vpop.f32.mrf.mxu2  ;;  %1695 = vmatpush.msra.mxu3 %v1577_v16  ;;  %v1602_v61 = vld [vmem:[#allocation4 + $0x768] sm:$0xff]  ;;  %v1416_v16 = vld [vmem:[#allocation4 + $0x198] sm:$0xff] }
 0x120   :  { %1731 = vmatpush.msrb.mxu1 %v1466_v24  ;;  %v1203_v47 = vpop.f32.mrf.mxu3  ;;  %1641 = vmatmul.f32.vlgmr.msra.gmra.mxu0 %v7908_v42  ;;  %v1514_v24 = vld [vmem:[#allocation4 + $0x4a8] sm:$0xff]  ;;  %v1387_v45 = vld [vmem:[#allocation4 + $0xb0] sm:$0xff] }
 0x121   :  { %1712 = vmatpush.msrb.mxu0 %v1398_v25  ;;  %1750 = vmatpush.msrb.mxu2 %v1534_v1  ;;  %v1367_v1 = vld [vmem:[#allocation4 + $0x10] sm:$0xff] }
 0x122   :  { %1732 = vmatpush.msrb.mxu1 %v1462_v30  ;;  %1696 = vmatpush.msra.mxu3 %v1573_v22  ;;  %v1565_v30 = vld [vmem:[#allocation4 + $0x640] sm:$0xff]  ;;  %v1412_v22 = vld [vmem:[#allocation4 + $0x178] sm:$0xff] }
 0x123   :  { %1713 = vmatpush.msrb.mxu0 %v1394_v31  ;;  %1751 = vmatpush.msrb.mxu2 %v1530_v8  ;;  %v1590_v8 = vld [vmem:[#allocation4 + $0x708] sm:$0xff] }
 0x124   :  { %1733 = vmatpush.msrb.mxu1 %v1458_v34  ;;  %1697 = vmatpush.msra.mxu3 %v1569_v26  ;;  %v1506_v34 = vld [vmem:[#allocation4 + $0x468] sm:$0xff]  ;;  %v1408_v26 = vld [vmem:[#allocation4 + $0x158] sm:$0xff] }
 0x125   :  { %1714 = vmatpush.msrb.mxu0 %v1390_v6  ;;  %1752 = vmatpush.msrb.mxu2 %v1526_v11  ;;  %v1586_v11 = vld [vmem:[#allocation4 + $0x6e8] sm:$0xff] }
 0x126   :  { %1734 = vmatpush.msrb.mxu1 %v1454_v57  ;;  %1698 = vmatpush.msra.mxu3 %v1565_v30 }
 0x127   :  { %1715 = vmatpush.msrb.mxu0 %v1386_v39  ;;  %1753 = vmatpush.msrb.mxu2 %v1522_v15  ;;  %v1582_v15 = vld [vmem:[#allocation4 + $0x6c8] sm:$0xff] }
 0x128   :  { %1735 = vmatpush.msrb.mxu1 %v1450_v43  ;;  %1699 = vmatpush.msra.mxu3 %v1561_v35  ;;  %v1498_v43 = vld [vmem:[#allocation4 + $0x428] sm:$0xff] }
 0x129   :  { %1716 = vmatpush.msrb.mxu0 %v1382_v44  ;;  %1754 = vmatpush.msrb.mxu2 %v1518_v19  ;;  %v1618_v44 = vld [vmem:[#allocation4 + $0x7e8] sm:$0xff] }
 0x12a   :  { %1736 = vmatpush.msrb.mxu1 %v1446_v48  ;;  %1700 = vmatpush.msra.mxu3 %v1557_v38  ;;  %v1494_v48 = vld [vmem:[#allocation4 + $0x408] sm:$0xff] }
 0x12b   :  { %1717 = vmatpush.msrb.mxu0 %v1378_v50  ;;  %1755 = vmatpush.msrb.mxu2 %v1514_v24  ;;  %v1383_v50 = vld [vmem:[#allocation4 + $0x90] sm:$0xff]  ;;  %v1562_v38 = vld [vmem:[#allocation4 + $0x628] sm:$0xff] }
 0x12c   :  { %1737 = vmatpush.msrb.mxu1 %v1442_v52  ;;  %1765 = vmatpush.msrb.mxu3 %v1618_v44  ;;  %v1431_v44 = vld [vmem:[#allocation4 + $0x210] sm:$0xff] }
 0x12d   :  { %1718 = vmatpush.msrb.mxu0 %v1374_v54  ;;  %1756 = vmatpush.msrb.mxu2 %v1510_v28  ;;  %v1379_v54 = vld [vmem:[#allocation4 + $0x70] sm:$0xff] }
 0x12e   :  { %1738 = vmatpush.msrb.mxu1 %v1438_v58  ;;  %1766 = vmatpush.msrb.mxu3 %v1614_v49  ;;  %v1606_v58 = vld [vmem:[#allocation4 + $0x788] sm:$0xff] }
 0x12f   :  { %1719 = vmatpush.msrb.mxu0 %v1370_v60  ;;  %v1214_v18 = vpop.f32.mrf.mxu0  ;;  %1757 = vmatpush.msrb.mxu2 %v1506_v34  ;;  %v1475_v60 = vld [vmem:[#allocation4 + $0x370] sm:$0xff]  ;;  %v1566_v34 = vld [vmem:[#allocation4 + $0x648] sm:$0xff] }
 0x130   :  { %1739 = vmatpush.msrb.mxu1 %v1434_v62  ;;  %v1215_v20 = vadd.f32 %v1214_v18, %v496_v14  ;;  %v1227_v21 = vpop.f32.mrf.mxu1  ;;  %1767 = vmatpush.msrb.mxu3 %v1610_v53  ;;  %v1371_v62 = vld [vmem:[#allocation4 + $0x30] sm:$0xff]  ;;  %v1488_v53 = vld [vmem:[#allocation4 + $0x3d8] sm:$0xff] }
 0x131   :  { %1720 = vmatpush.msrb.mxu0 %v1366_v0  ;;  %1758 = vmatpush.msrb.mxu2 %v1502_v55  ;;  %v1598_v0 = vld [vmem:[#allocation4 + $0x748] sm:$0xff]  ;;  %v1455_v14 = vld [vmem:[#allocation4 + $0x2d0] sm:$0xff] }
 0x132   :  { %1740 = vmatpush.msrb.mxu1 %v1430_v3  ;;  %1721 = vmatmul.f32.vlgmr.msrb.gmra.mxu0 %v7908_v42  ;;  %v1228_v25 = vadd.f32 %v1227_v21, %v1215_v20  ;;  %v1594_v3 = vld [vmem:[#allocation4 + $0x728] sm:$0xff]  ;;  %v1451_v18 = vld [vmem:[#allocation4 + $0x2b0] sm:$0xff] }
 0x133   :  { %1785 = vmatpush.msra.mxu0 %v1427_v2  ;;  %1759 = vmatpush.msrb.mxu2 %v1498_v43  ;;  %v1467_v2 = vld [vmem:[#allocation4 + $0x330] sm:$0xff]  ;;  %v1578_v21 = vld [vmem:[#allocation4 + $0x6a8] sm:$0xff] }
 0x134   :  { %1768 = vmatpush.msrb.mxu3 %v1606_v58  ;;  %v1555_v43 = vld [vmem:[#allocation4 + $0x5f0] sm:$0xff]  ;;  %v1484_v58 = vld [vmem:[#allocation4 + $0x3b8] sm:$0xff] }
 0x135   :  { %1786 = vmatpush.msra.mxu0 %v1423_v5  ;;  %1760 = vmatpush.msrb.mxu2 %v1494_v48  ;;  %v1463_v5 = vld [vmem:[#allocation4 + $0x310] sm:$0xff]  ;;  %v1492_v48 = vld [vmem:[#allocation4 + $0x3f8] sm:$0xff] }
 0x136   :  { %1769 = vmatpush.msrb.mxu3 %v1602_v61  ;;  %v1480_v61 = vld [vmem:[#allocation4 + $0x398] sm:$0xff] }
 0x137   :  { %1787 = vmatpush.msra.mxu0 %v1419_v10  ;;  %v1240_v29 = vpop.f32.mrf.mxu2  ;;  %v1216_v7 = vpop.f32.mrf.mxu0  ;;  %v1459_v10 = vld [vmem:[#allocation4 + $0x2f0] sm:$0xff] }
 0x138   :  { %v1241_v31 = vadd.f32 %v1240_v29, %v1228_v25  ;;  %v1253_v33 = vpop.f32.mrf.mxu3  ;;  %v1229_v57 = vpop.f32.mrf.mxu1  ;;  %1770 = vmatpush.msrb.mxu3 %v1598_v0  ;;  %v1574_v25 = vld [vmem:[#allocation4 + $0x688] sm:$0xff]  ;;  %v1435_v7 = vld [vmem:[#allocation4 + $0x230] sm:$0xff]  ;;  %v1476_v0 = vld [vmem:[#allocation4 + $0x378] sm:$0xff] }
 0x139   :  { %1788 = vmatpush.msra.mxu0 %v1415_v13  ;;  %v497_v13 = vld [vmem:[#allocation2 + $0x10] sm:$0xff]  ;;  %v1570_v29 = vld [vmem:[#allocation4 + $0x668] sm:$0xff] }
 0x13a   :  { %v7912_v6 = vadd.f32 %v1253_v33, %v1241_v31  ;;  %1771 = vmatpush.msrb.mxu3 %v1594_v3  ;;  %v1404_v31 = vld [vmem:[#allocation4 + $0x138] sm:$0xff]  ;;  %v1439_v33 = vld [vmem:[#allocation4 + $0x250] sm:$0xff] }
 0x13b   :  { %1789 = vmatpush.msra.mxu0 %v1411_v17  ;;  %v1472_v3 = vld [vmem:[#allocation4 + $0x358] sm:$0xff] }
 0x13c   :  { %v7916_v39 = vmul.f32 %v7912_v6, %v7912_v6  ;;  %1772 = vmatpush.msrb.mxu3 %v1590_v8  ;;  %v1468_v8 = vld [vmem:[#allocation4 + $0x338] sm:$0xff] }
 0x13d   :  { %1790 = vmatpush.msra.mxu0 %v1407_v23  ;;  %v1447_v23 = vld [vmem:[#allocation4 + $0x290] sm:$0xff] }
 0x13e   :  { %1661 = vmatmul.f32.vlgmr.msra.gmra.mxu1 %v7916_v39  ;;  %1773 = vmatpush.msrb.mxu3 %v1586_v11 }
 0x13f   :  { %1791 = vmatpush.msra.mxu0 %v1403_v27  ;;  %1805 = vmatpush.msra.mxu1 %v1491_v41  ;;  %v1242_v47 = vpop.f32.mrf.mxu2  ;;  %v1443_v27 = vld [vmem:[#allocation4 + $0x270] sm:$0xff]  ;;  %v1396_v41 = vld [vmem:[#allocation4 + $0xf8] sm:$0xff] }
 0x140   :  { %v1255_v52 = vpop.f32.mrf.mxu3  ;;  %1774 = vmatpush.msrb.mxu3 %v1582_v15  ;;  %v1551_v47 = vld [vmem:[#allocation4 + $0x5d0] sm:$0xff] }
 0x141   :  { %1792 = vmatpush.msra.mxu0 %v1399_v32  ;;  %1806 = vmatpush.msra.mxu1 %v1487_v46  ;;  %v1392_v46 = vld [vmem:[#allocation4 + $0xd8] sm:$0xff]  ;;  %v1547_v52 = vld [vmem:[#allocation4 + $0x5b0] sm:$0xff] }
 0x142   :  { %1775 = vmatpush.msrb.mxu3 %v1578_v21  ;;  %v1519_v15 = vld [vmem:[#allocation4 + $0x4d0] sm:$0xff]  ;;  %v1452_v21 = vld [vmem:[#allocation4 + $0x2b8] sm:$0xff] }
 0x143   :  { %1793 = vmatpush.msra.mxu0 %v1395_v36  ;;  %1807 = vmatpush.msra.mxu1 %v1483_v51  ;;  %v1400_v36 = vld [vmem:[#allocation4 + $0x118] sm:$0xff] }
 0x144   :  { %1776 = vmatpush.msrb.mxu3 %v1574_v25 }
 0x145   :  { %1794 = vmatpush.msra.mxu0 %v1391_v40  ;;  %1808 = vmatpush.msra.mxu1 %v1479_v56  ;;  %v1543_v56 = vld [vmem:[#allocation4 + $0x590] sm:$0xff] }
 0x146   :  { %1741 = vmatmul.f32.vlgmr.msrb.gmra.mxu1 %v7916_v39  ;;  %1777 = vmatpush.msrb.mxu3 %v1570_v29 }
 0x147   :  { %1795 = vmatpush.msra.mxu0 %v1387_v45  ;;  %1809 = vmatpush.msra.mxu1 %v1475_v60  ;;  %v1558_v45 = vld [vmem:[#allocation4 + $0x608] sm:$0xff]  ;;  %v1539_v60 = vld [vmem:[#allocation4 + $0x570] sm:$0xff] }
 0x148   :  { %1778 = vmatpush.msrb.mxu3 %v1566_v34  ;;  %v1619_v34 = vld [vmem:[#allocation4 + $0x7f0] sm:$0xff] }
 0x149   :  { %1796 = vmatpush.msra.mxu0 %v1383_v50  ;;  %1810 = vmatpush.msra.mxu1 %v1471_v63  ;;  %v1388_v50 = vld [vmem:[#allocation4 + $0xb8] sm:$0xff]  ;;  %v1535_v63 = vld [vmem:[#allocation4 + $0x550] sm:$0xff] }
 0x14a   :  { %1779 = vmatpush.msrb.mxu3 %v1562_v38  ;;  %v1556_v38 = vld [vmem:[#allocation4 + $0x5f8] sm:$0xff] }
 0x14b   :  { %1797 = vmatpush.msra.mxu0 %v1379_v54  ;;  %1811 = vmatpush.msra.mxu1 %v1467_v2  ;;  %v1384_v54 = vld [vmem:[#allocation4 + $0x98] sm:$0xff]  ;;  %v1531_v2 = vld [vmem:[#allocation4 + $0x530] sm:$0xff] }
 0x14c   :  { %1780 = vmatpush.msrb.mxu3 %v1558_v45  ;;  %v1552_v45 = vld [vmem:[#allocation4 + $0x5d8] sm:$0xff] }
 0x14d   :  { %1798 = vmatpush.msra.mxu0 %v1375_v59  ;;  %1812 = vmatpush.msra.mxu1 %v1463_v5  ;;  %v1380_v59 = vld [vmem:[#allocation4 + $0x78] sm:$0xff]  ;;  %v1527_v5 = vld [vmem:[#allocation4 + $0x510] sm:$0xff] }
 0x14f   :  { %1799 = vmatpush.msra.mxu0 %v1371_v62  ;;  %1813 = vmatpush.msra.mxu1 %v1459_v10  ;;  %v1266_v17 = vpop.f32.mrf.mxu0  ;;  %v1376_v62 = vld [vmem:[#allocation4 + $0x58] sm:$0xff]  ;;  %v1523_v10 = vld [vmem:[#allocation4 + $0x4f0] sm:$0xff] }
 0x150   :  { %v1267_v19 = vadd.f32 %v1266_v17, %v497_v13  ;;  %v1279_v20 = vpop.f32.mrf.mxu1  ;;  %v1515_v17 = vld [vmem:[#allocation4 + $0x4b0] sm:$0xff] }
 0x151   :  { %1800 = vmatpush.msra.mxu0 %v1367_v1  ;;  %1814 = vmatpush.msra.mxu1 %v1455_v14  ;;  %v1372_v1 = vld [vmem:[#allocation4 + $0x38] sm:$0xff] }
 0x152   :  { %1801 = vmatmul.f32.vlgmr.msra.gmra.mxu0 %v7908_v42  ;;  %v1280_v24 = vadd.f32 %v1279_v20, %v1267_v19  ;;  %v1456_v19 = vld [vmem:[#allocation4 + $0x2d8] sm:$0xff]  ;;  %v1511_v20 = vld [vmem:[#allocation4 + $0x490] sm:$0xff] }
 0x153   :  { %1865 = vmatpush.msrb.mxu0 %v1428_v4  ;;  %1815 = vmatpush.msra.mxu1 %v1451_v18  ;;  %v1368_v4 = vld [vmem:[#allocation4 + $0x18] sm:$0xff] }
 0x155   :  { %1866 = vmatpush.msrb.mxu0 %v1424_v9  ;;  %1816 = vmatpush.msra.mxu1 %v1447_v23  ;;  %v498_v9 = vld [vmem:[#allocation2 + $0x18] sm:$0xff] }
 0x157   :  { %1867 = vmatpush.msrb.mxu0 %v1420_v12  ;;  %v1292_v28 = vpop.f32.mrf.mxu2  ;;  %1817 = vmatpush.msra.mxu1 %v1443_v27  ;;  %v1268_v55 = vpop.f32.mrf.mxu0  ;;  %v1464_v12 = vld [vmem:[#allocation4 + $0x318] sm:$0xff] }
 0x158   :  { %v1293_v30 = vadd.f32 %v1292_v28, %v1280_v24  ;;  %v1305_v32 = vpop.f32.mrf.mxu3  ;;  %v1281_v57 = vpop.f32.mrf.mxu1  ;;  %v1503_v28 = vld [vmem:[#allocation4 + $0x450] sm:$0xff] }
 0x159   :  { %1868 = vmatpush.msrb.mxu0 %v1416_v16  ;;  %1818 = vmatpush.msra.mxu1 %v1439_v33  ;;  %v1460_v16 = vld [vmem:[#allocation4 + $0x2f8] sm:$0xff]  ;;  %v1615_v57 = vld [vmem:[#allocation4 + $0x7d0] sm:$0xff] }
 0x15a   :  { %v7921_v35 = vadd.f32 %v1305_v32, %v1293_v30  ;;  %v1444_v30 = vld [vmem:[#allocation4 + $0x278] sm:$0xff] }
 0x15b   :  { %1869 = vmatpush.msrb.mxu0 %v1412_v22  ;;  %1819 = vmatpush.msra.mxu1 %v1435_v7  ;;  %v1507_v22 = vld [vmem:[#allocation4 + $0x470] sm:$0xff]  ;;  %v1440_v33 = vld [vmem:[#allocation4 + $0x258] sm:$0xff] }
 0x15c   :  { %v7925_v40 = vmul.f32 %v7921_v35, %v7921_v35  ;;  %v1436_v7 = vld [vmem:[#allocation4 + $0x238] sm:$0xff] }
 0x15d   :  { %1870 = vmatpush.msrb.mxu0 %v1408_v26  ;;  %1820 = vmatpush.msra.mxu1 %v1431_v44  ;;  %v1448_v26 = vld [vmem:[#allocation4 + $0x298] sm:$0xff]  ;;  %v1611_v44 = vld [vmem:[#allocation4 + $0x7b0] sm:$0xff] }
 0x15e   :  { %1681 = vmatmul.f32.vlgmr.msra.gmra.mxu2 %v7925_v40  ;;  %1821 = vmatmul.f32.vlgmr.msra.gmra.mxu1 %v7916_v39 }
 0x15f   :  { %1871 = vmatpush.msrb.mxu0 %v1404_v31  ;;  %1825 = vmatpush.msra.mxu2 %v1555_v43  ;;  %v1294_v49 = vpop.f32.mrf.mxu2  ;;  %v1499_v31 = vld [vmem:[#allocation4 + $0x430] sm:$0xff]  ;;  %v1432_v43 = vld [vmem:[#allocation4 + $0x218] sm:$0xff] }
 0x160   :  { %v1307_v51 = vpop.f32.mrf.mxu3  ;;  %1885 = vmatpush.msrb.mxu1 %v1492_v48  ;;  %v1603_v48 = vld [vmem:[#allocation4 + $0x770] sm:$0xff]  ;;  %v1544_v49 = vld [vmem:[#allocation4 + $0x598] sm:$0xff] }
 0x161   :  { %1872 = vmatpush.msrb.mxu0 %v1400_v36  ;;  %1826 = vmatpush.msra.mxu2 %v1551_v47  ;;  %v1495_v36 = vld [vmem:[#allocation4 + $0x410] sm:$0xff]  ;;  %v1548_v47 = vld [vmem:[#allocation4 + $0x5b8] sm:$0xff] }
 0x162   :  { %1886 = vmatpush.msrb.mxu1 %v1488_v53  ;;  %v1540_v51 = vld [vmem:[#allocation4 + $0x578] sm:$0xff] }
 0x163   :  { %1873 = vmatpush.msrb.mxu0 %v1396_v41  ;;  %1827 = vmatpush.msra.mxu2 %v1547_v52  ;;  %v1595_v52 = vld [vmem:[#allocation4 + $0x730] sm:$0xff]  ;;  %v1536_v53 = vld [vmem:[#allocation4 + $0x558] sm:$0xff] }
 0x164   :  { %1887 = vmatpush.msrb.mxu1 %v1484_v58  ;;  %v1528_v58 = vld [vmem:[#allocation4 + $0x518] sm:$0xff] }
 0x165   :  { %1874 = vmatpush.msrb.mxu0 %v1392_v46  ;;  %1828 = vmatpush.msra.mxu2 %v1543_v56  ;;  %v1607_v46 = vld [vmem:[#allocation4 + $0x790] sm:$0xff]  ;;  %v1532_v56 = vld [vmem:[#allocation4 + $0x538] sm:$0xff] }
 0x166   :  { %1761 = vmatmul.f32.vlgmr.msrb.gmra.mxu2 %v7925_v40  ;;  %1888 = vmatpush.msrb.mxu1 %v1480_v61  ;;  %v1579_v61 = vld [vmem:[#allocation4 + $0x6b0] sm:$0xff] }
 0x167   :  { %1875 = vmatpush.msrb.mxu0 %v1388_v50  ;;  %1829 = vmatpush.msra.mxu2 %v1539_v60  ;;  %v1599_v50 = vld [vmem:[#allocation4 + $0x750] sm:$0xff]  ;;  %v1524_v60 = vld [vmem:[#allocation4 + $0x4f8] sm:$0xff] }
 0x168   :  { %1889 = vmatpush.msrb.mxu1 %v1476_v0  ;;  %v1516_v0 = vld [vmem:[#allocation4 + $0x4b8] sm:$0xff] }
 0x169   :  { %1876 = vmatpush.msrb.mxu0 %v1384_v54  ;;  %1830 = vmatpush.msra.mxu2 %v1535_v63  ;;  %v1591_v54 = vld [vmem:[#allocation4 + $0x710] sm:$0xff] }
 0x16a   :  { %1890 = vmatpush.msrb.mxu1 %v1472_v3  ;;  %v1575_v63 = vld [vmem:[#allocation4 + $0x690] sm:$0xff] }
 0x16b   :  { %1877 = vmatpush.msrb.mxu0 %v1380_v59  ;;  %1831 = vmatpush.msra.mxu2 %v1531_v2  ;;  %v1583_v59 = vld [vmem:[#allocation4 + $0x6d0] sm:$0xff]  ;;  %v1512_v2 = vld [vmem:[#allocation4 + $0x498] sm:$0xff] }
 0x16c   :  { %1891 = vmatpush.msrb.mxu1 %v1468_v8  ;;  %v1567_v3 = vld [vmem:[#allocation4 + $0x650] sm:$0xff]  ;;  %v1504_v8 = vld [vmem:[#allocation4 + $0x458] sm:$0xff] }
 0x16d   :  { %1878 = vmatpush.msrb.mxu0 %v1376_v62  ;;  %1832 = vmatpush.msra.mxu2 %v1527_v5  ;;  %v1520_v62 = vld [vmem:[#allocation4 + $0x4d8] sm:$0xff]  ;;  %v1563_v5 = vld [vmem:[#allocation4 + $0x630] sm:$0xff] }
 0x16e   :  { %1892 = vmatpush.msrb.mxu1 %v1464_v12  ;;  %v1496_v12 = vld [vmem:[#allocation4 + $0x418] sm:$0xff] }
 0x16f   :  { %1879 = vmatpush.msrb.mxu0 %v1372_v1  ;;  %v1318_v11 = vpop.f32.mrf.mxu0  ;;  %1833 = vmatpush.msra.mxu2 %v1523_v10  ;;  %v1571_v1 = vld [vmem:[#allocation4 + $0x670] sm:$0xff]  ;;  %v1500_v10 = vld [vmem:[#allocation4 + $0x438] sm:$0xff] }
 0x170   :  { %v1319_v13 = vadd.f32 %v1318_v11, %v498_v9  ;;  %v1331_v14 = vpop.f32.mrf.mxu1  ;;  %1893 = vmatpush.msrb.mxu1 %v1460_v16  ;;  %v1559_v9 = vld [vmem:[#allocation4 + $0x610] sm:$0xff]  ;;  %v1620_v11 = vld [vmem:[#allocation4 + $0x7f8] sm:$0xff] }
 0x171   :  { %1880 = vmatpush.msrb.mxu0 %v1368_v4  ;;  %1834 = vmatpush.msra.mxu2 %v1519_v15  ;;  %v1508_v4 = vld [vmem:[#allocation4 + $0x478] sm:$0xff] }
 0x172   :  { %1881 = vmatmul.f32.vlgmr.msrb.gmra.mxu0 %v7908_v42  ;;  %v1332_v18 = vadd.f32 %v1331_v14, %v1319_v13  ;;  %1894 = vmatpush.msrb.mxu1 %v1456_v19  ;;  %v1616_v13 = vld [vmem:[#allocation4 + $0x7d8] sm:$0xff] }
 0x173   :  { %1835 = vmatpush.msra.mxu2 %v1515_v17  ;;  %v1612_v14 = vld [vmem:[#allocation4 + $0x7b8] sm:$0xff] }
 0x174   :  { %1895 = vmatpush.msrb.mxu1 %v1452_v21  ;;  %v1608_v15 = vld [vmem:[#allocation4 + $0x798] sm:$0xff] }
 0x175   :  { %1836 = vmatpush.msra.mxu2 %v1511_v20  ;;  %v1604_v16 = vld [vmem:[#allocation4 + $0x778] sm:$0xff] }
 0x176   :  { %1896 = vmatpush.msrb.mxu1 %v1448_v26  ;;  %v1600_v17 = vld [vmem:[#allocation4 + $0x758] sm:$0xff] }
 0x177   :  { %v1344_v42 = vpop.f32.mrf.mxu2  ;;  %v1320_v25 = vpop.f32.mrf.mxu0  ;;  %1837 = vmatpush.msra.mxu2 %v1507_v22  ;;  %v1592_v19 = vld [vmem:[#allocation4 + $0x718] sm:$0xff] }
 0x178   :  { %v1345_v23 = vadd.f32 %v1344_v42, %v1332_v18  ;;  %v1357_v24 = vpop.f32.mrf.mxu3  ;;  %v1333_v27 = vpop.f32.mrf.mxu1  ;;  %1897 = vmatpush.msrb.mxu1 %v1444_v30  ;;  %v1596_v18 = vld [vmem:[#allocation4 + $0x738] sm:$0xff] }
 0x179   :  { %1838 = vmatpush.msra.mxu2 %v1503_v28  ;;  %v1588_v20 = vld [vmem:[#allocation4 + $0x6f8] sm:$0xff]  ;;  %v6088_v27 = vld [vmem:[#allocation7 + $0x30] sm:$0xff]  ;;  %v6087_v28 = vld [vmem:[#allocation7 + $0x28] sm:$0xff] }
 0x17a   :  { %v7931_v29 = vadd.f32 %v1357_v24, %v1345_v23  ;;  %1898 = vmatpush.msrb.mxu1 %v1440_v33  ;;  %v1584_v21 = vld [vmem:[#allocation4 + $0x6d8] sm:$0xff]  ;;  %v6096_v33 = vld [vmem:[#allocation7 + $0x70] sm:$0xff] }
 0x17b   :  { %1839 = vmatpush.msra.mxu2 %v1499_v31  ;;  %v1580_v42 = vld [vmem:[#allocation4 + $0x6b8] sm:$0xff]  ;;  %v6086_v31 = vld [vmem:[#allocation7 + $0x20] sm:$0xff] }
 0x17c   :  { %v7935_v32 = vmul.f32 %v7931_v29, %v7931_v29  ;;  %1899 = vmatpush.msrb.mxu1 %v1436_v7  ;;  %v1576_v22 = vld [vmem:[#allocation4 + $0x698] sm:$0xff]  ;;  %v6084_v7 = vld [vmem:[#allocation7 + $0x10] sm:$0xff] }
 0x17d   :  { %1840 = vmatpush.msra.mxu2 %v1495_v36  ;;  %v1568_v23 = vld [vmem:[#allocation4 + $0x658] sm:$0xff]  ;;  %v6095_v36 = vld [vmem:[#allocation7 + $0x68] sm:$0xff] }
 0x17e   :  { %1701 = vmatmul.f32.vlgmr.msra.gmra.mxu3 %v7935_v32  ;;  %1841 = vmatmul.f32.vlgmr.msra.gmra.mxu2 %v7925_v40  ;;  %v1564_v24 = vld [vmem:[#allocation4 + $0x638] sm:$0xff] }
 0x17f   :  { %1845 = vmatpush.msra.mxu3 %v1619_v34  ;;  %v1346_v55 = vpop.f32.mrf.mxu2  ;;  %1905 = vmatpush.msrb.mxu2 %v1556_v38  ;;  %v1560_v25 = vld [vmem:[#allocation4 + $0x618] sm:$0xff]  ;;  %v1621_v38 = vld [vmem:[#allocation6] sm:$0xff] }
 0x180   :  { %v1359_v41 = vpop.f32.mrf.mxu3  ;;  %1900 = vmatpush.msrb.mxu1 %v1432_v43  ;;  %v6089_v26 = vld [vmem:[#allocation7 + $0x38] sm:$0xff]  ;;  %v6094_v55 = vld [vmem:[#allocation7 + $0x60] sm:$0xff] }
 0x181   :  { %1846 = vmatpush.msra.mxu3 %v1615_v57  ;;  %1901 = vmatmul.f32.vlgmr.msrb.gmra.mxu1 %v7916_v39  ;;  %v1587_v39 = vld [vmem:[#allocation4 + $0x6f0] sm:$0xff]  ;;  %v6097_v30 = vld [vmem:[#allocation7 + $0x78] sm:$0xff] }
 0x182   :  { %1906 = vmatpush.msrb.mxu2 %v1552_v45  ;;  %2254 = vmatpush.bf16.msra.mxu0 %v6089_v26  ;;  %v6085_v34 = vld [vmem:[#allocation7 + $0x18] sm:$0xff]  ;;  %v6082_v45 = vld [vmem:[#allocation7] sm:$0xff] }
 0x183   :  { %1847 = vmatpush.msra.mxu3 %v1611_v44  ;;  %2267 = vmatpush.bf16.msra.mxu1 %v6097_v30  ;;  %v6093_v57 = vld [vmem:[#allocation7 + $0x58] sm:$0xff] }
 0x184   :  { %1907 = vmatpush.msrb.mxu2 %v1548_v47 }
 0x185   :  { %1848 = vmatpush.msra.mxu3 %v1607_v46  ;;  %v6092_v46 = vld [vmem:[#allocation7 + $0x50] sm:$0xff] }
 0x186   :  { %1781 = vmatmul.f32.vlgmr.msrb.gmra.mxu3 %v7935_v32  ;;  %1908 = vmatpush.msrb.mxu2 %v1544_v49 }
 0x187   :  { %1849 = vmatpush.msra.mxu3 %v1603_v48  ;;  %2255 = vmatpush.bf16.msra.mxu0 %v6088_v27  ;;  %v6105_v48 = vld [vmem:[#allocation7 + $0xb8] sm:$0xff] }
 0x188   :  { %1909 = vmatpush.msrb.mxu2 %v1540_v51  ;;  %2268 = vmatpush.bf16.msra.mxu1 %v6096_v33  ;;  %v6113_v27 = vld [vmem:[#allocation7 + $0xf8] sm:$0xff] }
 0x189   :  { %1850 = vmatpush.msra.mxu3 %v1599_v50  ;;  %v6091_v50 = vld [vmem:[#allocation7 + $0x48] sm:$0xff] }
 0x18a   :  { %1910 = vmatpush.msrb.mxu2 %v1536_v53  ;;  %v6104_v53 = vld [vmem:[#allocation7 + $0xb0] sm:$0xff] }
 0x18b   :  { %1851 = vmatpush.msra.mxu3 %v1595_v52  ;;  %2256 = vmatpush.bf16.msra.mxu0 %v6087_v28 }
 0x18c   :  { %1911 = vmatpush.msrb.mxu2 %v1532_v56  ;;  %2269 = vmatpush.bf16.msra.mxu1 %v6095_v36 }
 0x18d   :  { %1852 = vmatpush.msra.mxu3 %v1591_v54  ;;  %v1622_v54 = vld [vmem:[#allocation6 + $0x8] sm:$0xff] }
 0x18e   :  { %1912 = vmatpush.msrb.mxu2 %v1528_v58  ;;  %v6090_v58 = vld [vmem:[#allocation7 + $0x40] sm:$0xff] }
 0x18f   :  { %1853 = vmatpush.msra.mxu3 %v1587_v39  ;;  %2257 = vmatpush.bf16.msra.mxu0 %v6086_v31 }
 0x190   :  { %1913 = vmatpush.msrb.mxu2 %v1524_v60  ;;  %2270 = vmatpush.bf16.msra.mxu1 %v6094_v55 }
 0x191   :  { %1854 = vmatpush.msra.mxu3 %v1583_v59 }
 0x192   :  { %1914 = vmatpush.msrb.mxu2 %v1520_v62  ;;  %v6103_v62 = vld [vmem:[#allocation7 + $0xa8] sm:$0xff] }
 0x193   :  { %1855 = vmatpush.msra.mxu3 %v1579_v61  ;;  %2258 = vmatpush.bf16.msra.mxu0 %v6085_v34 }
 0x194   :  { %1915 = vmatpush.msrb.mxu2 %v1516_v0  ;;  %2271 = vmatpush.bf16.msra.mxu1 %v6093_v57 }
 0x195   :  { %1856 = vmatpush.msra.mxu3 %v1575_v63 }
 0x196   :  { %1916 = vmatpush.msrb.mxu2 %v1512_v2  ;;  %v6102_v2 = vld [vmem:[#allocation7 + $0xa0] sm:$0xff] }
 0x197   :  { %1857 = vmatpush.msra.mxu3 %v1571_v1  ;;  %2259 = vmatpush.bf16.msra.mxu0 %v6084_v7 }
 0x198   :  { %1917 = vmatpush.msrb.mxu2 %v1508_v4  ;;  %2272 = vmatpush.bf16.msra.mxu1 %v6092_v46 }
 0x199   :  { %1858 = vmatpush.msra.mxu3 %v1567_v3 }
 0x19a   :  { %1918 = vmatpush.msrb.mxu2 %v1504_v8 }
 0x19b   :  { %1859 = vmatpush.msra.mxu3 %v1563_v5 }
 0x19c   :  { %1919 = vmatpush.msrb.mxu2 %v1500_v10  ;;  %2273 = vmatpush.bf16.msra.mxu1 %v6091_v50  ;;  %v6101_v10 = vld [vmem:[#allocation7 + $0x98] sm:$0xff]  ;;  %v6107_v50 = vld [vmem:[#allocation7 + $0xc8] sm:$0xff] }
 0x19d   :  { %1860 = vmatpush.msra.mxu3 %v1559_v9  ;;  %v1642_v41 = vpop.f32.mrf.mxu0 }
 0x19e   :  { %1861 = vmatmul.f32.vlgmr.msra.gmra.mxu3 %v7935_v32  ;;  %1920 = vmatpush.msrb.mxu2 %v1496_v12  ;;  %v1643_v43 = vadd.f32 %v1642_v41, %v1621_v38  ;;  %v6111_v38 = vld [vmem:[#allocation7 + $0xe8] sm:$0xff] }
 0x19f   :  { %1925 = vmatpush.msrb.mxu3 %v1620_v11  ;;  %1921 = vmatmul.f32.vlgmr.msrb.gmra.mxu2 %v7925_v40  ;;  %v1572_v40 = vld [vmem:[#allocation4 + $0x678] sm:$0xff] }
 0x1a0   :  { %2280 = vmatpush.bf16.msra.mxu2 %v6105_v48  ;;  %2274 = vmatpush.bf16.msra.mxu1 %v6090_v58  ;;  %v6108_v48 = vld [vmem:[#allocation7 + $0xd0] sm:$0xff] }
 0x1a1   :  { %1926 = vmatpush.msrb.mxu3 %v1616_v13  ;;  %v6100_v13 = vld [vmem:[#allocation7 + $0x90] sm:$0xff] }
 0x1a3   :  { %1927 = vmatpush.msrb.mxu3 %v1612_v14 }
 0x1a4   :  { %2281 = vmatpush.bf16.msra.mxu2 %v6104_v53  ;;  %v6106_v53 = vld [vmem:[#allocation7 + $0xc0] sm:$0xff] }
 0x1a5   :  { %1928 = vmatpush.msrb.mxu3 %v1608_v15 }
 0x1a7   :  { %1929 = vmatpush.msrb.mxu3 %v1604_v16 }
 0x1a8   :  { %2282 = vmatpush.bf16.msra.mxu2 %v6103_v62 }
 0x1a9   :  { %1930 = vmatpush.msrb.mxu3 %v1600_v17  ;;  %v6099_v17 = vld [vmem:[#allocation7 + $0x88] sm:$0xff] }
 0x1ab   :  { %1931 = vmatpush.msrb.mxu3 %v1596_v18 }
 0x1ac   :  { %2283 = vmatpush.bf16.msra.mxu2 %v6102_v2 }
 0x1ad   :  { %1932 = vmatpush.msrb.mxu3 %v1592_v19 }
 0x1af   :  { %1933 = vmatpush.msrb.mxu3 %v1588_v20  ;;  %v1722_v56 = vpop.f32.mrf.mxu0 }
 0x1b0   :  { %v1723_v61 = vadd.f32 %v1722_v56, %v1622_v54  ;;  %2284 = vmatpush.bf16.msra.mxu2 %v6101_v10  ;;  %v1624_v56 = vld [vmem:[#allocation6 + $0x18] sm:$0xff] }
 0x1b1   :  { %1934 = vmatpush.msrb.mxu3 %v1584_v21 }
 0x1b3   :  { %1935 = vmatpush.msrb.mxu3 %v1580_v42  ;;  %v6098_v42 = vld [vmem:[#allocation7 + $0x80] sm:$0xff] }
 0x1b4   :  { %2285 = vmatpush.bf16.msra.mxu2 %v6100_v13  ;;  %v6121_v13 = vld [vmem:[#allocation10 + $0x38] sm:$0xff] }
 0x1b5   :  { %1936 = vmatpush.msrb.mxu3 %v1576_v22  ;;  %v1623_v22 = vld [vmem:[#allocation6 + $0x10] sm:$0xff] }
 0x1b7   :  { %1937 = vmatpush.msrb.mxu3 %v1572_v40 }
 0x1b8   :  { %2286 = vmatpush.bf16.msra.mxu2 %v6099_v17  ;;  %v6119_v17 = vld [vmem:[#allocation10 + $0x28] sm:$0xff] }
 0x1b9   :  { %1938 = vmatpush.msrb.mxu3 %v1568_v23 }
 0x1bb   :  { %1939 = vmatpush.msrb.mxu3 %v1564_v24  ;;  %v1662_v44 = vpop.f32.mrf.mxu1 }
 0x1bc   :  { %v1663_v49 = vadd.f32 %v1662_v44, %v1643_v43  ;;  %2287 = vmatpush.bf16.msra.mxu2 %v6098_v42  ;;  %v6110_v43 = vld [vmem:[#allocation7 + $0xe0] sm:$0xff]  ;;  %v6109_v44 = vld [vmem:[#allocation7 + $0xd8] sm:$0xff] }
 0x1bd   :  { %1940 = vmatpush.msrb.mxu3 %v1560_v25  ;;  %v6116_v42 = vld [vmem:[#allocation10 + $0x10] sm:$0xff] }
 0x1be   :  { %1941 = vmatmul.f32.vlgmr.msrb.gmra.mxu3 %v7935_v32  ;;  %v6083_v32 = vld [vmem:[#allocation7 + $0x8] sm:$0xff] }
 0x1bf   :  { %2260 = vmatpush.bf16.msra.mxu0 %v6083_v32  ;;  %2293 = vmatpush.bf16.msra.mxu3 %v6113_v27 }
 0x1c3   :  { %2261 = vmatpush.bf16.msra.mxu0 %v6082_v45  ;;  %v1742_v59 = vpop.f32.mrf.mxu1 }
 0x1c4   :  { %v1743_v0 = vadd.f32 %v1742_v59, %v1723_v61 }
 0x1c7   :  { %2373 = vmatpush.bf16.msrb.mxu0 %v6121_v13  ;;  %v3024_v13 = vld [vmem:[#allocation27 + $0x340] sm:$0xff] }
 0x1cf   :  { %v1802_v40 = vpop.f32.mrf.mxu0 }
 0x1d0   :  { %v1803_v28 = vadd.f32 %v1802_v40, %v1623_v22  ;;  %v6115_v22 = vld [vmem:[#allocation10 + $0x8] sm:$0xff]  ;;  %v5430_v40 = vld [vmem:[#allocation24 + $0xf0] sm:$0xf0] }
 0x1db   :  { %v1822_v25 = vpop.f32.mrf.mxu1 }
 0x1dc   :  { %v1823_v33 = vadd.f32 %v1822_v25, %v1803_v28  ;;  %v6164_v25 = vld [vmem:[#allocation24 + $0xc4] sm:$0xf] }
 0x1dd   :  { %v6160_v28 = vld [vmem:[#allocation24 + $0xa4] sm:$0xf] }
 0x1e1   :  { %v1682_v47 = vpop.f32.mrf.mxu2 }
 0x1e2   :  { %v1683_v51 = vadd.f32 %v1682_v47, %v1663_v49 }
 0x1e9   :  { %v1762_v63 = vpop.f32.mrf.mxu2 }
 0x1ea   :  { %v1763_v1 = vadd.f32 %v1762_v63, %v1743_v0 }
 0x1fe   :  { %v1902_v59 = vpop.f32.mrf.mxu1 }
 0x201   :  { %v1702_v52 = vpop.f32.mrf.mxu3  ;;  %v1842_v30 = vpop.f32.mrf.mxu2 }
 0x202   :  { %v1703_v39 = vadd.f32 %v1702_v52, %v1683_v51  ;;  %v1843_v36 = vadd.f32 %v1842_v30, %v1823_v33  ;;  %v5398_v30 = vld [vmem:[#allocation24 + $0xb0] sm:$0xf0] }
 0x204   :  { %v1945_v60 = vmax.f32 %v1703_v39, 1e-06  ;;  %v1882_v39 = vpop.f32.mrf.mxu0 }
 0x206   :  { %6342 = vrsqrt.f32 %v1945_v60  ;;  %vm1955_vm1 = vweird.f32 %v1945_v60 }
 0x209   :  { %v1782_v3 = vpop.f32.mrf.mxu3 }
 0x20a   :  { %v1783_v4 = vadd.f32 %v1782_v3, %v1763_v1 }
 0x20c   :  { %v6343_v5 = vpop.eup %6342  ;;  %v1946_v9 = vmax.f32 %v1783_v4, 1e-06 }
 0x20d   :  { %v1950_v8 = vmul.f32 %v6343_v5, %v1945_v60  ;;  %vm1956_vm0 = vweird.f32 %v6343_v5  ;;  %v1883_v60 = vadd.f32 %v1882_v39, %v1624_v56 }
 0x20e   :  { %6344 = vrsqrt.f32 %v1946_v9  ;;  %vm1957_vm2 = vmor %vm1955_vm1, %vm1956_vm0  ;;  %vm1965_vm4 = vweird.f32 %v1946_v9 }
 0x20f   :  { %v1951_v11 = vmul.f32 %v6343_v5, %v1950_v8  ;;  %v1903_v62 = vadd.f32 %v1902_v59, %v1883_v60  ;;  %v6126_v59 = vld [vmem:[%s8162_s9 + $0x20] sm:$0xff] }
 0x211   :  { %v1952_v12 = vmul.f32 0.5, %v1951_v11 }
 0x213   :  { %v1953_v14 = vsub.f32 1.5, %v1952_v12 }
 0x214   :  { %v6345_v15 = vpop.eup %6344 }
 0x215   :  { %v1954_v16 = vmul.f32 %v6343_v5, %v1953_v14  ;;  %v1960_v18 = vmul.f32 %v6345_v15, %v1946_v9  ;;  %vm1966_vm3 = vweird.f32 %v6345_v15  ;;  %v6120_v14 = vld [vmem:[#allocation10 + $0x30] sm:$0xff] }
 0x216   :  { %vm1967_vm5 = vmor %vm1965_vm4, %vm1966_vm3  ;;  %2374 = vmatpush.bf16.msrb.mxu0 %v6120_v14  ;;  %v5436_v14 = vld [vmem:[#allocation24 + $0xe8] sm:$0xf] }
 0x217   :  { %v1958_v19 = vsel %vm1957_vm2, %v6343_v5, %v1954_v16  ;;  %v1961_v20 = vmul.f32 %v6345_v15, %v1960_v18  ;;  %vm2510_vm2 = vcmask 261120  }
 0x218   :  { %v1989_v21 = vmul.f32 %v1958_v19, %v7904_v37  ;;  %v6112_v37 = vld [vmem:[#allocation7 + $0xf0] sm:$0xff]  ;;  %v6118_v19 = vld [vmem:[#allocation10 + $0x20] sm:$0xff] }
 0x219   :  { %v1962_v23 = vmul.f32 0.5, %v1961_v20  ;;  %2294 = vmatpush.bf16.msra.mxu3 %v6112_v37  ;;  %v6117_v20 = vld [vmem:[#allocation10 + $0x18] sm:$0xff]  ;;  %v5382_v37 = vld [vmem:[#allocation24 + $0x90] sm:$0xf0] }
 0x21a   :  { %v1993_v24 = vpack.c.bf16 %v1989_v21, %v1989_v21  ;;  %2375 = vmatpush.bf16.msrb.mxu0 %v6119_v17  ;;  %v6122_v17 = vld [vmem:[%s8162_s9] sm:$0xff] }
 0x21b   :  { %v1963_v26 = vsub.f32 1.5, %v1962_v23  ;;  %v6114_v23 = vld [vmem:[#allocation10] sm:$0xff] }
 0x21c   :  { %2262 = vmatmul.bf16.vlgmr.msra.gmra.mxu0 %v1993_v24 }
 0x21d   :  { %v1964_v31 = vmul.f32 %v6345_v15, %v1963_v26  ;;  %2295 = vmatpush.bf16.msra.mxu3 %v6111_v38  ;;  %v5414_v26 = vld [vmem:[#allocation24 + $0xd0] sm:$0xf0]  ;;  %v6148_v38 = vld [vmem:[#allocation24 + $0x44] sm:$0xf] }
 0x21e   :  { %2376 = vmatpush.bf16.msrb.mxu0 %v6118_v19  ;;  %v5417_v27 = vor.u32 %v6164_v25, %v5414_v26  ;;  %v3000_v25 = vld [vmem:[#allocation27 + $0x280] sm:$0xff] }
 0x21f   :  { %v1968_v34 = vsel %vm1967_vm5, %v6345_v15, %v1964_v31  ;;  %v5401_v31 = vor.u32 %v6160_v28, %v5398_v30  ;;  %v2996_v26 = vld [vmem:[#allocation27 + $0x260] sm:$0xff] }
 0x220   :  { %v1990_v7 = vmul.f32 %v1968_v34, %v7912_v6  ;;  %v6156_v34 = vld [vmem:[#allocation24 + $0x84] sm:$0xf] }
 0x221   :  { %v1862_v55 = vpop.f32.mrf.mxu3  ;;  %2296 = vmatpush.bf16.msra.mxu3 %v6110_v43  ;;  %v2988_v28 = vld [vmem:[#allocation27 + $0x220] sm:$0xff] }
 0x222   :  { %v1863_v32 = vadd.f32 %v1862_v55, %v1843_v36  ;;  %v1994_v57 = vpack.c.bf16 %v1990_v7, %v1990_v7  ;;  %v1922_v61 = vpop.f32.mrf.mxu2  ;;  %2377 = vmatpush.bf16.msrb.mxu0 %v6117_v20  ;;  %v5385_v36 = vor.u32 %v6156_v34, %v5382_v37  ;;  %v6152_v7 = vld [vmem:[#allocation24 + $0x64] sm:$0xf]  ;;  %v5366_v55 = vld [vmem:[#allocation24 + $0x70] sm:$0xf0]  ;;  %v3037_v34 = vld [vmem:[#allocation27 + $0x3a8] sm:$0xff] }
 0x223   :  { %v1923_v63 = vadd.f32 %v1922_v61, %v1903_v62  ;;  %v3016_v20 = vld [vmem:[#allocation27 + $0x300] sm:$0xff]  ;;  %v3033_v37 = vld [vmem:[#allocation27 + $0x388] sm:$0xff] }
 0x224   :  { %v1947_v41 = vmax.f32 %v1863_v32, 1e-06  ;;  %2275 = vmatmul.bf16.vlgmr.msra.gmra.mxu1 %v1994_v57  ;;  %v5369_v32 = vor.u32 %v6152_v7, %v5366_v55  ;;  %v2984_v30 = vld [vmem:[#allocation27 + $0x200] sm:$0xff]  ;;  %v5404_v7 = vld [vmem:[#allocation24 + $0xa8] sm:$0xf] }
 0x225   :  { %2297 = vmatpush.bf16.msra.mxu3 %v6109_v44  ;;  %v6144_v44 = vld [vmem:[#allocation24 + $0x24] sm:$0xf]  ;;  %v6163_v55 = vld [vmem:[#allocation24 + $0xb4] sm:$0xf0] }
 0x226   :  { %6346 = vrsqrt.f32 %v1947_v41  ;;  %vm1975_vm7 = vweird.f32 %v1947_v41  ;;  %2378 = vmatpush.bf16.msrb.mxu0 %v6116_v42  ;;  %v6167_v42 = vld [vmem:[#allocation24 + $0xd4] sm:$0xf0] }
 0x229   :  { %2298 = vmatpush.bf16.msra.mxu3 %v6108_v48  ;;  %v5318_v48 = vld [vmem:[#allocation24 + $0x10] sm:$0xf0] }
 0x22a   :  { %2379 = vmatpush.bf16.msrb.mxu0 %v6115_v22 }
 0x22c   :  { %v6347_v45 = vpop.eup %6346 }
 0x22d   :  { %v1970_v46 = vmul.f32 %v6347_v45, %v1947_v41  ;;  %vm1976_vm6 = vweird.f32 %v6347_v45  ;;  %2299 = vmatpush.bf16.msra.mxu3 %v6107_v50  ;;  %v5350_v41 = vld [vmem:[#allocation24 + $0x50] sm:$0xf0]  ;;  %v2061_v50 = vld [vmem:[#allocation9] sm:$0xff] }
 0x22e   :  { %vm1977_vm8 = vmor %vm1975_vm7, %vm1976_vm6  ;;  %2380 = vmatpush.bf16.msrb.mxu0 %v6114_v23  ;;  %v5353_v43 = vor.u32 %v6148_v38, %v5350_v41  ;;  %v3008_v23 = vld [vmem:[#allocation27 + $0x2c0] sm:$0xff]  ;;  %v3021_v38 = vld [vmem:[#allocation27 + $0x328] sm:$0xff] }
 0x22f   :  { %v1971_v47 = vmul.f32 %v6347_v45, %v1970_v46  ;;  %v5388_v41 = vld [vmem:[#allocation24 + $0x88] sm:$0xf] }
 0x231   :  { %v1972_v49 = vmul.f32 0.5, %v1971_v47  ;;  %2300 = vmatpush.bf16.msra.mxu3 %v6106_v53  ;;  %v6140_v47 = vld [vmem:[#allocation24 + $0x4] sm:$0xf] }
 0x233   :  { %v1973_v6 = vsub.f32 1.5, %v1972_v49  ;;  %v5321_v49 = vor.u32 %v6140_v47, %v5318_v48  ;;  %v5372_v47 = vld [vmem:[#allocation24 + $0x68] sm:$0xf]  ;;  %v6155_v48 = vld [vmem:[#allocation24 + $0x74] sm:$0xf0] }
 0x235   :  { %v1974_v51 = vmul.f32 %v6347_v45, %v1973_v6  ;;  %v6129_v6 = vld [vmem:[%s8162_s9 + $0x38] sm:$0xff] }
 0x236   :  { %2453 = vmatpush.bf16.msrb.mxu1 %v6129_v6  ;;  %v3009_v6 = vld [vmem:[#allocation27 + $0x2c8] sm:$0xff] }
 0x237   :  { %v1978_v52 = vsel %vm1977_vm8, %v6347_v45, %v1974_v51  ;;  %v5334_v45 = vld [vmem:[#allocation24 + $0x30] sm:$0xf0]  ;;  %v6128_v51 = vld [vmem:[%s8162_s9 + $0x30] sm:$0xff] }
 0x238   :  { %v1991_v54 = vmul.f32 %v1978_v52, %v7921_v35  ;;  %v5337_v46 = vor.u32 %v6144_v44, %v5334_v45  ;;  %v3017_v45 = vld [vmem:[#allocation27 + $0x308] sm:$0xff] }
 0x23a   :  { %v1995_v58 = vpack.c.bf16 %v1991_v54, %v1991_v54  ;;  %2454 = vmatpush.bf16.msrb.mxu1 %v6128_v51  ;;  %v6127_v54 = vld [vmem:[%s8162_s9 + $0x28] sm:$0xff]  ;;  %v5356_v51 = vld [vmem:[#allocation24 + $0x48] sm:$0xf] }
 0x23c   :  { %2288 = vmatmul.bf16.vlgmr.msra.gmra.mxu2 %v1995_v58 }
 0x23e   :  { %2455 = vmatpush.bf16.msrb.mxu1 %v6127_v54  ;;  %v3001_v54 = vld [vmem:[#allocation27 + $0x288] sm:$0xff] }
 0x241   :  { %v1942_v0 = vpop.f32.mrf.mxu3 }
 0x242   :  { %v1943_v1 = vadd.f32 %v1942_v0, %v1923_v63  ;;  %v3044_v63 = vld [vmem:[#allocation27 + $0x3e0] sm:$0xff]  ;;  %2456 = vmatpush.bf16.msrb.mxu1 %v6126_v59  ;;  %v6125_v0 = vld [vmem:[%s8162_s9 + $0x18] sm:$0xff] }
 0x244   :  { %v1948_v2 = vmax.f32 %v1943_v1, 1e-06 }
 0x246   :  { %6348 = vrsqrt.f32 %v1948_v2  ;;  %vm1985_vm10 = vweird.f32 %v1948_v2  ;;  %2457 = vmatpush.bf16.msrb.mxu1 %v6125_v0 }
 0x24c   :  { %v6349_v3 = vpop.eup %6348 }
 0x24d   :  { %v1980_v4 = vmul.f32 %v6349_v3, %v1948_v2  ;;  %vm1986_vm9 = vweird.f32 %v6349_v3  ;;  %v3040_v2 = vld [vmem:[#allocation27 + $0x3c0] sm:$0xff] }
 0x24e   :  { %vm1987_vm11 = vmor %vm1985_vm10, %vm1986_vm9 }
 0x24f   :  { %v1981_v5 = vmul.f32 %v6349_v3, %v1980_v4  ;;  %v3036_v4 = vld [vmem:[#allocation27 + $0x3a0] sm:$0xff] }
 0x251   :  { %v1982_v8 = vmul.f32 0.5, %v1981_v5  ;;  %v6124_v5 = vld [vmem:[%s8162_s9 + $0x10] sm:$0xff] }
 0x252   :  { %2458 = vmatpush.bf16.msrb.mxu1 %v6124_v5 }
 0x253   :  { %v1983_v9 = vsub.f32 1.5, %v1982_v8 }
 0x255   :  { %v1984_v35 = vmul.f32 %v6349_v3, %v1983_v9  ;;  %v3032_v9 = vld [vmem:[#allocation27 + $0x380] sm:$0xff] }
 0x257   :  { %v1988_v10 = vsel %vm1987_vm11, %v6349_v3, %v1984_v35 }
 0x258   :  { %v1992_v11 = vmul.f32 %v1988_v10, %v7931_v29  ;;  %v6168_v29 = vld [vmem:[#allocation24 + $0xe4] sm:$0xf] }
 0x259   :  { %v5433_v24 = vor.u32 %v6168_v29, %v5430_v40  ;;  %v3028_v10 = vld [vmem:[#allocation27 + $0x360] sm:$0xff] }
 0x25a   :  { %v1996_v12 = vpack.c.bf16 %v1992_v11, %v1992_v11  ;;  %v6123_v11 = vld [vmem:[%s8162_s9 + $0x8] sm:$0xff] }
 0x25b   :  { %2877 = vmatpush.bf16.msra.mxu0 %v5433_v24  ;;  %2459 = vmatpush.bf16.msrb.mxu1 %v6123_v11  ;;  %v3012_v29 = vld [vmem:[#allocation27 + $0x2e0] sm:$0xff] }
 0x25c   :  { %2301 = vmatmul.bf16.vlgmr.msra.gmra.mxu3 %v1996_v12  ;;  %v3004_v24 = vld [vmem:[#allocation27 + $0x2a0] sm:$0xff] }
 0x25f   :  { %2878 = vmatpush.bf16.msra.mxu0 %v5417_v27  ;;  %2460 = vmatpush.bf16.msrb.mxu1 %v6122_v17  ;;  %v2992_v27 = vld [vmem:[#allocation27 + $0x240] sm:$0xff]  ;;  %v3034_v17 = vld [vmem:[#allocation27 + $0x390] sm:$0xff] }
 0x263   :  { %2879 = vmatpush.bf16.msra.mxu0 %v5401_v31  ;;  %v3045_v31 = vld [vmem:[#allocation27 + $0x3e8] sm:$0xff] }
 0x267   :  { %2880 = vmatpush.bf16.msra.mxu0 %v5385_v36  ;;  %v3029_v36 = vld [vmem:[#allocation27 + $0x368] sm:$0xff] }
 0x26b   :  { %2881 = vmatpush.bf16.msra.mxu0 %v5369_v32  ;;  %v5405_v32 = vor.u32 %v6163_v55, %v5404_v7  ;;  %v3035_v7 = vld [vmem:[#allocation27 + $0x398] sm:$0xff]  ;;  %v3096_v55 = vld [vmem:[#allocation27 + $0x580] sm:$0xff] }
 0x26f   :  { %2882 = vmatpush.bf16.msra.mxu0 %v5353_v43  ;;  %v6159_v43 = vld [vmem:[#allocation24 + $0x94] sm:$0xf0] }
 0x270   :  { %v5389_v44 = vor.u32 %v6159_v43, %v5388_v41  ;;  %v3027_v41 = vld [vmem:[#allocation27 + $0x358] sm:$0xff]  ;;  %v3088_v43 = vld [vmem:[#allocation27 + $0x540] sm:$0xff] }
 0x273   :  { %2883 = vmatpush.bf16.msra.mxu0 %v5337_v46  ;;  %v3013_v46 = vld [vmem:[#allocation27 + $0x2e8] sm:$0xff] }
 0x277   :  { %2884 = vmatpush.bf16.msra.mxu0 %v5321_v49  ;;  %v5373_v49 = vor.u32 %v6155_v48, %v5372_v47  ;;  %v3023_v47 = vld [vmem:[#allocation27 + $0x338] sm:$0xff]  ;;  %v3084_v48 = vld [vmem:[#allocation27 + $0x520] sm:$0xff] }
 0x299   :  { %v2263_v15 = vpop.f32.mrf.mxu0 }
 0x29a   :  { %v2264_v52 = vadd.f32 %v2263_v15, %v2061_v50  ;;  %v6171_v15 = vld [vmem:[#allocation24 + $0xf4] sm:$0xf0]  ;;  %v3005_v50 = vld [vmem:[#allocation27 + $0x2a8] sm:$0xff] }
 0x29b   :  { %v5437_v19 = vor.u32 %v6171_v15, %v5436_v14  ;;  %v3042_v14 = vld [vmem:[#allocation27 + $0x3d0] sm:$0xff] }
 0x29c   :  { %v3038_v15 = vld [vmem:[#allocation27 + $0x3b0] sm:$0xff] }
 0x29d   :  { %2890 = vmatpush.bf16.msra.mxu1 %v5437_v19  ;;  %v3030_v19 = vld [vmem:[#allocation27 + $0x370] sm:$0xff] }
 0x2a1   :  { %v2265_v16 = vpop.f32.mrf.mxu0  ;;  %v2276_v18 = vpop.f32.mrf.mxu1 }
 0x2a2   :  { %v2277_v53 = vadd.f32 %v2276_v18, %v2264_v52  ;;  %v3020_v16 = vld [vmem:[#allocation27 + $0x320] sm:$0xff]  ;;  %v6151_v52 = vld [vmem:[#allocation24 + $0x54] sm:$0xf0] }
 0x2a9   :  { %v2278_v21 = vpop.f32.mrf.mxu1 }
 0x2aa   :  { %v5420_v21 = vld [vmem:[#allocation24 + $0xc8] sm:$0xf] }
 0x2ab   :  { %v5421_v40 = vor.u32 %v6167_v42, %v5420_v21  ;;  %v3022_v21 = vld [vmem:[#allocation27 + $0x330] sm:$0xff] }
 0x2ac   :  { %v3018_v42 = vld [vmem:[#allocation27 + $0x310] sm:$0xff] }
 0x2ad   :  { %2891 = vmatpush.bf16.msra.mxu1 %v5421_v40  ;;  %v3010_v40 = vld [vmem:[#allocation27 + $0x2d0] sm:$0xff] }
 0x2b1   :  { %2892 = vmatpush.bf16.msra.mxu1 %v5405_v32  ;;  %v3031_v32 = vld [vmem:[#allocation27 + $0x378] sm:$0xff] }
 0x2b5   :  { %2893 = vmatpush.bf16.msra.mxu1 %v5389_v44  ;;  %v6130_v44 = vld [vmem:[#allocation18] sm:$0xff] }
 0x2b9   :  { %2894 = vmatpush.bf16.msra.mxu1 %v5373_v49 }
 0x2bf   :  { %v2289_v33 = vpop.f32.mrf.mxu2 }
 0x2c0   :  { %v2290_v56 = vadd.f32 %v2289_v33, %v2277_v53  ;;  %v3041_v33 = vld [vmem:[#allocation27 + $0x3c8] sm:$0xff]  ;;  %v5357_v53 = vor.u32 %v6151_v52, %v5356_v51  ;;  %v3015_v51 = vld [vmem:[#allocation27 + $0x2f8] sm:$0xff]  ;;  %v3076_v52 = vld [vmem:[#allocation27 + $0x4e0] sm:$0xff] }
 0x2c2   :  { %2895 = vmatpush.bf16.msra.mxu1 %v5357_v53  ;;  %v3011_v53 = vld [vmem:[#allocation27 + $0x2d8] sm:$0xff] }
 0x2c7   :  { %v2291_v57 = vpop.f32.mrf.mxu2 }
 0x2c8   :  { %v3025_v57 = vld [vmem:[#allocation27 + $0x348] sm:$0xff] }
 0x2df   :  { %v2302_v39 = vpop.f32.mrf.mxu3 }
 0x2e0   :  { %v2303_v58 = vadd.f32 %v2302_v39, %v2290_v56  ;;  %v2997_v56 = vld [vmem:[#allocation27 + $0x268] sm:$0xff] }
 0x2e1   :  { %v5340_v39 = vld [vmem:[#allocation24 + $0x28] sm:$0xf] }
 0x2e2   :  { %v2306_v60 = vand.u32 2147483647, %v2303_v58  ;;  %v6310_v61 = vcvt.f32.s32 %v2303_v58  ;;  %v6313_v35 = vand.u32 2147483648, %v2303_v58 }
 0x2e4   :  { %v2307_v62 = vpack.c.bf16 %v2306_v60, %v2306_v60  ;;  %v6311_v1 = vcvt.s32.f32 %v6310_v61  ;;  %vm6309_vm12 = vcmp.lt.f32.partialorder %v2306_v60, 8388608.0  ;;  %v2993_v60 = vld [vmem:[#allocation27 + $0x248] sm:$0xff] }
 0x2e5   :  { %v2989_v61 = vld [vmem:[#allocation27 + $0x228] sm:$0xff] }
 0x2e6   :  { %2381 = vmatmul.bf16.vlgmr.msrb.gmra.mxu0 %v2307_v62  ;;  %v6312_v8 = vand.u32 2147483647, %v6311_v1  ;;  %v5324_v62 = vld [vmem:[#allocation24 + $0x8] sm:$0xf] }
 0x2e7   :  { %v2304_v3 = vpop.f32.mrf.mxu3  ;;  %3200 = vmatpush.msrb.mxu0 %v3044_v63  ;;  %v6143_v63 = vld [vmem:[#allocation24 + $0x14] sm:$0xf0]  ;;  %v2985_v1 = vld [vmem:[#allocation27 + $0x208] sm:$0xff] }
 0x2e8   :  { %v6314_v12 = vor.u32 %v6313_v35, %v6312_v8  ;;  %v5325_v0 = vor.u32 %v6143_v63, %v5324_v62  ;;  %v2701_v35 = vld [vmem:[#allocation25 + $0x8] sm:$0xff]  ;;  %v2995_v62 = vld [vmem:[#allocation27 + $0x258] sm:$0xff]  ;;  %v3056_v63 = vld [vmem:[#allocation27 + $0x440] sm:$0xff] }
 0x2e9   :  { %3201 = vmatpush.msrb.mxu0 %v3040_v2  ;;  %v2324_v2 = vld [vmem:[#allocation12] sm:$0xff] }
 0x2ea   :  { %v7972_v18 = vsel %vm6309_vm12, %v6314_v12, %v2303_v58  ;;  %v6147_v58 = vld [vmem:[#allocation24 + $0x34] sm:$0xf0] }
 0x2eb   :  { %3202 = vmatpush.msrb.mxu0 %v3036_v4  ;;  %v7976_v22 = vpack.c.bf16 %v7972_v18, %v7972_v18  ;;  %v5341_v59 = vor.u32 %v6147_v58, %v5340_v39  ;;  %v3068_v39 = vld [vmem:[#allocation27 + $0x4a0] sm:$0xff]  ;;  %v3003_v58 = vld [vmem:[#allocation27 + $0x298] sm:$0xff] }
 0x2ed   :  { %3203 = vmatpush.msrb.mxu0 %v3032_v9  ;;  %2896 = vmatpush.bf16.msra.mxu1 %v5341_v59  ;;  %v3064_v59 = vld [vmem:[#allocation27 + $0x480] sm:$0xff] }
 0x2ef   :  { %3204 = vmatpush.msrb.mxu0 %v3028_v10 }
 0x2f1   :  { %3205 = vmatpush.msrb.mxu0 %v3024_v13  ;;  %2897 = vmatpush.bf16.msra.mxu1 %v5325_v0  ;;  %v3046_v13 = vld [vmem:[#allocation27 + $0x3f0] sm:$0xff]  ;;  %v2991_v0 = vld [vmem:[#allocation27 + $0x238] sm:$0xff] }
 0x2f3   :  { %3206 = vmatpush.msrb.mxu0 %v3020_v16 }
 0x2f5   :  { %3207 = vmatpush.msrb.mxu0 %v3016_v20  ;;  %v3026_v20 = vld [vmem:[#allocation27 + $0x350] sm:$0xff] }
 0x2f6   :  { %2885 = vmatmul.bf16.vlgmr.msra.gmra.mxu0 %v7976_v22 }
 0x2f7   :  { %3208 = vmatpush.msrb.mxu0 %v3012_v29  ;;  %v3014_v29 = vld [vmem:[#allocation27 + $0x2f0] sm:$0xff] }
 0x2f9   :  { %3209 = vmatpush.msrb.mxu0 %v3008_v23  ;;  %v3006_v23 = vld [vmem:[#allocation27 + $0x2b0] sm:$0xff] }
 0x2fb   :  { %3210 = vmatpush.msrb.mxu0 %v3004_v24  ;;  %v3002_v24 = vld [vmem:[#allocation27 + $0x290] sm:$0xff] }
 0x2fd   :  { %3211 = vmatpush.msrb.mxu0 %v3000_v25  ;;  %v2998_v25 = vld [vmem:[#allocation27 + $0x270] sm:$0xff] }
 0x2ff   :  { %3212 = vmatpush.msrb.mxu0 %v2996_v26  ;;  %v2994_v26 = vld [vmem:[#allocation27 + $0x250] sm:$0xff] }
 0x301   :  { %3213 = vmatpush.msrb.mxu0 %v2992_v27  ;;  %v2990_v27 = vld [vmem:[#allocation27 + $0x230] sm:$0xff] }
 0x303   :  { %3214 = vmatpush.msrb.mxu0 %v2988_v28  ;;  %v2986_v28 = vld [vmem:[#allocation27 + $0x210] sm:$0xff] }
 0x305   :  { %3215 = vmatpush.msrb.mxu0 %v2984_v30  ;;  %v3047_v30 = vld [vmem:[#allocation27 + $0x3f8] sm:$0xff] }
 0x307   :  { %3280 = vmatpush.msra.mxu0 %v3045_v31  ;;  %v3043_v31 = vld [vmem:[#allocation27 + $0x3d8] sm:$0xff] }
 0x309   :  { %3281 = vmatpush.msra.mxu0 %v3041_v33  ;;  %v3108_v33 = vld [vmem:[#allocation27 + $0x5e0] sm:$0xff] }
 0x30b   :  { %3282 = vmatpush.msra.mxu0 %v3037_v34  ;;  %v3104_v34 = vld [vmem:[#allocation27 + $0x5c0] sm:$0xff] }
 0x30d   :  { %3283 = vmatpush.msra.mxu0 %v3033_v37  ;;  %v3039_v37 = vld [vmem:[#allocation27 + $0x3b8] sm:$0xff] }
 0x30f   :  { %3284 = vmatpush.msra.mxu0 %v3029_v36  ;;  %v3100_v36 = vld [vmem:[#allocation27 + $0x5a0] sm:$0xff] }
 0x311   :  { %3285 = vmatpush.msra.mxu0 %v3025_v57  ;;  %v3092_v57 = vld [vmem:[#allocation27 + $0x560] sm:$0xff] }
 0x313   :  { %3286 = vmatpush.msra.mxu0 %v3021_v38  ;;  %v6131_v38 = vld [vmem:[#allocation18 + $0x8] sm:$0xff] }
 0x314   :  { %2539 = vmatpush.bf16.msrb.mxu2 %v6131_v38  ;;  %v6146_v38 = vld [vmem:[#allocation24 + $0x2c] sm:$0xf0] }
 0x315   :  { %3287 = vmatpush.msra.mxu0 %v3017_v45  ;;  %v5428_v45 = vld [vmem:[#allocation24 + $0xe0] sm:$0xf] }
 0x317   :  { %3288 = vmatpush.msra.mxu0 %v3013_v46  ;;  %v6170_v46 = vld [vmem:[#allocation24 + $0xec] sm:$0xf0] }
 0x318   :  { %v5429_v49 = vor.u32 %v6170_v46, %v5428_v45  ;;  %2540 = vmatpush.bf16.msrb.mxu2 %v6130_v44  ;;  %v5316_v45 = vld [vmem:[#allocation24] sm:$0xf]  ;;  %v6142_v46 = vld [vmem:[#allocation24 + $0xc] sm:$0xf0] }
 0x319   :  { %3289 = vmatpush.msra.mxu0 %v3009_v6  ;;  %v3019_v6 = vld [vmem:[#allocation27 + $0x318] sm:$0xff] }
 0x31b   :  { %3290 = vmatpush.msra.mxu0 %v3005_v50  ;;  %v3080_v50 = vld [vmem:[#allocation27 + $0x500] sm:$0xff] }
 0x31c   :  { %2864 = vmatpush.bf16.msra.mxu2 %v5429_v49 }
 0x31d   :  { %3291 = vmatpush.msra.mxu0 %v3001_v54  ;;  %v3072_v54 = vld [vmem:[#allocation27 + $0x4c0] sm:$0xff] }
 0x31f   :  { %3292 = vmatpush.msra.mxu0 %v2997_v56  ;;  %v3007_v56 = vld [vmem:[#allocation27 + $0x2b8] sm:$0xff] }
 0x321   :  { %3293 = vmatpush.msra.mxu0 %v2993_v60  ;;  %v2999_v60 = vld [vmem:[#allocation27 + $0x278] sm:$0xff] }
 0x323   :  { %3294 = vmatpush.msra.mxu0 %v2989_v61  ;;  %v3060_v61 = vld [vmem:[#allocation27 + $0x460] sm:$0xff] }
 0x325   :  { %3295 = vmatpush.msra.mxu0 %v2985_v1  ;;  %v3052_v1 = vld [vmem:[#allocation27 + $0x420] sm:$0xff] }
 0x363   :  { %v2382_v3 = vpop.f32.mrf.mxu0 }
 0x364   :  { %v2383_v4 = vadd.f32 %v2382_v3, %v2324_v2  ;;  %v2987_v2 = vld [vmem:[#allocation27 + $0x218] sm:$0xff]  ;;  %v3048_v3 = vld [vmem:[#allocation27 + $0x400] sm:$0xff] }
 0x366   :  { %v2386_v5 = vmax.f32 %v2383_v4, 0.0  ;;  %v3109_v4 = vld [vmem:[#allocation27 + $0x5e8] sm:$0xff] }
 0x368   :  { %v2387_v8 = vpack.c.bf16 %v2386_v5, %v2386_v5  ;;  %v3105_v5 = vld [vmem:[#allocation27 + $0x5c8] sm:$0xff] }
 0x36a   :  { %2461 = vmatmul.bf16.vlgmr.msrb.gmra.mxu1 %v2387_v8  ;;  %v3101_v8 = vld [vmem:[#allocation27 + $0x5a8] sm:$0xff] }
 0x36b   :  { %v2384_v9 = vpop.f32.mrf.mxu0  ;;  %3220 = vmatpush.msrb.mxu1 %v3108_v33 }
 0x36c   :  { %v3097_v9 = vld [vmem:[#allocation27 + $0x588] sm:$0xff] }
 0x36d   :  { %3221 = vmatpush.msrb.mxu1 %v3104_v34  ;;  %v3057_v34 = vld [vmem:[#allocation27 + $0x448] sm:$0xff] }
 0x36f   :  { %3222 = vmatpush.msrb.mxu1 %v3100_v36  ;;  %v6150_v36 = vld [vmem:[#allocation24 + $0x4c] sm:$0xf0] }
 0x371   :  { %3223 = vmatpush.msrb.mxu1 %v3096_v55 }
 0x373   :  { %v2886_v10 = vpop.f32.mrf.mxu0  ;;  %3224 = vmatpush.msrb.mxu1 %v3092_v57  ;;  %v5332_v57 = vld [vmem:[#allocation24 + $0x20] sm:$0xf] }
 0x374   :  { %v7979_v11 = vadd.f32 %v2886_v10, %v2701_v35  ;;  %v3093_v35 = vld [vmem:[#allocation27 + $0x568] sm:$0xff] }
 0x375   :  { %3225 = vmatpush.msrb.mxu1 %v3088_v43  ;;  %v3089_v10 = vld [vmem:[#allocation27 + $0x548] sm:$0xff]  ;;  %v5333_v43 = vor.u32 %v6146_v38, %v5332_v57  ;;  %v3078_v57 = vld [vmem:[#allocation27 + $0x4f0] sm:$0xff] }
 0x376   :  { %v7983_v12 = vmul.f32 %v7979_v11, %v7979_v11 }
 0x377   :  { %3226 = vmatpush.msrb.mxu1 %v3084_v48  ;;  %v2404_v48 = vld [vmem:[#allocation13] sm:$0xff] }
 0x378   :  { %3216 = vmatmul.f32.vlgmr.msrb.gmra.mxu0 %v7983_v12 }
 0x379   :  { %3360 = vmatpush.msrb.mxu0 %v3046_v13  ;;  %3227 = vmatpush.msrb.mxu1 %v3080_v50  ;;  %v5412_v13 = vld [vmem:[#allocation24 + $0xc0] sm:$0xf] }
 0x37a   :  { %2898 = vmatmul.bf16.vlgmr.msra.gmra.mxu1 %v7976_v22 }
 0x37b   :  { %3361 = vmatpush.msrb.mxu0 %v3042_v14  ;;  %v2888_v16 = vpop.f32.mrf.mxu0  ;;  %3228 = vmatpush.msrb.mxu1 %v3076_v52  ;;  %v6166_v14 = vld [vmem:[#allocation24 + $0xcc] sm:$0xf0] }
 0x37c   :  { %v5413_v16 = vor.u32 %v6166_v14, %v5412_v13 }
 0x37d   :  { %3362 = vmatpush.msrb.mxu0 %v3038_v15  ;;  %3229 = vmatpush.msrb.mxu1 %v3072_v54  ;;  %v3085_v15 = vld [vmem:[#allocation27 + $0x528] sm:$0xff] }
 0x37e   :  { %2865 = vmatpush.bf16.msra.mxu2 %v5413_v16 }
 0x37f   :  { %3363 = vmatpush.msrb.mxu0 %v3034_v17  ;;  %3230 = vmatpush.msrb.mxu1 %v3068_v39  ;;  %v3081_v17 = vld [vmem:[#allocation27 + $0x508] sm:$0xff] }
 0x380   :  { %3296 = vmatmul.f32.vlgmr.msra.gmra.mxu0 %v7983_v12 }
 0x381   :  { %3364 = vmatpush.msrb.mxu0 %v3030_v19  ;;  %3231 = vmatpush.msrb.mxu1 %v3064_v59  ;;  %v5396_v19 = vld [vmem:[#allocation24 + $0xa0] sm:$0xf] }
 0x383   :  { %3365 = vmatpush.msrb.mxu0 %v3026_v20  ;;  %3232 = vmatpush.msrb.mxu1 %v3060_v61  ;;  %v3077_v20 = vld [vmem:[#allocation27 + $0x4e8] sm:$0xff] }
 0x385   :  { %3366 = vmatpush.msrb.mxu0 %v3022_v21  ;;  %3233 = vmatpush.msrb.mxu1 %v3056_v63 }
 0x387   :  { %3367 = vmatpush.msrb.mxu0 %v3018_v42  ;;  %3234 = vmatpush.msrb.mxu1 %v3052_v1  ;;  %v3073_v42 = vld [vmem:[#allocation27 + $0x4c8] sm:$0xff] }
 0x389   :  { %3368 = vmatpush.msrb.mxu0 %v3014_v29  ;;  %3235 = vmatpush.msrb.mxu1 %v3048_v3  ;;  %v2468_v29 = vld [vmem:[#allocation16] sm:$0xff] }
 0x38b   :  { %3369 = vmatpush.msrb.mxu0 %v3010_v40  ;;  %3300 = vmatpush.msra.mxu1 %v3109_v4  ;;  %v5380_v40 = vld [vmem:[#allocation24 + $0x80] sm:$0xf] }
 0x38d   :  { %3370 = vmatpush.msrb.mxu0 %v3006_v23  ;;  %3301 = vmatpush.msra.mxu1 %v3105_v5  ;;  %v6158_v23 = vld [vmem:[#allocation24 + $0x8c] sm:$0xf0] }
 0x38f   :  { %3371 = vmatpush.msrb.mxu0 %v3002_v24  ;;  %3302 = vmatpush.msra.mxu1 %v3101_v8  ;;  %v3069_v24 = vld [vmem:[#allocation27 + $0x4a8] sm:$0xff] }
 0x391   :  { %3372 = vmatpush.msrb.mxu0 %v2998_v25  ;;  %3303 = vmatpush.msra.mxu1 %v3097_v9  ;;  %v5381_v25 = vor.u32 %v6158_v23, %v5380_v40 }
 0x393   :  { %3373 = vmatpush.msrb.mxu0 %v2994_v26  ;;  %3304 = vmatpush.msra.mxu1 %v3093_v35  ;;  %v2469_v26 = vmax.f32 %v2468_v29, 0.11  ;;  %v3106_v29 = vld [vmem:[#allocation27 + $0x5d0] sm:$0xff] }
 0x395   :  { %3374 = vmatpush.msrb.mxu0 %v2990_v27  ;;  %3305 = vmatpush.msra.mxu1 %v3089_v10  ;;  %v3065_v27 = vld [vmem:[#allocation27 + $0x488] sm:$0xff]  ;;  %6350 = vrcp.f32 %v2469_v26  ;;  %vm2475_vm13 = vweird.f32 %v2469_v26  ;;  %v2481_v54 = vand.u32 2147483648, %v2469_v26  ;;  %v2702_v10 = vld [vmem:[#allocation25 + $0x10] sm:$0xff] }
 0x397   :  { %3375 = vmatpush.msrb.mxu0 %v2986_v28  ;;  %3306 = vmatpush.msra.mxu1 %v3085_v15  ;;  %v5364_v28 = vld [vmem:[#allocation24 + $0x60] sm:$0xf]  ;;  %v2482_v63 = vor.u32 1.1754944e-38, %v2481_v54  ;;  %v3107_v54 = vld [vmem:[#allocation27 + $0x5d8] sm:$0xff] }
 0x398   :  { %3376 = vmatmul.f32.vlgmr.msrb.gmra.mxu0 %v7983_v12 }
 0x399   :  { %3440 = vmatpush.msra.mxu0 %v3047_v30  ;;  %3307 = vmatpush.msra.mxu1 %v3081_v17  ;;  %v6154_v30 = vld [vmem:[#allocation24 + $0x6c] sm:$0xf0] }
 0x39a   :  { %v5365_v33 = vor.u32 %v6154_v30, %v5364_v28  ;;  %v3098_v28 = vld [vmem:[#allocation27 + $0x590] sm:$0xff] }
 0x39b   :  { %3441 = vmatpush.msra.mxu0 %v3043_v31  ;;  %3308 = vmatpush.msra.mxu1 %v3077_v20  ;;  %v3061_v31 = vld [vmem:[#allocation27 + $0x468] sm:$0xff]  ;;  %v3110_v20 = vld [vmem:[#allocation27 + $0x5f0] sm:$0xff] }
 0x39d   :  { %3442 = vmatpush.msra.mxu0 %v3039_v37  ;;  %3309 = vmatpush.msra.mxu1 %v3073_v42  ;;  %v5348_v37 = vld [vmem:[#allocation24 + $0x40] sm:$0xf] }
 0x39e   :  { %v5349_v55 = vor.u32 %v6150_v36, %v5348_v37  ;;  %v3086_v37 = vld [vmem:[#allocation27 + $0x530] sm:$0xff] }
 0x39f   :  { %3443 = vmatpush.msra.mxu0 %v3035_v7  ;;  %3310 = vmatpush.msra.mxu1 %v3069_v24  ;;  %v3053_v7 = vld [vmem:[#allocation27 + $0x428] sm:$0xff]  ;;  %v3102_v24 = vld [vmem:[#allocation27 + $0x5b0] sm:$0xff] }
 0x3a0   :  { %v3082_v36 = vld [vmem:[#allocation27 + $0x510] sm:$0xff] }
 0x3a1   :  { %3444 = vmatpush.msra.mxu0 %v3031_v32  ;;  %3311 = vmatpush.msra.mxu1 %v3065_v27  ;;  %v3049_v32 = vld [vmem:[#allocation27 + $0x408] sm:$0xff] }
 0x3a3   :  { %3445 = vmatpush.msra.mxu0 %v3027_v41  ;;  %3312 = vmatpush.msra.mxu1 %v3061_v31  ;;  %v6351_v41 = vpop.eup %6350 }
 0x3a4   :  { %v2471_v44 = vmul.f32 %v6351_v41, %v2469_v26  ;;  %vm2476_vm14 = vweird.f32 %v6351_v41 }
 0x3a5   :  { %3446 = vmatpush.msra.mxu0 %v3023_v47  ;;  %3313 = vmatpush.msra.mxu1 %v3057_v34  ;;  %v5317_v47 = vor.u32 %v6142_v46, %v5316_v45  ;;  %vm2477_vm15 = vmor %vm2475_vm13, %vm2476_vm14  ;;  %v3090_v34 = vld [vmem:[#allocation27 + $0x550] sm:$0xff] }
 0x3a6   :  { %v2472_v49 = vsub.f32 1.0, %v2471_v44  ;;  %v3070_v45 = vld [vmem:[#allocation27 + $0x4b0] sm:$0xff] }
 0x3a7   :  { %3447 = vmatpush.msra.mxu0 %v3019_v6  ;;  %3314 = vmatpush.msra.mxu1 %v3053_v7 }
 0x3a9   :  { %3448 = vmatpush.msra.mxu0 %v3015_v51  ;;  %3315 = vmatpush.msra.mxu1 %v3049_v32  ;;  %v2473_v51 = vmul.f32 %v6351_v41, %v2472_v49  ;;  %v3062_v49 = vld [vmem:[#allocation27 + $0x470] sm:$0xff] }
 0x3ab   :  { %3449 = vmatpush.msra.mxu0 %v3011_v53  ;;  %v2474_v39 = vadd.f32 %v6351_v41, %v2473_v51  ;;  %v3054_v51 = vld [vmem:[#allocation27 + $0x430] sm:$0xff] }
 0x3ad   :  { %3450 = vmatpush.msra.mxu0 %v3007_v56 }
 0x3af   :  { %3451 = vmatpush.msra.mxu0 %v3003_v58  ;;  %v2479_v58 = vand.u32 2147483647, %v2469_v26 }
 0x3b1   :  { %3452 = vmatpush.msra.mxu0 %v2999_v60  ;;  %vm2480_vm1 = vcmp.eq.f32.partialorder %v2479_v58, 8.507059e+37  ;;  %v6139_v58 = vld [vmem:[#allocation21 + $0x38] sm:$0xff] }
 0x3b2   :  { %2613 = vmatpush.bf16.msrb.mxu3 %v6139_v58  ;;  %v2945_v58 = vld [vmem:[#allocation27 + $0xc8] sm:$0xff] }
 0x3b3   :  { %3453 = vmatpush.msra.mxu0 %v2995_v62 }
 0x3b5   :  { %3454 = vmatpush.msra.mxu0 %v2991_v0  ;;  %v2478_v0 = vsel %vm2477_vm15, %v6351_v41, %v2474_v39  ;;  %v2976_v39 = vld [vmem:[#allocation27 + $0x1c0] sm:$0xff] }
 0x3b6   :  { %v2483_v8 = vsel %vm2480_vm1, %v2482_v63, %v2478_v0  ;;  %v2968_v63 = vld [vmem:[#allocation27 + $0x180] sm:$0xff]  ;;  %v3095_v0 = vld [vmem:[#allocation27 + $0x578] sm:$0xff] }
 0x3b7   :  { %3455 = vmatpush.msra.mxu0 %v2987_v2  ;;  %v2467_v2 = vld [vmem:[#allocation15] sm:$0xff] }
 0x3b8   :  { %3456 = vmatmul.f32.vlgmr.msra.gmra.mxu0 %v7983_v12  ;;  %v6162_v12 = vld [vmem:[#allocation24 + $0xac] sm:$0xf0] }
 0x3b9   :  { %v5397_v21 = vor.u32 %v6162_v12, %v5396_v19 }
 0x3bb   :  { %2866 = vmatpush.bf16.msra.mxu2 %v5397_v21 }
 0x3bf   :  { %2867 = vmatpush.bf16.msra.mxu2 %v5381_v25 }
 0x3c3   :  { %2868 = vmatpush.bf16.msra.mxu2 %v5365_v33  ;;  %v3094_v33 = vld [vmem:[#allocation27 + $0x570] sm:$0xff] }
 0x3c7   :  { %2869 = vmatpush.bf16.msra.mxu2 %v5349_v55 }
 0x3cb   :  { %2870 = vmatpush.bf16.msra.mxu2 %v5333_v43  ;;  %v3074_v43 = vld [vmem:[#allocation27 + $0x4d0] sm:$0xff] }
 0x3cf   :  { %2871 = vmatpush.bf16.msra.mxu2 %v5317_v47  ;;  %v3066_v47 = vld [vmem:[#allocation27 + $0x490] sm:$0xff] }
 0x3e7   :  { %v2462_v6 = vpop.f32.mrf.mxu1 }
 0x3e8   :  { %v2463_v50 = vadd.f32 %v2462_v6, %v2404_v48 }
 0x3ea   :  { %v6302_v52 = vcvt.f32.s32 %v2463_v50  ;;  %v6300_v56 = vand.u32 2147483647, %v2463_v50  ;;  %v6305_v60 = vand.u32 2147483648, %v2463_v50 }
 0x3ec   :  { %v6303_v53 = vcvt.s32.f32 %v6302_v52  ;;  %vm6301_vm0 = vcmp.lt.f32.partialorder %v6300_v56, 8388608.0  ;;  %v3050_v52 = vld [vmem:[#allocation27 + $0x410] sm:$0xff]  ;;  %v2980_v56 = vld [vmem:[#allocation27 + $0x1e0] sm:$0xff] }
 0x3ee   :  { %v6304_v59 = vand.u32 2147483647, %v6303_v53  ;;  %v3111_v53 = vld [vmem:[#allocation27 + $0x5f8] sm:$0xff] }
 0x3ef   :  { %v2464_v61 = vpop.f32.mrf.mxu1 }
 0x3f0   :  { %v6306_v62 = vor.u32 %v6305_v60, %v6304_v59  ;;  %v3103_v59 = vld [vmem:[#allocation27 + $0x5b8] sm:$0xff]  ;;  %v2972_v60 = vld [vmem:[#allocation27 + $0x1a0] sm:$0xff]  ;;  %v6138_v61 = vld [vmem:[#allocation21 + $0x30] sm:$0xff] }
 0x3f1   :  { %2614 = vmatpush.bf16.msrb.mxu3 %v6138_v61  ;;  %v5358_v61 = vld [vmem:[#allocation24 + $0x58] sm:$0xf0] }
 0x3f2   :  { %v6307_v1 = vsel %vm6301_vm0, %v6306_v62, %v2463_v50  ;;  %v3058_v50 = vld [vmem:[#allocation27 + $0x450] sm:$0xff]  ;;  %v3099_v62 = vld [vmem:[#allocation27 + $0x598] sm:$0xff] }
 0x3f3   :  { %v2485_v3 = vadd.f32 0.5, %v6307_v1  ;;  %v5271_v4 = vadd.f32 -0.5, %v6307_v1  ;;  %v2512_v5 = vpack.c.bf16 %v6307_v1, %v6307_v1  ;;  %v2964_v1 = vld [vmem:[#allocation27 + $0x160] sm:$0xff] }
 0x3f5   :  { %v2486_v9 = vsub.f32 %v2485_v3, %v2467_v2  ;;  %v2497_v35 = vsub.f32 %v5271_v4, %v2467_v2  ;;  %5280 = vmatmul.msk.bf16.vlgmr.msrb.gmra.mxu2 %vm2510_vm2, %v2512_v5  ;;  %v6137_v2 = vld [vmem:[#allocation21 + $0x28] sm:$0xff]  ;;  %v3091_v3 = vld [vmem:[#allocation27 + $0x558] sm:$0xff] }
 0x3f6   :  { %3180 = vmatpush.msrb.mxu2 %v2980_v56  ;;  %v2960_v4 = vld [vmem:[#allocation27 + $0x140] sm:$0xff]  ;;  %v3087_v5 = vld [vmem:[#allocation27 + $0x538] sm:$0xff]  ;;  %2615 = vmatpush.bf16.msrb.mxu3 %v6137_v2 }
 0x3f7   :  { %v2487_v13 = vmul.f32 %v2486_v9, %v2483_v8  ;;  %v2498_v14 = vmul.f32 %v2497_v35, %v2483_v8  ;;  %v2899_v15 = vpop.f32.mrf.mxu1  ;;  %v2956_v8 = vld [vmem:[#allocation27 + $0x120] sm:$0xff]  ;;  %v6136_v9 = vld [vmem:[#allocation21 + $0x20] sm:$0xff] }
 0x3f8   :  { %v7991_v16 = vadd.f32 %v2899_v15, %v2702_v10  ;;  %3181 = vmatpush.msrb.mxu2 %v2976_v39  ;;  %v3083_v35 = vld [vmem:[#allocation27 + $0x518] sm:$0xff]  ;;  %v2952_v10 = vld [vmem:[#allocation27 + $0x100] sm:$0xff]  ;;  %v6135_v15 = vld [vmem:[#allocation21 + $0x18] sm:$0xff] }
 0x3f9   :  { %v2488_v17 = vmul.f32 0.044715, %v2487_v13  ;;  %v2499_v19 = vmul.f32 0.044715, %v2498_v14  ;;  %v5374_v56 = vld [vmem:[#allocation24 + $0x78] sm:$0xf0] }
 0x3fa   :  { %v7995_v12 = vmul.f32 %v7991_v16, %v7991_v16  ;;  %3182 = vmatpush.msrb.mxu2 %v2972_v60  ;;  %2616 = vmatpush.bf16.msrb.mxu3 %v6136_v9  ;;  %v6149_v60 = vld [vmem:[#allocation24 + $0x4c] sm:$0xf]  ;;  %v5342_v2 = vld [vmem:[#allocation24 + $0x38] sm:$0xf0] }
 0x3fb   :  { %v2489_v21 = vmul.f32 %v2488_v17, %v2487_v13  ;;  %v2500_v42 = vmul.f32 %v2499_v19, %v2498_v14  ;;  %v3075_v17 = vld [vmem:[#allocation27 + $0x4d8] sm:$0xff]  ;;  %v2944_v19 = vld [vmem:[#allocation27 + $0xc0] sm:$0xff] }
 0x3fc   :  { %3236 = vmatmul.f32.vlgmr.msrb.gmra.mxu1 %v7995_v12  ;;  %3183 = vmatpush.msrb.mxu2 %v2968_v63  ;;  %v2937_v63 = vld [vmem:[#allocation27 + $0x88] sm:$0xff]  ;;  %v5326_v9 = vld [vmem:[#allocation24 + $0x18] sm:$0xf0] }
 0x3fd   :  { %v2490_v40 = vmul.f32 %v2489_v21, %v2487_v13  ;;  %v2501_v23 = vmul.f32 %v2500_v42, %v2498_v14  ;;  %3380 = vmatpush.msrb.mxu1 %v3110_v20  ;;  %v3071_v20 = vld [vmem:[#allocation27 + $0x4b8] sm:$0xff]  ;;  %v2940_v21 = vld [vmem:[#allocation27 + $0xa0] sm:$0xff]  ;;  %v6134_v42 = vld [vmem:[#allocation21 + $0x10] sm:$0xff] }
 0x3fe   :  { %3184 = vmatpush.msrb.mxu2 %v2964_v1  ;;  %2617 = vmatpush.bf16.msrb.mxu3 %v6135_v15  ;;  %v6145_v1 = vld [vmem:[#allocation24 + $0x2c] sm:$0xf] }
 0x3ff   :  { %v2491_v25 = vadd.f32 %v2490_v40, %v2487_v13  ;;  %v2502_v26 = vadd.f32 %v2501_v23, %v2498_v14  ;;  %3381 = vmatpush.msrb.mxu1 %v3106_v29  ;;  %v2901_v27 = vpop.f32.mrf.mxu1  ;;  %v3079_v13 = vld [vmem:[#allocation27 + $0x4f8] sm:$0xff]  ;;  %v2948_v14 = vld [vmem:[#allocation27 + $0xe0] sm:$0xff] }
 0x400   :  { %3185 = vmatpush.msrb.mxu2 %v2960_v4  ;;  %v3067_v29 = vld [vmem:[#allocation27 + $0x498] sm:$0xff]  ;;  %v2936_v40 = vld [vmem:[#allocation27 + $0x80] sm:$0xff]  ;;  %v2929_v4 = vld [vmem:[#allocation27 + $0x48] sm:$0xff] }
 0x401   :  { %v2492_v30 = vmul.f32 0.7978846, %v2491_v25  ;;  %v2503_v31 = vmul.f32 0.7978846, %v2502_v26  ;;  %3382 = vmatpush.msrb.mxu1 %v3102_v24  ;;  %v3063_v23 = vld [vmem:[#allocation27 + $0x478] sm:$0xff]  ;;  %v2932_v24 = vld [vmem:[#allocation27 + $0x60] sm:$0xff] }
 0x402   :  { %3186 = vmatpush.msrb.mxu2 %v2956_v8  ;;  %2618 = vmatpush.bf16.msrb.mxu3 %v6134_v42  ;;  %v6133_v25 = vld [vmem:[#allocation21 + $0x8] sm:$0xff]  ;;  %v3059_v26 = vld [vmem:[#allocation27 + $0x458] sm:$0xff]  ;;  %v6141_v8 = vld [vmem:[#allocation24 + $0xc] sm:$0xf] }
 0x403   :  { %6352 = vtanh.f32 %v2492_v30  ;;  %3383 = vmatpush.msrb.mxu1 %v3098_v28  ;;  %v2928_v27 = vld [vmem:[#allocation27 + $0x40] sm:$0xff]  ;;  %v3055_v28 = vld [vmem:[#allocation27 + $0x438] sm:$0xff] }
 0x404   :  { %6354 = vtanh.f32 %v2503_v31  ;;  %3316 = vmatmul.f32.vlgmr.msra.gmra.mxu1 %v7995_v12  ;;  %3187 = vmatpush.msrb.mxu2 %v2952_v10  ;;  %v2924_v30 = vld [vmem:[#allocation27 + $0x20] sm:$0xff]  ;;  %v6132_v31 = vld [vmem:[#allocation21] sm:$0xff]  ;;  %v2921_v10 = vld [vmem:[#allocation27 + $0x8] sm:$0xff] }
 0x405   :  { %3384 = vmatpush.msrb.mxu1 %v3094_v33  ;;  %2872 = vmatmul.bf16.vlgmr.msra.gmra.mxu2 %v7976_v22  ;;  %v6169_v33 = vld [vmem:[#allocation24 + $0xec] sm:$0xf] }
 0x406   :  { %3188 = vmatpush.msrb.mxu2 %v2948_v14  ;;  %2619 = vmatpush.bf16.msrb.mxu3 %v6133_v25  ;;  %v2974_v25 = vld [vmem:[#allocation27 + $0x1b0] sm:$0xff] }
 0x407   :  { %3385 = vmatpush.msrb.mxu1 %v3090_v34  ;;  %v5438_v34 = vld [vmem:[#allocation24 + $0xf8] sm:$0xf0] }
 0x408   :  { %3189 = vmatpush.msrb.mxu2 %v2944_v19 }
 0x409   :  { %v6353_v7 = vpop.eup %6352  ;;  %3386 = vmatpush.msrb.mxu1 %v3086_v37  ;;  %v3051_v37 = vld [vmem:[#allocation27 + $0x418] sm:$0xff] }
 0x40a   :  { %v6355_v55 = vpop.eup %6354  ;;  %v2494_v32 = vadd.f32 1.0, %v6353_v7  ;;  %3190 = vmatpush.msrb.mxu2 %v2940_v21  ;;  %v2981_v7 = vld [vmem:[#allocation27 + $0x1e8] sm:$0xff]  ;;  %2620 = vmatpush.bf16.msrb.mxu3 %v6132_v31  ;;  %v2700_v21 = vld [vmem:[#allocation25] sm:$0xff]  ;;  %v2958_v31 = vld [vmem:[#allocation27 + $0x130] sm:$0xff] }
 0x40b   :  { %v2505_v38 = vadd.f32 1.0, %v6355_v55  ;;  %3387 = vmatpush.msrb.mxu1 %v3082_v36  ;;  %v2920_v36 = vld [vmem:[#allocation27] sm:$0xff]  ;;  %v5441_v55 = vor.u32 %v6169_v33, %v5438_v34  ;;  %v2954_v33 = vld [vmem:[#allocation27 + $0x110] sm:$0xff] }
 0x40c   :  { %v2495_v41 = vmul.f32 0.5, %v2494_v32  ;;  %3191 = vmatpush.msrb.mxu2 %v2936_v40  ;;  %v6165_v32 = vld [vmem:[#allocation24 + $0xcc] sm:$0xf]  ;;  %v2950_v34 = vld [vmem:[#allocation27 + $0xf0] sm:$0xff] }
 0x40d   :  { %v2506_v44 = vmul.f32 0.5, %v2505_v38  ;;  %3388 = vmatpush.msrb.mxu1 %v3078_v57  ;;  %v5422_v57 = vld [vmem:[#allocation24 + $0xd8] sm:$0xf0]  ;;  %v2977_v38 = vld [vmem:[#allocation27 + $0x1c8] sm:$0xff] }
 0x40e   :  { %3192 = vmatpush.msrb.mxu2 %v2932_v24  ;;  %2903 = vmatpush.bf16.msra.mxu3 %v5441_v55  ;;  %v2978_v24 = vld [vmem:[#allocation27 + $0x1d0] sm:$0xff] }
 0x40f   :  { %v2507_v46 = vsub.f32 %v2495_v41, %v2506_v44  ;;  %3389 = vmatpush.msrb.mxu1 %v3074_v43  ;;  %v2973_v41 = vld [vmem:[#allocation27 + $0x1a8] sm:$0xff]  ;;  %v5425_v43 = vor.u32 %v6165_v32, %v5422_v57  ;;  %v2930_v55 = vld [vmem:[#allocation27 + $0x50] sm:$0xff] }
 0x410   :  { %3193 = vmatpush.msrb.mxu2 %v2928_v27  ;;  %v2969_v44 = vld [vmem:[#allocation27 + $0x188] sm:$0xff]  ;;  %v2970_v27 = vld [vmem:[#allocation27 + $0x190] sm:$0xff] }
 0x411   :  { %v2508_v48 = vmax.f32 %v2507_v46, 1e-09  ;;  %3390 = vmatpush.msrb.mxu1 %v3070_v45  ;;  %v2965_v45 = vld [vmem:[#allocation27 + $0x168] sm:$0xff]  ;;  %v2926_v32 = vld [vmem:[#allocation27 + $0x30] sm:$0xff] }
 0x412   :  { %3194 = vmatpush.msrb.mxu2 %v2924_v30  ;;  %2904 = vmatpush.bf16.msra.mxu3 %v5425_v43  ;;  %v6161_v46 = vld [vmem:[#allocation24 + $0xac] sm:$0xf]  ;;  %v2962_v30 = vld [vmem:[#allocation27 + $0x150] sm:$0xff]  ;;  %v3172_v43 = vld [vmem:[#allocation27 + $0x7e0] sm:$0xff] }
 0x413   :  { %v2509_v6 = vmin.f32 %v2508_v48, 1.0  ;;  %3391 = vmatpush.msrb.mxu1 %v3066_v47  ;;  %v5406_v47 = vld [vmem:[#allocation24 + $0xb8] sm:$0xf0]  ;;  %v2922_v57 = vld [vmem:[#allocation27 + $0x10] sm:$0xff] }
 0x414   :  { %3195 = vmatpush.msrb.mxu2 %v2920_v36  ;;  %v5409_v48 = vor.u32 %v6161_v46, %v5406_v47  ;;  %v2938_v36 = vld [vmem:[#allocation27 + $0x90] sm:$0xff]  ;;  %v3164_v46 = vld [vmem:[#allocation27 + $0x7a0] sm:$0xff]  ;;  %v2971_v47 = vld [vmem:[#allocation27 + $0x198] sm:$0xff] }
 0x415   :  { %2511 = vst.msk [vmem:[%s8133_s25] sm:$0xff] %vm2510_vm2, %v2509_v6  ;;  %3392 = vmatpush.msrb.mxu1 %v3062_v49  ;;  %v2961_v49 = vld [vmem:[#allocation27 + $0x148] sm:$0xff] }
 0x416   :  { %3260 = vmatpush.msra.mxu2 %v2981_v7  ;;  %2905 = vmatpush.bf16.msra.mxu3 %v5409_v48  ;;  %v2957_v6 = vld [vmem:[#allocation27 + $0x128] sm:$0xff]  ;;  %v2934_v7 = vld [vmem:[#allocation27 + $0x70] sm:$0xff]  ;;  %v3160_v48 = vld [vmem:[#allocation27 + $0x780] sm:$0xff] }
 0x417   :  { %3393 = vmatpush.msrb.mxu1 %v3058_v50  ;;  %v6157_v50 = vld [vmem:[#allocation24 + $0x8c] sm:$0xf] }
 0x418   :  { %3261 = vmatpush.msra.mxu2 %v2977_v38  ;;  %v2983_v38 = vld [vmem:[#allocation27 + $0x1f8] sm:$0xff] }
 0x419   :  { %3394 = vmatpush.msrb.mxu1 %v3054_v51 }
 0x41a   :  { %3262 = vmatpush.msra.mxu2 %v2973_v41  ;;  %v2979_v41 = vld [vmem:[#allocation27 + $0x1d8] sm:$0xff] }
 0x41b   :  { %3395 = vmatpush.msrb.mxu1 %v3050_v52  ;;  %v2953_v52 = vld [vmem:[#allocation27 + $0x108] sm:$0xff] }
 0x41c   :  { %3396 = vmatmul.f32.vlgmr.msrb.gmra.mxu1 %v7995_v12  ;;  %3263 = vmatpush.msra.mxu2 %v2969_v44  ;;  %v3168_v44 = vld [vmem:[#allocation27 + $0x7c0] sm:$0xff] }
 0x41d   :  { %3460 = vmatpush.msra.mxu1 %v3111_v53  ;;  %v2949_v53 = vld [vmem:[#allocation27 + $0xe8] sm:$0xff] }
 0x41e   :  { %3264 = vmatpush.msra.mxu2 %v2965_v45  ;;  %v2975_v45 = vld [vmem:[#allocation27 + $0x1b8] sm:$0xff] }
 0x41f   :  { %3461 = vmatpush.msra.mxu1 %v3107_v54  ;;  %v6153_v54 = vld [vmem:[#allocation24 + $0x6c] sm:$0xf] }
 0x420   :  { %3265 = vmatpush.msra.mxu2 %v2961_v49  ;;  %v5377_v39 = vor.u32 %v6153_v54, %v5374_v56  ;;  %v2967_v49 = vld [vmem:[#allocation27 + $0x178] sm:$0xff]  ;;  %v3144_v54 = vld [vmem:[#allocation27 + $0x700] sm:$0xff] }
 0x421   :  { %3462 = vmatpush.msra.mxu1 %v3103_v59  ;;  %v2941_v59 = vld [vmem:[#allocation27 + $0xa8] sm:$0xff]  ;;  %v2951_v56 = vld [vmem:[#allocation27 + $0xf8] sm:$0xff] }
 0x422   :  { %3266 = vmatpush.msra.mxu2 %v2957_v6  ;;  %v3156_v6 = vld [vmem:[#allocation27 + $0x760] sm:$0xff] }
 0x423   :  { %3463 = vmatpush.msra.mxu1 %v3099_v62  ;;  %v5361_v62 = vor.u32 %v6149_v60, %v5358_v61  ;;  %v2943_v60 = vld [vmem:[#allocation27 + $0xb8] sm:$0xff]  ;;  %v3132_v61 = vld [vmem:[#allocation27 + $0x6a0] sm:$0xff] }
 0x424   :  { %3267 = vmatpush.msra.mxu2 %v2953_v52  ;;  %v3148_v52 = vld [vmem:[#allocation27 + $0x720] sm:$0xff] }
 0x425   :  { %3464 = vmatpush.msra.mxu1 %v3095_v0  ;;  %v2933_v0 = vld [vmem:[#allocation27 + $0x68] sm:$0xff] }
 0x426   :  { %3268 = vmatpush.msra.mxu2 %v2949_v53  ;;  %v2955_v53 = vld [vmem:[#allocation27 + $0x118] sm:$0xff] }
 0x427   :  { %3465 = vmatpush.msra.mxu1 %v3091_v3  ;;  %v5345_v3 = vor.u32 %v6145_v1, %v5342_v2  ;;  %v3124_v1 = vld [vmem:[#allocation27 + $0x660] sm:$0xff]  ;;  %v2931_v2 = vld [vmem:[#allocation27 + $0x58] sm:$0xff] }
 0x428   :  { %3269 = vmatpush.msra.mxu2 %v2945_v58  ;;  %v2947_v58 = vld [vmem:[#allocation27 + $0xd8] sm:$0xff] }
 0x429   :  { %3466 = vmatpush.msra.mxu1 %v3087_v5  ;;  %v2925_v5 = vld [vmem:[#allocation27 + $0x28] sm:$0xff] }
 0x42a   :  { %3270 = vmatpush.msra.mxu2 %v2941_v59  ;;  %v3136_v59 = vld [vmem:[#allocation27 + $0x6c0] sm:$0xff] }
 0x42b   :  { %3467 = vmatpush.msra.mxu1 %v3083_v35  ;;  %v5329_v35 = vor.u32 %v6141_v8, %v5326_v9  ;;  %v2923_v8 = vld [vmem:[#allocation27 + $0x18] sm:$0xff]  ;;  %v3112_v9 = vld [vmem:[#allocation27 + $0x600] sm:$0xff] }
 0x42c   :  { %3271 = vmatpush.msra.mxu2 %v2937_v63  ;;  %v3128_v63 = vld [vmem:[#allocation27 + $0x680] sm:$0xff] }
 0x42d   :  { %3468 = vmatpush.msra.mxu1 %v3079_v13  ;;  %v2517_v13 = vld [vmem:[#allocation19] sm:$0xff] }
 0x42e   :  { %3272 = vmatpush.msra.mxu2 %v2933_v0  ;;  %v2935_v0 = vld [vmem:[#allocation27 + $0x78] sm:$0xff] }
 0x42f   :  { %3469 = vmatpush.msra.mxu1 %v3075_v17 }
 0x430   :  { %3273 = vmatpush.msra.mxu2 %v2929_v4  ;;  %v2927_v4 = vld [vmem:[#allocation27 + $0x38] sm:$0xff] }
 0x431   :  { %3470 = vmatpush.msra.mxu1 %v3071_v20 }
 0x432   :  { %3274 = vmatpush.msra.mxu2 %v2925_v5  ;;  %v3116_v5 = vld [vmem:[#allocation27 + $0x620] sm:$0xff] }
 0x433   :  { %3471 = vmatpush.msra.mxu1 %v3067_v29 }
 0x434   :  { %3275 = vmatpush.msra.mxu2 %v2921_v10  ;;  %v3169_v10 = vld [vmem:[#allocation27 + $0x7c8] sm:$0xff] }
 0x435   :  { %3472 = vmatpush.msra.mxu1 %v3063_v23  ;;  %v2982_v23 = vld [vmem:[#allocation27 + $0x1f0] sm:$0xff] }
 0x437   :  { %3473 = vmatpush.msra.mxu1 %v3059_v26 }
 0x439   :  { %3474 = vmatpush.msra.mxu1 %v3055_v28  ;;  %v2966_v28 = vld [vmem:[#allocation27 + $0x170] sm:$0xff] }
 0x43b   :  { %3475 = vmatpush.msra.mxu1 %v3051_v37  ;;  %v2946_v37 = vld [vmem:[#allocation27 + $0xd0] sm:$0xff] }
 0x43c   :  { %3476 = vmatmul.f32.vlgmr.msra.gmra.mxu1 %v7995_v12  ;;  %v5390_v12 = vld [vmem:[#allocation24 + $0x98] sm:$0xf0] }
 0x43d   :  { %v5393_v51 = vor.u32 %v6157_v50, %v5390_v12  ;;  %v2963_v50 = vld [vmem:[#allocation27 + $0x158] sm:$0xff]  ;;  %v3152_v12 = vld [vmem:[#allocation27 + $0x740] sm:$0xff] }
 0x43f   :  { %2906 = vmatpush.bf16.msra.mxu3 %v5393_v51  ;;  %v2959_v51 = vld [vmem:[#allocation27 + $0x138] sm:$0xff] }
 0x443   :  { %2907 = vmatpush.bf16.msra.mxu3 %v5377_v39  ;;  %v3140_v39 = vld [vmem:[#allocation27 + $0x6e0] sm:$0xff] }
 0x447   :  { %2908 = vmatpush.bf16.msra.mxu3 %v5361_v62  ;;  %v2939_v62 = vld [vmem:[#allocation27 + $0x98] sm:$0xff] }
 0x44b   :  { %2909 = vmatpush.bf16.msra.mxu3 %v5345_v3  ;;  %v3120_v3 = vld [vmem:[#allocation27 + $0x640] sm:$0xff] }
 0x44f   :  { %2910 = vmatpush.bf16.msra.mxu3 %v5329_v35  ;;  %v3173_v35 = vld [vmem:[#allocation27 + $0x7e8] sm:$0xff] }
 0x478   :  { %v2542_v14 = vpop.f32.mrf.mxu2 }
 0x479   :  { %v2543_v15 = vadd.f32 %v2542_v14, %v2517_v13  ;;  %v3165_v13 = vld [vmem:[#allocation27 + $0x7a8] sm:$0xff] }
 0x47a   :  { %v3161_v14 = vld [vmem:[#allocation27 + $0x788] sm:$0xff] }
 0x47b   :  { %v2546_v17 = vmax.f32 %v2543_v15, 0.0  ;;  %v3157_v15 = vld [vmem:[#allocation27 + $0x768] sm:$0xff] }
 0x47d   :  { %v2547_v19 = vpack.c.bf16 %v2546_v17, %v2546_v17  ;;  %v3153_v17 = vld [vmem:[#allocation27 + $0x748] sm:$0xff] }
 0x47f   :  { %2621 = vmatmul.bf16.vlgmr.msrb.gmra.mxu3 %v2547_v19  ;;  %v3149_v19 = vld [vmem:[#allocation27 + $0x728] sm:$0xff] }
 0x480   :  { %v2544_v20 = vpop.f32.mrf.mxu2  ;;  %3240 = vmatpush.msrb.mxu3 %v3172_v43 }
 0x481   :  { %v3145_v20 = vld [vmem:[#allocation27 + $0x708] sm:$0xff] }
 0x482   :  { %3241 = vmatpush.msrb.mxu3 %v3168_v44 }
 0x484   :  { %3242 = vmatpush.msrb.mxu3 %v3164_v46  ;;  %v3174_v46 = vld [vmem:[#allocation27 + $0x7f0] sm:$0xff] }
 0x486   :  { %3243 = vmatpush.msrb.mxu3 %v3160_v48  ;;  %v5313_v48 = vadd.f32 -0.5, %v7972_v18 }
 0x488   :  { %v2873_v42 = vpop.f32.mrf.mxu2  ;;  %3244 = vmatpush.msrb.mxu3 %v3156_v6 }
 0x489   :  { %v8006_v29 = vadd.f32 %v2873_v42, %v2700_v21  ;;  %v3141_v21 = vld [vmem:[#allocation27 + $0x6e8] sm:$0xff] }
 0x48a   :  { %3245 = vmatpush.msrb.mxu3 %v3152_v12  ;;  %v3137_v42 = vld [vmem:[#allocation27 + $0x6c8] sm:$0xff] }
 0x48b   :  { %v8010_v40 = vmul.f32 %v8006_v29, %v8006_v29 }
 0x48c   :  { %3246 = vmatpush.msrb.mxu3 %v3148_v52  ;;  %v3166_v52 = vld [vmem:[#allocation27 + $0x7b0] sm:$0xff] }
 0x48d   :  { %3196 = vmatmul.f32.vlgmr.msrb.gmra.mxu2 %v8010_v40 }
 0x48e   :  { %3340 = vmatpush.msrb.mxu2 %v2982_v23  ;;  %3247 = vmatpush.msrb.mxu3 %v3144_v54  ;;  %v3133_v23 = vld [vmem:[#allocation27 + $0x6a8] sm:$0xff] }
 0x48f   :  { %2911 = vmatmul.bf16.vlgmr.msra.gmra.mxu3 %v7976_v22  ;;  %v2942_v22 = vld [vmem:[#allocation27 + $0xb0] sm:$0xff] }
 0x490   :  { %3341 = vmatpush.msrb.mxu2 %v2978_v24  ;;  %v2875_v26 = vpop.f32.mrf.mxu2  ;;  %3248 = vmatpush.msrb.mxu3 %v3140_v39  ;;  %v3125_v24 = vld [vmem:[#allocation27 + $0x668] sm:$0xff]  ;;  %v3162_v39 = vld [vmem:[#allocation27 + $0x790] sm:$0xff] }
 0x491   :  { %v3117_v26 = vld [vmem:[#allocation27 + $0x628] sm:$0xff] }
 0x492   :  { %3342 = vmatpush.msrb.mxu2 %v2974_v25  ;;  %3249 = vmatpush.msrb.mxu3 %v3136_v59  ;;  %v3121_v25 = vld [vmem:[#allocation27 + $0x648] sm:$0xff] }
 0x494   :  { %3343 = vmatpush.msrb.mxu2 %v2970_v27  ;;  %3250 = vmatpush.msrb.mxu3 %v3132_v61  ;;  %v3113_v27 = vld [vmem:[#allocation27 + $0x608] sm:$0xff] }
 0x495   :  { %3276 = vmatmul.f32.vlgmr.msra.gmra.mxu2 %v8010_v40 }
 0x496   :  { %3344 = vmatpush.msrb.mxu2 %v2966_v28  ;;  %3251 = vmatpush.msrb.mxu3 %v3128_v63  ;;  %v2564_v28 = vld [vmem:[#allocation22] sm:$0xff] }
 0x498   :  { %3345 = vmatpush.msrb.mxu2 %v2962_v30  ;;  %3252 = vmatpush.msrb.mxu3 %v3124_v1  ;;  %v3150_v1 = vld [vmem:[#allocation27 + $0x730] sm:$0xff] }
 0x49a   :  { %3346 = vmatpush.msrb.mxu2 %v2958_v31  ;;  %3253 = vmatpush.msrb.mxu3 %v3120_v3 }
 0x49c   :  { %3347 = vmatpush.msrb.mxu2 %v2954_v33  ;;  %3254 = vmatpush.msrb.mxu3 %v3116_v5  ;;  %v3142_v5 = vld [vmem:[#allocation27 + $0x6f0] sm:$0xff] }
 0x49e   :  { %3348 = vmatpush.msrb.mxu2 %v2950_v34  ;;  %3255 = vmatpush.msrb.mxu3 %v3112_v9  ;;  %v3134_v9 = vld [vmem:[#allocation27 + $0x6b0] sm:$0xff] }
 0x4a0   :  { %3349 = vmatpush.msrb.mxu2 %v2946_v37  ;;  %3320 = vmatpush.msra.mxu3 %v3173_v35 }
 0x4a2   :  { %3350 = vmatpush.msrb.mxu2 %v2942_v22  ;;  %3321 = vmatpush.msra.mxu3 %v3169_v10 }
 0x4a4   :  { %3351 = vmatpush.msrb.mxu2 %v2938_v36  ;;  %3322 = vmatpush.msra.mxu3 %v3165_v13 }
 0x4a6   :  { %3352 = vmatpush.msrb.mxu2 %v2934_v7  ;;  %3323 = vmatpush.msra.mxu3 %v3161_v14  ;;  %v2703_v7 = vld [vmem:[#allocation25 + $0x18] sm:$0xff]  ;;  %v3130_v14 = vld [vmem:[#allocation27 + $0x690] sm:$0xff] }
 0x4a8   :  { %3353 = vmatpush.msrb.mxu2 %v2930_v55  ;;  %3324 = vmatpush.msra.mxu3 %v3157_v15 }
 0x4aa   :  { %3354 = vmatpush.msrb.mxu2 %v2926_v32  ;;  %3325 = vmatpush.msra.mxu3 %v3153_v17 }
 0x4ac   :  { %3355 = vmatpush.msrb.mxu2 %v2922_v57  ;;  %3326 = vmatpush.msra.mxu3 %v3149_v19  ;;  %v3126_v19 = vld [vmem:[#allocation27 + $0x670] sm:$0xff] }
 0x4ad   :  { %3356 = vmatmul.f32.vlgmr.msrb.gmra.mxu2 %v8010_v40 }
 0x4ae   :  { %3420 = vmatpush.msra.mxu2 %v2983_v38  ;;  %3327 = vmatpush.msra.mxu3 %v3145_v20 }
 0x4b0   :  { %3421 = vmatpush.msra.mxu2 %v2979_v41  ;;  %3328 = vmatpush.msra.mxu3 %v3141_v21  ;;  %v3122_v21 = vld [vmem:[#allocation27 + $0x650] sm:$0xff] }
 0x4b2   :  { %3422 = vmatpush.msra.mxu2 %v2975_v45  ;;  %3329 = vmatpush.msra.mxu3 %v3137_v42 }
 0x4b4   :  { %3423 = vmatpush.msra.mxu2 %v2971_v47  ;;  %3330 = vmatpush.msra.mxu3 %v3133_v23  ;;  %v2643_v47 = vadd.f32 0.5, %v7972_v18  ;;  %v3118_v23 = vld [vmem:[#allocation27 + $0x630] sm:$0xff] }
 0x4b6   :  { %3424 = vmatpush.msra.mxu2 %v2967_v49 }
 0x4b8   :  { %3425 = vmatpush.msra.mxu2 %v2963_v50  ;;  %v3170_v50 = vld [vmem:[#allocation27 + $0x7d0] sm:$0xff] }
 0x4ba   :  { %3426 = vmatpush.msra.mxu2 %v2959_v51 }
 0x4bc   :  { %3427 = vmatpush.msra.mxu2 %v2955_v53 }
 0x4be   :  { %3428 = vmatpush.msra.mxu2 %v2951_v56 }
 0x4c0   :  { %3429 = vmatpush.msra.mxu2 %v2947_v58 }
 0x4c2   :  { %3430 = vmatpush.msra.mxu2 %v2943_v60  ;;  %v3158_v60 = vld [vmem:[#allocation27 + $0x770] sm:$0xff] }
 0x4c4   :  { %3431 = vmatpush.msra.mxu2 %v2939_v62  ;;  %v3154_v62 = vld [vmem:[#allocation27 + $0x750] sm:$0xff] }
 0x4c6   :  { %3432 = vmatpush.msra.mxu2 %v2935_v0 }
 0x4c8   :  { %3433 = vmatpush.msra.mxu2 %v2931_v2 }
 0x4ca   :  { %3434 = vmatpush.msra.mxu2 %v2927_v4  ;;  %v3146_v4 = vld [vmem:[#allocation27 + $0x710] sm:$0xff] }
 0x4cc   :  { %3435 = vmatpush.msra.mxu2 %v2923_v8  ;;  %v3138_v8 = vld [vmem:[#allocation27 + $0x6d0] sm:$0xff] }
 0x4cd   :  { %3436 = vmatmul.f32.vlgmr.msra.gmra.mxu2 %v8010_v40  ;;  %v3129_v40 = vld [vmem:[#allocation27 + $0x688] sm:$0xff] }
 0x4ce   :  { %3331 = vmatpush.msra.mxu3 %v3129_v40 }
 0x4d0   :  { %3332 = vmatpush.msra.mxu3 %v3125_v24  ;;  %v3114_v24 = vld [vmem:[#allocation27 + $0x610] sm:$0xff] }
 0x4d2   :  { %3333 = vmatpush.msra.mxu3 %v3121_v25 }
 0x4d4   :  { %3334 = vmatpush.msra.mxu3 %v3117_v26  ;;  %v3175_v26 = vld [vmem:[#allocation27 + $0x7f8] sm:$0xff] }
 0x4d6   :  { %3335 = vmatpush.msra.mxu3 %v3113_v27  ;;  %v3171_v27 = vld [vmem:[#allocation27 + $0x7d8] sm:$0xff] }
 0x502   :  { %v2622_v30 = vpop.f32.mrf.mxu3 }
 0x503   :  { %v2623_v31 = vadd.f32 %v2622_v30, %v2564_v28  ;;  %v5556_v28 = vld [vmem:[#allocation30 + $0xe0] sm:$0xf]  ;;  %v6202_v30 = vld [vmem:[#allocation30 + $0xec] sm:$0xf0] }
 0x505   :  { %v2627_v33 = vmax.f32 %v2623_v31, 0.11  ;;  %v5540_v31 = vld [vmem:[#allocation30 + $0xc0] sm:$0xf] }
 0x507   :  { %6356 = vrcp.f32 %v2627_v33  ;;  %v2639_v55 = vand.u32 2147483648, %v2627_v33  ;;  %v2637_v57 = vand.u32 2147483647, %v2627_v33  ;;  %vm2633_vm4 = vweird.f32 %v2627_v33 }
 0x509   :  { %v2640_v44 = vor.u32 1.1754944e-38, %v2639_v55  ;;  %vm2638_vm6 = vcmp.eq.f32.partialorder %v2637_v57, 8.507059e+37  ;;  %v6230_v57 = vld [vmem:[#allocation30 + $0x1cc] sm:$0xf0] }
 0x50a   :  { %v2624_v34 = vpop.f32.mrf.mxu3 }
 0x50b   :  { %v6198_v34 = vld [vmem:[#allocation30 + $0xcc] sm:$0xf0] }
 0x50d   :  { %v6357_v37 = vpop.eup %6356 }
 0x50e   :  { %v2629_v22 = vmul.f32 %v6357_v37, %v2627_v33  ;;  %vm2634_vm3 = vweird.f32 %v6357_v37  ;;  %v5557_v33 = vor.u32 %v6202_v30, %v5556_v28  ;;  %v5812_v28 = vld [vmem:[#allocation30 + $0x2e0] sm:$0xf]  ;;  %v6266_v30 = vld [vmem:[#allocation30 + $0x2ec] sm:$0xf0] }
 0x50f   :  { %vm2635_vm5 = vmor %vm2633_vm4, %vm2634_vm3 }
 0x510   :  { %v2630_v36 = vsub.f32 1.0, %v2629_v22  ;;  %v5684_v22 = vld [vmem:[#allocation30 + $0x1e0] sm:$0xf]  ;;  %4332 = vmatpush.bf16.msrb.mxu2 %v5557_v33 }
 0x511   :  { %v5588_v33 = vld [vmem:[#allocation30 + $0x120] sm:$0xf] }
 0x512   :  { %v2631_v32 = vmul.f32 %v6357_v37, %v2630_v36  ;;  %v2912_v38 = vpop.f32.mrf.mxu3  ;;  %v6234_v36 = vld [vmem:[#allocation30 + $0x1ec] sm:$0xf0] }
 0x513   :  { %v8017_v41 = vadd.f32 %v2912_v38, %v2703_v7  ;;  %v5541_v7 = vor.u32 %v6198_v34, %v5540_v31  ;;  %v5685_v55 = vor.u32 %v6234_v36, %v5684_v22  ;;  %v3163_v38 = vld [vmem:[#allocation27 + $0x798] sm:$0xff]  ;;  %v5813_v31 = vor.u32 %v6266_v30, %v5812_v28  ;;  %v6210_v34 = vld [vmem:[#allocation30 + $0x12c] sm:$0xf0]  ;;  %v6196_v22 = vld [vmem:[#allocation30 + $0xc4] sm:$0xf]  ;;  %v3217_v30 = vpop.f32.mrf.mxu0 }
 0x514   :  { %v2632_v43 = vadd.f32 %v6357_v37, %v2631_v32  ;;  %v5668_v32 = vld [vmem:[#allocation30 + $0x1c0] sm:$0xf] }
 0x515   :  { %v8021_v45 = vmul.f32 %v8017_v41, %v8017_v41  ;;  %4345 = vmatpush.bf16.msrb.mxu0 %v5685_v55  ;;  %4333 = vmatpush.bf16.msrb.mxu2 %v5541_v7  ;;  %v5796_v7 = vld [vmem:[#allocation30 + $0x2c0] sm:$0xf]  ;;  %v6262_v55 = vld [vmem:[#allocation30 + $0x2cc] sm:$0xf0] }
 0x516   :  { %v2636_v49 = vsel %vm2635_vm5, %v6357_v37, %v2632_v43  ;;  %v3167_v37 = vld [vmem:[#allocation27 + $0x7b8] sm:$0xff]  ;;  %v5524_v43 = vld [vmem:[#allocation30 + $0xa0] sm:$0xf]  ;;  %4358 = vmatpush.bf16.msrb.mxu1 %v5813_v31 }
 0x517   :  { %v2641_v6 = vsel %vm2638_vm6, %v2640_v44, %v2636_v49  ;;  %3256 = vmatmul.f32.vlgmr.msrb.gmra.mxu3 %v8021_v45  ;;  %v6194_v44 = vld [vmem:[#allocation30 + $0xac] sm:$0xf0] }
 0x518   :  { %v2644_v12 = vmul.f32 %v2643_v47, %v2641_v6  ;;  %v2654_v51 = vmul.f32 %v5313_v48, %v2641_v6  ;;  %3400 = vmatpush.msrb.mxu3 %v3174_v46  ;;  %v5669_v46 = vor.u32 %v6230_v57, %v5668_v32  ;;  %v3159_v47 = vld [vmem:[#allocation27 + $0x778] sm:$0xff]  ;;  %v5652_v48 = vld [vmem:[#allocation30 + $0x1a0] sm:$0xf]  ;;  %v6226_v49 = vld [vmem:[#allocation30 + $0x1ac] sm:$0xf0]  ;;  %v5525_v6 = vor.u32 %v6194_v44, %v5524_v43 }
 0x519   :  { %v5797_v32 = vor.u32 %v6262_v55, %v5796_v7  ;;  %v5572_v57 = vld [vmem:[#allocation30 + $0x100] sm:$0xf]  ;;  %v6192_v44 = vld [vmem:[#allocation30 + $0xa4] sm:$0xf]  ;;  %v3237_v55 = vpop.f32.mrf.mxu1 }
 0x51a   :  { %v2645_v53 = vmul.f32 0.044715, %v2644_v12  ;;  %v2655_v54 = vmul.f32 0.044715, %v2654_v51  ;;  %3401 = vmatpush.msrb.mxu3 %v3170_v50  ;;  %v2914_v56 = vpop.f32.mrf.mxu3  ;;  %v3155_v50 = vld [vmem:[#allocation27 + $0x758] sm:$0xff]  ;;  %4346 = vmatpush.bf16.msrb.mxu0 %v5669_v46 }
 0x51b   :  { %v6222_v56 = vld [vmem:[#allocation30 + $0x18c] sm:$0xf0]  ;;  %4334 = vmatpush.bf16.msrb.mxu2 %v5525_v6  ;;  %v5526_v46 = vld [vmem:[#allocation30 + $0xb0] sm:$0xf0]  ;;  %4359 = vmatpush.bf16.msrb.mxu1 %v5797_v32  ;;  %v3177_v32 = vld [vmem:[#allocation28 + $0x8] sm:$0xff] }
 0x51c   :  { %v2646_v58 = vmul.f32 %v2645_v53, %v2644_v12  ;;  %v2656_v59 = vmul.f32 %v2655_v54, %v2654_v51  ;;  %3402 = vmatpush.msrb.mxu3 %v3166_v52  ;;  %v5653_v52 = vor.u32 %v6226_v49, %v5652_v48  ;;  %v3151_v53 = vld [vmem:[#allocation27 + $0x738] sm:$0xff]  ;;  %v5636_v54 = vld [vmem:[#allocation30 + $0x180] sm:$0xf]  ;;  %v5529_v48 = vor.u32 %v6192_v44, %v5526_v46  ;;  %v5686_v49 = vld [vmem:[#allocation30 + $0x1f0] sm:$0xf0] }
 0x51d   :  { %v6238_v44 = vld [vmem:[#allocation30 + $0x20c] sm:$0xf0] }
 0x51e   :  { %v2647_v18 = vmul.f32 %v2646_v58, %v2644_v12  ;;  %v2657_v61 = vmul.f32 %v2656_v59, %v2654_v51  ;;  %3403 = vmatpush.msrb.mxu3 %v3162_v39  ;;  %v3147_v58 = vld [vmem:[#allocation27 + $0x718] sm:$0xff]  ;;  %v5492_v59 = vld [vmem:[#allocation30 + $0x60] sm:$0xf]  ;;  %4347 = vmatpush.bf16.msrb.mxu0 %v5653_v52  ;;  %v6188_v52 = vld [vmem:[#allocation30 + $0x84] sm:$0xf] }
 0x51f   :  { %3336 = vmatmul.f32.vlgmr.msra.gmra.mxu3 %v8021_v45 }
 0x520   :  { %v2648_v63 = vadd.f32 %v2647_v18, %v2644_v12  ;;  %v2658_v0 = vadd.f32 %v2657_v61, %v2654_v51  ;;  %3404 = vmatpush.msrb.mxu3 %v3158_v60  ;;  %v5508_v12 = vld [vmem:[#allocation30 + $0x80] sm:$0xf]  ;;  %v6190_v51 = vld [vmem:[#allocation30 + $0x8c] sm:$0xf0]  ;;  %v5637_v18 = vor.u32 %v6222_v56, %v5636_v54  ;;  %v3143_v61 = vld [vmem:[#allocation27 + $0x6f8] sm:$0xff] }
 0x521   :  { %v5509_v39 = vor.u32 %v6190_v51, %v5508_v12  ;;  %v6186_v60 = vld [vmem:[#allocation30 + $0x6c] sm:$0xf0]  ;;  %v6228_v54 = vld [vmem:[#allocation30 + $0x1c4] sm:$0xf] }
 0x522   :  { %v2649_v2 = vmul.f32 0.7978846, %v2648_v63  ;;  %v2659_v3 = vmul.f32 0.7978846, %v2658_v0  ;;  %3405 = vmatpush.msrb.mxu3 %v3154_v62  ;;  %v5620_v62 = vld [vmem:[#allocation30 + $0x160] sm:$0xf]  ;;  %v5493_v0 = vor.u32 %v6186_v60, %v5492_v59  ;;  %4348 = vmatpush.bf16.msrb.mxu0 %v5637_v18 }
 0x523   :  { %v6218_v63 = vld [vmem:[#allocation30 + $0x16c] sm:$0xf0]  ;;  %4335 = vmatpush.bf16.msrb.mxu2 %v5509_v39  ;;  %v5670_v39 = vld [vmem:[#allocation30 + $0x1d0] sm:$0xf0] }
 0x524   :  { %6358 = vtanh.f32 %v2649_v2  ;;  %3406 = vmatpush.msrb.mxu3 %v3150_v1  ;;  %v3139_v1 = vld [vmem:[#allocation27 + $0x6d8] sm:$0xff]  ;;  %v5476_v2 = vld [vmem:[#allocation30 + $0x40] sm:$0xf]  ;;  %v6258_v12 = vld [vmem:[#allocation30 + $0x2ac] sm:$0xf0]  ;;  %v5673_v60 = vor.u32 %v6228_v54, %v5670_v39 }
 0x525   :  { %6360 = vtanh.f32 %v2659_v3  ;;  %v6182_v3 = vld [vmem:[#allocation30 + $0x4c] sm:$0xf0] }
 0x526   :  { %3407 = vmatpush.msrb.mxu3 %v3146_v4  ;;  %v5621_v4 = vor.u32 %v6218_v63, %v5620_v62  ;;  %v6254_v59 = vld [vmem:[#allocation30 + $0x28c] sm:$0xf0]  ;;  %v5494_v62 = vld [vmem:[#allocation30 + $0x70] sm:$0xf0]  ;;  %v6224_v63 = vld [vmem:[#allocation30 + $0x1a4] sm:$0xf] }
 0x527   :  { %4336 = vmatpush.bf16.msrb.mxu2 %v5493_v0  ;;  %v6298_v39 = vld [vmem:[#allocation30 + $0x3ec] sm:$0xf0] }
 0x528   :  { %3408 = vmatpush.msrb.mxu3 %v3142_v5  ;;  %v3135_v5 = vld [vmem:[#allocation27 + $0x6b8] sm:$0xff]  ;;  %4349 = vmatpush.bf16.msrb.mxu0 %v5621_v4 }
 0x52a   :  { %v6359_v35 = vpop.eup %6358  ;;  %3409 = vmatpush.msrb.mxu3 %v3138_v8  ;;  %v5477_v8 = vor.u32 %v6182_v3, %v5476_v2  ;;  %v5748_v2 = vld [vmem:[#allocation30 + $0x260] sm:$0xf]  ;;  %v6250_v3 = vld [vmem:[#allocation30 + $0x26c] sm:$0xf0] }
 0x52b   :  { %v6361_v10 = vpop.eup %6360  ;;  %v2651_v13 = vadd.f32 1.0, %v6359_v35  ;;  %v5460_v35 = vld [vmem:[#allocation30 + $0x20] sm:$0xf] }
 0x52c   :  { %v2661_v15 = vadd.f32 1.0, %v6361_v10  ;;  %3410 = vmatpush.msrb.mxu3 %v3134_v9  ;;  %v3131_v9 = vld [vmem:[#allocation27 + $0x698] sm:$0xff]  ;;  %v6178_v10 = vld [vmem:[#allocation30 + $0x2c] sm:$0xf0]  ;;  %4337 = vmatpush.bf16.msrb.mxu2 %v5477_v8  ;;  %v5478_v8 = vld [vmem:[#allocation30 + $0x50] sm:$0xf0] }
 0x52d   :  { %v2652_v17 = vmul.f32 0.5, %v2651_v13  ;;  %v3127_v13 = vld [vmem:[#allocation27 + $0x678] sm:$0xff] }
 0x52e   :  { %v2662_v20 = vmul.f32 0.5, %v2661_v15  ;;  %3411 = vmatpush.msrb.mxu3 %v3130_v14  ;;  %v5461_v14 = vor.u32 %v6178_v10, %v5460_v35  ;;  %v3123_v15 = vld [vmem:[#allocation27 + $0x658] sm:$0xff]  ;;  %v6220_v35 = vld [vmem:[#allocation30 + $0x184] sm:$0xf]  ;;  %v5638_v10 = vld [vmem:[#allocation30 + $0x190] sm:$0xf0] }
 0x530   :  { %v2663_v42 = vsub.f32 %v2652_v17, %v2662_v20  ;;  %3412 = vmatpush.msrb.mxu3 %v3126_v19  ;;  %v3119_v17 = vld [vmem:[#allocation27 + $0x638] sm:$0xff]  ;;  %4338 = vmatpush.bf16.msrb.mxu2 %v5461_v14  ;;  %v5444_v20 = vld [vmem:[#allocation30] sm:$0xf] }
 0x531   :  { %v3115_v19 = vld [vmem:[#allocation27 + $0x618] sm:$0xff]  ;;  %v5732_v14 = vld [vmem:[#allocation30 + $0x240] sm:$0xf] }
 0x532   :  { %v2664_v40 = vmax.f32 %v2663_v42, 1e-09  ;;  %3413 = vmatpush.msrb.mxu3 %v3122_v21  ;;  %v6174_v21 = vld [vmem:[#allocation30 + $0xc] sm:$0xf0]  ;;  %v5604_v42 = vld [vmem:[#allocation30 + $0x140] sm:$0xf] }
 0x534   :  { %v2665_v25 = vmin.f32 %v2664_v40, 1.0  ;;  %3414 = vmatpush.msrb.mxu3 %v3118_v23  ;;  %v5445_v23 = vor.u32 %v6174_v21, %v5444_v20  ;;  %v6214_v40 = vld [vmem:[#allocation30 + $0x14c] sm:$0xf0]  ;;  %v5641_v20 = vor.u32 %v6220_v35, %v5638_v10  ;;  %v6176_v21 = vld [vmem:[#allocation30 + $0x24] sm:$0xf] }
 0x535   :  { %v6256_v35 = vld [vmem:[#allocation30 + $0x2a4] sm:$0xf] }
 0x536   :  { %2666 = vst [vmem:[%s8132_s24] sm:$0xff] %v2665_v25  ;;  %3415 = vmatpush.msrb.mxu3 %v3114_v24  ;;  %v6200_v24 = vld [vmem:[#allocation30 + $0xe4] sm:$0xf]  ;;  %v5558_v25 = vld [vmem:[#allocation30 + $0xf0] sm:$0xf0]  ;;  %4339 = vmatpush.bf16.msrb.mxu2 %v5445_v23 }
 0x537   :  { %3416 = vmatmul.f32.vlgmr.msrb.gmra.mxu3 %v8021_v45 }
 0x538   :  { %3480 = vmatpush.msra.mxu3 %v3175_v26  ;;  %v5605_v26 = vor.u32 %v6214_v40, %v5604_v42  ;;  %v5462_v42 = vld [vmem:[#allocation30 + $0x30] sm:$0xf0]  ;;  %v6216_v40 = vld [vmem:[#allocation30 + $0x164] sm:$0xf] }
 0x539   :  { %v5465_v28 = vor.u32 %v6176_v21, %v5462_v42 }
 0x53a   :  { %3481 = vmatpush.msra.mxu3 %v3171_v27  ;;  %v5561_v27 = vor.u32 %v6200_v24, %v5558_v25  ;;  %4350 = vmatpush.bf16.msrb.mxu0 %v5605_v26  ;;  %v5622_v24 = vld [vmem:[#allocation30 + $0x170] sm:$0xf0]  ;;  %v5716_v25 = vld [vmem:[#allocation30 + $0x220] sm:$0xf]  ;;  %v6242_v26 = vld [vmem:[#allocation30 + $0x22c] sm:$0xf0] }
 0x53b   :  { %v5625_v31 = vor.u32 %v6216_v40, %v5622_v24  ;;  %v5766_v40 = vld [vmem:[#allocation30 + $0x290] sm:$0xf0] }
 0x53c   :  { %3482 = vmatpush.msra.mxu3 %v3167_v37  ;;  %4384 = vmatpush.bf16.msra.mxu2 %v5561_v27  ;;  %v5589_v37 = vor.u32 %v6210_v34, %v5588_v33  ;;  %v6172_v33 = vld [vmem:[#allocation30 + $0x4] sm:$0xf]  ;;  %v5446_v34 = vld [vmem:[#allocation30 + $0x10] sm:$0xf0] }
 0x53d   :  { %v5449_v7 = vor.u32 %v6172_v33, %v5446_v34  ;;  %v5750_v33 = vld [vmem:[#allocation30 + $0x270] sm:$0xf0]  ;;  %v5876_v34 = vld [vmem:[#allocation30 + $0x360] sm:$0xf] }
 0x53e   :  { %3483 = vmatpush.msra.mxu3 %v3163_v38  ;;  %4351 = vmatpush.bf16.msrb.mxu0 %v5589_v37  ;;  %v6206_v38 = vld [vmem:[#allocation30 + $0x10c] sm:$0xf0]  ;;  %v5717_v37 = vor.u32 %v6242_v26, %v5716_v25  ;;  %v5892_v26 = vld [vmem:[#allocation30 + $0x380] sm:$0xf] }
 0x53f   :  { %v5573_v43 = vor.u32 %v6206_v38, %v5572_v57 }
 0x540   :  { %3484 = vmatpush.msra.mxu3 %v3159_v47  ;;  %v6232_v47 = vld [vmem:[#allocation30 + $0x1e4] sm:$0xf] }
 0x541   :  { %v5689_v6 = vor.u32 %v6232_v47, %v5686_v49  ;;  %v6264_v49 = vld [vmem:[#allocation30 + $0x2e4] sm:$0xf] }
 0x542   :  { %3485 = vmatpush.msra.mxu3 %v3155_v50  ;;  %v5780_v50 = vld [vmem:[#allocation30 + $0x2a0] sm:$0xf]  ;;  %4352 = vmatpush.bf16.msrb.mxu0 %v5573_v43 }
 0x543   :  { %v5781_v51 = vor.u32 %v6258_v12, %v5780_v50  ;;  %v5700_v43 = vld [vmem:[#allocation30 + $0x200] sm:$0xf] }
 0x544   :  { %3486 = vmatpush.msra.mxu3 %v3151_v53  ;;  %v5510_v53 = vld [vmem:[#allocation30 + $0x90] sm:$0xf0] }
 0x545   :  { %4360 = vmatpush.bf16.msrb.mxu1 %v5781_v51  ;;  %v5513_v56 = vor.u32 %v6188_v52, %v5510_v53  ;;  %v6208_v51 = vld [vmem:[#allocation30 + $0x124] sm:$0xf]  ;;  %v5590_v52 = vld [vmem:[#allocation30 + $0x130] sm:$0xf0] }
 0x546   :  { %3487 = vmatpush.msra.mxu3 %v3147_v58  ;;  %4397 = vmatpush.bf16.msra.mxu0 %v5689_v6  ;;  %v5764_v58 = vld [vmem:[#allocation30 + $0x280] sm:$0xf]  ;;  %v5814_v6 = vld [vmem:[#allocation30 + $0x2f0] sm:$0xf0]  ;;  %v5593_v54 = vor.u32 %v6208_v51, %v5590_v52  ;;  %v5564_v52 = vld [vmem:[#allocation30 + $0xe8] sm:$0xf] }
 0x547   :  { %v5765_v18 = vor.u32 %v6254_v59, %v5764_v58  ;;  %v5817_v12 = vor.u32 %v6264_v49, %v5814_v6  ;;  %v3297_v58 = vpop.f32.mrf.mxu0  ;;  %v6278_v49 = vld [vmem:[#allocation30 + $0x34c] sm:$0xf0] }
 0x548   :  { %3488 = vmatpush.msra.mxu3 %v3143_v61  ;;  %v6184_v61 = vld [vmem:[#allocation30 + $0x64] sm:$0xf] }
 0x549   :  { %v5497_v0 = vor.u32 %v6184_v61, %v5494_v62  ;;  %4361 = vmatpush.bf16.msrb.mxu1 %v5765_v18  ;;  %v6260_v61 = vld [vmem:[#allocation30 + $0x2c4] sm:$0xf]  ;;  %v5798_v62 = vld [vmem:[#allocation30 + $0x2d0] sm:$0xf0] }
 0x54a   :  { %3489 = vmatpush.msra.mxu3 %v3139_v1  ;;  %v5654_v1 = vld [vmem:[#allocation30 + $0x1b0] sm:$0xf0]  ;;  %4398 = vmatpush.bf16.msra.mxu0 %v5673_v60 }
 0x54b   :  { %v5657_v4 = vor.u32 %v6224_v63, %v5654_v1  ;;  %v5801_v63 = vor.u32 %v6260_v61, %v5798_v62  ;;  %v5574_v1 = vld [vmem:[#allocation30 + $0x110] sm:$0xf0]  ;;  %v6274_v62 = vld [vmem:[#allocation30 + $0x32c] sm:$0xf0] }
 0x54c   :  { %3490 = vmatpush.msra.mxu3 %v3135_v5  ;;  %v6180_v5 = vld [vmem:[#allocation30 + $0x44] sm:$0xf] }
 0x54e   :  { %3491 = vmatpush.msra.mxu3 %v3131_v9  ;;  %v5749_v9 = vor.u32 %v6250_v3, %v5748_v2  ;;  %4399 = vmatpush.bf16.msra.mxu0 %v5657_v4  ;;  %v5924_v2 = vld [vmem:[#allocation30 + $0x3c0] sm:$0xf]  ;;  %v3317_v3 = vpop.f32.mrf.mxu1 }
 0x550   :  { %3492 = vmatpush.msra.mxu3 %v3127_v13  ;;  %v3197_v13 = vpop.f32.mrf.mxu2  ;;  %4362 = vmatpush.bf16.msrb.mxu1 %v5749_v9 }
 0x552   :  { %3493 = vmatpush.msra.mxu3 %v3123_v15  ;;  %v6246_v15 = vld [vmem:[#allocation30 + $0x24c] sm:$0xf0]  ;;  %4400 = vmatpush.bf16.msra.mxu0 %v5641_v20 }
 0x553   :  { %v5733_v23 = vor.u32 %v6246_v15, %v5732_v14  ;;  %v5908_v14 = vld [vmem:[#allocation30 + $0x3a0] sm:$0xf]  ;;  %v6290_v15 = vld [vmem:[#allocation30 + $0x3ac] sm:$0xf0] }
 0x554   :  { %3494 = vmatpush.msra.mxu3 %v3119_v17  ;;  %v5481_v17 = vor.u32 %v6180_v5, %v5478_v8  ;;  %v6294_v5 = vld [vmem:[#allocation30 + $0x3cc] sm:$0xf0]  ;;  %v5909_v20 = vor.u32 %v6290_v15, %v5908_v14 }
 0x555   :  { %4363 = vmatpush.bf16.msrb.mxu1 %v5733_v23  ;;  %v5925_v9 = vor.u32 %v6294_v5, %v5924_v2  ;;  %v6252_v23 = vld [vmem:[#allocation30 + $0x284] sm:$0xf] }
 0x556   :  { %3495 = vmatpush.msra.mxu3 %v3115_v19  ;;  %v3176_v19 = vld [vmem:[#allocation28] sm:$0xff]  ;;  %4401 = vmatpush.bf16.msra.mxu0 %v5625_v31  ;;  %v5769_v25 = vor.u32 %v6252_v23, %v5766_v40  ;;  %v3397_v15 = vpop.f32.mrf.mxu1  ;;  %v5942_v40 = vld [vmem:[#allocation30 + $0x3f0] sm:$0xf0] }
 0x557   :  { %3496 = vmatmul.f32.vlgmr.msra.gmra.mxu3 %v8021_v45  ;;  %v5542_v45 = vld [vmem:[#allocation30 + $0xd0] sm:$0xf0]  ;;  %v3198_v27 = vadd.f32 %v3197_v13, %v3176_v19  ;;  %v6248_v31 = vld [vmem:[#allocation30 + $0x264] sm:$0xf] }
 0x558   :  { %v5545_v36 = vor.u32 %v6196_v22, %v5542_v45  ;;  %v6212_v22 = vld [vmem:[#allocation30 + $0x144] sm:$0xf]  ;;  %v5606_v45 = vld [vmem:[#allocation30 + $0x150] sm:$0xf0]  ;;  %v3277_v57 = vpop.f32.mrf.mxu2 }
 0x559   :  { %v5609_v38 = vor.u32 %v6212_v22, %v5606_v45  ;;  %4364 = vmatpush.bf16.msrb.mxu1 %v5717_v37  ;;  %v3278_v46 = vadd.f32 %v3277_v57, %v3177_v32  ;;  %v5782_v13 = vld [vmem:[#allocation30 + $0x2b0] sm:$0xf0]  ;;  %v5753_v22 = vor.u32 %v6248_v31, %v5750_v33  ;;  %v6282_v45 = vld [vmem:[#allocation30 + $0x36c] sm:$0xf0]  ;;  %v6296_v23 = vld [vmem:[#allocation30 + $0x3e4] sm:$0xf] }
 0x55a   :  { %4385 = vmatpush.bf16.msra.mxu2 %v5545_v36  ;;  %v3218_v36 = vadd.f32 %v3217_v30, %v3198_v27  ;;  %v5785_v19 = vor.u32 %v6256_v35, %v5782_v13  ;;  %v6286_v27 = vld [vmem:[#allocation30 + $0x38c] sm:$0xf0]  ;;  %v5692_v33 = vld [vmem:[#allocation30 + $0x1e8] sm:$0xf] }
 0x55b   :  { %4402 = vmatpush.bf16.msra.mxu0 %v5609_v38  ;;  %v3298_v60 = vadd.f32 %v3297_v58, %v3278_v46  ;;  %v5893_v30 = vor.u32 %v6286_v27, %v5892_v26  ;;  %v6244_v38 = vld [vmem:[#allocation30 + $0x244] sm:$0xf]  ;;  %v5532_v26 = vld [vmem:[#allocation30 + $0xa8] sm:$0xf]  ;;  %v6195_v27 = vld [vmem:[#allocation30 + $0xb4] sm:$0xf0] }
 0x55c   :  { %v3238_v47 = vadd.f32 %v3237_v55, %v3218_v36  ;;  %v5877_v36 = vor.u32 %v6282_v45, %v5876_v34  ;;  %v6235_v34 = vld [vmem:[#allocation30 + $0x1f4] sm:$0xf0] }
 0x55d   :  { %v3318_v8 = vadd.f32 %v3317_v3, %v3298_v60 }
 0x55e   :  { %4386 = vmatpush.bf16.msra.mxu2 %v5529_v48  ;;  %v5701_v48 = vor.u32 %v6238_v44, %v5700_v43  ;;  %v5734_v43 = vld [vmem:[#allocation30 + $0x250] sm:$0xf0]  ;;  %v5860_v44 = vld [vmem:[#allocation30 + $0x340] sm:$0xf] }
 0x55f   :  { %4403 = vmatpush.bf16.msra.mxu0 %v5593_v54  ;;  %v6240_v54 = vld [vmem:[#allocation30 + $0x224] sm:$0xf] }
 0x560   :  { %4365 = vmatpush.bf16.msrb.mxu1 %v5701_v48  ;;  %v3357_v55 = vpop.f32.mrf.mxu2  ;;  %v5737_v48 = vor.u32 %v6244_v38, %v5734_v43  ;;  %v5516_v38 = vld [vmem:[#allocation30 + $0x88] sm:$0xf] }
 0x562   :  { %4387 = vmatpush.bf16.msra.mxu2 %v5513_v56  ;;  %v5940_v56 = vld [vmem:[#allocation30 + $0x3e0] sm:$0xf] }
 0x563   :  { %v5941_v59 = vor.u32 %v6298_v39, %v5940_v56  ;;  %v5718_v56 = vld [vmem:[#allocation30 + $0x230] sm:$0xf0]  ;;  %v5844_v39 = vld [vmem:[#allocation30 + $0x320] sm:$0xf] }
 0x564   :  { %4410 = vmatpush.bf16.msra.mxu1 %v5817_v12  ;;  %v5721_v61 = vor.u32 %v6240_v54, %v5718_v56  ;;  %v6284_v54 = vld [vmem:[#allocation30 + $0x384] sm:$0xf]  ;;  %v5894_v56 = vld [vmem:[#allocation30 + $0x390] sm:$0xf0] }
 0x565   :  { %4371 = vmatpush.bf16.msrb.mxu3 %v5941_v59  ;;  %v6203_v59 = vld [vmem:[#allocation30 + $0xf4] sm:$0xf0] }
 0x566   :  { %4388 = vmatpush.bf16.msra.mxu2 %v5497_v0  ;;  %v6204_v0 = vld [vmem:[#allocation30 + $0x104] sm:$0xf]  ;;  %v5565_v5 = vor.u32 %v6203_v59, %v5564_v52  ;;  %v5660_v52 = vld [vmem:[#allocation30 + $0x1a8] sm:$0xf] }
 0x567   :  { %v5577_v4 = vor.u32 %v6204_v0, %v5574_v1  ;;  %v5845_v1 = vor.u32 %v6274_v62, %v5844_v39  ;;  %v6183_v62 = vld [vmem:[#allocation30 + $0x54] sm:$0xf0] }
 0x568   :  { %4411 = vmatpush.bf16.msra.mxu1 %v5801_v63  ;;  %v3377_v63 = vpop.f32.mrf.mxu0 }
 0x569   :  { %4404 = vmatpush.bf16.msra.mxu0 %v5577_v4  ;;  %4372 = vmatpush.bf16.msrb.mxu3 %v5925_v9  ;;  %v5702_v9 = vld [vmem:[#allocation30 + $0x210] sm:$0xf0] }
 0x56a   :  { %4389 = vmatpush.bf16.msra.mxu2 %v5481_v17 }
 0x56c   :  { %4412 = vmatpush.bf16.msra.mxu1 %v5785_v19  ;;  %v6270_v19 = vld [vmem:[#allocation30 + $0x30c] sm:$0xf0] }
 0x56d   :  { %4373 = vmatpush.bf16.msrb.mxu3 %v5909_v20 }
 0x56e   :  { %4390 = vmatpush.bf16.msra.mxu2 %v5465_v28 }
 0x570   :  { %4413 = vmatpush.bf16.msra.mxu1 %v5769_v25 }
 0x571   :  { %4374 = vmatpush.bf16.msrb.mxu3 %v5893_v30 }
 0x572   :  { %4391 = vmatpush.bf16.msra.mxu2 %v5449_v7  ;;  %v3178_v7 = vld [vmem:[#allocation28 + $0x10] sm:$0xff] }
 0x573   :  { %v3358_v6 = vadd.f32 %v3357_v55, %v3178_v7  ;;  %v5926_v7 = vld [vmem:[#allocation30 + $0x3d0] sm:$0xf0] }
 0x574   :  { %4414 = vmatpush.bf16.msra.mxu1 %v5753_v22 }
 0x575   :  { %4375 = vmatpush.bf16.msrb.mxu3 %v5877_v36  ;;  %v3378_v2 = vadd.f32 %v3377_v63, %v3358_v6  ;;  %v6292_v36 = vld [vmem:[#allocation30 + $0x3c4] sm:$0xf]  ;;  %v5644_v63 = vld [vmem:[#allocation30 + $0x188] sm:$0xf] }
 0x576   :  { %v5929_v43 = vor.u32 %v6292_v36, %v5926_v7  ;;  %v5846_v36 = vld [vmem:[#allocation30 + $0x330] sm:$0xf0] }
 0x577   :  { %v3398_v20 = vadd.f32 %v3397_v15, %v3378_v2 }
 0x578   :  { %4415 = vmatpush.bf16.msra.mxu1 %v5737_v48  ;;  %v5910_v48 = vld [vmem:[#allocation30 + $0x3b0] sm:$0xf0] }
 0x57c   :  { %4416 = vmatpush.bf16.msra.mxu1 %v5721_v61  ;;  %v5897_v61 = vor.u32 %v6284_v54, %v5894_v56 }
 0x59a   :  { %v3257_v50 = vpop.f32.mrf.mxu3 }
 0x59b   :  { %v3258_v53 = vadd.f32 %v3257_v50, %v3238_v47  ;;  %v5861_v50 = vor.u32 %v6278_v49, %v5860_v44 }
 0x59d   :  { %v8032_v18 = vmax.f32 %v3258_v53, 1e-06  ;;  %4376 = vmatpush.bf16.msrb.mxu3 %v5861_v50  ;;  %v5500_v50 = vld [vmem:[#allocation30 + $0x68] sm:$0xf] }
 0x59f   :  { %6362 = vrsqrt.f32 %v8032_v18  ;;  %vm3511_vm7 = vcmp.eq.f32.partialorder %v8032_v18, inf  ;;  %v3514_v51 = vand.u32 2147483648, %v8032_v18  ;;  %vm3513_vm8 = vcmp.eq.f32.partialorder %v8032_v18, 0.0 }
 0x5a1   :  { %4377 = vmatpush.bf16.msrb.mxu3 %v5845_v1 }
 0x5a2   :  { %v3337_v10 = vpop.f32.mrf.mxu3 }
 0x5a3   :  { %v3338_v17 = vadd.f32 %v3337_v10, %v3318_v8  ;;  %v6236_v8 = vld [vmem:[#allocation30 + $0x204] sm:$0xf]  ;;  %v5548_v10 = vld [vmem:[#allocation30 + $0xc8] sm:$0xf] }
 0x5a4   :  { %v5705_v14 = vor.u32 %v6236_v8, %v5702_v9  ;;  %v5468_v9 = vld [vmem:[#allocation30 + $0x28] sm:$0xf] }
 0x5a5   :  { %v6363_v21 = vpop.eup %6362  ;;  %v8035_v42 = vmax.f32 %v3338_v17, 1e-06  ;;  %v5828_v17 = vld [vmem:[#allocation30 + $0x300] sm:$0xf] }
 0x5a6   :  { %v3505_v24 = vmul.f32 %v6363_v21, %v8032_v18  ;;  %4417 = vmatpush.bf16.msra.mxu1 %v5705_v14  ;;  %v6219_v14 = vld [vmem:[#allocation30 + $0x174] sm:$0xf0] }
 0x5a7   :  { %6364 = vrsqrt.f32 %v8035_v42  ;;  %vm3523_vm9 = vcmp.eq.f32.partialorder %v8035_v42, inf  ;;  %v3526_v25 = vand.u32 2147483648, %v8035_v42  ;;  %vm3525_vm10 = vcmp.eq.f32.partialorder %v8035_v42, 0.0 }
 0x5a8   :  { %v3506_v28 = vmul.f32 %v6363_v21, %v3505_v24 }
 0x5aa   :  { %v3507_v37 = vmul.f32 0.5, %v3506_v28  ;;  %v5945_v28 = vor.u32 %v6296_v23, %v5942_v40 }
 0x5ac   :  { %v3508_v32 = vsub.f32 1.5, %v3507_v37 }
 0x5ad   :  { %v6365_v57 = vpop.eup %6364 }
 0x5ae   :  { %v3509_v46 = vmul.f32 %v6363_v21, %v3508_v32  ;;  %v3517_v47 = vmul.f32 %v6365_v57, %v8035_v42  ;;  %v5829_v21 = vor.u32 %v6270_v19, %v5828_v17  ;;  %v5533_v32 = vor.u32 %v6195_v27, %v5532_v26  ;;  %v6276_v19 = vld [vmem:[#allocation30 + $0x344] sm:$0xf]  ;;  %v5612_v27 = vld [vmem:[#allocation30 + $0x148] sm:$0xf] }
 0x5b0   :  { %v3510_v12 = vmul.f32 %v3509_v46, %v8032_v18  ;;  %v3518_v53 = vmul.f32 %v6365_v57, %v3517_v47  ;;  %4378 = vmatpush.bf16.msrb.mxu3 %v5829_v21  ;;  %v5676_v46 = vld [vmem:[#allocation30 + $0x1c8] sm:$0xf]  ;;  %v6231_v47 = vld [vmem:[#allocation30 + $0x1d4] sm:$0xf0]  ;;  %v3437_v21 = vpop.f32.mrf.mxu2 }
 0x5b1   :  { %v5677_v6 = vor.u32 %v6231_v47, %v5676_v46  ;;  %v5596_v47 = vld [vmem:[#allocation30 + $0x128] sm:$0xf] }
 0x5b2   :  { %v3512_v58 = vsel %vm3511_vm7, %v8032_v18, %v3510_v12  ;;  %v3519_v60 = vmul.f32 0.5, %v3518_v53  ;;  %v6199_v18 = vld [vmem:[#allocation30 + $0xd4] sm:$0xf0] }
 0x5b3   :  { %v3515_v0 = vsel %vm3513_vm8, %v3514_v51, %v3512_v58  ;;  %v5549_v24 = vor.u32 %v6199_v18, %v5548_v10  ;;  %v6187_v51 = vld [vmem:[#allocation30 + $0x74] sm:$0xf0] }
 0x5b4   :  { %v3552_v3 = vmul.f32 %v3515_v0, %v8006_v29  ;;  %v3520_v4 = vsub.f32 1.5, %v3519_v60  ;;  %4423 = vmatpush.bf16.msra.mxu3 %v5945_v28  ;;  %v6227_v53 = vld [vmem:[#allocation30 + $0x1b4] sm:$0xf0]  ;;  %v5501_v58 = vor.u32 %v6187_v51, %v5500_v50  ;;  %v5484_v60 = vld [vmem:[#allocation30 + $0x48] sm:$0xf]  ;;  %v3457_v50 = vpop.f32.mrf.mxu0 }
 0x5b5   :  { %v5661_v59 = vor.u32 %v6227_v53, %v5660_v52  ;;  %v6223_v0 = vld [vmem:[#allocation30 + $0x194] sm:$0xf0]  ;;  %v6268_v51 = vld [vmem:[#allocation30 + $0x304] sm:$0xf]  ;;  %v5830_v52 = vld [vmem:[#allocation30 + $0x310] sm:$0xf0] }
 0x5b6   :  { %v8046_v35 = vpack.c.bf16 %v3552_v3, %v3552_v3  ;;  %v3521_v13 = vmul.f32 %v6365_v57, %v3520_v4  ;;  %v5693_v57 = vor.u32 %v6235_v34, %v5692_v33  ;;  %v6280_v3 = vld [vmem:[#allocation30 + $0x364] sm:$0xf]  ;;  %v5878_v4 = vld [vmem:[#allocation30 + $0x370] sm:$0xf0]  ;;  %v5645_v8 = vor.u32 %v6223_v0, %v5644_v63  ;;  %v6179_v10 = vld [vmem:[#allocation30 + $0x34] sm:$0xf0] }
 0x5b7   :  { %v5881_v18 = vor.u32 %v6280_v3, %v5878_v4  ;;  %v5469_v23 = vor.u32 %v6179_v10, %v5468_v9  ;;  %v6215_v28 = vld [vmem:[#allocation30 + $0x154] sm:$0xf0]  ;;  %v5566_v33 = vld [vmem:[#allocation30 + $0xf8] sm:$0xf0]  ;;  %v5833_v63 = vor.u32 %v6268_v51, %v5830_v52  ;;  %v5724_v52 = vld [vmem:[#allocation30 + $0x228] sm:$0xf] }
 0x5b8   :  { %4340 = vmatmul.bf16.vlgmr.msrb.gmra.mxu2 %v8046_v35  ;;  %v3522_v29 = vmul.f32 %v3521_v13, %v8035_v42  ;;  %4424 = vmatpush.bf16.msra.mxu3 %v5929_v43  ;;  %v5628_v13 = vld [vmem:[#allocation30 + $0x168] sm:$0xf]  ;;  %v5613_v7 = vor.u32 %v6215_v28, %v5612_v27  ;;  %v5534_v0 = vld [vmem:[#allocation30 + $0xb8] sm:$0xf0]  ;;  %v6225_v28 = vld [vmem:[#allocation30 + $0x1ac] sm:$0xf] }
 0x5b9   :  { %4436 = vmatpush.bf16.msrb.mxu2 %v5565_v5  ;;  %v5485_v5 = vor.u32 %v6183_v62, %v5484_v60  ;;  %v5629_v40 = vor.u32 %v6219_v14, %v5628_v13  ;;  %v5580_v60 = vld [vmem:[#allocation30 + $0x108] sm:$0xf]  ;;  %v6193_v62 = vld [vmem:[#allocation30 + $0xac] sm:$0xf]  ;;  %v6259_v13 = vld [vmem:[#allocation30 + $0x2b4] sm:$0xf0] }
 0x5ba   :  { %v3417_v30 = vpop.f32.mrf.mxu3  ;;  %v3524_v31 = vsel %vm3523_vm9, %v8035_v42, %v3522_v29  ;;  %v6191_v42 = vld [vmem:[#allocation30 + $0x94] sm:$0xf0]  ;;  %v5537_v9 = vor.u32 %v6193_v62, %v5534_v0  ;;  %v6189_v14 = vld [vmem:[#allocation30 + $0x8c] sm:$0xf]  ;;  %v5502_v27 = vld [vmem:[#allocation30 + $0x78] sm:$0xf0] }
 0x5bb   :  { %v3418_v37 = vadd.f32 %v3417_v30, %v3398_v20  ;;  %v3527_v22 = vsel %vm3525_vm10, %v3526_v25, %v3524_v31  ;;  %v5517_v49 = vor.u32 %v6191_v42, %v5516_v38  ;;  %v5862_v20 = vld [vmem:[#allocation30 + $0x350] sm:$0xf0]  ;;  %v3179_v29 = vld [vmem:[#allocation28 + $0x18] sm:$0xff]  ;;  %v6201_v31 = vld [vmem:[#allocation30 + $0xec] sm:$0xf] }
 0x5bc   :  { %v3553_v45 = vmul.f32 %v3527_v22, %v7979_v11  ;;  %v6288_v11 = vld [vmem:[#allocation30 + $0x3a4] sm:$0xf]  ;;  %v6175_v25 = vld [vmem:[#allocation30 + $0x14] sm:$0xf0]  ;;  %v5865_v26 = vor.u32 %v6276_v19, %v5862_v20  ;;  %v3438_v34 = vadd.f32 %v3437_v21, %v3179_v29  ;;  %v5569_v42 = vor.u32 %v6201_v31, %v5566_v33  ;;  %v6229_v19 = vld [vmem:[#allocation30 + $0x1cc] sm:$0xf] }
 0x5bd   :  { %v8055_v55 = vmax.f32 %v3418_v37, 1e-06  ;;  %4437 = vmatpush.bf16.msrb.mxu2 %v5549_v24  ;;  %v5913_v12 = vor.u32 %v6288_v11, %v5910_v48  ;;  %v5452_v24 = vld [vmem:[#allocation30 + $0x8] sm:$0xf]  ;;  %v6267_v38 = vld [vmem:[#allocation30 + $0x2f4] sm:$0xf0] }
 0x5be   :  { %v8057_v44 = vpack.c.bf16 %v3553_v45, %v3553_v45  ;;  %v5453_v37 = vor.u32 %v6175_v25, %v5452_v24  ;;  %v6272_v45 = vld [vmem:[#allocation30 + $0x324] sm:$0xf]  ;;  %v6211_v11 = vld [vmem:[#allocation30 + $0x134] sm:$0xf0]  ;;  %v3458_v53 = vadd.f32 %v3457_v50, %v3438_v34  ;;  %v5678_v20 = vld [vmem:[#allocation30 + $0x1d8] sm:$0xf0] }
 0x5bf   :  { %6366 = vrsqrt.f32 %v8055_v55  ;;  %4425 = vmatpush.bf16.msra.mxu3 %v5913_v12  ;;  %vm3535_vm11 = vcmp.eq.f32.partialorder %v8055_v55, inf  ;;  %v5849_v43 = vor.u32 %v6272_v45, %v5846_v36  ;;  %vm3537_vm12 = vcmp.eq.f32.partialorder %v8055_v55, 0.0  ;;  %v5772_v24 = vld [vmem:[#allocation30 + $0x288] sm:$0xf]  ;;  %v6255_v25 = vld [vmem:[#allocation30 + $0x294] sm:$0xf0] }
 0x5c0   :  { %4353 = vmatmul.bf16.vlgmr.msrb.gmra.mxu0 %v8057_v44  ;;  %v5597_v56 = vor.u32 %v6211_v11, %v5596_v47  ;;  %v5773_v31 = vor.u32 %v6255_v25, %v5772_v24  ;;  %v6181_v45 = vld [vmem:[#allocation30 + $0x4c] sm:$0xf]  ;;  %v5486_v36 = vld [vmem:[#allocation30 + $0x58] sm:$0xf0]  ;;  %v6247_v47 = vld [vmem:[#allocation30 + $0x254] sm:$0xf0] }
 0x5c1   :  { %4438 = vmatpush.bf16.msrb.mxu2 %v5533_v32  ;;  %4449 = vmatpush.bf16.msrb.mxu0 %v5693_v57  ;;  %v3538_v32 = vand.u32 2147483648, %v8055_v55  ;;  %v5820_v57 = vld [vmem:[#allocation30 + $0x2e8] sm:$0xf]  ;;  %v6177_v11 = vld [vmem:[#allocation30 + $0x2c] sm:$0xf] }
 0x5c2   :  { %v5821_v54 = vor.u32 %v6267_v38, %v5820_v57  ;;  %v5630_v50 = vld [vmem:[#allocation30 + $0x178] sm:$0xf0]  ;;  %v6205_v24 = vld [vmem:[#allocation30 + $0x10c] sm:$0xf] }
 0x5c3   :  { %4426 = vmatpush.bf16.msra.mxu3 %v5897_v61  ;;  %v6207_v61 = vld [vmem:[#allocation30 + $0x114] sm:$0xf0]  ;;  %v5582_v25 = vld [vmem:[#allocation30 + $0x118] sm:$0xf0] }
 0x5c5   :  { %v6367_v39 = vpop.eup %6366  ;;  %4439 = vmatpush.bf16.msrb.mxu2 %v5517_v49  ;;  %4450 = vmatpush.bf16.msrb.mxu0 %v5677_v6  ;;  %v6197_v49 = vld [vmem:[#allocation30 + $0xcc] sm:$0xf]  ;;  %v5550_v6 = vld [vmem:[#allocation30 + $0xd8] sm:$0xf0] }
 0x5c6   :  { %v3529_v1 = vmul.f32 %v6367_v39, %v8055_v55 }
 0x5c7   :  { %4427 = vmatpush.bf16.msra.mxu3 %v5881_v18  ;;  %v5788_v18 = vld [vmem:[#allocation30 + $0x2a8] sm:$0xf] }
 0x5c8   :  { %4392 = vmatmul.bf16.vlgmr.msra.gmra.mxu2 %v8046_v35  ;;  %v3530_v2 = vmul.f32 %v6367_v39, %v3529_v1  ;;  %v5694_v1 = vld [vmem:[#allocation30 + $0x1f8] sm:$0xf0]  ;;  %v5789_v21 = vor.u32 %v6259_v13, %v5788_v18 }
 0x5c9   :  { %4440 = vmatpush.bf16.msrb.mxu2 %v5501_v58  ;;  %4451 = vmatpush.bf16.msrb.mxu0 %v5661_v59  ;;  %v6263_v58 = vld [vmem:[#allocation30 + $0x2d4] sm:$0xf0]  ;;  %v5553_v59 = vor.u32 %v6197_v49, %v5550_v6  ;;  %v5470_v49 = vld [vmem:[#allocation30 + $0x38] sm:$0xf0]  ;;  %v6217_v6 = vld [vmem:[#allocation30 + $0x16c] sm:$0xf] }
 0x5ca   :  { %v3531_v15 = vmul.f32 0.5, %v3530_v2  ;;  %v3477_v2 = vpop.f32.mrf.mxu1 }
 0x5cb   :  { %4428 = vmatpush.bf16.msra.mxu3 %v5865_v26  ;;  %v3478_v3 = vadd.f32 %v3477_v2, %v3458_v53  ;;  %v6185_v26 = vld [vmem:[#allocation30 + $0x6c] sm:$0xf]  ;;  %v5473_v53 = vor.u32 %v6177_v11, %v5470_v49  ;;  %v6239_v2 = vld [vmem:[#allocation30 + $0x214] sm:$0xf0] }
 0x5cc   :  { %v3532_v17 = vsub.f32 1.5, %v3531_v15  ;;  %v5505_v33 = vor.u32 %v6185_v26, %v5502_v27  ;;  %v6283_v49 = vld [vmem:[#allocation30 + $0x374] sm:$0xf0] }
 0x5cd   :  { %4441 = vmatpush.bf16.msrb.mxu2 %v5485_v5  ;;  %4452 = vmatpush.bf16.msrb.mxu0 %v5645_v8  ;;  %v5581_v5 = vor.u32 %v6207_v61, %v5580_v60  ;;  %v6213_v60 = vld [vmem:[#allocation30 + $0x14c] sm:$0xf]  ;;  %v5614_v61 = vld [vmem:[#allocation30 + $0x158] sm:$0xf0] }
 0x5ce   :  { %v3533_v30 = vmul.f32 %v6367_v39, %v3532_v17  ;;  %v5804_v39 = vld [vmem:[#allocation30 + $0x2c8] sm:$0xf]  ;;  %v5518_v17 = vld [vmem:[#allocation30 + $0x98] sm:$0xf0] }
 0x5cf   :  { %4429 = vmatpush.bf16.msra.mxu3 %v5849_v43  ;;  %v5805_v4 = vor.u32 %v6263_v58, %v5804_v39  ;;  %v5489_v43 = vor.u32 %v6181_v45, %v5486_v36  ;;  %v6173_v39 = vld [vmem:[#allocation30 + $0xc] sm:$0xf]  ;;  %v6291_v45 = vld [vmem:[#allocation30 + $0x3b4] sm:$0xf0] }
 0x5d0   :  { %4405 = vmatmul.bf16.vlgmr.msra.gmra.mxu0 %v8057_v44  ;;  %v3534_v22 = vmul.f32 %v3533_v30, %v8055_v55  ;;  %v5662_v30 = vld [vmem:[#allocation30 + $0x1b8] sm:$0xf0]  ;;  %v6253_v36 = vld [vmem:[#allocation30 + $0x28c] sm:$0xf] }
 0x5d1   :  { %4442 = vmatpush.bf16.msrb.mxu2 %v5469_v23  ;;  %4453 = vmatpush.bf16.msrb.mxu0 %v5629_v40  ;;  %v5521_v23 = vor.u32 %v6189_v14, %v5518_v17  ;;  %v5681_v40 = vor.u32 %v6229_v19, %v5678_v20  ;;  %v5665_v34 = vor.u32 %v6225_v28, %v5662_v30  ;;  %v5948_v14 = vld [vmem:[#allocation30 + $0x3e8] sm:$0xf]  ;;  %v6299_v20 = vld [vmem:[#allocation30 + $0x3f4] sm:$0xf0] }
 0x5d2   :  { %v3536_v46 = vsel %vm3535_vm11, %v8055_v55, %v3534_v22  ;;  %v6251_v22 = vld [vmem:[#allocation30 + $0x274] sm:$0xf0]  ;;  %v5949_v27 = vor.u32 %v6299_v20, %v5948_v14  ;;  %v6285_v14 = vld [vmem:[#allocation30 + $0x38c] sm:$0xf]  ;;  %v5886_v20 = vld [vmem:[#allocation30 + $0x378] sm:$0xf0] }
 0x5d3   :  { %v3539_v48 = vsel %vm3537_vm12, %v3538_v32, %v3536_v46  ;;  %4430 = vmatpush.bf16.msra.mxu3 %v5833_v63  ;;  %v5646_v32 = vld [vmem:[#allocation30 + $0x198] sm:$0xf0]  ;;  %v5740_v46 = vld [vmem:[#allocation30 + $0x248] sm:$0xf] }
 0x5d4   :  { %v3554_v12 = vmul.f32 %v3539_v48, %v7991_v16  ;;  %v6233_v16 = vld [vmem:[#allocation30 + $0x1ec] sm:$0xf]  ;;  %v5741_v51 = vor.u32 %v6247_v47, %v5740_v46  ;;  %v5758_v46 = vld [vmem:[#allocation30 + $0x278] sm:$0xf0] }
 0x5d5   :  { %4443 = vmatpush.bf16.msrb.mxu2 %v5453_v37  ;;  %4454 = vmatpush.bf16.msrb.mxu0 %v5613_v7  ;;  %v5697_v10 = vor.u32 %v6233_v16, %v5694_v1  ;;  %v5756_v37 = vld [vmem:[#allocation30 + $0x268] sm:$0xf]  ;;  %v6221_v7 = vld [vmem:[#allocation30 + $0x18c] sm:$0xf]  ;;  %v5617_v16 = vor.u32 %v6213_v60, %v5614_v61  ;;  %v5710_v61 = vld [vmem:[#allocation30 + $0x218] sm:$0xf0] }
 0x5d6   :  { %v8070_v55 = vpack.c.bf16 %v3554_v12, %v3554_v12  ;;  %v5757_v38 = vor.u32 %v6251_v22, %v5756_v37  ;;  %v5708_v1 = vld [vmem:[#allocation30 + $0x208] sm:$0xf]  ;;  %v5790_v37 = vld [vmem:[#allocation30 + $0x2b8] sm:$0xf0]  ;;  %v6237_v60 = vld [vmem:[#allocation30 + $0x20c] sm:$0xf] }
 0x5d7   :  { %v5709_v18 = vor.u32 %v6239_v2, %v5708_v1  ;;  %v5916_v22 = vld [vmem:[#allocation30 + $0x3a8] sm:$0xf]  ;;  %v6297_v1 = vld [vmem:[#allocation30 + $0x3ec] sm:$0xf]  ;;  %v5950_v2 = vld [vmem:[#allocation30 + $0x3f8] sm:$0xf0] }
 0x5d8   :  { %4366 = vmatmul.bf16.vlgmr.msrb.gmra.mxu1 %v8070_v55  ;;  %4444 = vmatmul.bf16.vlgmr.msrb.gmra.mxu2 %v8046_v35 }
 0x5d9   :  { %4488 = vmatpush.bf16.msra.mxu2 %v5569_v42  ;;  %4462 = vmatpush.bf16.msrb.mxu1 %v5821_v54  ;;  %v5649_v42 = vor.u32 %v6221_v7, %v5646_v32  ;;  %v5633_v54 = vor.u32 %v6217_v6, %v5630_v50  ;;  %v5774_v7 = vld [vmem:[#allocation30 + $0x298] sm:$0xf0]  ;;  %v5917_v32 = vor.u32 %v6291_v45, %v5916_v22  ;;  %v6245_v6 = vld [vmem:[#allocation30 + $0x24c] sm:$0xf] }
 0x5da   :  { %4455 = vmatpush.bf16.msrb.mxu0 %v5597_v56  ;;  %v3497_v8 = vpop.f32.mrf.mxu3  ;;  %v6243_v56 = vld [vmem:[#allocation30 + $0x234] sm:$0xf0]  ;;  %v5742_v50 = vld [vmem:[#allocation30 + $0x258] sm:$0xf0] }
 0x5db   :  { %v3498_v15 = vadd.f32 %v3497_v8, %v3478_v3  ;;  %v5725_v63 = vor.u32 %v6243_v56, %v5724_v52  ;;  %v6265_v3 = vld [vmem:[#allocation30 + $0x2ec] sm:$0xf]  ;;  %v6279_v52 = vld [vmem:[#allocation30 + $0x354] sm:$0xf0] }
 0x5dc   :  { %v6209_v8 = vld [vmem:[#allocation30 + $0x12c] sm:$0xf] }
 0x5dd   :  { %4489 = vmatpush.bf16.msra.mxu2 %v5553_v59  ;;  %v8074_v29 = vmax.f32 %v3498_v15, 1e-06  ;;  %4463 = vmatpush.bf16.msrb.mxu1 %v5805_v4  ;;  %v5454_v59 = vld [vmem:[#allocation30 + $0x18] sm:$0xf0] }
 0x5de   :  { %4456 = vmatpush.bf16.msrb.mxu0 %v5581_v5  ;;  %v5457_v0 = vor.u32 %v6173_v39, %v5454_v59  ;;  %v5822_v5 = vld [vmem:[#allocation30 + $0x2f8] sm:$0xf0]  ;;  %v6275_v59 = vld [vmem:[#allocation30 + $0x334] sm:$0xf0] }
 0x5df   :  { %6368 = vrsqrt.f32 %v8074_v29  ;;  %vm3547_vm13 = vcmp.eq.f32.partialorder %v8074_v29, inf  ;;  %v3550_v13 = vand.u32 2147483648, %v8074_v29  ;;  %v5825_v15 = vor.u32 %v6265_v3, %v5822_v5  ;;  %v6293_v5 = vld [vmem:[#allocation30 + $0x3cc] sm:$0xf] }
 0x5e0   :  { %vm3549_vm14 = vcmp.eq.f32.partialorder %v8074_v29, 0.0 }
 0x5e1   :  { %4490 = vmatpush.bf16.msra.mxu2 %v5537_v9  ;;  %4457 = vmatmul.bf16.vlgmr.msrb.gmra.mxu0 %v8057_v44  ;;  %v5598_v9 = vld [vmem:[#allocation30 + $0x138] sm:$0xf0] }
 0x5e2   :  { %4501 = vmatpush.bf16.msra.mxu0 %v5697_v10  ;;  %4464 = vmatpush.bf16.msrb.mxu1 %v5789_v21  ;;  %v5601_v17 = vor.u32 %v6209_v8, %v5598_v9  ;;  %v6261_v21 = vld [vmem:[#allocation30 + $0x2cc] sm:$0xf]  ;;  %v5934_v8 = vld [vmem:[#allocation30 + $0x3d8] sm:$0xf0] }
 0x5e3   :  { %v5937_v9 = vor.u32 %v6293_v5, %v5934_v8 }
 0x5e5   :  { %4491 = vmatpush.bf16.msra.mxu2 %v5521_v23  ;;  %v6369_v57 = vpop.eup %6368 }
 0x5e6   :  { %4502 = vmatpush.bf16.msra.mxu0 %v5681_v40  ;;  %4465 = vmatpush.bf16.msrb.mxu1 %v5773_v31  ;;  %v3541_v48 = vmul.f32 %v6369_v57, %v8074_v29  ;;  %v5806_v40 = vld [vmem:[#allocation30 + $0x2d8] sm:$0xf0]  ;;  %v5585_v31 = vor.u32 %v6205_v24, %v5582_v25  ;;  %v6273_v24 = vld [vmem:[#allocation30 + $0x32c] sm:$0xf] }
 0x5e7   :  { %v5809_v30 = vor.u32 %v6261_v21, %v5806_v40  ;;  %v5870_v40 = vld [vmem:[#allocation30 + $0x358] sm:$0xf0] }
 0x5e8   :  { %4418 = vmatmul.bf16.vlgmr.msra.gmra.mxu1 %v8070_v55  ;;  %v3542_v12 = vmul.f32 %v6369_v57, %v3541_v48  ;;  %v5884_v48 = vld [vmem:[#allocation30 + $0x368] sm:$0xf]  ;;  %v5854_v25 = vld [vmem:[#allocation30 + $0x338] sm:$0xf0] }
 0x5e9   :  { %4492 = vmatpush.bf16.msra.mxu2 %v5505_v33  ;;  %v5932_v33 = vld [vmem:[#allocation30 + $0x3c8] sm:$0xf] }
 0x5ea   :  { %4503 = vmatpush.bf16.msra.mxu0 %v5665_v34  ;;  %4466 = vmatpush.bf16.msrb.mxu1 %v5757_v38  ;;  %v3543_v58 = vmul.f32 0.5, %v3542_v12  ;;  %v6257_v34 = vld [vmem:[#allocation30 + $0x2ac] sm:$0xf]  ;;  %v5900_v38 = vld [vmem:[#allocation30 + $0x388] sm:$0xf]  ;;  %v5885_v12 = vor.u32 %v6283_v49, %v5884_v48 }
 0x5ec   :  { %v3544_v62 = vsub.f32 1.5, %v3543_v58  ;;  %v5852_v58 = vld [vmem:[#allocation30 + $0x328] sm:$0xf] }
 0x5ed   :  { %4493 = vmatpush.bf16.msra.mxu2 %v5489_v43  ;;  %v6287_v43 = vld [vmem:[#allocation30 + $0x394] sm:$0xf0] }
 0x5ee   :  { %4504 = vmatpush.bf16.msra.mxu0 %v5649_v42  ;;  %4467 = vmatpush.bf16.msrb.mxu1 %v5741_v51  ;;  %v3545_v4 = vmul.f32 %v6369_v57, %v3544_v62  ;;  %v5777_v57 = vor.u32 %v6253_v36, %v5774_v7  ;;  %v6249_v42 = vld [vmem:[#allocation30 + $0x26c] sm:$0xf]  ;;  %v5901_v47 = vor.u32 %v6287_v43, %v5900_v38 }
 0x5ef   :  { %v5761_v11 = vor.u32 %v6249_v42, %v5758_v46  ;;  %v5745_v51 = vor.u32 %v6245_v6, %v5742_v50  ;;  %v5853_v62 = vor.u32 %v6275_v59, %v5852_v58 }
 0x5f0   :  { %v3546_v10 = vmul.f32 %v3545_v4, %v8074_v29  ;;  %v5953_v4 = vor.u32 %v6297_v1, %v5950_v2 }
 0x5f1   :  { %4494 = vmatpush.bf16.msra.mxu2 %v5473_v53  ;;  %v6241_v53 = vld [vmem:[#allocation30 + $0x22c] sm:$0xf] }
 0x5f2   :  { %4505 = vmatpush.bf16.msra.mxu0 %v5633_v54  ;;  %4468 = vmatpush.bf16.msrb.mxu1 %v5725_v63  ;;  %v3548_v19 = vsel %vm3547_vm13, %v8074_v29, %v3546_v10  ;;  %v6295_v29 = vld [vmem:[#allocation30 + $0x3d4] sm:$0xf0]  ;;  %v5726_v54 = vld [vmem:[#allocation30 + $0x238] sm:$0xf0]  ;;  %v5713_v63 = vor.u32 %v6237_v60, %v5710_v61  ;;  %v6289_v10 = vld [vmem:[#allocation30 + $0x3ac] sm:$0xf] }
 0x5f3   :  { %v3551_v23 = vsel %vm3549_vm14, %v3550_v13, %v3548_v19  ;;  %v5729_v39 = vor.u32 %v6241_v53, %v5726_v54  ;;  %v6281_v19 = vld [vmem:[#allocation30 + $0x36c] sm:$0xf] }
 0x5f4   :  { %v3555_v26 = vmul.f32 %v3551_v23, %v8017_v41  ;;  %v5933_v41 = vor.u32 %v6295_v29, %v5932_v33  ;;  %v5889_v21 = vor.u32 %v6281_v19, %v5886_v20  ;;  %v6277_v23 = vld [vmem:[#allocation30 + $0x34c] sm:$0xf] }
 0x5f5   :  { %4495 = vmatpush.bf16.msra.mxu2 %v5457_v0  ;;  %v5836_v0 = vld [vmem:[#allocation30 + $0x308] sm:$0xf] }
 0x5f6   :  { %4506 = vmatpush.bf16.msra.mxu0 %v5617_v16  ;;  %4469 = vmatpush.bf16.msrb.mxu1 %v5709_v18  ;;  %v8087_v28 = vpack.c.bf16 %v3555_v26, %v3555_v26  ;;  %v6271_v16 = vld [vmem:[#allocation30 + $0x314] sm:$0xf0]  ;;  %v5918_v18 = vld [vmem:[#allocation30 + $0x3b8] sm:$0xf0]  ;;  %v5857_v26 = vor.u32 %v6273_v24, %v5854_v25  ;;  %v3689_v53 = vld [vmem:[#allocation31 + $0x8] sm:$0xff] }
 0x5f7   :  { %v5837_v3 = vor.u32 %v6271_v16, %v5836_v0  ;;  %v5921_v13 = vor.u32 %v6289_v10, %v5918_v18 }
 0x5f8   :  { %4496 = vmatmul.bf16.vlgmr.msra.gmra.mxu2 %v8046_v35  ;;  %4379 = vmatmul.bf16.vlgmr.msrb.gmra.mxu3 %v8087_v28  ;;  %v5793_v35 = vor.u32 %v6257_v34, %v5790_v37 }
 0x5f9   :  { %4470 = vmatmul.bf16.vlgmr.msrb.gmra.mxu1 %v8070_v55  ;;  %4475 = vmatpush.bf16.msrb.mxu3 %v5949_v27  ;;  %v6269_v27 = vld [vmem:[#allocation30 + $0x30c] sm:$0xf] }
 0x5fa   :  { %4514 = vmatpush.bf16.msra.mxu1 %v5825_v15  ;;  %4507 = vmatpush.bf16.msra.mxu0 %v5601_v17  ;;  %v5902_v15 = vld [vmem:[#allocation30 + $0x398] sm:$0xf0] }
 0x5fb   :  { %v5905_v17 = vor.u32 %v6285_v14, %v5902_v15 }
 0x5fd   :  { %4476 = vmatpush.bf16.msrb.mxu3 %v5933_v41 }
 0x5fe   :  { %4515 = vmatpush.bf16.msra.mxu1 %v5809_v30  ;;  %4508 = vmatpush.bf16.msra.mxu0 %v5585_v31  ;;  %v5838_v30 = vld [vmem:[#allocation30 + $0x318] sm:$0xf0] }
 0x5ff   :  { %v5841_v31 = vor.u32 %v6269_v27, %v5838_v30 }
 0x601   :  { %4509 = vmatmul.bf16.vlgmr.msra.gmra.mxu0 %v8057_v44  ;;  %4477 = vmatpush.bf16.msrb.mxu3 %v5917_v32  ;;  %v5868_v44 = vld [vmem:[#allocation30 + $0x348] sm:$0xf] }
 0x602   :  { %4516 = vmatpush.bf16.msra.mxu1 %v5793_v35  ;;  %v5869_v56 = vor.u32 %v6279_v52, %v5868_v44 }
 0x605   :  { %4478 = vmatpush.bf16.msrb.mxu3 %v5901_v47  ;;  %v3688_v47 = vld [vmem:[#allocation31] sm:$0xff] }
 0x606   :  { %4517 = vmatpush.bf16.msra.mxu1 %v5777_v57 }
 0x608   :  { %4431 = vmatmul.bf16.vlgmr.msra.gmra.mxu3 %v8087_v28 }
 0x609   :  { %4479 = vmatpush.bf16.msrb.mxu3 %v5885_v12 }
 0x60a   :  { %4518 = vmatpush.bf16.msra.mxu1 %v5761_v11 }
 0x60d   :  { %4480 = vmatpush.bf16.msrb.mxu3 %v5869_v56 }
 0x60e   :  { %4519 = vmatpush.bf16.msra.mxu1 %v5745_v51 }
 0x611   :  { %4481 = vmatpush.bf16.msrb.mxu3 %v5853_v62  ;;  %v3690_v62 = vld [vmem:[#allocation31 + $0x10] sm:$0xff] }
 0x612   :  { %4520 = vmatpush.bf16.msra.mxu1 %v5729_v39 }
 0x615   :  { %4482 = vmatpush.bf16.msrb.mxu3 %v5837_v3 }
 0x616   :  { %4521 = vmatpush.bf16.msra.mxu1 %v5713_v63 }
 0x618   :  { %4483 = vmatmul.bf16.vlgmr.msrb.gmra.mxu3 %v8087_v28 }
 0x619   :  { %4522 = vmatmul.bf16.vlgmr.msra.gmra.mxu1 %v8070_v55  ;;  %4527 = vmatpush.bf16.msra.mxu3 %v5953_v4  ;;  %v5873_v55 = vor.u32 %v6277_v23, %v5870_v40 }
 0x61d   :  { %4528 = vmatpush.bf16.msra.mxu3 %v5937_v9  ;;  %v3691_v9 = vld [vmem:[#allocation31 + $0x18] sm:$0xff] }
 0x621   :  { %4529 = vmatpush.bf16.msra.mxu3 %v5921_v13 }
 0x625   :  { %4530 = vmatpush.bf16.msra.mxu3 %v5905_v17 }
 0x629   :  { %4531 = vmatpush.bf16.msra.mxu3 %v5889_v21 }
 0x62d   :  { %4532 = vmatpush.bf16.msra.mxu3 %v5873_v55 }
 0x631   :  { %4533 = vmatpush.bf16.msra.mxu3 %v5857_v26 }
 0x635   :  { %4534 = vmatpush.bf16.msra.mxu3 %v5841_v31 }
 0x638   :  { %4535 = vmatmul.bf16.vlgmr.msra.gmra.mxu3 %v8087_v28 }
 0x63b   :  { %v4341_v33 = vpop.f32.mrf.mxu2 }
 0x63c   :  { %v4342_v11 = vadd.f32 %v4341_v33, %v3688_v47 }
 0x63d   :  { %v4354_v29 = vpop.f32.mrf.mxu0 }
 0x63e   :  { %v4355_v28 = vadd.f32 %v4354_v29, %v4342_v11 }
 0x643   :  { %v4343_v34 = vpop.f32.mrf.mxu2 }
 0x645   :  { %v4356_v37 = vpop.f32.mrf.mxu0 }
 0x64b   :  { %v4393_v41 = vpop.f32.mrf.mxu2 }
 0x64c   :  { %v4394_v39 = vadd.f32 %v4393_v41, %v3689_v53 }
 0x64d   :  { %v4406_v35 = vpop.f32.mrf.mxu0 }
 0x64e   :  { %v4407_v58 = vadd.f32 %v4406_v35, %v4394_v39 }
 0x653   :  { %v4395_v22 = vpop.f32.mrf.mxu2 }
 0x655   :  { %v4367_v45 = vpop.f32.mrf.mxu1  ;;  %v4408_v36 = vpop.f32.mrf.mxu0 }
 0x656   :  { %v4368_v6 = vadd.f32 %v4367_v45, %v4355_v28 }
 0x65b   :  { %v4445_v7 = vpop.f32.mrf.mxu2 }
 0x65c   :  { %v4446_v16 = vadd.f32 %v4445_v7, %v3690_v62 }
 0x65d   :  { %v4369_v32 = vpop.f32.mrf.mxu1 }
 0x65e   :  { %v4458_v57 = vpop.f32.mrf.mxu0 }
 0x65f   :  { %v4459_v1 = vadd.f32 %v4458_v57, %v4446_v16 }
 0x663   :  { %v4447_v38 = vpop.f32.mrf.mxu2 }
 0x665   :  { %v4419_v43 = vpop.f32.mrf.mxu1 }
 0x666   :  { %v4460_v42 = vpop.f32.mrf.mxu0  ;;  %v4420_v59 = vadd.f32 %v4419_v43, %v4407_v58 }
 0x66d   :  { %v4421_v46 = vpop.f32.mrf.mxu1 }
 0x676   :  { %v4471_v48 = vpop.f32.mrf.mxu1 }
 0x677   :  { %v4472_v2 = vadd.f32 %v4471_v48, %v4459_v1 }
 0x67b   :  { %v4497_v49 = vpop.f32.mrf.mxu2  ;;  %v4380_v12 = vpop.f32.mrf.mxu3 }
 0x67c   :  { %v4381_v51 = vadd.f32 %v4380_v12, %v4368_v6  ;;  %v4498_v10 = vadd.f32 %v4497_v49, %v3691_v9 }
 0x67e   :  { %v4510_v50 = vpop.f32.mrf.mxu0  ;;  %v4473_v44 = vpop.f32.mrf.mxu1  ;;  %4540 = vst [vmem:[%s8163_s1] sm:$0xff] %v4381_v51 }
 0x67f   :  { %v4511_v18 = vadd.f32 %v4510_v50, %v4498_v10 }
 0x683   :  { %v4499_v52 = vpop.f32.mrf.mxu2  ;;  %v4382_v56 = vpop.f32.mrf.mxu3 }
 0x686   :  { %v4512_v54 = vpop.f32.mrf.mxu0 }
 0x68b   :  { %v4432_v60 = vpop.f32.mrf.mxu3 }
 0x68c   :  { %v4433_v61 = vadd.f32 %v4432_v60, %v4420_v59 }
 0x68e   :  { %4541 = vst [vmem:[%s8163_s1 + $0x8] sm:$0xff] %v4433_v61 }
 0x693   :  { %v4434_v0 = vpop.f32.mrf.mxu3 }
 0x696   :  { %v4523_v63 = vpop.f32.mrf.mxu1 }
 0x697   :  { %v4524_v13 = vadd.f32 %v4523_v63, %v4511_v18 }
 0x69b   :  { %v4484_v4 = vpop.f32.mrf.mxu3 }
 0x69c   :  { %v4485_v5 = vadd.f32 %v4484_v4, %v4472_v2 }
 0x69e   :  { %v4525_v3 = vpop.f32.mrf.mxu1  ;;  %4542 = vst [vmem:[%s8163_s1 + $0x10] sm:$0xff] %v4485_v5 }
 0x6a3   :  { %v4486_v8 = vpop.f32.mrf.mxu3 }
 0x6bb   :  { %v4536_v14 = vpop.f32.mrf.mxu3 }
 0x6bc   :  { %v4537_v15 = vadd.f32 %v4536_v14, %v4524_v13 }
 0x6be   :  { %4543 = vst [vmem:[%s8163_s1 + $0x18] sm:$0xff] %v4537_v15 }
 0x6c3   :  { %v4538_v17 = vpop.f32.mrf.mxu3 }
 0x6c4   :  { %4556 = vsyncpa [#allocation3], 1 }
 0x6c5   :  { %4557 = vsyncpa [#allocation5], 1 }
 0x6c6   :  { %4558 = vsyncpa [#allocation8], 1 }
 0x6c7   :  { %4559 = vsyncpa [#allocation11], 1 }
 0x6c8   :  { %4560 = vsyncpa [#allocation14], 1 }
 0x6c9   :  { %4561 = vsyncpa [#allocation17], 1 }
 0x6ca   :  { %4562 = vsyncpa [#allocation20], 1 }
 0x6cb   :  { %4563 = vsyncpa [#allocation23], 1 }
 0x6cc   :  { %4564 = vsyncpa [#allocation26], 1 }
 0x6cd   :  { %4565 = vsyncpa [#allocation29], 1 }
 0x6ce   :  { %4566 = vsyncpa [#allocation32], 1 }

</bundles_post_ra>
